<compile_context>
chip_gen: v7x
topology: tpu7x:2x2x1
jax: 0.10.0
libtpu: 0.0.40
codegen_flags: <defaults>
</compile_context>

<pallas_src>
import jax
import jax.numpy as jnp
from jax import lax
from jax.experimental import pallas as pl
from jax.experimental.pallas import tpu as pltpu

N_EMBD = 384
N_HEAD = 6
HEAD_SIZE = N_EMBD // N_HEAD          # 64
FF_HIDDEN = 4 * N_EMBD                # 1536
BLOCK_SIZE = 256                      # max T supported by the causal mask
LN_EPS = 1e-5                         # torch.nn.LayerNorm default
MASK_BIAS = -1e30                     # additive causal-mask bias


def _layernorm(x, gamma, beta):
    mean = jnp.mean(x, axis=-1, keepdims=True)
    var = jnp.mean(jnp.square(x - mean), axis=-1, keepdims=True)
    return (x - mean) * lax.rsqrt(var + LN_EPS) * gamma + beta


def block_kernel(x_ref, g1_ref, be1_ref, wqkv_ref, wproj_ref, bproj_ref,
                 g2_ref, be2_ref, w1_ref, bb1_ref, w2_ref, bb2_ref, o_ref):
    # One (Bb, T, C) batch-pack per grid step; fold (Bb, T) -> rows for the
    # dense matmuls so the MXU sees Bb*T rows instead of T.
    Bb, T, C = x_ref.shape
    x2d = x_ref[...].reshape(Bb * T, C)                         # f32

    # ---- LayerNorm 1 (f32 elementwise; cast only at dot boundaries) ----
    ln1 = _layernorm(x2d, g1_ref[0], be1_ref[0])

    # ---- Fused QKV projection: one (Bb*T, C) x (C, 3C) bf16 matmul ----
    # NOTE: the 1/sqrt(n_embd) attention scale (PyTorch scales by n_embd**-0.5,
    # not head_size**-0.5) is pre-folded into the Q columns of wqkv at init.
    qkv = jnp.dot(ln1.astype(jnp.bfloat16), wqkv_ref[...],
                  preferred_element_type=jnp.float32)           # (Bb*T, 3C) f32

    q = qkv[:, :C].reshape(Bb, T, C).astype(jnp.bfloat16)
    k = qkv[:, C:2 * C].reshape(Bb, T, C).astype(jnp.bfloat16)
    v = qkv[:, 2 * C:].reshape(Bb, T, C).astype(jnp.bfloat16)

    # Additive causal mask, built once (0 on/below diagonal, -1e30 above).
    # The diagonal is always admitted so softmax stays well defined.
    row = lax.broadcasted_iota(jnp.int32, (T, T), 0)
    col = lax.broadcasted_iota(jnp.int32, (T, T), 1)
    mask_bias = jnp.where(col <= row, 0.0, MASK_BIAS).astype(jnp.float32)[None]

    wproj = wproj_ref[...]                                      # (C, C) bf16

    # ---- Per-head causal attention, folded straight into the output proj ----
    # sum_h out_h @ Wproj[h*64:(h+1)*64, :] == concat_h(out_h) @ Wproj, so the
    # 64-lane head outputs never hit VMEM as masked partial stores.
    proj = jnp.zeros((Bb * T, C), jnp.float32)
    for h in range(N_HEAD):                                     # static, 6 heads
        s = slice(h * HEAD_SIZE, (h + 1) * HEAD_SIZE)
        qh, kh, vh = q[:, :, s], k[:, :, s], v[:, :, s]         # (Bb, T, 64) bf16
        # Contraction on last dim: no materialized K transpose.
        wei = jnp.einsum("bqd,bkd->bqk", qh, kh,
                         preferred_element_type=jnp.float32)    # (Bb, T, T) f32
        wei = wei + mask_bias
        wei = wei - jnp.max(wei, axis=-1, keepdims=True)
        p = jnp.exp(wei)
        p = p * pl.reciprocal(jnp.sum(p, axis=-1, keepdims=True), approx=True)
        out_h = jnp.einsum("bqk,bkd->bqd", p.astype(jnp.bfloat16), vh,
                           preferred_element_type=jnp.float32)  # (Bb, T, 64) f32
        proj = proj + jnp.dot(
            out_h.reshape(Bb * T, HEAD_SIZE).astype(jnp.bfloat16),
            wproj[s, :], preferred_element_type=jnp.float32)    # (Bb*T, C) f32

    # ---- Residual 1 ----
    x1 = x2d + proj + bproj_ref[0]

    # ---- LayerNorm 2 + FeedForward + residual 2 ----
    ln2 = _layernorm(x1, g2_ref[0], be2_ref[0])
    h1 = jnp.dot(ln2.astype(jnp.bfloat16), w1_ref[...],
                 preferred_element_type=jnp.float32) + bb1_ref[0]
    h1 = jnp.maximum(h1, 0.0)                                   # ReLU
    ff = jnp.dot(h1.astype(jnp.bfloat16), w2_ref[...],
                 preferred_element_type=jnp.float32) + bb2_ref[0]

    o_ref[...] = (x1 + ff).reshape(Bb, T, C)


def _vmem_capacity_bytes():
    try:
        return int(pltpu.get_tpu_info().vmem_capacity_bytes)
    except Exception:
        return 64 << 20          # conservative fallback (v7x-sized VMEM)


def _pick_block_batch(B, T, vmem_bytes):
    """Batch rows per grid step.

    Hard rule: when B >= 2 keep >= 2 grid steps so a megacore chip (v7x, 2 TCs)
    can shard the "parallel" grid axis; on 1-TC chips the extra step is ~0.35us.
    Within that, pick the largest Bb whose row count (Bb*T) fits a VMEM-derived
    cap: 512 rows on 64 MiB chips (v7x), 1024 rows on 128 MiB chips (v5e/v6e).
    """
    row_cap = 1024 if vmem_bytes >= (96 << 20) else 512
    candidates = [bb for bb in range(1, B + 1) if B % bb == 0]
    if B >= 2:
        multi = [bb for bb in candidates if B // bb >= 2]
        if multi:
            candidates = multi
    fitting = [bb for bb in candidates if bb * T <= row_cap]
    return max(fitting) if fitting else min(candidates)


def _cost_estimate(B, T):
    C, H, D = N_EMBD, N_HEAD, HEAD_SIZE
    flops = 2 * B * T * C * (3 * C)             # fused QKV projection
    flops += 2 * B * H * T * T * D * 2          # attention scores + attn @ V
    flops += 2 * B * T * C * C                  # output projection
    flops += 2 * B * T * C * FF_HIDDEN * 2      # feed-forward (two matmuls)
    transcendentals = B * H * T * T             # softmax exp
    weight_bytes = 2 * (C * 3 * C + C * C + 2 * C * FF_HIDDEN)   # bf16 weights
    act_bytes = 4 * (2 * B * T * C)                              # x in + out, f32
    return pl.CostEstimate(flops=flops, transcendentals=transcendentals,
                           bytes_accessed=act_bytes + weight_bytes)


def block_forward(x, p):
    B, T, C = x.shape
    assert C == N_EMBD and T <= BLOCK_SIZE
    vmem_cap = _vmem_capacity_bytes()
    Bb = _pick_block_batch(B, T, vmem_cap)
    # 32 MiB scoped limit on 64 MiB-VMEM chips (v7x); 80 MiB on 128 MiB chips.
    vmem_limit = (80 << 20) if vmem_cap >= (96 << 20) else (32 << 20)

    def const(shape):
        nd = len(shape)
        return pl.BlockSpec(shape, lambda b, _nd=nd: (0,) * _nd)

    in_specs = [
        pl.BlockSpec((Bb, T, C), lambda b: (b, 0, 0)),     # x
        const((1, C)), const((1, C)),                      # ln1 gamma/beta (f32)
        const((C, 3 * C)),                                 # fused Wqkv (bf16, Q pre-scaled)
        const((C, C)), const((1, C)),                      # Wproj (bf16), bproj (f32)
        const((1, C)), const((1, C)),                      # ln2 gamma/beta (f32)
        const((C, FF_HIDDEN)), const((1, FF_HIDDEN)),      # FF W1 (bf16), b1 (f32)
        const((FF_HIDDEN, C)), const((1, C)),              # FF W2 (bf16), b2 (f32)
    ]
    out_spec = pl.BlockSpec((Bb, T, C), lambda b: (b, 0, 0))

    return pl.pallas_call(
        block_kernel,
        out_shape=jax.ShapeDtypeStruct((B, T, C), jnp.float32),
        grid_spec=pltpu.PrefetchScalarGridSpec(
            num_scalar_prefetch=0,
            grid=(B // Bb,),
            in_specs=in_specs,
            out_specs=out_spec,
        ),
        compiler_params=pltpu.CompilerParams(
            dimension_semantics=("parallel",),
            vmem_limit_bytes=vmem_limit,
        ),
        cost_estimate=_cost_estimate(B, T),
    )(x, p["g1"], p["be1"], p["wqkv"], p["wproj"], p["bproj"],
      p["g2"], p["be2"], p["w1"], p["bb1"], p["w2"], p["bb2"])


def reference_forward(x, p):
    """Pure-JAX f32 reference matching the PyTorch Block forward semantics.

    The PyTorch attention scale (n_embd**-0.5) is already folded into the Q
    columns of p['wqkv'] (an equivalent reparameterization done once at init),
    so no extra scale is applied here.
    """
    def ln(y, g, b):
        m = y.mean(-1, keepdims=True)
        v = ((y - m) ** 2).mean(-1, keepdims=True)
        return (y - m) / jnp.sqrt(v + LN_EPS) * g + b

    B, T, C = x.shape
    wqkv = p["wqkv"].astype(jnp.float32)
    wq, wk, wv = wqkv[:, :C], wqkv[:, C:2 * C], wqkv[:, 2 * C:]
    wproj = p["wproj"].astype(jnp.float32)
    w1 = p["w1"].astype(jnp.float32)
    w2 = p["w2"].astype(jnp.float32)

    ln1 = ln(x, p["g1"][0], p["be1"][0])
    q = ln1 @ wq                                   # scale pre-folded into wq
    k = ln1 @ wk
    v = ln1 @ wv
    qh = q.reshape(B, T, N_HEAD, HEAD_SIZE).transpose(0, 2, 1, 3)
    kh = k.reshape(B, T, N_HEAD, HEAD_SIZE).transpose(0, 2, 1, 3)
    vh = v.reshape(B, T, N_HEAD, HEAD_SIZE).transpose(0, 2, 1, 3)
    wei = jnp.einsum("bhqd,bhkd->bhqk", qh, kh)
    mask = jnp.tril(jnp.ones((T, T), bool))
    wei = jnp.where(mask, wei, -jnp.inf)
    wei = jax.nn.softmax(wei, axis=-1)
    out = jnp.einsum("bhqk,bhkd->bhqd", wei, vh)
    out = out.transpose(0, 2, 1, 3).reshape(B, T, C)
    x1 = x + (out @ wproj + p["bproj"][0])
    ln2 = ln(x1, p["g2"][0], p["be2"][0])
    ff = jnp.maximum(ln2 @ w1 + p["bb1"][0], 0.0) @ w2 + p["bb2"][0]
    return x1 + ff


def init_params(key):
    ks = jax.random.split(key, 8)
    s = 0.02
    scale = 1.0 / jnp.sqrt(jnp.float32(N_EMBD))    # PyTorch scales by n_embd**-0.5
    wq = s * jax.random.normal(ks[0], (N_EMBD, N_EMBD), jnp.float32)
    wk = s * jax.random.normal(ks[1], (N_EMBD, N_EMBD), jnp.float32)
    wv = s * jax.random.normal(ks[2], (N_EMBD, N_EMBD), jnp.float32)
    return {
        "g1": jnp.ones((1, N_EMBD), jnp.float32),
        "be1": jnp.zeros((1, N_EMBD), jnp.float32),
        # matmul weights stored in bf16 (halved DMA/VMEM); biases & LN params f32.
        # Attention scale folded into the Q columns once here (host-side prep),
        # so the kernel never pays a (rows, 384) VPU multiply for it.
        "wqkv": jnp.concatenate([wq * scale, wk, wv], axis=1).astype(jnp.bfloat16),
        "wproj": (s * jax.random.normal(ks[3], (N_EMBD, N_EMBD), jnp.float32)
                  ).astype(jnp.bfloat16),
        "bproj": s * jax.random.normal(ks[4], (1, N_EMBD), jnp.float32),
        "g2": jnp.ones((1, N_EMBD), jnp.float32),
        "be2": jnp.zeros((1, N_EMBD), jnp.float32),
        "w1": (s * jax.random.normal(ks[5], (N_EMBD, FF_HIDDEN), jnp.float32)
               ).astype(jnp.bfloat16),
        "bb1": jnp.zeros((1, FF_HIDDEN), jnp.float32),
        "w2": (s * jax.random.normal(ks[6], (FF_HIDDEN, N_EMBD), jnp.float32)
               ).astype(jnp.bfloat16),
        "bb2": jnp.zeros((1, N_EMBD), jnp.float32),
    }


if __name__ == "__main__":
    key = jax.random.PRNGKey(0)
    pkey, xkey = jax.random.split(key)
    params = init_params(pkey)

    B, T = 2, 64                       # small shapes; C is fixed to n_embd=384
    x = jax.random.normal(xkey, (B, T, N_EMBD), jnp.float32)

    out = jax.block_until_ready(block_forward(x, params))
    ref = jax.block_until_ready(reference_forward(x, params))

    assert out.shape == (B, T, N_EMBD)
    # Tolerance loosened vs. pure f32: bf16 matmul operands (f32 accumulation)
    # + EUP approx reciprocal in the softmax denominator.
    max_err = float(jnp.max(jnp.abs(out - ref)))
    assert jnp.allclose(out, ref, atol=3e-2, rtol=3e-2), \
        f"mismatch vs reference (max abs err {max_err})"
    print("KERNEL_OK")
</pallas_src>

<mosaic_0001>
module attributes {stable_mosaic.version = 11 : i64} {
  func.func @block_kernel(%arg0: i32, %arg1: memref<1x64x384xf32, #tpu.memory_space<vmem>>, %arg2: memref<1x384xf32, #tpu.memory_space<vmem>>, %arg3: memref<1x384xf32, #tpu.memory_space<vmem>>, %arg4: memref<384x1152xbf16, #tpu.memory_space<vmem>>, %arg5: memref<384x384xbf16, #tpu.memory_space<vmem>>, %arg6: memref<1x384xf32, #tpu.memory_space<vmem>>, %arg7: memref<1x384xf32, #tpu.memory_space<vmem>>, %arg8: memref<1x384xf32, #tpu.memory_space<vmem>>, %arg9: memref<384x1536xbf16, #tpu.memory_space<vmem>>, %arg10: memref<1x1536xf32, #tpu.memory_space<vmem>>, %arg11: memref<1536x384xbf16, #tpu.memory_space<vmem>>, %arg12: memref<1x384xf32, #tpu.memory_space<vmem>>, %arg13: memref<1x64x384xf32, #tpu.memory_space<vmem>>) attributes {dimension_semantics = [#tpu.dimension_semantics<parallel>], iteration_bounds = array<i64: 2>, scalar_prefetch = 0 : i64, scratch_operands = 0 : i64, tpu.core_type = #tpu.core_type<tc>, window_params = [{transform_indices = @transform_0, window_bounds = array<i64: 1, 64, 384>}, {pipeline_mode = #tpu.pipeline_mode<synchronous>, transform_indices = @transform_1, window_bounds = array<i64: 1, 384>}, {pipeline_mode = #tpu.pipeline_mode<synchronous>, transform_indices = @transform_2, window_bounds = array<i64: 1, 384>}, {pipeline_mode = #tpu.pipeline_mode<synchronous>, transform_indices = @transform_3, window_bounds = array<i64: 384, 1152>}, {pipeline_mode = #tpu.pipeline_mode<synchronous>, transform_indices = @transform_4, window_bounds = array<i64: 384, 384>}, {pipeline_mode = #tpu.pipeline_mode<synchronous>, transform_indices = @transform_5, window_bounds = array<i64: 1, 384>}, {pipeline_mode = #tpu.pipeline_mode<synchronous>, transform_indices = @transform_6, window_bounds = array<i64: 1, 384>}, {pipeline_mode = #tpu.pipeline_mode<synchronous>, transform_indices = @transform_7, window_bounds = array<i64: 1, 384>}, {pipeline_mode = #tpu.pipeline_mode<synchronous>, transform_indices = @transform_8, window_bounds = array<i64: 384, 1536>}, {pipeline_mode = #tpu.pipeline_mode<synchronous>, transform_indices = @transform_9, window_bounds = array<i64: 1, 1536>}, {pipeline_mode = #tpu.pipeline_mode<synchronous>, transform_indices = @transform_10, window_bounds = array<i64: 1536, 384>}, {pipeline_mode = #tpu.pipeline_mode<synchronous>, transform_indices = @transform_11, window_bounds = array<i64: 1, 384>}, {transform_indices = @transform_12, window_bounds = array<i64: 1, 64, 384>}]} {
    %c0 = arith.constant 0 : index
    %c0_0 = arith.constant 0 : index
    %c0_1 = arith.constant 0 : index
    %0 = vector.load %arg1[%c0, %c0_0, %c0_1] : memref<1x64x384xf32, #tpu.memory_space<vmem>>, vector<1x64x384xf32>
    %1 = vector.shape_cast %0 : vector<1x64x384xf32> to vector<64x384xf32>
    %c0_2 = arith.constant 0 : index
    %c0_3 = arith.constant 0 : index
    %2 = vector.load %arg2[%c0_2, %c0_3] : memref<1x384xf32, #tpu.memory_space<vmem>>, vector<1x384xf32>
    %3 = vector.shape_cast %2 : vector<1x384xf32> to vector<384xf32>
    %c0_4 = arith.constant 0 : index
    %c0_5 = arith.constant 0 : index
    %4 = vector.load %arg3[%c0_4, %c0_5] : memref<1x384xf32, #tpu.memory_space<vmem>>, vector<1x384xf32>
    %5 = vector.shape_cast %4 : vector<1x384xf32> to vector<384xf32>
    %cst = arith.constant dense<0.000000e+00> : vector<64xf32>
    %6 = vector.multi_reduction <add>, %1, %cst [1] : vector<64x384xf32> to vector<64xf32>
    %7 = vector.shape_cast %6 : vector<64xf32> to vector<64x1xf32>
    %cst_6 = arith.constant 3.840000e+02 : f32
    %8 = vector.broadcast %cst_6 : f32 to vector<64x1xf32>
    %9 = arith.divf %7, %8 : vector<64x1xf32>
    %10 = vector.broadcast %9 : vector<64x1xf32> to vector<64x384xf32>
    %11 = arith.subf %1, %10 : vector<64x384xf32>
    %12 = arith.mulf %11, %11 : vector<64x384xf32>
    %cst_7 = arith.constant dense<0.000000e+00> : vector<64xf32>
    %13 = vector.multi_reduction <add>, %12, %cst_7 [1] : vector<64x384xf32> to vector<64xf32>
    %14 = vector.shape_cast %13 : vector<64xf32> to vector<64x1xf32>
    %cst_8 = arith.constant 3.840000e+02 : f32
    %15 = vector.broadcast %cst_8 : f32 to vector<64x1xf32>
    %16 = arith.divf %14, %15 : vector<64x1xf32>
    %17 = vector.broadcast %9 : vector<64x1xf32> to vector<64x384xf32>
    %18 = arith.subf %1, %17 : vector<64x384xf32>
    %cst_9 = arith.constant 9.99999974E-6 : f32
    %19 = vector.broadcast %cst_9 : f32 to vector<64x1xf32>
    %20 = arith.addf %16, %19 : vector<64x1xf32>
    %21 = math.rsqrt %20 : vector<64x1xf32>
    %22 = vector.broadcast %21 : vector<64x1xf32> to vector<64x384xf32>
    %23 = arith.mulf %18, %22 : vector<64x384xf32>
    %24 = vector.shape_cast %3 : vector<384xf32> to vector<1x384xf32>
    %25 = vector.broadcast %24 : vector<1x384xf32> to vector<64x384xf32>
    %26 = arith.mulf %23, %25 : vector<64x384xf32>
    %27 = vector.shape_cast %5 : vector<384xf32> to vector<1x384xf32>
    %28 = vector.broadcast %27 : vector<1x384xf32> to vector<64x384xf32>
    %29 = arith.addf %26, %28 : vector<64x384xf32>
    %30 = arith.truncf %29 : vector<64x384xf32> to vector<64x384xbf16>
    %c0_10 = arith.constant 0 : index
    %c0_11 = arith.constant 0 : index
    %31 = vector.load %arg4[%c0_10, %c0_11] : memref<384x1152xbf16, #tpu.memory_space<vmem>>, vector<384x1152xbf16>
    %cst_12 = arith.constant dense<0.000000e+00> : vector<64x1152xf32>
    %32 = tpu.matmul %30, %31, %cst_12 {dimension_numbers = #tpu.dot_dimension_numbers<[1], [0], [0], [1], [0, 0, 1, 1], [], []>} : vector<64x384xbf16>, vector<384x1152xbf16>, vector<64x1152xf32> -> vector<64x1152xf32>
    %33 = vector.extract_strided_slice %32 {offsets = [0, 0], sizes = [64, 384], strides = [1, 1]} : vector<64x1152xf32> to vector<64x384xf32>
    %34 = vector.shape_cast %33 : vector<64x384xf32> to vector<1x64x384xf32>
    %35 = arith.truncf %34 : vector<1x64x384xf32> to vector<1x64x384xbf16>
    %36 = vector.extract_strided_slice %32 {offsets = [0, 384], sizes = [64, 384], strides = [1, 1]} : vector<64x1152xf32> to vector<64x384xf32>
    %37 = vector.shape_cast %36 : vector<64x384xf32> to vector<1x64x384xf32>
    %38 = arith.truncf %37 : vector<1x64x384xf32> to vector<1x64x384xbf16>
    %39 = vector.extract_strided_slice %32 {offsets = [0, 768], sizes = [64, 384], strides = [1, 1]} : vector<64x1152xf32> to vector<64x384xf32>
    %40 = vector.shape_cast %39 : vector<64x384xf32> to vector<1x64x384xf32>
    %41 = arith.truncf %40 : vector<1x64x384xf32> to vector<1x64x384xbf16>
    %42 = tpu.iota {dimensions = array<i32: 0>} : vector<64x64xi32>
    %43 = tpu.iota {dimensions = array<i32: 1>} : vector<64x64xi32>
    %44 = arith.cmpi sle, %43, %42 : vector<64x64xi32>
    %cst_13 = arith.constant 0.000000e+00 : f32
    %cst_14 = arith.constant -1.000000e+30 : f32
    %45 = vector.broadcast %cst_13 : f32 to vector<64x64xf32>
    %46 = vector.broadcast %cst_14 : f32 to vector<64x64xf32>
    %47 = arith.select %44, %45, %46 : vector<64x64xi1>, vector<64x64xf32>
    %48 = vector.shape_cast %47 : vector<64x64xf32> to vector<1x64x64xf32>
    %c0_15 = arith.constant 0 : index
    %c0_16 = arith.constant 0 : index
    %49 = vector.load %arg5[%c0_15, %c0_16] : memref<384x384xbf16, #tpu.memory_space<vmem>>, vector<384x384xbf16>
    %cst_17 = arith.constant 0.000000e+00 : f32
    %50 = vector.broadcast %cst_17 : f32 to vector<64x384xf32>
    %51 = vector.extract_strided_slice %35 {offsets = [0, 0, 0], sizes = [1, 64, 64], strides = [1, 1, 1]} : vector<1x64x384xbf16> to vector<1x64x64xbf16>
    %52 = vector.extract_strided_slice %38 {offsets = [0, 0, 0], sizes = [1, 64, 64], strides = [1, 1, 1]} : vector<1x64x384xbf16> to vector<1x64x64xbf16>
    %53 = vector.extract_strided_slice %41 {offsets = [0, 0, 0], sizes = [1, 64, 64], strides = [1, 1, 1]} : vector<1x64x384xbf16> to vector<1x64x64xbf16>
    "tpu.trace_start"() <{level = 10 : i32, message = "bqd,bkd->bqk"}> : () -> ()
    %cst_18 = arith.constant dense<0.000000e+00> : vector<1x64x64xf32>
    %54 = tpu.matmul %51, %52, %cst_18 {dimension_numbers = #tpu.dot_dimension_numbers<[2], [2], [1], [1], [0, 0, 0, 1, 1, 1], [0], [0]>} : vector<1x64x64xbf16>, vector<1x64x64xbf16>, vector<1x64x64xf32> -> vector<1x64x64xf32>
    "tpu.trace_stop"() : () -> ()
    %55 = arith.addf %54, %48 : vector<1x64x64xf32>
    %cst_19 = arith.constant dense<0xFF800000> : vector<1x64xf32>
    %56 = vector.multi_reduction <maximumf>, %55, %cst_19 [2] : vector<1x64x64xf32> to vector<1x64xf32>
    %57 = vector.shape_cast %56 : vector<1x64xf32> to vector<1x64x1xf32>
    %58 = vector.broadcast %57 : vector<1x64x1xf32> to vector<1x64x64xf32>
    %59 = arith.subf %55, %58 : vector<1x64x64xf32>
    %60 = math.exp %59 : vector<1x64x64xf32>
    %cst_20 = arith.constant dense<0.000000e+00> : vector<1x64xf32>
    %61 = vector.multi_reduction <add>, %60, %cst_20 [2] : vector<1x64x64xf32> to vector<1x64xf32>
    %62 = vector.shape_cast %61 : vector<1x64xf32> to vector<1x64x1xf32>
    %63 = tpu.reciprocal %62 {approx = true} : vector<1x64x1xf32> -> vector<1x64x1xf32>
    %64 = vector.broadcast %63 : vector<1x64x1xf32> to vector<1x64x64xf32>
    %65 = arith.mulf %60, %64 : vector<1x64x64xf32>
    %66 = arith.truncf %65 : vector<1x64x64xf32> to vector<1x64x64xbf16>
    "tpu.trace_start"() <{level = 10 : i32, message = "bqk,bkd->bqd"}> : () -> ()
    %cst_21 = arith.constant dense<0.000000e+00> : vector<1x64x64xf32>
    %67 = tpu.matmul %66, %53, %cst_21 {dimension_numbers = #tpu.dot_dimension_numbers<[2], [1], [1], [2], [0, 0, 0, 1, 1, 2], [0], [0]>} : vector<1x64x64xbf16>, vector<1x64x64xbf16>, vector<1x64x64xf32> -> vector<1x64x64xf32>
    "tpu.trace_stop"() : () -> ()
    %68 = vector.shape_cast %67 : vector<1x64x64xf32> to vector<64x64xf32>
    %69 = arith.truncf %68 : vector<64x64xf32> to vector<64x64xbf16>
    %70 = vector.extract_strided_slice %49 {offsets = [0, 0], sizes = [64, 384], strides = [1, 1]} : vector<384x384xbf16> to vector<64x384xbf16>
    %cst_22 = arith.constant dense<0.000000e+00> : vector<64x384xf32>
    %71 = tpu.matmul %69, %70, %cst_22 {dimension_numbers = #tpu.dot_dimension_numbers<[1], [0], [0], [1], [0, 0, 1, 1], [], []>} : vector<64x64xbf16>, vector<64x384xbf16>, vector<64x384xf32> -> vector<64x384xf32>
    %72 = arith.addf %50, %71 : vector<64x384xf32>
    %73 = vector.extract_strided_slice %35 {offsets = [0, 0, 64], sizes = [1, 64, 64], strides = [1, 1, 1]} : vector<1x64x384xbf16> to vector<1x64x64xbf16>
    %74 = vector.extract_strided_slice %38 {offsets = [0, 0, 64], sizes = [1, 64, 64], strides = [1, 1, 1]} : vector<1x64x384xbf16> to vector<1x64x64xbf16>
    %75 = vector.extract_strided_slice %41 {offsets = [0, 0, 64], sizes = [1, 64, 64], strides = [1, 1, 1]} : vector<1x64x384xbf16> to vector<1x64x64xbf16>
    "tpu.trace_start"() <{level = 10 : i32, message = "bqd,bkd->bqk"}> : () -> ()
    %cst_23 = arith.constant dense<0.000000e+00> : vector<1x64x64xf32>
    %76 = tpu.matmul %73, %74, %cst_23 {dimension_numbers = #tpu.dot_dimension_numbers<[2], [2], [1], [1], [0, 0, 0, 1, 1, 1], [0], [0]>} : vector<1x64x64xbf16>, vector<1x64x64xbf16>, vector<1x64x64xf32> -> vector<1x64x64xf32>
    "tpu.trace_stop"() : () -> ()
    %77 = arith.addf %76, %48 : vector<1x64x64xf32>
    %cst_24 = arith.constant dense<0xFF800000> : vector<1x64xf32>
    %78 = vector.multi_reduction <maximumf>, %77, %cst_24 [2] : vector<1x64x64xf32> to vector<1x64xf32>
    %79 = vector.shape_cast %78 : vector<1x64xf32> to vector<1x64x1xf32>
    %80 = vector.broadcast %79 : vector<1x64x1xf32> to vector<1x64x64xf32>
    %81 = arith.subf %77, %80 : vector<1x64x64xf32>
    %82 = math.exp %81 : vector<1x64x64xf32>
    %cst_25 = arith.constant dense<0.000000e+00> : vector<1x64xf32>
    %83 = vector.multi_reduction <add>, %82, %cst_25 [2] : vector<1x64x64xf32> to vector<1x64xf32>
    %84 = vector.shape_cast %83 : vector<1x64xf32> to vector<1x64x1xf32>
    %85 = tpu.reciprocal %84 {approx = true} : vector<1x64x1xf32> -> vector<1x64x1xf32>
    %86 = vector.broadcast %85 : vector<1x64x1xf32> to vector<1x64x64xf32>
    %87 = arith.mulf %82, %86 : vector<1x64x64xf32>
    %88 = arith.truncf %87 : vector<1x64x64xf32> to vector<1x64x64xbf16>
    "tpu.trace_start"() <{level = 10 : i32, message = "bqk,bkd->bqd"}> : () -> ()
    %cst_26 = arith.constant dense<0.000000e+00> : vector<1x64x64xf32>
    %89 = tpu.matmul %88, %75, %cst_26 {dimension_numbers = #tpu.dot_dimension_numbers<[2], [1], [1], [2], [0, 0, 0, 1, 1, 2], [0], [0]>} : vector<1x64x64xbf16>, vector<1x64x64xbf16>, vector<1x64x64xf32> -> vector<1x64x64xf32>
    "tpu.trace_stop"() : () -> ()
    %90 = vector.shape_cast %89 : vector<1x64x64xf32> to vector<64x64xf32>
    %91 = arith.truncf %90 : vector<64x64xf32> to vector<64x64xbf16>
    %92 = vector.extract_strided_slice %49 {offsets = [64, 0], sizes = [64, 384], strides = [1, 1]} : vector<384x384xbf16> to vector<64x384xbf16>
    %cst_27 = arith.constant dense<0.000000e+00> : vector<64x384xf32>
    %93 = tpu.matmul %91, %92, %cst_27 {dimension_numbers = #tpu.dot_dimension_numbers<[1], [0], [0], [1], [0, 0, 1, 1], [], []>} : vector<64x64xbf16>, vector<64x384xbf16>, vector<64x384xf32> -> vector<64x384xf32>
    %94 = arith.addf %72, %93 : vector<64x384xf32>
    %95 = vector.extract_strided_slice %35 {offsets = [0, 0, 128], sizes = [1, 64, 64], strides = [1, 1, 1]} : vector<1x64x384xbf16> to vector<1x64x64xbf16>
    %96 = vector.extract_strided_slice %38 {offsets = [0, 0, 128], sizes = [1, 64, 64], strides = [1, 1, 1]} : vector<1x64x384xbf16> to vector<1x64x64xbf16>
    %97 = vector.extract_strided_slice %41 {offsets = [0, 0, 128], sizes = [1, 64, 64], strides = [1, 1, 1]} : vector<1x64x384xbf16> to vector<1x64x64xbf16>
    "tpu.trace_start"() <{level = 10 : i32, message = "bqd,bkd->bqk"}> : () -> ()
    %cst_28 = arith.constant dense<0.000000e+00> : vector<1x64x64xf32>
    %98 = tpu.matmul %95, %96, %cst_28 {dimension_numbers = #tpu.dot_dimension_numbers<[2], [2], [1], [1], [0, 0, 0, 1, 1, 1], [0], [0]>} : vector<1x64x64xbf16>, vector<1x64x64xbf16>, vector<1x64x64xf32> -> vector<1x64x64xf32>
    "tpu.trace_stop"() : () -> ()
    %99 = arith.addf %98, %48 : vector<1x64x64xf32>
    %cst_29 = arith.constant dense<0xFF800000> : vector<1x64xf32>
    %100 = vector.multi_reduction <maximumf>, %99, %cst_29 [2] : vector<1x64x64xf32> to vector<1x64xf32>
    %101 = vector.shape_cast %100 : vector<1x64xf32> to vector<1x64x1xf32>
    %102 = vector.broadcast %101 : vector<1x64x1xf32> to vector<1x64x64xf32>
    %103 = arith.subf %99, %102 : vector<1x64x64xf32>
    %104 = math.exp %103 : vector<1x64x64xf32>
    %cst_30 = arith.constant dense<0.000000e+00> : vector<1x64xf32>
    %105 = vector.multi_reduction <add>, %104, %cst_30 [2] : vector<1x64x64xf32> to vector<1x64xf32>
    %106 = vector.shape_cast %105 : vector<1x64xf32> to vector<1x64x1xf32>
    %107 = tpu.reciprocal %106 {approx = true} : vector<1x64x1xf32> -> vector<1x64x1xf32>
    %108 = vector.broadcast %107 : vector<1x64x1xf32> to vector<1x64x64xf32>
    %109 = arith.mulf %104, %108 : vector<1x64x64xf32>
    %110 = arith.truncf %109 : vector<1x64x64xf32> to vector<1x64x64xbf16>
    "tpu.trace_start"() <{level = 10 : i32, message = "bqk,bkd->bqd"}> : () -> ()
    %cst_31 = arith.constant dense<0.000000e+00> : vector<1x64x64xf32>
    %111 = tpu.matmul %110, %97, %cst_31 {dimension_numbers = #tpu.dot_dimension_numbers<[2], [1], [1], [2], [0, 0, 0, 1, 1, 2], [0], [0]>} : vector<1x64x64xbf16>, vector<1x64x64xbf16>, vector<1x64x64xf32> -> vector<1x64x64xf32>
    "tpu.trace_stop"() : () -> ()
    %112 = vector.shape_cast %111 : vector<1x64x64xf32> to vector<64x64xf32>
    %113 = arith.truncf %112 : vector<64x64xf32> to vector<64x64xbf16>
    %114 = vector.extract_strided_slice %49 {offsets = [128, 0], sizes = [64, 384], strides = [1, 1]} : vector<384x384xbf16> to vector<64x384xbf16>
    %cst_32 = arith.constant dense<0.000000e+00> : vector<64x384xf32>
    %115 = tpu.matmul %113, %114, %cst_32 {dimension_numbers = #tpu.dot_dimension_numbers<[1], [0], [0], [1], [0, 0, 1, 1], [], []>} : vector<64x64xbf16>, vector<64x384xbf16>, vector<64x384xf32> -> vector<64x384xf32>
    %116 = arith.addf %94, %115 : vector<64x384xf32>
    %117 = vector.extract_strided_slice %35 {offsets = [0, 0, 192], sizes = [1, 64, 64], strides = [1, 1, 1]} : vector<1x64x384xbf16> to vector<1x64x64xbf16>
    %118 = vector.extract_strided_slice %38 {offsets = [0, 0, 192], sizes = [1, 64, 64], strides = [1, 1, 1]} : vector<1x64x384xbf16> to vector<1x64x64xbf16>
    %119 = vector.extract_strided_slice %41 {offsets = [0, 0, 192], sizes = [1, 64, 64], strides = [1, 1, 1]} : vector<1x64x384xbf16> to vector<1x64x64xbf16>
    "tpu.trace_start"() <{level = 10 : i32, message = "bqd,bkd->bqk"}> : () -> ()
    %cst_33 = arith.constant dense<0.000000e+00> : vector<1x64x64xf32>
    %120 = tpu.matmul %117, %118, %cst_33 {dimension_numbers = #tpu.dot_dimension_numbers<[2], [2], [1], [1], [0, 0, 0, 1, 1, 1], [0], [0]>} : vector<1x64x64xbf16>, vector<1x64x64xbf16>, vector<1x64x64xf32> -> vector<1x64x64xf32>
    "tpu.trace_stop"() : () -> ()
    %121 = arith.addf %120, %48 : vector<1x64x64xf32>
    %cst_34 = arith.constant dense<0xFF800000> : vector<1x64xf32>
    %122 = vector.multi_reduction <maximumf>, %121, %cst_34 [2] : vector<1x64x64xf32> to vector<1x64xf32>
    %123 = vector.shape_cast %122 : vector<1x64xf32> to vector<1x64x1xf32>
    %124 = vector.broadcast %123 : vector<1x64x1xf32> to vector<1x64x64xf32>
    %125 = arith.subf %121, %124 : vector<1x64x64xf32>
    %126 = math.exp %125 : vector<1x64x64xf32>
    %cst_35 = arith.constant dense<0.000000e+00> : vector<1x64xf32>
    %127 = vector.multi_reduction <add>, %126, %cst_35 [2] : vector<1x64x64xf32> to vector<1x64xf32>
    %128 = vector.shape_cast %127 : vector<1x64xf32> to vector<1x64x1xf32>
    %129 = tpu.reciprocal %128 {approx = true} : vector<1x64x1xf32> -> vector<1x64x1xf32>
    %130 = vector.broadcast %129 : vector<1x64x1xf32> to vector<1x64x64xf32>
    %131 = arith.mulf %126, %130 : vector<1x64x64xf32>
    %132 = arith.truncf %131 : vector<1x64x64xf32> to vector<1x64x64xbf16>
    "tpu.trace_start"() <{level = 10 : i32, message = "bqk,bkd->bqd"}> : () -> ()
    %cst_36 = arith.constant dense<0.000000e+00> : vector<1x64x64xf32>
    %133 = tpu.matmul %132, %119, %cst_36 {dimension_numbers = #tpu.dot_dimension_numbers<[2], [1], [1], [2], [0, 0, 0, 1, 1, 2], [0], [0]>} : vector<1x64x64xbf16>, vector<1x64x64xbf16>, vector<1x64x64xf32> -> vector<1x64x64xf32>
    "tpu.trace_stop"() : () -> ()
    %134 = vector.shape_cast %133 : vector<1x64x64xf32> to vector<64x64xf32>
    %135 = arith.truncf %134 : vector<64x64xf32> to vector<64x64xbf16>
    %136 = vector.extract_strided_slice %49 {offsets = [192, 0], sizes = [64, 384], strides = [1, 1]} : vector<384x384xbf16> to vector<64x384xbf16>
    %cst_37 = arith.constant dense<0.000000e+00> : vector<64x384xf32>
    %137 = tpu.matmul %135, %136, %cst_37 {dimension_numbers = #tpu.dot_dimension_numbers<[1], [0], [0], [1], [0, 0, 1, 1], [], []>} : vector<64x64xbf16>, vector<64x384xbf16>, vector<64x384xf32> -> vector<64x384xf32>
    %138 = arith.addf %116, %137 : vector<64x384xf32>
    %139 = vector.extract_strided_slice %35 {offsets = [0, 0, 256], sizes = [1, 64, 64], strides = [1, 1, 1]} : vector<1x64x384xbf16> to vector<1x64x64xbf16>
    %140 = vector.extract_strided_slice %38 {offsets = [0, 0, 256], sizes = [1, 64, 64], strides = [1, 1, 1]} : vector<1x64x384xbf16> to vector<1x64x64xbf16>
    %141 = vector.extract_strided_slice %41 {offsets = [0, 0, 256], sizes = [1, 64, 64], strides = [1, 1, 1]} : vector<1x64x384xbf16> to vector<1x64x64xbf16>
    "tpu.trace_start"() <{level = 10 : i32, message = "bqd,bkd->bqk"}> : () -> ()
    %cst_38 = arith.constant dense<0.000000e+00> : vector<1x64x64xf32>
    %142 = tpu.matmul %139, %140, %cst_38 {dimension_numbers = #tpu.dot_dimension_numbers<[2], [2], [1], [1], [0, 0, 0, 1, 1, 1], [0], [0]>} : vector<1x64x64xbf16>, vector<1x64x64xbf16>, vector<1x64x64xf32> -> vector<1x64x64xf32>
    "tpu.trace_stop"() : () -> ()
    %143 = arith.addf %142, %48 : vector<1x64x64xf32>
    %cst_39 = arith.constant dense<0xFF800000> : vector<1x64xf32>
    %144 = vector.multi_reduction <maximumf>, %143, %cst_39 [2] : vector<1x64x64xf32> to vector<1x64xf32>
    %145 = vector.shape_cast %144 : vector<1x64xf32> to vector<1x64x1xf32>
    %146 = vector.broadcast %145 : vector<1x64x1xf32> to vector<1x64x64xf32>
    %147 = arith.subf %143, %146 : vector<1x64x64xf32>
    %148 = math.exp %147 : vector<1x64x64xf32>
    %cst_40 = arith.constant dense<0.000000e+00> : vector<1x64xf32>
    %149 = vector.multi_reduction <add>, %148, %cst_40 [2] : vector<1x64x64xf32> to vector<1x64xf32>
    %150 = vector.shape_cast %149 : vector<1x64xf32> to vector<1x64x1xf32>
    %151 = tpu.reciprocal %150 {approx = true} : vector<1x64x1xf32> -> vector<1x64x1xf32>
    %152 = vector.broadcast %151 : vector<1x64x1xf32> to vector<1x64x64xf32>
    %153 = arith.mulf %148, %152 : vector<1x64x64xf32>
    %154 = arith.truncf %153 : vector<1x64x64xf32> to vector<1x64x64xbf16>
    "tpu.trace_start"() <{level = 10 : i32, message = "bqk,bkd->bqd"}> : () -> ()
    %cst_41 = arith.constant dense<0.000000e+00> : vector<1x64x64xf32>
    %155 = tpu.matmul %154, %141, %cst_41 {dimension_numbers = #tpu.dot_dimension_numbers<[2], [1], [1], [2], [0, 0, 0, 1, 1, 2], [0], [0]>} : vector<1x64x64xbf16>, vector<1x64x64xbf16>, vector<1x64x64xf32> -> vector<1x64x64xf32>
    "tpu.trace_stop"() : () -> ()
    %156 = vector.shape_cast %155 : vector<1x64x64xf32> to vector<64x64xf32>
    %157 = arith.truncf %156 : vector<64x64xf32> to vector<64x64xbf16>
    %158 = vector.extract_strided_slice %49 {offsets = [256, 0], sizes = [64, 384], strides = [1, 1]} : vector<384x384xbf16> to vector<64x384xbf16>
    %cst_42 = arith.constant dense<0.000000e+00> : vector<64x384xf32>
    %159 = tpu.matmul %157, %158, %cst_42 {dimension_numbers = #tpu.dot_dimension_numbers<[1], [0], [0], [1], [0, 0, 1, 1], [], []>} : vector<64x64xbf16>, vector<64x384xbf16>, vector<64x384xf32> -> vector<64x384xf32>
    %160 = arith.addf %138, %159 : vector<64x384xf32>
    %161 = vector.extract_strided_slice %35 {offsets = [0, 0, 320], sizes = [1, 64, 64], strides = [1, 1, 1]} : vector<1x64x384xbf16> to vector<1x64x64xbf16>
    %162 = vector.extract_strided_slice %38 {offsets = [0, 0, 320], sizes = [1, 64, 64], strides = [1, 1, 1]} : vector<1x64x384xbf16> to vector<1x64x64xbf16>
    %163 = vector.extract_strided_slice %41 {offsets = [0, 0, 320], sizes = [1, 64, 64], strides = [1, 1, 1]} : vector<1x64x384xbf16> to vector<1x64x64xbf16>
    "tpu.trace_start"() <{level = 10 : i32, message = "bqd,bkd->bqk"}> : () -> ()
    %cst_43 = arith.constant dense<0.000000e+00> : vector<1x64x64xf32>
    %164 = tpu.matmul %161, %162, %cst_43 {dimension_numbers = #tpu.dot_dimension_numbers<[2], [2], [1], [1], [0, 0, 0, 1, 1, 1], [0], [0]>} : vector<1x64x64xbf16>, vector<1x64x64xbf16>, vector<1x64x64xf32> -> vector<1x64x64xf32>
    "tpu.trace_stop"() : () -> ()
    %165 = arith.addf %164, %48 : vector<1x64x64xf32>
    %cst_44 = arith.constant dense<0xFF800000> : vector<1x64xf32>
    %166 = vector.multi_reduction <maximumf>, %165, %cst_44 [2] : vector<1x64x64xf32> to vector<1x64xf32>
    %167 = vector.shape_cast %166 : vector<1x64xf32> to vector<1x64x1xf32>
    %168 = vector.broadcast %167 : vector<1x64x1xf32> to vector<1x64x64xf32>
    %169 = arith.subf %165, %168 : vector<1x64x64xf32>
    %170 = math.exp %169 : vector<1x64x64xf32>
    %cst_45 = arith.constant dense<0.000000e+00> : vector<1x64xf32>
    %171 = vector.multi_reduction <add>, %170, %cst_45 [2] : vector<1x64x64xf32> to vector<1x64xf32>
    %172 = vector.shape_cast %171 : vector<1x64xf32> to vector<1x64x1xf32>
    %173 = tpu.reciprocal %172 {approx = true} : vector<1x64x1xf32> -> vector<1x64x1xf32>
    %174 = vector.broadcast %173 : vector<1x64x1xf32> to vector<1x64x64xf32>
    %175 = arith.mulf %170, %174 : vector<1x64x64xf32>
    %176 = arith.truncf %175 : vector<1x64x64xf32> to vector<1x64x64xbf16>
    "tpu.trace_start"() <{level = 10 : i32, message = "bqk,bkd->bqd"}> : () -> ()
    %cst_46 = arith.constant dense<0.000000e+00> : vector<1x64x64xf32>
    %177 = tpu.matmul %176, %163, %cst_46 {dimension_numbers = #tpu.dot_dimension_numbers<[2], [1], [1], [2], [0, 0, 0, 1, 1, 2], [0], [0]>} : vector<1x64x64xbf16>, vector<1x64x64xbf16>, vector<1x64x64xf32> -> vector<1x64x64xf32>
    "tpu.trace_stop"() : () -> ()
    %178 = vector.shape_cast %177 : vector<1x64x64xf32> to vector<64x64xf32>
    %179 = arith.truncf %178 : vector<64x64xf32> to vector<64x64xbf16>
    %180 = vector.extract_strided_slice %49 {offsets = [320, 0], sizes = [64, 384], strides = [1, 1]} : vector<384x384xbf16> to vector<64x384xbf16>
    %cst_47 = arith.constant dense<0.000000e+00> : vector<64x384xf32>
    %181 = tpu.matmul %179, %180, %cst_47 {dimension_numbers = #tpu.dot_dimension_numbers<[1], [0], [0], [1], [0, 0, 1, 1], [], []>} : vector<64x64xbf16>, vector<64x384xbf16>, vector<64x384xf32> -> vector<64x384xf32>
    %182 = arith.addf %160, %181 : vector<64x384xf32>
    %183 = arith.addf %1, %182 : vector<64x384xf32>
    %c0_48 = arith.constant 0 : index
    %c0_49 = arith.constant 0 : index
    %184 = vector.load %arg6[%c0_48, %c0_49] : memref<1x384xf32, #tpu.memory_space<vmem>>, vector<1x384xf32>
    %185 = vector.shape_cast %184 : vector<1x384xf32> to vector<384xf32>
    %186 = vector.shape_cast %185 : vector<384xf32> to vector<1x384xf32>
    %187 = vector.broadcast %186 : vector<1x384xf32> to vector<64x384xf32>
    %188 = arith.addf %183, %187 : vector<64x384xf32>
    %c0_50 = arith.constant 0 : index
    %c0_51 = arith.constant 0 : index
    %189 = vector.load %arg7[%c0_50, %c0_51] : memref<1x384xf32, #tpu.memory_space<vmem>>, vector<1x384xf32>
    %190 = vector.shape_cast %189 : vector<1x384xf32> to vector<384xf32>
    %c0_52 = arith.constant 0 : index
    %c0_53 = arith.constant 0 : index
    %191 = vector.load %arg8[%c0_52, %c0_53] : memref<1x384xf32, #tpu.memory_space<vmem>>, vector<1x384xf32>
    %192 = vector.shape_cast %191 : vector<1x384xf32> to vector<384xf32>
    %cst_54 = arith.constant dense<0.000000e+00> : vector<64xf32>
    %193 = vector.multi_reduction <add>, %188, %cst_54 [1] : vector<64x384xf32> to vector<64xf32>
    %194 = vector.shape_cast %193 : vector<64xf32> to vector<64x1xf32>
    %cst_55 = arith.constant 3.840000e+02 : f32
    %195 = vector.broadcast %cst_55 : f32 to vector<64x1xf32>
    %196 = arith.divf %194, %195 : vector<64x1xf32>
    %197 = vector.broadcast %196 : vector<64x1xf32> to vector<64x384xf32>
    %198 = arith.subf %188, %197 : vector<64x384xf32>
    %199 = arith.mulf %198, %198 : vector<64x384xf32>
    %cst_56 = arith.constant dense<0.000000e+00> : vector<64xf32>
    %200 = vector.multi_reduction <add>, %199, %cst_56 [1] : vector<64x384xf32> to vector<64xf32>
    %201 = vector.shape_cast %200 : vector<64xf32> to vector<64x1xf32>
    %cst_57 = arith.constant 3.840000e+02 : f32
    %202 = vector.broadcast %cst_57 : f32 to vector<64x1xf32>
    %203 = arith.divf %201, %202 : vector<64x1xf32>
    %204 = vector.broadcast %196 : vector<64x1xf32> to vector<64x384xf32>
    %205 = arith.subf %188, %204 : vector<64x384xf32>
    %cst_58 = arith.constant 9.99999974E-6 : f32
    %206 = vector.broadcast %cst_58 : f32 to vector<64x1xf32>
    %207 = arith.addf %203, %206 : vector<64x1xf32>
    %208 = math.rsqrt %207 : vector<64x1xf32>
    %209 = vector.broadcast %208 : vector<64x1xf32> to vector<64x384xf32>
    %210 = arith.mulf %205, %209 : vector<64x384xf32>
    %211 = vector.shape_cast %190 : vector<384xf32> to vector<1x384xf32>
    %212 = vector.broadcast %211 : vector<1x384xf32> to vector<64x384xf32>
    %213 = arith.mulf %210, %212 : vector<64x384xf32>
    %214 = vector.shape_cast %192 : vector<384xf32> to vector<1x384xf32>
    %215 = vector.broadcast %214 : vector<1x384xf32> to vector<64x384xf32>
    %216 = arith.addf %213, %215 : vector<64x384xf32>
    %217 = arith.truncf %216 : vector<64x384xf32> to vector<64x384xbf16>
    %c0_59 = arith.constant 0 : index
    %c0_60 = arith.constant 0 : index
    %218 = vector.load %arg9[%c0_59, %c0_60] : memref<384x1536xbf16, #tpu.memory_space<vmem>>, vector<384x1536xbf16>
    %cst_61 = arith.constant dense<0.000000e+00> : vector<64x1536xf32>
    %219 = tpu.matmul %217, %218, %cst_61 {dimension_numbers = #tpu.dot_dimension_numbers<[1], [0], [0], [1], [0, 0, 1, 1], [], []>} : vector<64x384xbf16>, vector<384x1536xbf16>, vector<64x1536xf32> -> vector<64x1536xf32>
    %c0_62 = arith.constant 0 : index
    %c0_63 = arith.constant 0 : index
    %220 = vector.load %arg10[%c0_62, %c0_63] : memref<1x1536xf32, #tpu.memory_space<vmem>>, vector<1x1536xf32>
    %221 = vector.shape_cast %220 : vector<1x1536xf32> to vector<1536xf32>
    %222 = vector.shape_cast %221 : vector<1536xf32> to vector<1x1536xf32>
    %223 = vector.broadcast %222 : vector<1x1536xf32> to vector<64x1536xf32>
    %224 = arith.addf %219, %223 : vector<64x1536xf32>
    %cst_64 = arith.constant 0.000000e+00 : f32
    %225 = vector.broadcast %cst_64 : f32 to vector<64x1536xf32>
    %226 = arith.maximumf %224, %225 : vector<64x1536xf32>
    %227 = arith.truncf %226 : vector<64x1536xf32> to vector<64x1536xbf16>
    %c0_65 = arith.constant 0 : index
    %c0_66 = arith.constant 0 : index
    %228 = vector.load %arg11[%c0_65, %c0_66] : memref<1536x384xbf16, #tpu.memory_space<vmem>>, vector<1536x384xbf16>
    %cst_67 = arith.constant dense<0.000000e+00> : vector<64x384xf32>
    %229 = tpu.matmul %227, %228, %cst_67 {dimension_numbers = #tpu.dot_dimension_numbers<[1], [0], [0], [1], [0, 0, 1, 1], [], []>} : vector<64x1536xbf16>, vector<1536x384xbf16>, vector<64x384xf32> -> vector<64x384xf32>
    %c0_68 = arith.constant 0 : index
    %c0_69 = arith.constant 0 : index
    %230 = vector.load %arg12[%c0_68, %c0_69] : memref<1x384xf32, #tpu.memory_space<vmem>>, vector<1x384xf32>
    %231 = vector.shape_cast %230 : vector<1x384xf32> to vector<384xf32>
    %232 = vector.shape_cast %231 : vector<384xf32> to vector<1x384xf32>
    %233 = vector.broadcast %232 : vector<1x384xf32> to vector<64x384xf32>
    %234 = arith.addf %229, %233 : vector<64x384xf32>
    %235 = arith.addf %188, %234 : vector<64x384xf32>
    %236 = vector.shape_cast %235 : vector<64x384xf32> to vector<1x64x384xf32>
    %c0_70 = arith.constant 0 : index
    %c0_71 = arith.constant 0 : index
    %c0_72 = arith.constant 0 : index
    %237 = vector.load %arg13[%c0_70, %c0_71, %c0_72] : memref<1x64x384xf32, #tpu.memory_space<vmem>>, vector<1x64x384xf32>
    tpu.vector_store %arg13[%c0_70, %c0_71, %c0_72], %236 {strides = array<i32>} : memref<1x64x384xf32, #tpu.memory_space<vmem>>, vector<1x64x384xf32>,
    return
  }
  func.func @transform_0(%arg0: i32) -> (i32, i32, i32) {
    %c0_i32 = arith.constant 0 : i32
    %c0_i32_0 = arith.constant 0 : i32
    %c0_i32_1 = arith.constant 0 : i32
    return %arg0, %c0_i32, %c0_i32_0 : i32, i32, i32
  }
  func.func @transform_1(%arg0: i32) -> (i32, i32) {
    %c0_i32 = arith.constant 0 : i32
    %c0_i32_0 = arith.constant 0 : i32
    %c0_i32_1 = arith.constant 0 : i32
    return %c0_i32, %c0_i32_0 : i32, i32
  }
  func.func @transform_2(%arg0: i32) -> (i32, i32) {
    %c0_i32 = arith.constant 0 : i32
    %c0_i32_0 = arith.constant 0 : i32
    %c0_i32_1 = arith.constant 0 : i32
    return %c0_i32, %c0_i32_0 : i32, i32
  }
  func.func @transform_3(%arg0: i32) -> (i32, i32) {
    %c0_i32 = arith.constant 0 : i32
    %c0_i32_0 = arith.constant 0 : i32
    %c0_i32_1 = arith.constant 0 : i32
    return %c0_i32, %c0_i32_0 : i32, i32
  }
  func.func @transform_4(%arg0: i32) -> (i32, i32) {
    %c0_i32 = arith.constant 0 : i32
    %c0_i32_0 = arith.constant 0 : i32
    %c0_i32_1 = arith.constant 0 : i32
    return %c0_i32, %c0_i32_0 : i32, i32
  }
  func.func @transform_5(%arg0: i32) -> (i32, i32) {
    %c0_i32 = arith.constant 0 : i32
    %c0_i32_0 = arith.constant 0 : i32
    %c0_i32_1 = arith.constant 0 : i32
    return %c0_i32, %c0_i32_0 : i32, i32
  }
  func.func @transform_6(%arg0: i32) -> (i32, i32) {
    %c0_i32 = arith.constant 0 : i32
    %c0_i32_0 = arith.constant 0 : i32
    %c0_i32_1 = arith.constant 0 : i32
    return %c0_i32, %c0_i32_0 : i32, i32
  }
  func.func @transform_7(%arg0: i32) -> (i32, i32) {
    %c0_i32 = arith.constant 0 : i32
    %c0_i32_0 = arith.constant 0 : i32
    %c0_i32_1 = arith.constant 0 : i32
    return %c0_i32, %c0_i32_0 : i32, i32
  }
  func.func @transform_8(%arg0: i32) -> (i32, i32) {
    %c0_i32 = arith.constant 0 : i32
    %c0_i32_0 = arith.constant 0 : i32
    %c0_i32_1 = arith.constant 0 : i32
    return %c0_i32, %c0_i32_0 : i32, i32
  }
  func.func @transform_9(%arg0: i32) -> (i32, i32) {
    %c0_i32 = arith.constant 0 : i32
    %c0_i32_0 = arith.constant 0 : i32
    %c0_i32_1 = arith.constant 0 : i32
    return %c0_i32, %c0_i32_0 : i32, i32
  }
  func.func @transform_10(%arg0: i32) -> (i32, i32) {
    %c0_i32 = arith.constant 0 : i32
    %c0_i32_0 = arith.constant 0 : i32
    %c0_i32_1 = arith.constant 0 : i32
    return %c0_i32, %c0_i32_0 : i32, i32
  }
  func.func @transform_11(%arg0: i32) -> (i32, i32) {
    %c0_i32 = arith.constant 0 : i32
    %c0_i32_0 = arith.constant 0 : i32
    %c0_i32_1 = arith.constant 0 : i32
    return %c0_i32, %c0_i32_0 : i32, i32
  }
  func.func @transform_12(%arg0: i32) -> (i32, i32, i32) {
    %c0_i32 = arith.constant 0 : i32
    %c0_i32_0 = arith.constant 0 : i32
    %c0_i32_1 = arith.constant 0 : i32
    return %arg0, %c0_i32, %c0_i32_0 : i32, i32, i32
  }
}

</mosaic_0001>

<bundles_post_ra>
// kernel: tpu_custom_call.1
= control target key start
LH: loop header
LB: loop body
LE: loop exit
PB: predicated region body
PF: predicated region fallthrough
CT: control target
= control target key end

     0   :  { %s19226_s0 = inlined_call_operand.hbm [shape: f32[2,64,384], index: 0, kind: input, shape index: {}]   ;;  %s19227_s1 = inlined_call_operand.hbm [shape: f32[1,384], index: 1, kind: input, shape index: {}]   ;;  %s19228_s2 = inlined_call_operand.hbm [shape: f32[1,384], index: 2, kind: input, shape index: {}]   ;;  %s19229_s3 = inlined_call_operand.hbm [shape: bf16[384,1152], index: 3, kind: input, shape index: {}]   ;;  %s19230_s4 = inlined_call_operand.hbm [shape: bf16[384,384], index: 4, kind: input, shape index: {}]   ;;  %s19231_s5 = inlined_call_operand.hbm [shape: f32[1,384], index: 5, kind: input, shape index: {}]   ;;  %s19232_s6 = inlined_call_operand.hbm [shape: f32[1,384], index: 6, kind: input, shape index: {}]   ;;  %s19233_s7 = inlined_call_operand.hbm [shape: f32[1,384], index: 7, kind: input, shape index: {}]   ;;  %s19234_s8 = inlined_call_operand.hbm [shape: bf16[384,1536], index: 8, kind: input, shape index: {}]   ;;  %s19235_s9 = inlined_call_operand.hbm [shape: f32[1,1536], index: 9, kind: input, shape index: {}]   ;;  %s19236_s10 = inlined_call_operand.hbm [shape: bf16[1536,384], index: 10, kind: input, shape index: {}]   ;;  %s19237_s11 = inlined_call_operand.hbm [shape: f32[1,384], index: 11, kind: input, shape index: {}]   ;;  %s19238_s12 = inlined_call_operand.hbm [shape: f32[2,64,384], index: 12, kind: output, shape index: {}]  }
   0x1   :  { %19273 = sst [smem:[#allocation44_spill]] %s19227_s1 }
   0x2   :  { %19274 = sst [smem:[#allocation45_spill]] %s19228_s2 }
   0x3   :  { %19275 = sst [smem:[#allocation46_spill]] %s19229_s3 }
   0x4   :  { %19276 = sst [smem:[#allocation47_spill]] %s19231_s5 }
   0x5   :  { %19277 = sst [smem:[#allocation48_spill]] %s19238_s12 }
   0x6   :  { %17 = vsyncpa [#allocation3], 0 }
   0x7   :  { %19 = vsyncpa [#allocation3 + $0x1], 0 }
   0x8   :  { %20 = vsyncpa [#allocation6], 0 }
   0x9   :  { %21 = vsyncpa [#allocation9], 0 }
   0xa   :  { %22 = vsyncpa [#allocation12], 0 }
   0xb   :  { %23 = vsyncpa [#allocation15], 0 }
   0xc   :  { %24 = vsyncpa [#allocation18], 0 }
   0xd   :  { %25 = vsyncpa [#allocation21], 0 }
   0xe   :  { %26 = vsyncpa [#allocation4], 0 }
   0xf   :  { %28 = vsyncpa [#allocation4 + $0x1], 0  ;;  %s16719_s21 = smov 0   ;;  %s16721_s22 = smov 0  }
  0x10   :  { %s16723_s23 = smov 0   ;;  %s16725_s24 = smov 0  }
  0x11 LB: > { %s16628_s25 = smov [#allocation5]   ;;  %s16740_s27 = sadd.s32 4294967295, %s16626_s24   ;;  %s16626_s24 = sphi %s16725_s24, %s19356_s24   ;;  %s16622_s23 = sphi %s16723_s23, %s19355_s23   ;;  %s16618_s22 = sphi %s16721_s22, %s19354_s22   ;;  %s16614_s21 = sphi %s16719_s21, %s19353_s21  }
  0x12   : > { %s335_s26 = sshll.u32 %s16628_s25, 4  ;;  %p12301_p0 = scmp.ge.s32.totalorder %s16626_s24, 1  ;;  %s16745_s26 = int_to_ptr.vmem [resolvable:$true] %s335_s26 }
  0x13   : > { %p19241_p1 = scmp.eq.s32.totalorder %s16740_s27, 0  ;;  %p322_p2 = scmp.lt.s32.totalorder %s16626_s24, 3 }
  0x14   : > { %s16629_s29 = smov [#allocation8]   ;;  %s16630_s14 = smov [#allocation11]  }
  0x15   : > { %p16747_p3 = pnand %p12301_p0, %p322_p2  ;;  %s356_s30 = sshll.u32 %s16629_s29, 4  ;;  %s16754_s30 = int_to_ptr.vmem [resolvable:$true] %s356_s30 }
  0x16   : > { %s383_s15 = sshll.u32 %s16630_s14, 4  ;;  %s19281_s1 = sld [smem:[#allocation44_spill]]  ;;  %s16762_s15 = int_to_ptr.vmem [resolvable:$true] %s383_s15 }
  0x17   : > { %s19278_s28 = scalar_select %p16747_p3, 1, 0 }
  0x18   : > { %p14586_p5 = pneg %p16747_p3 }
  0x19   : > { %19279 = sst [smem:[#allocation31_spill]] %s19278_s28 }
  0x1a   : > { %p16758_p6 = pnand %p14586_p5, %p19241_p1 }
  0x1c   : > { %s16198_s18 = scalar_lea.hbm %s19281_s1, 48  ;;  %p16772_p8 = pneg %p16758_p6 }
  0x1d   : > { %p16199_p7 = scmp.ne.s32.totalorder %s19281_s1, %s16198_s18  ;;  %p16205_p11 = scmp.lt.u32.totalorder %s16198_s18, %s19281_s1 }
  0x1f   : > { %p16201_p9 = pnand %p16772_p8, %p16199_p7 }
  0x21   : > { %p16202_p10 = pneg %p16201_p9 }
  0x23   : > { %p16207_p12 = pnand %p16205_p11, %p16202_p10 }
  0x25   : > { %16210 = shalt.err (!%p16207_p12)
}
  0x26   : > { %s16211_s16 = scalar_lea.vmem %s16745_s26, 48  ;;  %s16218_s17 = scalar_lea.vmem %s16745_s26, 64 }
  0x27   : > { %p16212_p13 = scmp.ne.s32.totalorder %s16745_s26, %s16211_s16  ;;  %p16219_p5 = scmp.lt.s32.totalorder %s16745_s26, %s16745_s26 }
  0x28   : > { %p16220_p7 = scmp.lt.s32.totalorder %s16218_s17, %s16211_s16 }
  0x29   : > { %p16214_p0 = pnand %p16212_p13, %p16772_p8 }
  0x2a   : > { %p16221_p9 = por %p16220_p7, %p16219_p5 }
  0x2b   : > { %p16215_p2 = pneg %p16214_p0 }
  0x2d   : > { %p16222_p4 = pnand %p16221_p9, %p16215_p2 }
  0x2f   : > { %16225 = shalt.err (!%p16222_p4)
}
  0x30   : > { %14589 = dma.hbm_to_vmem [thread:$0]  (!%p16758_p6), %s19281_s1, 48, %s16745_s26, [#allocation6]  }
  0x31   : > { %s19283_s3 = sld [smem:[#allocation46_spill]] }
  0x37   : > { %s16226_s14 = scalar_lea.hbm %s19283_s3, 27648 }
  0x38   : > { %p16227_p10 = scmp.ne.s32.totalorder %s19283_s3, %s16226_s14  ;;  %p16233_p4 = scmp.lt.u32.totalorder %s16226_s14, %s19283_s3 }
  0x3a   : > { %p16229_p11 = pnand %p16227_p10, %p16772_p8 }
  0x3c   : > { %p16230_p12 = pneg %p16229_p11 }
  0x3e   : > { %p16235_p13 = pnand %p16233_p4, %p16230_p12 }
  0x40   : > { %16238 = shalt.err (!%p16235_p13)
}
  0x41   : > { %s16239_s26 = scalar_lea.vmem %s16754_s30, 27648  ;;  %p16247_p7 = scmp.lt.s32.totalorder %s16754_s30, %s16754_s30 }
  0x42   : > { %p16240_p0 = scmp.ne.s32.totalorder %s16754_s30, %s16239_s26  ;;  %p16248_p9 = scmp.lt.s32.totalorder %s16239_s26, %s16239_s26 }
  0x44   : > { %p16242_p2 = pnand %p16240_p0, %p16772_p8  ;;  %p16249_p10 = por %p16248_p9, %p16247_p7 }
  0x46   : > { %p16243_p5 = pneg %p16242_p2 }
  0x48   : > { %p16250_p11 = pnand %p16249_p10, %p16243_p5 }
  0x4a   : > { %16253 = shalt.err (!%p16250_p11)
}
  0x4b   : > { %s16631_s12 = smov 576   ;;  %s16632_s28 = smov 36  }
  0x4c   : > { %14595 = dma.hbm_to_vmem [thread:$0]  (!%p16758_p6), %s19283_s3, 27648, %s16754_s30, [#allocation9], %s16631_s12, %s16631_s12, %s16632_s28  }
  0x4d   : > { %s19284_s5 = sld [smem:[#allocation47_spill]] }
  0x53   : > { %s16254_s14 = scalar_lea.hbm %s19284_s5, 48 }
  0x54   : > { %p16255_p12 = scmp.ne.s32.totalorder %s19284_s5, %s16254_s14  ;;  %p16261_p0 = scmp.lt.u32.totalorder %s16254_s14, %s19284_s5 }
  0x56   : > { %p16257_p4 = pnand %p16255_p12, %p16772_p8 }
  0x58   : > { %p16258_p13 = pneg %p16257_p4 }
  0x5a   : > { %p16263_p2 = pnand %p16261_p0, %p16258_p13 }
  0x5c   : > { %16266 = shalt.err (!%p16263_p2)
}
  0x5d   : > { %s16267_s30 = scalar_lea.vmem %s16762_s15, 48  ;;  %s16274_s12 = scalar_lea.vmem %s16762_s15, 64 }
  0x5e   : > { %p16268_p5 = scmp.ne.s32.totalorder %s16762_s15, %s16267_s30  ;;  %p16275_p10 = scmp.lt.s32.totalorder %s16762_s15, %s16762_s15 }
  0x5f   : > { %p16276_p11 = scmp.lt.s32.totalorder %s16274_s12, %s16267_s30 }
  0x60   : > { %p16270_p7 = pnand %p16268_p5, %p16772_p8 }
  0x61   : > { %p16277_p12 = por %p16276_p11, %p16275_p10 }
  0x62   : > { %p16271_p9 = pneg %p16270_p7 }
  0x64   : > { %p16278_p4 = pnand %p16277_p12, %p16271_p9 }
  0x66   : > { %16281 = shalt.err (!%p16278_p4)
}
  0x67   : > { %14601 = dma.hbm_to_vmem [thread:$0]  (!%p16758_p6), %s19284_s5, 48, %s16762_s15, [#allocation12]  }
  0x68   : > { %s16633_s18 = smov [#allocation14]   ;;  %s16634_s20 = smov [#allocation17]  }
  0x69   : > { %s405_s19 = sshll.u32 %s16633_s18, 4  ;;  %s429_s29 = sshll.u32 %s16634_s20, 4  ;;  %s406_s19 = int_to_ptr.vmem [resolvable:$true] %s405_s19  ;;  %s430_s29 = int_to_ptr.vmem [resolvable:$true] %s429_s29 }
  0x6a   : > { %s16282_s17 = scalar_lea.hbm %s19233_s7, 48 }
  0x6b   : > { %p16283_p13 = scmp.ne.s32.totalorder %s19233_s7, %s16282_s17  ;;  %p16289_p5 = scmp.lt.u32.totalorder %s16282_s17, %s19233_s7 }
  0x6d   : > { %p16285_p0 = pnand %p16283_p13, %p16772_p8 }
  0x6f   : > { %p16286_p2 = pneg %p16285_p0 }
  0x71   : > { %p16291_p7 = pnand %p16289_p5, %p16286_p2 }
  0x73   : > { %16294 = shalt.err (!%p16291_p7)
}
  0x74   : > { %s16295_s15 = scalar_lea.vmem %s406_s19, 48  ;;  %s16302_s28 = scalar_lea.vmem %s406_s19, 64 }
  0x75   : > { %p16296_p9 = scmp.ne.s32.totalorder %s406_s19, %s16295_s15  ;;  %p16303_p12 = scmp.lt.s32.totalorder %s406_s19, %s406_s19 }
  0x76   : > { %p16304_p4 = scmp.lt.s32.totalorder %s16302_s28, %s16295_s15 }
  0x77   : > { %p16298_p10 = pnand %p16296_p9, %p16772_p8 }
  0x78   : > { %p16305_p1 = por %p16304_p4, %p16303_p12 }
  0x79   : > { %p16299_p11 = pneg %p16298_p10 }
  0x7b   : > { %p16306_p3 = pnand %p16305_p1, %p16299_p11 }
  0x7d   : > { %16309 = shalt.err (!%p16306_p3)
}
  0x7e   : > { %14607 = dma.hbm_to_vmem [thread:$0]  (!%p16758_p6), %s19233_s7, 48, %s406_s19, [#allocation15]  }
  0x7f   : > { %s16310_s17 = scalar_lea.hbm %s19235_s9, 192 }
  0x80   : > { %p16311_p13 = scmp.ne.s32.totalorder %s19235_s9, %s16310_s17  ;;  %p16317_p3 = scmp.lt.u32.totalorder %s16310_s17, %s19235_s9 }
  0x82   : > { %p16313_p0 = pnand %p16311_p13, %p16772_p8 }
  0x84   : > { %p16314_p1 = pneg %p16313_p0 }
  0x86   : > { %p16319_p2 = pnand %p16317_p3, %p16314_p1 }
  0x88   : > { %16322 = shalt.err (!%p16319_p2)
}
  0x89   : > { %s16323_s15 = scalar_lea.vmem %s430_s29, 192  ;;  %p16331_p10 = scmp.lt.s32.totalorder %s430_s29, %s430_s29 }
  0x8a   : > { %p16324_p5 = scmp.ne.s32.totalorder %s430_s29, %s16323_s15  ;;  %p16332_p11 = scmp.lt.s32.totalorder %s16323_s15, %s16323_s15 }
  0x8c   : > { %p16326_p7 = pnand %p16324_p5, %p16772_p8  ;;  %p16333_p12 = por %p16332_p11, %p16331_p10 }
  0x8e   : > { %p16327_p9 = pneg %p16326_p7 }
  0x90   : > { %p16334_p4 = pnand %p16333_p12, %p16327_p9 }
  0x92   : > { %16337 = shalt.err (!%p16334_p4)
}
  0x93   : > { %14613 = dma.hbm_to_vmem [thread:$0]  (!%p16758_p6), %s19235_s9, 192, %s430_s29, [#allocation18]  }
  0x94   : > { %s16635_s18 = smov [#allocation7]   ;;  %s16636_s14 = smov [#allocation10]  }
  0x95   : > { %s346_s20 = sshll.u32 %s16635_s18, 4  ;;  %s369_s16 = sshll.u32 %s16636_s14, 4  ;;  %s347_s20 = int_to_ptr.vmem [resolvable:$true] %s346_s20  ;;  %s370_s16 = int_to_ptr.vmem [resolvable:$true] %s369_s16 }
  0x96   : > { %s19285_s2 = sld [smem:[#allocation45_spill]] }
  0x9c   : > { %s16338_s30 = scalar_lea.hbm %s19285_s2, 48 }
  0x9d   : > { %p16339_p13 = scmp.ne.s32.totalorder %s19285_s2, %s16338_s30  ;;  %p16345_p3 = scmp.lt.u32.totalorder %s16338_s30, %s19285_s2 }
  0x9f   : > { %p16341_p0 = pnand %p16339_p13, %p16772_p8 }
  0xa1   : > { %p16342_p1 = pneg %p16341_p0 }
  0xa3   : > { %p16347_p2 = pnand %p16345_p3, %p16342_p1 }
  0xa5   : > { %16350 = shalt.err (!%p16347_p2)
}
  0xa6   : > { %s16351_s29 = scalar_lea.vmem %s347_s20, 48  ;;  %s16358_s28 = scalar_lea.vmem %s347_s20, 64 }
  0xa7   : > { %p16352_p5 = scmp.ne.s32.totalorder %s347_s20, %s16351_s29  ;;  %p16359_p10 = scmp.lt.s32.totalorder %s347_s20, %s347_s20 }
  0xa8   : > { %p16360_p11 = scmp.lt.s32.totalorder %s16358_s28, %s16351_s29 }
  0xa9   : > { %p16354_p7 = pnand %p16352_p5, %p16772_p8 }
  0xaa   : > { %p16361_p12 = por %p16360_p11, %p16359_p10 }
  0xab   : > { %p16355_p9 = pneg %p16354_p7 }
  0xad   : > { %p16362_p4 = pnand %p16361_p12, %p16355_p9 }
  0xaf   : > { %16365 = shalt.err (!%p16362_p4)
}
  0xb0   : > { %14592 = dma.hbm_to_vmem [thread:$0]  (!%p16758_p6), %s19285_s2, 48, %s347_s20, [#allocation6]  }
  0xb1   : > { %s16366_s30 = scalar_lea.hbm %s19230_s4, 9216 }
  0xb2   : > { %p16367_p13 = scmp.ne.s32.totalorder %s19230_s4, %s16366_s30  ;;  %p16373_p3 = scmp.lt.u32.totalorder %s16366_s30, %s19230_s4 }
  0xb4   : > { %p16369_p0 = pnand %p16367_p13, %p16772_p8 }
  0xb6   : > { %p16370_p1 = pneg %p16369_p0 }
  0xb8   : > { %p16375_p2 = pnand %p16373_p3, %p16370_p1 }
  0xba   : > { %16378 = shalt.err (!%p16375_p2)
}
  0xbb   : > { %s16379_s29 = scalar_lea.vmem %s370_s16, 9216  ;;  %p16387_p10 = scmp.lt.s32.totalorder %s370_s16, %s370_s16 }
  0xbc   : > { %p16380_p5 = scmp.ne.s32.totalorder %s370_s16, %s16379_s29  ;;  %p16388_p11 = scmp.lt.s32.totalorder %s16379_s29, %s16379_s29 }
  0xbe   : > { %p16382_p7 = pnand %p16380_p5, %p16772_p8  ;;  %p16389_p12 = por %p16388_p11, %p16387_p10 }
  0xc0   : > { %p16383_p9 = pneg %p16382_p7 }
  0xc2   : > { %p16390_p4 = pnand %p16389_p12, %p16383_p9 }
  0xc4   : > { %16393 = shalt.err (!%p16390_p4)
}
  0xc5   : > { %s19243_s20 = smov 192   ;;  %s19244_s28 = smov 12  }
  0xc6   : > { %14598 = dma.hbm_to_vmem [thread:$0]  (!%p16758_p6), %s19230_s4, 9216, %s370_s16, [#allocation9], %s19243_s20, %s19243_s20, %s19244_s28  }
  0xc7   : > { %s16639_s17 = smov [#allocation13]   ;;  %s16640_s30 = smov [#allocation16]  }
  0xc8   : > { %s394_s26 = sshll.u32 %s16639_s17, 4  ;;  %s415_s12 = sshll.u32 %s16640_s30, 4  ;;  %s395_s26 = int_to_ptr.vmem [resolvable:$true] %s394_s26  ;;  %s416_s12 = int_to_ptr.vmem [resolvable:$true] %s415_s12 }
  0xc9   : > { %s16394_s19 = scalar_lea.hbm %s19232_s6, 48 }
  0xca   : > { %p16395_p13 = scmp.ne.s32.totalorder %s19232_s6, %s16394_s19  ;;  %p16401_p3 = scmp.lt.u32.totalorder %s16394_s19, %s19232_s6 }
  0xcc   : > { %p16397_p0 = pnand %p16395_p13, %p16772_p8 }
  0xce   : > { %p16398_p1 = pneg %p16397_p0 }
  0xd0   : > { %p16403_p2 = pnand %p16401_p3, %p16398_p1 }
  0xd2   : > { %16406 = shalt.err (!%p16403_p2)
}
  0xd3   : > { %s16407_s16 = scalar_lea.vmem %s395_s26, 48  ;;  %s16414_s18 = scalar_lea.vmem %s395_s26, 64 }
  0xd4   : > { %p16408_p5 = scmp.ne.s32.totalorder %s395_s26, %s16407_s16  ;;  %p16415_p10 = scmp.lt.s32.totalorder %s395_s26, %s395_s26 }
  0xd5   : > { %p16416_p11 = scmp.lt.s32.totalorder %s16414_s18, %s16407_s16 }
  0xd6   : > { %p16410_p7 = pnand %p16408_p5, %p16772_p8 }
  0xd7   : > { %p16417_p12 = por %p16416_p11, %p16415_p10 }
  0xd8   : > { %p16411_p9 = pneg %p16410_p7 }
  0xda   : > { %p16418_p4 = pnand %p16417_p12, %p16411_p9 }
  0xdc   : > { %16421 = shalt.err (!%p16418_p4)
}
  0xdd   : > { %14604 = dma.hbm_to_vmem [thread:$0]  (!%p16758_p6), %s19232_s6, 48, %s395_s26, [#allocation12]  }
  0xde   : > { %s16422_s17 = scalar_lea.hbm %s19234_s8, 36864 }
  0xdf   : > { %p16423_p13 = scmp.ne.s32.totalorder %s19234_s8, %s16422_s17  ;;  %p16429_p3 = scmp.lt.u32.totalorder %s16422_s17, %s19234_s8 }
  0xe1   : > { %p16425_p0 = pnand %p16423_p13, %p16772_p8 }
  0xe3   : > { %p16426_p1 = pneg %p16425_p0 }
  0xe5   : > { %p16431_p2 = pnand %p16429_p3, %p16426_p1 }
  0xe7   : > { %16434 = shalt.err (!%p16431_p2)
}
  0xe8   : > { %s16435_s29 = scalar_lea.vmem %s416_s12, 36864  ;;  %p16443_p10 = scmp.lt.s32.totalorder %s416_s12, %s416_s12 }
  0xe9   : > { %p16436_p5 = scmp.ne.s32.totalorder %s416_s12, %s16435_s29  ;;  %p16444_p11 = scmp.lt.s32.totalorder %s16435_s29, %s16435_s29 }
  0xeb   : > { %p16438_p7 = pnand %p16436_p5, %p16772_p8  ;;  %p16445_p12 = por %p16444_p11, %p16443_p10 }
  0xed   : > { %p16439_p9 = pneg %p16438_p7 }
  0xef   : > { %p16446_p4 = pnand %p16445_p12, %p16439_p9 }
  0xf1   : > { %16449 = shalt.err (!%p16446_p4)
}
  0xf2   : > { %s16641_s26 = smov 768   ;;  %s16642_s16 = smov 48  }
  0xf3   : > { %14610 = dma.hbm_to_vmem [thread:$0]  (!%p16758_p6), %s19234_s8, 36864, %s416_s12, [#allocation15], %s16641_s26, %s16641_s26, %s16642_s16  }
  0xf4   : > { %s16643_s14 = smov [#allocation19]   ;;  %s16644_s5 = smov [#allocation20]  }
  0xf5   : > { %s439_s3 = sshll.u32 %s16643_s14, 4  ;;  %s453_s17 = sshll.u32 %s16644_s5, 4  ;;  %s440_s3 = int_to_ptr.vmem [resolvable:$true] %s439_s3  ;;  %s454_s17 = int_to_ptr.vmem [resolvable:$true] %s453_s17 }
  0xf6   : > { %s16450_s15 = scalar_lea.hbm %s19236_s10, 36864 }
  0xf7   : > { %p16451_p13 = scmp.ne.s32.totalorder %s19236_s10, %s16450_s15  ;;  %p16457_p3 = scmp.lt.u32.totalorder %s16450_s15, %s19236_s10 }
  0xf9   : > { %p16453_p0 = pnand %p16451_p13, %p16772_p8 }
  0xfb   : > { %p16454_p1 = pneg %p16453_p0 }
  0xfd   : > { %p16459_p2 = pnand %p16457_p3, %p16454_p1 }
  0xff   : > { %16462 = shalt.err (!%p16459_p2)
}
 0x100   : > { %s16463_s12 = scalar_lea.vmem %s440_s3, 36864  ;;  %p16471_p10 = scmp.lt.s32.totalorder %s440_s3, %s440_s3 }
 0x101   : > { %p16464_p5 = scmp.ne.s32.totalorder %s440_s3, %s16463_s12  ;;  %p16472_p11 = scmp.lt.s32.totalorder %s16463_s12, %s16463_s12 }
 0x103   : > { %p16466_p7 = pnand %p16464_p5, %p16772_p8  ;;  %p16473_p12 = por %p16472_p11, %p16471_p10 }
 0x105   : > { %p16467_p9 = pneg %p16466_p7 }
 0x107   : > { %p16474_p4 = pnand %p16473_p12, %p16467_p9 }
 0x109   : > { %16477 = shalt.err (!%p16474_p4)
}
 0x10a   : > { %s19286_s26 = smov 12   ;;  %s19287_s16 = smov 192  }
 0x10b   : > { %14616 = dma.hbm_to_vmem [thread:$0]  (!%p16758_p6), %s19236_s10, 36864, %s440_s3, [#allocation18], %s19287_s16, %s19287_s16, %s19286_s26  }
 0x10c   : > { %s16478_s14 = scalar_lea.hbm %s19237_s11, 48 }
 0x10d   : > { %p16479_p13 = scmp.ne.s32.totalorder %s19237_s11, %s16478_s14  ;;  %p16485_p3 = scmp.lt.u32.totalorder %s16478_s14, %s19237_s11 }
 0x10f   : > { %p16481_p0 = pnand %p16479_p13, %p16772_p8 }
 0x111   : > { %p16482_p1 = pneg %p16481_p0 }
 0x113   : > { %p16487_p2 = pnand %p16485_p3, %p16482_p1 }
 0x115   : > { %16490 = shalt.err (!%p16487_p2)
}
 0x116   : > { %s16491_s19 = scalar_lea.vmem %s454_s17, 48  ;;  %s16498_s3 = scalar_lea.vmem %s454_s17, 64 }
 0x117   : > { %p16492_p5 = scmp.ne.s32.totalorder %s454_s17, %s16491_s19  ;;  %p16499_p10 = scmp.lt.s32.totalorder %s454_s17, %s454_s17 }
 0x118   : > { %p16500_p11 = scmp.lt.s32.totalorder %s16498_s3, %s16491_s19 }
 0x119   : > { %p16494_p7 = pnand %p16492_p5, %p16772_p8 }
 0x11a   : > { %p16501_p12 = por %p16500_p11, %p16499_p10 }
 0x11b   : > { %p16495_p9 = pneg %p16494_p7 }
 0x11d   : > { %p16502_p4 = pnand %p16501_p12, %p16495_p9 }
 0x11f   : > { %16505 = shalt.err (!%p16502_p4)
}
 0x120   : > { %14619 = dma.hbm_to_vmem [thread:$0]  (!%p16758_p6), %s19237_s11, 48, %s454_s17, [#allocation21]  }
 0x121   : > { %s12300_s25 = sadd.s32 4294967294, %s16626_s24   ;;  %s16993_s13 = sadd.s32 1, %s16626_s24  }
 0x122   : > { %s41_s26 = sadd.s32 1, %s16622_s23  ;;  %s38_s16 = ssub.s32 %s16626_s24, %s16993_s13 }
 0x123   : > { %p48_p8 = scmp.ne.s32.totalorder %s16622_s23, %s16618_s22  ;;  %p39_p13 = scmp.eq.s32.totalorder %s38_s16, 0 }
 0x124   : > { %p49_p0 = scmp.eq.s32.totalorder %s16626_s24, 0  ;;  %p54_p1 = scmp.ne.s32.totalorder %s16618_s22, %s16614_s21 }
 0x125   : > { %p309_p3 = scmp.eq.s32.totalorder %s16740_s27, 1  ;;  %p19288_p5 = scmp.eq.s32.totalorder %s16740_s27, 0 }
 0x126   : > { %s17005_s20 = scalar_select %p39_p13, %s16622_s23, %s41_s26  }
 0x127   : > { %p50_p2 = por %p49_p0, %p48_p8  ;;  %p17009_p7 = por %p19288_p5, %p54_p1 }
 0x128   : > { %p17013_p6 = por %p309_p3, %p48_p8  ;;  %p315_p9 = scmp.eq.s32.totalorder %s12300_s25, 1 }
 0x129   : > { %p14639_p10 = scmp.lt.s32.totalorder %s16626_s24, 2  ;;  %s464_s18 = sand.u32 1, %s16622_s23  }
 0x12a   : > { %s19290_s17 = scalar_select %p17013_p6, 1, 0 }
 0x12b   : > { %p17019_p11 = por %p315_p9, %p54_p1  ;;  %s14534_s14 = smul.u32 192, %s464_s18 }
 0x12c   : > { %p17023_p12 = pnand %p14639_p10, %p50_p2  ;;  %s14535_s30 = smul.u32 3072, %s16626_s24 }
 0x12d   : > { %s19291_s2 = scalar_select %p17019_p11, 1, 0 }
 0x12e   : > { %s17031_s19 = scalar_lea.hbm %s19226_s0, %s14535_s30  ;;  %s468_s3 = scalar_lea.vmem [#allocation2], %s14534_s14 }
 0x12f   : > { %s475_s29 = sshll.u32 %s468_s3, 4  ;;  %s17035_s12 = scalar_lea.sflag [#allocation3], %s464_s18  ;;  %s17033_s29 = int_to_ptr.vmem [resolvable:$true] %s475_s29 }
 0x130   : > { %s16506_s25 = scalar_lea.hbm %s17031_s19, 3072  ;;  %p16508_p8 = pneg %p17023_p12 }
 0x131   : > { %p16507_p4 = scmp.ne.s32.totalorder %s17031_s19, %s16506_s25  ;;  %s16511_s30 = scalar_lea.hbm %s19226_s0, 6144 }
 0x132   : > { %p16512_p1 = scmp.lt.u32.totalorder %s17031_s19, %s19226_s0  ;;  %p16513_p3 = scmp.lt.u32.totalorder %s16511_s30, %s16506_s25 }
 0x133   : > { %p16509_p13 = pnand %p16508_p8, %p16507_p4  ;;  %p16515_p5 = scmp.lt.u32.totalorder %s16506_s25, %s17031_s19 }
 0x134   : > { %p16514_p2 = por %p16513_p3, %p16512_p1 }
 0x135   : > { %p16510_p0 = pneg %p16509_p13 }
 0x136   : > { %p16516_p9 = por %p16515_p5, %p16514_p2 }
 0x138   : > { %p16517_p10 = pnand %p16516_p9, %p16510_p0 }
 0x13a   : > { %16520 = shalt.err (!%p16517_p10)
}
 0x13b   : > { %s16521_s18 = scalar_lea.vmem %s17033_s29, 3072  ;;  %s16645_s14 = smov [#allocation2]  }
 0x13c   : > { %p16522_p4 = scmp.ne.s32.totalorder %s17033_s29, %s16521_s18  ;;  %s16526_s3 = sshll.u32 %s16645_s14, 4  ;;  %s16527_s3 = int_to_ptr.vmem [resolvable:$false] %s16526_s3 }
 0x13d   : > { %s16528_s26 = scalar_lea.vmem %s16527_s3, 6144  ;;  %p16529_p6 = scmp.lt.s32.totalorder %s17033_s29, %s16527_s3 }
 0x13e   : > { %p16524_p13 = pnand %p16522_p4, %p16508_p8  ;;  %p16530_p1 = scmp.lt.s32.totalorder %s16528_s26, %s16521_s18 }
 0x140   : > { %p16525_p11 = pneg %p16524_p13  ;;  %p16531_p3 = por %p16530_p1, %p16529_p6 }
 0x142   : > { %p16532_p2 = pnand %p16531_p3, %p16525_p11 }
 0x144   : > { %16535 = shalt.err (!%p16532_p2)
}
 0x145   : > { %s16646_s25 = smov 384   ;;  %s16647_s16 = smov 24  }
 0x146   : > { %14623 = dma.hbm_to_vmem [thread:$0]  (!%p17023_p12), %s17031_s19, 3072, %s17033_s29, %s17035_s12, %s16646_s25, %s16646_s25, %s16647_s16  }
 0x147   : > { %s19293_s30 = sld [smem:[#allocation31_spill]] }
 0x14d   : > { %p19294_p8 = scmp.ne.s32.totalorder %s19293_s30, 0 }
 0x14f   : > { %487 = sbr.rel (%p19294_p8) target bundleno = 7086 (0x1bae), region = 68 }
 0x156   : > { %s17066_s1 = sand.u32 1, %s16618_s22  }
 0x157   : > { %s14536_s15 = smul.u32 192, %s17066_s1  ;;  %s490_s18 = scalar_lea.sflag [#allocation3], %s17066_s1 }
 0x159   : > { %s17072_s14 = scalar_lea.vmem [#allocation2], %s14536_s15 }
 0x15a   : > { %16581 = dma.done.wait (%p17009_p7), %s490_s18, 3072  }
 0x15b   : > { %16583 = vsyncadd (%p17009_p7), %s490_s18, 4294964224  ;;  %p19295_p6 = scmp.eq.s32.totalorder %s16740_s27, 0 }
 0x15d   : > { %16585 = dma.done.wait (%p19295_p6), [#allocation6], 96   ;;  %p19296_p11 = pmov %p19295_p6 }
 0x15e   : > { %p19297_p12 = pmov %p19295_p6 }
 0x15f   : > { %16587 = vsyncadd (%p19296_p11), [#allocation6], 4294967200 }
 0x160   : > { %16589 = dma.done.wait (%p19297_p12), [#allocation9], 36864   ;;  %p19298_p0 = pmov %p19295_p6 }
 0x162   : > { %16591 = vsyncadd (%p19298_p0), [#allocation9], 4294930432  ;;  %p19299_p5 = pmov %p19298_p0 }
 0x163   : > { %p19300_p9 = pmov %p19298_p0 }
 0x164   : > { %16593 = dma.done.wait (%p19299_p5), [#allocation12], 96  }
 0x165   : > { %16595 = vsyncadd (%p19300_p9), [#allocation12], 4294967200  ;;  %p19301_p7 = pmov %p19298_p0 }
 0x166   : > { %p19302_p10 = pmov %p19298_p0 }
 0x167   : > { %16597 = dma.done.wait (%p19301_p7), [#allocation15], 36912  }
 0x168   : > { %16599 = vsyncadd (%p19302_p10), [#allocation15], 4294930384  ;;  %p19303_p4 = pmov %p19298_p0 }
 0x169   : > { %p19304_p13 = pmov %p19298_p0 }
 0x16a   : > { %16601 = dma.done.wait (%p19303_p4), [#allocation18], 37056  }
 0x16b   : > { %16603 = vsyncadd (%p19304_p13), [#allocation18], 4294930240  ;;  %p19305_p1 = pmov %p19298_p0 }
 0x16c   : > { %p19306_p3 = pmov %p19298_p0 }
 0x16d   : > { %16605 = dma.done.wait (%p19305_p1), [#allocation21], 48  }
 0x16e   : > { %16607 = vsyncadd (%p19306_p3), [#allocation21], 4294967248  ;;  %v17103_v0 = vld [vmem:[%s17072_s14] sm:$0xff]  ;;  %v17106_v1 = vld [vmem:[%s17072_s14 + $0x8] sm:$0xff]  ;;  %vm3083_vm0 = vcmask 523264   ;;  %s16650_s28 = smov 64  }
 0x16f   : > { %v17109_v2 = vld [vmem:[%s17072_s14 + $0x10] sm:$0xff]  ;;  %v605_v3 = vadd.f32 %v17106_v1, %v17103_v0  ;;  %v17117_v5 = vld [vmem:[%s17072_s14 + $0x38] sm:$0xff]  ;;  %v17120_v6 = vld [vmem:[%s17072_s14 + $0x40] sm:$0xff]  ;;  %s19122_s5 = scalar_lea.vmem [#allocation22], %s14536_s15  ;;  %s14537_s19 = smul.u32 3072, %s16740_s27 }
 0x170   : > { %v17114_v4 = vld [vmem:[%s17072_s14 + $0x30] sm:$0xff]  ;;  %v582_v8 = vld [vmem:[%s17072_s14 + $0x18] sm:$0xff]  ;;  %v583_v9 = vld [vmem:[%s17072_s14 + $0x20] sm:$0xff]  ;;  %s12122_s29 = sshll.u32 %s19122_s5, 4  ;;  %s19348_s26 = sld [smem:[#allocation48_spill]]  ;;  %s19180_s29 = int_to_ptr.vmem [resolvable:$true] %s12122_s29 }
 0x171   : > { %v613_v7 = vadd.f32 %v17117_v5, %v17114_v4  ;;  %v584_v10 = vld [vmem:[%s17072_s14 + $0x28] sm:$0xff]  ;;  %v606_v11 = vadd.f32 %v605_v3, %v17109_v2  ;;  %v609_v12 = vadd.f32 %v583_v9, %v582_v8  ;;  %v589_v14 = vld [vmem:[%s17072_s14 + $0x50] sm:$0xff]  ;;  %v590_v15 = vld [vmem:[%s17072_s14 + $0x58] sm:$0xff]  ;;  %s12109_s25 = scalar_lea.sflag [#allocation4], %s17066_s1  ;;  %s16536_s16 = scalar_lea.vmem %s19180_s29, 3072 }
 0x172   : > { %v588_v13 = vld [vmem:[%s17072_s14 + $0x48] sm:$0xff]  ;;  %v591_v18 = vld [vmem:[%s17072_s14 + $0x60] sm:$0xff]  ;;  %v594_v22 = vld [vmem:[%s17072_s14 + $0x78] sm:$0xff]  ;;  %p16537_p2 = scmp.ne.s32.totalorder %s19180_s29, %s16536_s16  ;;  %p19350_p8 = scmp.ne.s32.totalorder %s19290_s17, 0 }
 0x173   : > { %v614_v16 = vadd.f32 %v613_v7, %v17120_v6  ;;  %v617_v17 = vadd.f32 %v589_v14, %v588_v13  ;;  %v592_v19 = vld [vmem:[%s17072_s14 + $0x68] sm:$0xff]  ;;  %607 = vadd.xlane.f32.xlu0 %v606_v11  ;;  %v610_v20 = vadd.f32 %v609_v12, %v584_v10  ;;  %v595_v23 = vld [vmem:[%s17072_s14 + $0x80] sm:$0xff]  ;;  %v593_v25 = vld [vmem:[%s17072_s14 + $0x70] sm:$0xff]  ;;  %s16651_s30 = smov [#allocation22]  }
 0x174   : > { %v621_v21 = vadd.f32 %v592_v19, %v591_v18  ;;  %v625_v26 = vadd.f32 %v595_v23, %v594_v22  ;;  %v597_v27 = vld [vmem:[%s17072_s14 + $0x90] sm:$0xff]  ;;  %v598_v28 = vld [vmem:[%s17072_s14 + $0x98] sm:$0xff]  ;;  %v596_v29 = vld [vmem:[%s17072_s14 + $0x88] sm:$0xff]  ;;  %p16538_p6 = pnand %p16537_p2, %p19350_p8  ;;  %s16540_s15 = sshll.u32 %s16651_s30, 4  ;;  %s16541_s15 = int_to_ptr.vmem [resolvable:$false] %s16540_s15 }
 0x175   : > { %615 = vadd.xlane.f32.xlu1 %v614_v16  ;;  %v618_v24 = vadd.f32 %v617_v17, %v590_v15  ;;  %v600_v30 = vld [vmem:[%s17072_s14 + $0xa8] sm:$0xff]  ;;  %v601_v31 = vld [vmem:[%s17072_s14 + $0xb0] sm:$0xff]  ;;  %v599_v32 = vld [vmem:[%s17072_s14 + $0xa0] sm:$0xff]  ;;  %v629_v34 = vadd.f32 %v598_v28, %v597_v27  ;;  %s16542_s18 = scalar_lea.vmem %s16541_s15, 6144  ;;  %p16543_p12 = scmp.lt.s32.totalorder %s19180_s29, %s16541_s15 }
 0x176   : > { %v622_v33 = vadd.f32 %v621_v21, %v593_v25  ;;  %v602_v35 = vld [vmem:[%s17072_s14 + $0xb8] sm:$0xff]  ;;  %v626_v36 = vadd.f32 %v625_v26, %v596_v29  ;;  %v633_v37 = vadd.f32 %v601_v31, %v600_v30  ;;  %v14708_v40 = vld [vmem:[#allocation8 + $0x4] ss:$36 sps:$4 sm:$0xff]   ;;  %v14717_v49 = vld [vmem:[#allocation8 + $0xdc] ss:$36 sps:$4 sm:$0xff]   ;;  %s19176_s27 = scalar_lea.hbm %s19348_s26, %s14537_s19  ;;  %p16539_p11 = pneg %p16538_p6 }
 0x177   : > { %611 = vadd.xlane.f32.xlu0 %v610_v20  ;;  %v630_v38 = vadd.f32 %v629_v34, %v599_v32  ;;  %v14710_v41 = vld [vmem:[#allocation8] ss:$36 sps:$4 sm:$0xff]   ;;  %v14711_v42 = vld [vmem:[#allocation8 + $0x4c] ss:$36 sps:$4 sm:$0xff]   ;;  %2210 = vmatprep.subr.bf16.mxu0 %v14708_v40  ;;  %v14714_v44 = vld [vmem:[#allocation8 + $0x94] ss:$36 sps:$4 sm:$0xff]   ;;  %p16544_p0 = scmp.lt.s32.totalorder %s16542_s18, %s16536_s16 }
 0x178   : > { %v634_v39 = vadd.f32 %v633_v37, %v602_v35  ;;  %2211 = vmatpush1.bf16.msra.mxu0 %v14710_v41  ;;  %v14713_v43 = vld [vmem:[#allocation8 + $0x48] ss:$36 sps:$4 sm:$0xff]   ;;  %v14716_v46 = vld [vmem:[#allocation8 + $0x90] ss:$36 sps:$4 sm:$0xff]   ;;  %v14719_v51 = vld [vmem:[#allocation8 + $0xd8] ss:$36 sps:$4 sm:$0xff]  }
 0x179   : > { %619 = vadd.xlane.f32.xlu1 %v618_v24  ;;  %2212 = vmatprep.subr.bf16.mxu0 %v14711_v42  ;;  %v14732_v45 = vld [vmem:[#allocation8 + $0x48c] ss:$36 sps:$4 sm:$0xff]   ;;  %v14738_v48 = vld [vmem:[#allocation8 + $0x4d4] ss:$36 sps:$4 sm:$0xff]   ;;  %v14720_v52 = vld [vmem:[#allocation8 + $0x124] ss:$36 sps:$4 sm:$0xff]   ;;  %p16545_p5 = por %p16544_p0, %p16543_p12 }
 0x17a   : > { %v14736_v47 = vld [vmem:[#allocation8 + $0x488] ss:$36 sps:$4 sm:$0xff]   ;;  %2429 = vmatprep.subr.bf16.mxu1 %v14732_v45  ;;  %v14742_v50 = vld [vmem:[#allocation8 + $0x4d0] ss:$36 sps:$4 sm:$0xff]   ;;  %v14722_v53 = vld [vmem:[#allocation8 + $0x120] ss:$36 sps:$4 sm:$0xff]  }
 0x17b   : > { %623 = vadd.xlane.f32.xlu0 %v622_v33  ;;  %2430 = vmatpush1.bf16.msra.mxu1 %v14736_v47  ;;  %v14723_v54 = vld [vmem:[#allocation8 + $0x16c] ss:$36 sps:$4 sm:$0xff]   ;;  %v14726_v56 = vld [vmem:[#allocation8 + $0x1b4] ss:$36 sps:$4 sm:$0xff]   ;;  %v14729_v58 = vld [vmem:[#allocation8 + $0x1fc] ss:$36 sps:$4 sm:$0xff]   ;;  %p16546_p9 = pnand %p16545_p5, %p16539_p11 }
 0x17c   : > { %2213 = vmatpush1.bf16.msra.mxu0 %v14713_v43  ;;  %2431 = vmatprep.subr.bf16.mxu1 %v14738_v48  ;;  %v14725_v55 = vld [vmem:[#allocation8 + $0x168] ss:$36 sps:$4 sm:$0xff]   ;;  %v14728_v57 = vld [vmem:[#allocation8 + $0x1b0] ss:$36 sps:$4 sm:$0xff]   ;;  %v14731_v59 = vld [vmem:[#allocation8 + $0x1f8] ss:$36 sps:$4 sm:$0xff]  }
 0x17d   : > { %627 = vadd.xlane.f32.xlu1 %v626_v36  ;;  %2214 = vmatprep.subr.bf16.mxu0 %v14714_v44  ;;  %v14734_v60 = vld [vmem:[#allocation8 + $0x244] ss:$36 sps:$4 sm:$0xff]   ;;  %v14740_v62 = vld [vmem:[#allocation8 + $0x28c] ss:$36 sps:$4 sm:$0xff]   ;;  %v16157_v21 = vld [vmem:[%s17072_s14 + $0x20] sm:$0xff] }
 0x17e   : > { %v14737_v61 = vld [vmem:[#allocation8 + $0x240] ss:$36 sps:$4 sm:$0xff]   ;;  %v16156_v19 = vld [vmem:[%s17072_s14 + $0x18] sm:$0xff]  ;;  %v16160_v28 = vld [vmem:[%s17072_s14 + $0x50] sm:$0xff] }
 0x17f   : > { %631 = vadd.xlane.f32.xlu0 %v630_v38  ;;  %2432 = vmatpush1.bf16.msra.mxu1 %v14742_v50  ;;  %v16158_v24 = vld [vmem:[%s17072_s14 + $0x28] sm:$0xff]  ;;  %v16161_v32 = vld [vmem:[%s17072_s14 + $0x58] sm:$0xff]  ;;  %v16162_v43 = vld [vmem:[%s17072_s14 + $0x60] sm:$0xff] }
 0x180   : > { %2215 = vmatpush1.bf16.msra.mxu0 %v14716_v46  ;;  %v16159_v26 = vld [vmem:[%s17072_s14 + $0x48] sm:$0xff] }
 0x181   : > { %635 = vadd.xlane.f32.xlu1 %v634_v39  ;;  %2216 = vmatprep.subr.bf16.mxu0 %v14717_v49  ;;  %v16163_v45 = vld [vmem:[%s17072_s14 + $0x68] sm:$0xff]  ;;  %v16164_v49 = vld [vmem:[%s17072_s14 + $0x78] sm:$0xff] }
 0x184   : > { %2217 = vmatpush1.bf16.msra.mxu0 %v14719_v51  ;;  %v16165_v51 = vld [vmem:[%s17072_s14 + $0x80] sm:$0xff] }
 0x185   : > { %2218 = vmatprep.subr.bf16.mxu0 %v14720_v52 }
 0x188   : > { %2219 = vmatpush1.bf16.msra.mxu0 %v14722_v53 }
 0x189   : > { %2220 = vmatprep.subr.bf16.mxu0 %v14723_v54 }
 0x18c   : > { %2221 = vmatpush1.bf16.msra.mxu0 %v14725_v55  ;;  %v16166_v55 = vld [vmem:[%s17072_s14 + $0x70] sm:$0xff] }
 0x18d   : > { %2222 = vmatprep.subr.bf16.mxu0 %v14726_v56 }
 0x190   : > { %2223 = vmatpush1.bf16.msra.mxu0 %v14728_v57 }
 0x191   : > { %2224 = vmatprep.subr.bf16.mxu0 %v14729_v58 }
 0x194   : > { %2225 = vmatpush1.bf16.msra.mxu0 %v14731_v59 }
 0x195   : > { %2226 = vmatprep.subr.bf16.mxu0 %v14734_v60 }
 0x198   : > { %2227 = vmatpush1.bf16.msra.mxu0 %v14737_v61 }
 0x199   : > { %2228 = vmatprep.subr.bf16.mxu0 %v14740_v62 }
 0x200   : > { %v608_v63 = vpop.xlane.xlu0 %607 }
 0x201   : > { %v638_v3 = vmul.f32 0.0026041667, %v608_v63 }
 0x202   : > { %v616_v7 = vpop.xlane.xlu1 %615 }
 0x203   : > { %v640_v8 = vmul.f32 0.0026041667, %v616_v7  ;;  %v17145_v9 = vsub.f32 %v17103_v0, %v638_v3  ;;  %v17148_v10 = vsub.f32 %v17106_v1, %v638_v3  ;;  %v17151_v11 = vsub.f32 %v17109_v2, %v638_v3  ;;  %v16167_v7 = vld [vmem:[%s17072_s14 + $0x88] sm:$0xff] }
 0x204   : > { %v612_v14 = vpop.xlane.xlu0 %611 }
 0x205   : > { %v17154_v12 = vsub.f32 %v17114_v4, %v640_v8  ;;  %v17157_v13 = vsub.f32 %v17117_v5, %v640_v8  ;;  %v17160_v15 = vsub.f32 %v17120_v6, %v640_v8  ;;  %v639_v0 = vmul.f32 0.0026041667, %v612_v14  ;;  %v16168_v14 = vld [vmem:[%s17072_s14 + $0x90] sm:$0xff] }
 0x206   : > { %v620_v16 = vpop.xlane.xlu1 %619  ;;  %v670_v1 = vmul.f32 %v17145_v9, %v17145_v9  ;;  %v671_v2 = vmul.f32 %v17148_v10, %v17148_v10  ;;  %v672_v4 = vmul.f32 %v17151_v11, %v17151_v11 }
 0x207   : > { %v641_v5 = vmul.f32 0.0026041667, %v620_v16  ;;  %v676_v17 = vmul.f32 %v17154_v12, %v17154_v12  ;;  %v677_v6 = vmul.f32 %v17157_v13, %v17157_v13  ;;  %v678_v18 = vmul.f32 %v17160_v15, %v17160_v15  ;;  %v16169_v16 = vld [vmem:[%s17072_s14 + $0x98] sm:$0xff] }
 0x208   : > { %v17175_v20 = vsub.f32 %v16156_v19, %v639_v0  ;;  %v17178_v22 = vsub.f32 %v16157_v21, %v639_v0  ;;  %v694_v23 = vadd.f32 %v671_v2, %v670_v1  ;;  %v17181_v25 = vsub.f32 %v16158_v24, %v639_v0  ;;  %v624_v30 = vpop.xlane.xlu0 %623  ;;  %v16172_v24 = vld [vmem:[%s17072_s14 + $0xa0] sm:$0xff] }
 0x209   : > { %v17184_v27 = vsub.f32 %v16159_v26, %v641_v5  ;;  %v17187_v29 = vsub.f32 %v16160_v28, %v641_v5  ;;  %v702_v31 = vadd.f32 %v677_v6, %v676_v17  ;;  %v17190_v33 = vsub.f32 %v16161_v32, %v641_v5  ;;  %v16171_v17 = vld [vmem:[%s17072_s14 + $0xb0] sm:$0xff]  ;;  %v16173_v32 = vld [vmem:[%s17072_s14 + $0xb8] sm:$0xff] }
 0x20a   : > { %v642_v34 = vmul.f32 0.0026041667, %v624_v30  ;;  %v695_v35 = vadd.f32 %v694_v23, %v672_v4  ;;  %v628_v36 = vpop.xlane.xlu1 %627  ;;  %v673_v37 = vmul.f32 %v17175_v20, %v17175_v20  ;;  %v674_v38 = vmul.f32 %v17178_v22, %v17178_v22  ;;  %v16170_v4 = vld [vmem:[%s17072_s14 + $0xa8] sm:$0xff] }
 0x20b   : > { %v643_v39 = vmul.f32 0.0026041667, %v628_v36  ;;  %v703_v40 = vadd.f32 %v702_v31, %v678_v18  ;;  %v675_v41 = vmul.f32 %v17181_v25, %v17181_v25  ;;  %v679_v42 = vmul.f32 %v17184_v27, %v17184_v27 }
 0x20c   : > { %v17201_v44 = vsub.f32 %v16162_v43, %v642_v34  ;;  %v17204_v46 = vsub.f32 %v16163_v45, %v642_v34  ;;  %696 = vadd.xlane.f32.xlu0 %v695_v35  ;;  %v698_v47 = vadd.f32 %v674_v38, %v673_v37  ;;  %v680_v48 = vmul.f32 %v17187_v29, %v17187_v29  ;;  %v632_v53 = vpop.xlane.xlu0 %631 }
 0x20d   : > { %v17209_v50 = vsub.f32 %v16164_v49, %v643_v39  ;;  %v17212_v52 = vsub.f32 %v16165_v51, %v643_v39  ;;  %v681_v54 = vmul.f32 %v17190_v33, %v17190_v33  ;;  %v17217_v56 = vsub.f32 %v16166_v55, %v642_v34  ;;  %v14746_v49 = vld [vmem:[#allocation8 + $0x2d4] ss:$36 sps:$4 sm:$0xff]   ;;  %v14752_v55 = vld [vmem:[#allocation8 + $0x31c] ss:$36 sps:$4 sm:$0xff]  }
 0x20e   : > { %v644_v57 = vmul.f32 0.0026041667, %v632_v53  ;;  %v699_v58 = vadd.f32 %v698_v47, %v675_v41  ;;  %v636_v59 = vpop.xlane.xlu1 %635  ;;  %v706_v60 = vadd.f32 %v680_v48, %v679_v42  ;;  %v682_v61 = vmul.f32 %v17201_v44, %v17201_v44  ;;  %v14743_v47 = vld [vmem:[#allocation8 + $0x288] ss:$36 sps:$4 sm:$0xff]   ;;  %v14744_v48 = vld [vmem:[#allocation8 + $0x51c] ss:$36 sps:$4 sm:$0xff]  }
 0x20f   : > { %v645_v62 = vmul.f32 0.0026041667, %v636_v59  ;;  %v683_v63 = vmul.f32 %v17204_v46, %v17204_v46  ;;  %v684_v3 = vmul.f32 %v17217_v56, %v17217_v56  ;;  %v17226_v8 = vsub.f32 %v16167_v7, %v643_v39  ;;  %2229 = vmatpush1.bf16.msra.mxu0 %v14743_v47  ;;  %v14748_v51 = vld [vmem:[#allocation8 + $0x518] ss:$36 sps:$4 sm:$0xff]   ;;  %2433 = vmatprep.subr.bf16.mxu1 %v14744_v48  ;;  %v14749_v53 = vld [vmem:[#allocation8 + $0x2d0] ss:$36 sps:$4 sm:$0xff]  }
 0x210   : > { %v17229_v0 = vsub.f32 %v16168_v14, %v644_v57  ;;  %v17232_v1 = vsub.f32 %v16169_v16, %v644_v57  ;;  %704 = vadd.xlane.f32.xlu0 %v703_v40  ;;  %700 = vadd.xlane.f32.xlu1 %v699_v58  ;;  %v707_v2 = vadd.f32 %v706_v60, %v681_v54  ;;  %v14750_v54 = vld [vmem:[#allocation8 + $0x564] ss:$36 sps:$4 sm:$0xff]   ;;  %v14755_v58 = vld [vmem:[#allocation8 + $0x318] ss:$36 sps:$4 sm:$0xff]   ;;  %v14756_v59 = vld [vmem:[#allocation8 + $0x5ac] ss:$36 sps:$4 sm:$0xff]  }
 0x211   : > { %v17235_v5 = vsub.f32 %v16170_v4, %v645_v62  ;;  %v17238_v6 = vsub.f32 %v16171_v17, %v645_v62  ;;  %v710_v18 = vadd.f32 %v683_v63, %v682_v61  ;;  %v685_v19 = vmul.f32 %v17209_v50, %v17209_v50  ;;  %2230 = vmatprep.subr.bf16.mxu0 %v14746_v49  ;;  %v14758_v60 = vld [vmem:[#allocation8 + $0x364] ss:$36 sps:$4 sm:$0xff]   ;;  %v14762_v63 = vld [vmem:[#allocation8 + $0x5f4] ss:$36 sps:$4 sm:$0xff]   ;;  %v14768_v16 = vld [vmem:[#allocation8 + $0x63c] ss:$36 sps:$4 sm:$0xff]  }
 0x212   : > { %v686_v21 = vmul.f32 %v17212_v52, %v17212_v52  ;;  %v687_v23 = vmul.f32 %v17226_v8, %v17226_v8  ;;  %v17247_v26 = vsub.f32 %v16172_v24, %v644_v57  ;;  %v688_v28 = vmul.f32 %v17229_v0, %v17229_v0  ;;  %2434 = vmatpush1.bf16.msra.mxu1 %v14748_v51  ;;  %v14754_v57 = vld [vmem:[#allocation8 + $0x560] ss:$36 sps:$4 sm:$0xff]   ;;  %v14760_v61 = vld [vmem:[#allocation8 + $0x5a8] ss:$36 sps:$4 sm:$0xff]   ;;  %v14766_v7 = vld [vmem:[#allocation8 + $0x5f0] ss:$36 sps:$4 sm:$0xff]  }
 0x213   : > { %v711_v30 = vadd.f32 %v710_v18, %v684_v3  ;;  %v689_v31 = vmul.f32 %v17232_v1, %v17232_v1  ;;  %v17254_v34 = vsub.f32 %v16173_v32, %v645_v62  ;;  %v691_v35 = vmul.f32 %v17235_v5, %v17235_v5  ;;  %2231 = vmatpush1.bf16.msra.mxu0 %v14749_v53  ;;  %v14761_v62 = vld [vmem:[#allocation8 + $0x360] ss:$36 sps:$4 sm:$0xff]   ;;  %v14764_v3 = vld [vmem:[#allocation8 + $0x3ac] ss:$36 sps:$4 sm:$0xff]   ;;  %v14772_v4 = vld [vmem:[#allocation8 + $0x638] ss:$36 sps:$4 sm:$0xff]  }
 0x214   : > { %708 = vadd.xlane.f32.xlu1 %v707_v2  ;;  %v714_v36 = vadd.f32 %v686_v21, %v685_v19  ;;  %v690_v37 = vmul.f32 %v17247_v26, %v17247_v26  ;;  %v692_v38 = vmul.f32 %v17238_v6, %v17238_v6  ;;  %2435 = vmatprep.subr.bf16.mxu1 %v14750_v54  ;;  %v14767_v14 = vld [vmem:[#allocation8 + $0x3a8] ss:$36 sps:$4 sm:$0xff]   ;;  %v14770_v2 = vld [vmem:[#allocation8 + $0x3f4] ss:$36 sps:$4 sm:$0xff]   ;;  %v14776_v19 = vld [vmem:[#allocation8 + $0x43c] ss:$36 sps:$4 sm:$0xff]   ;;  %v19248_v32 = vlaneseq }
 0x215   : > { %712 = vadd.xlane.f32.xlu0 %v711_v30  ;;  %v718_v39 = vadd.f32 %v689_v31, %v688_v28  ;;  %v693_v40 = vmul.f32 %v17254_v34, %v17254_v34  ;;  %2232 = vmatprep.subr.bf16.mxu0 %v14752_v55  ;;  %v14773_v17 = vld [vmem:[#allocation8 + $0x3f0] ss:$36 sps:$4 sm:$0xff]   ;;  %v14774_v18 = vld [vmem:[#allocation8 + $0x684] ss:$36 sps:$4 sm:$0xff]   ;;  %v14782_v24 = vld [vmem:[#allocation8 + $0x1c] ss:$36 sps:$4 sm:$0xff]  }
 0x216   : > { %v715_v41 = vadd.f32 %v714_v36, %v687_v23  ;;  %v722_v42 = vadd.f32 %v692_v38, %v691_v35  ;;  %2436 = vmatpush1.bf16.msra.mxu1 %v14754_v57  ;;  %v14778_v21 = vld [vmem:[#allocation8 + $0x680] ss:$36 sps:$4 sm:$0xff]   ;;  %v14779_v23 = vld [vmem:[#allocation8 + $0x438] ss:$36 sps:$4 sm:$0xff]   ;;  %v19246_v28 = vmov 0  }
 0x217   : > { %v719_v43 = vadd.f32 %v718_v39, %v690_v37  ;;  %2233 = vmatpush1.bf16.msra.mxu0 %v14755_v58  ;;  %2437 = vmatprep.subr.bf16.mxu1 %v14756_v59  ;;  %v14785_v30 = vld [vmem:[#allocation8 + $0x484] ss:$36 sps:$4 sm:$0xff]   ;;  %v17266_v39 = vshrl.u32 %v19248_v32, 7  ;;  %v603_v53 = vld [vmem:[#allocation5] sm:$0x7] }
 0x218   : > { %716 = vadd.xlane.f32.xlu1 %v715_v41  ;;  %v723_v45 = vadd.f32 %v722_v42, %v693_v40  ;;  %2234 = vmatprep.subr.bf16.mxu0 %v14758_v60 }
 0x219   : > { %720 = vadd.xlane.f32.xlu0 %v719_v43  ;;  %2461 = vmatprep.mubr.bf16.mxu1 %v19246_v28  ;;  %19307 = vst [vmem:[#allocation32_spill] sm:$0xff] %v17266_v39  ;;  %v17269_v47 = vsub.s32 1, %v17266_v39  ;;  %v17272_v48 = vsub.s32 2, %v17266_v39 }
 0x21a   : > { %2438 = vmatpush1.bf16.msra.mxu1 %v14760_v61  ;;  %v17275_v61 = vsub.s32 0, %v17266_v39 }
 0x21b   : > { %2235 = vmatpush1.bf16.msra.mxu0 %v14761_v62  ;;  %2439 = vmatprep.subr.bf16.mxu1 %v14762_v63  ;;  %19308 = vst [vmem:[#allocation33_spill] sm:$0xff] %v17269_v47  ;;  %19309 = vst [vmem:[#allocation34_spill] sm:$0xff] %v17272_v48  ;;  %v17278_v63 = vrot.slane %v603_v53, %v17269_v47 }
 0x21c   : > { %724 = vadd.xlane.f32.xlu1 %v723_v45  ;;  %2236 = vmatprep.subr.bf16.mxu0 %v14764_v3  ;;  %19310 = vst [vmem:[#allocation35_spill] sm:$0xff] %v17275_v61  ;;  %v17281_v3 = vrot.slane %v603_v53, %v17272_v48 }
 0x21e   : > { %2440 = vmatpush1.bf16.msra.mxu1 %v14766_v7 }
 0x21f   : > { %2237 = vmatpush1.bf16.msra.mxu0 %v14767_v14  ;;  %2441 = vmatprep.subr.bf16.mxu1 %v14768_v16  ;;  %v604_v16 = vld [vmem:[#allocation7] sm:$0x7] }
 0x220   : > { %2238 = vmatprep.subr.bf16.mxu0 %v14770_v2 }
 0x222   : > { %2442 = vmatpush1.bf16.msra.mxu1 %v14772_v4 }
 0x223   : > { %2239 = vmatpush1.bf16.msra.mxu0 %v14773_v17  ;;  %2443 = vmatprep.subr.bf16.mxu1 %v14774_v18 }
 0x224   : > { %2240 = vmatprep.subr.bf16.mxu0 %v14776_v19 }
 0x226   : > { %2444 = vmatpush1.bf16.msra.mxu1 %v14778_v21 }
 0x227   : > { %2241 = vmatpush1.bf16.msra.mxu0 %v14779_v23  ;;  %2648 = vmatprep.subr.bf16.mxu1 %v14782_v24  ;;  %v17287_v23 = vrot.slane %v603_v53, %v17275_v61 }
 0x228   : > { %2283 = vmatprep.subr.bf16.mxu0 %v14785_v30  ;;  %v17291_v30 = vrot.slane %v604_v16, %v17269_v47 }
 0x299   : > { %v697_v31 = vpop.xlane.xlu0 %696 }
 0x29a   : > { %v726_v35 = vmul.f32 0.0026041667, %v697_v31 }
 0x29c   : > { %v734_v36 = vadd.f32 1e-05, %v726_v35  ;;  %v17295_v35 = vrot.slane %v604_v16, %v17272_v48 }
 0x29d   : > { %v701_v37 = vpop.xlane.xlu1 %700  ;;  %v705_v38 = vpop.xlane.xlu0 %704 }
 0x29e   : > { %15932 = vrsqrt.f32 %v734_v36  ;;  %v727_v40 = vmul.f32 0.0026041667, %v701_v37  ;;  %v728_v41 = vmul.f32 0.0026041667, %v705_v38  ;;  %v17300_v38 = vrot.slane %v604_v16, %v17275_v61 }
 0x2a0   : > { %v735_v42 = vadd.f32 1e-05, %v727_v40  ;;  %v736_v43 = vadd.f32 1e-05, %v728_v41 }
 0x2a1   : > { %v709_v45 = vpop.xlane.xlu1 %708 }
 0x2a2   : > { %15934 = vrsqrt.f32 %v735_v42  ;;  %v729_v49 = vmul.f32 0.0026041667, %v709_v45  ;;  %v713_v51 = vpop.xlane.xlu0 %712 }
 0x2a3   : > { %15936 = vrsqrt.f32 %v736_v43  ;;  %v730_v54 = vmul.f32 0.0026041667, %v713_v51 }
 0x2a4   : > { %v737_v55 = vadd.f32 1e-05, %v729_v49 }
 0x2a5   : > { %v738_v57 = vadd.f32 1e-05, %v730_v54  ;;  %v717_v58 = vpop.xlane.xlu1 %716 }
 0x2a6   : > { %15938 = vrsqrt.f32 %v737_v55  ;;  %v731_v59 = vmul.f32 0.0026041667, %v717_v58  ;;  %v721_v60 = vpop.xlane.xlu0 %720 }
 0x2a7   : > { %v732_v62 = vmul.f32 0.0026041667, %v721_v60  ;;  %15940 = vrsqrt.f32 %v738_v57  ;;  %v14783_v57 = vld [vmem:[#allocation8 + $0x480] ss:$36 sps:$4 sm:$0xff]  }
 0x2a8   : > { %v15933_v7 = vpop.eup %15932  ;;  %v739_v14 = vadd.f32 1e-05, %v731_v59  ;;  %v14788_v59 = vld [vmem:[#allocation8 + $0x64] ss:$36 sps:$4 sm:$0xff]  }
 0x2a9   : > { %v740_v2 = vadd.f32 1e-05, %v732_v62  ;;  %v725_v4 = vpop.xlane.xlu1 %724  ;;  %v751_v17 = vmul.f32 %v15933_v7, %v17148_v10  ;;  %v752_v18 = vmul.f32 %v15933_v7, %v17151_v11  ;;  %v750_v21 = vmul.f32 %v15933_v7, %v17145_v9 }
 0x2aa   : > { %15942 = vrsqrt.f32 %v739_v14  ;;  %v733_v19 = vmul.f32 0.0026041667, %v725_v4 }
 0x2ab   : > { %v791_v24 = vmul.f32 %v17278_v63, %v751_v17  ;;  %v792_v31 = vmul.f32 %v17281_v3, %v752_v18  ;;  %15944 = vrsqrt.f32 %v740_v2  ;;  %v790_v41 = vmul.f32 %v17287_v23, %v750_v21  ;;  %v14791_v2 = vld [vmem:[#allocation8 + $0x4cc] ss:$36 sps:$4 sm:$0xff]  }
 0x2ac   : > { %v15935_v10 = vpop.eup %15934  ;;  %v741_v36 = vadd.f32 1e-05, %v733_v19 }
 0x2ad   : > { %v15937_v11 = vpop.eup %15936  ;;  %v754_v37 = vmul.f32 %v15935_v10, %v17178_v22  ;;  %v755_v9 = vmul.f32 %v15935_v10, %v17181_v25  ;;  %v753_v40 = vmul.f32 %v15935_v10, %v17175_v20  ;;  %v831_v45 = vadd.f32 %v17291_v30, %v791_v24  ;;  %v14780_v25 = vld [vmem:[#allocation8 + $0x18] ss:$36 sps:$4 sm:$0xff]   ;;  %v14789_v10 = vld [vmem:[#allocation8 + $0x4c8] ss:$36 sps:$4 sm:$0xff]  }
 0x2ae   : > { %15946 = vrsqrt.f32 %v741_v36  ;;  %v757_v42 = vmul.f32 %v15937_v11, %v17157_v13  ;;  %v832_v22 = vadd.f32 %v17295_v35, %v792_v31  ;;  %v758_v20 = vmul.f32 %v15937_v11, %v17160_v15 }
 0x2af   : > { %v794_v43 = vmul.f32 %v17278_v63, %v754_v37  ;;  %v795_v49 = vmul.f32 %v17281_v3, %v755_v9  ;;  %v793_v53 = vmul.f32 %v17287_v23, %v753_v40  ;;  %v756_v55 = vmul.f32 %v15937_v11, %v17154_v12 }
 0x2b0   : > { %v15939_v51 = vpop.eup %15938  ;;  %v797_v54 = vmul.f32 %v17278_v63, %v757_v42  ;;  %v830_v14 = vadd.f32 %v17300_v38, %v790_v41  ;;  %v798_v21 = vmul.f32 %v17281_v3, %v758_v20  ;;  %v14794_v42 = vld [vmem:[#allocation8 + $0xac] ss:$36 sps:$4 sm:$0xff]  }
 0x2b1   : > { %v834_v13 = vadd.f32 %v17291_v30, %v794_v43  ;;  %v835_v58 = vadd.f32 %v17295_v35, %v795_v49  ;;  %v760_v60 = vmul.f32 %v15939_v51, %v17187_v29  ;;  %v761_v62 = vmul.f32 %v15939_v51, %v17190_v33  ;;  %v15941_v7 = vpop.eup %15940  ;;  %v14797_v43 = vld [vmem:[#allocation8 + $0x514] ss:$36 sps:$4 sm:$0xff]  }
 0x2b2   : > { %v833_v16 = vadd.f32 %v17300_v38, %v793_v53  ;;  %v759_v15 = vmul.f32 %v15939_v51, %v17184_v27  ;;  %v837_v33 = vadd.f32 %v17291_v30, %v797_v54  ;;  %v14786_v27 = vld [vmem:[#allocation8 + $0x60] ss:$36 sps:$4 sm:$0xff]   ;;  %v796_v36 = vmul.f32 %v17287_v23, %v756_v55 }
 0x2b3   : > { %v17320_v4 = vpack.c.bf16 %v834_v13, %v831_v45  ;;  %v17322_v12 = vpack.c.bf16 %v835_v58, %v832_v22  ;;  %v800_v17 = vmul.f32 %v17278_v63, %v760_v60  ;;  %v801_v18 = vmul.f32 %v17281_v3, %v761_v62  ;;  %v14800_v58 = vld [vmem:[#allocation8 + $0xf4] ss:$36 sps:$4 sm:$0xff]  }
 0x2b4   : > { %v15943_v19 = vpop.eup %15942  ;;  %v17326_v29 = vpack.c.bf16 %v833_v16, %v830_v14  ;;  %v799_v24 = vmul.f32 %v17287_v23, %v759_v15  ;;  %v763_v11 = vmul.f32 %v15941_v7, %v17204_v46  ;;  %v14792_v46 = vld [vmem:[#allocation8 + $0xa8] ss:$36 sps:$4 sm:$0xff]   ;;  %v838_v22 = vadd.f32 %v17295_v35, %v798_v21 }
 0x2b5   : > { %2242 = vmatprep.mubr.bf16.mxu0 %v17320_v4  ;;  %2462 = vmatmul.mubr.bf16.vlgmr.msra.gmra.mrb[0].mxu1 %v17322_v12  ;;  %v840_v31 = vadd.f32 %v17291_v30, %v800_v17  ;;  %v841_v37 = vadd.f32 %v17295_v35, %v801_v18  ;;  %v766_v9 = vmul.f32 %v15943_v19, %v17212_v52  ;;  %v17339_v40 = vpop.eup %15944  ;;  %v14806_v17 = vld [vmem:[#allocation8 + $0x13c] ss:$36 sps:$4 sm:$0xff]   ;;  %v14809_v18 = vld [vmem:[#allocation8 + $0x5a4] ss:$36 sps:$4 sm:$0xff]  }
 0x2b6   : > { %2649 = vmatpush1.bf16.msra.mxu1 %v14780_v25  ;;  %2243 = vmatmul.mubr.bf16.vlgmr.msra.gmra.mrb[0].mxu0 %v17326_v29  ;;  %v803_v45 = vmul.f32 %v17278_v63, %v763_v11  ;;  %v839_v51 = vadd.f32 %v17300_v38, %v799_v24  ;;  %v14795_v25 = vld [vmem:[#allocation8 + $0x510] ss:$36 sps:$4 sm:$0xff]   ;;  %v836_v53 = vadd.f32 %v17300_v38, %v796_v36  ;;  %v14804_v24 = vld [vmem:[#allocation8 + $0x138] ss:$36 sps:$4 sm:$0xff]  }
 0x2b7   : > { %2284 = vmatpush1.bf16.msra.mxu0 %v14783_v57  ;;  %2650 = vmatprep.subr.bf16.mxu1 %v14788_v59  ;;  %v17341_v41 = vpack.c.bf16 %v840_v31, %v837_v33  ;;  %v806_v52 = vmul.f32 %v17278_v63, %v766_v9  ;;  %v764_v54 = vmul.f32 %v15941_v7, %v17217_v56  ;;  %v14803_v59 = vld [vmem:[#allocation8 + $0x55c] ss:$36 sps:$4 sm:$0xff]  }
 0x2b8   : > { %v15947_v49 = vpop.eup %15946  ;;  %2285 = vmatprep.subr.bf16.mxu0 %v14791_v2  ;;  %2471 = vmatprep.mubr.bf16.mxu1 %v19246_v28  ;;  %v767_v20 = vmul.f32 %v15943_v19, %v17226_v8  ;;  %v765_v55 = vmul.f32 %v15943_v19, %v17209_v50  ;;  %v17353_v13 = vpack.c.bf16 %v841_v37, %v838_v22  ;;  %v14807_v31 = vld [vmem:[#allocation8 + $0x5a0] ss:$36 sps:$4 sm:$0xff]  }
 0x2b9   : > { %2252 = vmatprep.mubr.bf16.mxu0 %v17341_v41  ;;  %v846_v57 = vadd.f32 %v17291_v30, %v806_v52  ;;  %v762_v60 = vmul.f32 %v15941_v7, %v17201_v44  ;;  %v772_v62 = vmul.f32 %v15947_v49, %v17238_v6  ;;  %v843_v14 = vadd.f32 %v17291_v30, %v803_v45  ;;  %v14798_v44 = vld [vmem:[#allocation8 + $0xf0] ss:$36 sps:$4 sm:$0xff]   ;;  %v14801_v6 = vld [vmem:[#allocation8 + $0x558] ss:$36 sps:$4 sm:$0xff]  }
 0x2ba   : > { %2651 = vmatpush1.bf16.msra.mxu1 %v14786_v27  ;;  %v807_v56 = vmul.f32 %v17281_v3, %v767_v20  ;;  %v769_v50 = vmul.f32 %v17339_v40, %v17232_v1  ;;  %v17362_v8 = vpack.c.bf16 %v839_v51, %v836_v53  ;;  %v805_v16 = vmul.f32 %v17287_v23, %v765_v55  ;;  %v14815_v45 = vld [vmem:[#allocation8 + $0x5ec] ss:$36 sps:$4 sm:$0xff]   ;;  %v14821_v52 = vld [vmem:[#allocation8 + $0x634] ss:$36 sps:$4 sm:$0xff]  }
 0x2bb   : > { %2286 = vmatpush1.bf16.msra.mxu0 %v14789_v10  ;;  %2652 = vmatprep.subr.bf16.mxu1 %v14794_v42  ;;  %v17366_v2 = vpack.c.bf16 %v846_v57, %v843_v14  ;;  %v804_v7 = vmul.f32 %v17281_v3, %v764_v54  ;;  %v812_v15 = vmul.f32 %v17278_v63, %v772_v62  ;;  %v14818_v51 = vld [vmem:[#allocation8 + $0x1cc] ss:$36 sps:$4 sm:$0xff]   ;;  %v14824_v57 = vld [vmem:[#allocation8 + $0x214] ss:$36 sps:$4 sm:$0xff]  }
 0x2bc   : > { %2287 = vmatprep.subr.bf16.mxu0 %v14797_v43  ;;  %v802_v1 = vmul.f32 %v17287_v23, %v762_v60  ;;  %v847_v19 = vadd.f32 %v17295_v35, %v807_v56  ;;  %v809_v33 = vmul.f32 %v17278_v63, %v769_v50  ;;  %v773_v21 = vmul.f32 %v15947_v49, %v17254_v34  ;;  %v14812_v43 = vld [vmem:[#allocation8 + $0x184] ss:$36 sps:$4 sm:$0xff]   ;;  %v14822_v60 = vld [vmem:[#allocation8 + $0x210] ss:$36 sps:$4 sm:$0xff]   ;;  %v14825_v62 = vld [vmem:[#allocation8 + $0x678] ss:$36 sps:$4 sm:$0xff]  }
 0x2bd   : > { %2472 = vmatmul.mubr.bf16.gmra.mrb[4].mxu1 %v17353_v13  ;;  %v845_v27 = vadd.f32 %v17300_v38, %v805_v16  ;;  %v844_v10 = vadd.f32 %v17295_v35, %v804_v7  ;;  %v852_v36 = vadd.f32 %v17291_v30, %v812_v15  ;;  %v770_v11 = vmul.f32 %v17339_v40, %v17247_v26  ;;  %v14816_v53 = vld [vmem:[#allocation8 + $0x1c8] ss:$36 sps:$4 sm:$0xff]   ;;  %v14828_v14 = vld [vmem:[#allocation8 + $0x258] ss:$36 sps:$4 sm:$0xff]  }
 0x2be   : > { %2653 = vmatpush1.bf16.msra.mxu1 %v14792_v46  ;;  %2253 = vmatmul.mubr.bf16.gmra.mrb[4].mxu0 %v17362_v8  ;;  %v771_v37 = vmul.f32 %v15947_v49, %v17235_v5  ;;  %v842_v34 = vadd.f32 %v17300_v38, %v802_v1  ;;  %v768_v63 = vmul.f32 %v17339_v40, %v17229_v0  ;;  %v14810_v5 = vld [vmem:[#allocation8 + $0x180] ss:$36 sps:$4 sm:$0xff]   ;;  %v14813_v0 = vld [vmem:[#allocation8 + $0x5e8] ss:$36 sps:$4 sm:$0xff]   ;;  %v14839_v16 = vld [vmem:[#allocation8 + $0x54] ss:$36 sps:$4 sm:$0xff]  }
 0x2bf   : > { %2288 = vmatpush1.bf16.msra.mxu0 %v14795_v25  ;;  %2262 = vmatprep.mubr.bf16.mxu0 %v17366_v2  ;;  %v17386_v9 = vpack.c.bf16 %v847_v19, %v844_v10  ;;  %v849_v42 = vadd.f32 %v17291_v30, %v809_v33  ;;  %v813_v46 = vmul.f32 %v17281_v3, %v773_v21  ;;  %v14831_v56 = vld [vmem:[#allocation8 + $0x8] ss:$36 sps:$4 sm:$0xff]   ;;  %v14845_v15 = vld [vmem:[#allocation8 + $0x9c] ss:$36 sps:$4 sm:$0xff]   ;;  %v14846_v33 = vld [vmem:[#allocation8 + $0x330] ss:$36 sps:$4 sm:$0xff]  }
 0x2c0   : > { %2654 = vmatprep.subr.bf16.mxu1 %v14800_v58  ;;  %2289 = vmatprep.subr.bf16.mxu0 %v14803_v59  ;;  %v17390_v26 = vpack.c.bf16 %v845_v27, %v842_v34  ;;  %v811_v49 = vmul.f32 %v17287_v23, %v771_v37  ;;  %v810_v40 = vmul.f32 %v17281_v3, %v770_v11  ;;  %v14819_v3 = vld [vmem:[#allocation8 + $0x630] ss:$36 sps:$4 sm:$0xff]   ;;  %v14827_v58 = vld [vmem:[#allocation8 + $0x67c] ss:$36 sps:$4 sm:$0xff]   ;;  %v14836_v50 = vld [vmem:[#allocation8 + $0x2a4] ss:$36 sps:$4 sm:$0xff]  }
 0x2c1   : > { %2481 = vmatprep.mubr.bf16.mxu1 %v19246_v28  ;;  %v17394_v22 = vpack.c.bf16 %v852_v36, %v849_v42  ;;  %v808_v30 = vmul.f32 %v17287_v23, %v768_v63  ;;  %v853_v25 = vadd.f32 %v17295_v35, %v813_v46  ;;  %v14842_v7 = vld [vmem:[#allocation8 + $0x2ec] ss:$36 sps:$4 sm:$0xff]   ;;  %v14851_v19 = vld [vmem:[#allocation8 + $0xe4] ss:$36 sps:$4 sm:$0xff]   ;;  %v14863_v11 = vld [vmem:[#allocation8 + $0x174] ss:$36 sps:$4 sm:$0xff]  }
 0x2c2   : > { %2655 = vmatpush1.bf16.msra.mxu1 %v14798_v44  ;;  %v851_v54 = vadd.f32 %v17300_v38, %v811_v49  ;;  %v850_v20 = vadd.f32 %v17295_v35, %v810_v40  ;;  %v14830_v35 = vld [vmem:[#allocation8 + $0x25c] ss:$36 sps:$4 sm:$0xff]   ;;  %v14840_v1 = vld [vmem:[#allocation8 + $0x2e8] ss:$36 sps:$4 sm:$0xff]   ;;  %v14861_v34 = vld [vmem:[#allocation8 + $0x170] ss:$36 sps:$4 sm:$0xff]  }
 0x2c3   : > { %2290 = vmatpush1.bf16.msra.mxu0 %v14801_v6  ;;  %2656 = vmatprep.subr.bf16.mxu1 %v14806_v17  ;;  %v848_v23 = vadd.f32 %v17300_v38, %v808_v30  ;;  %v14833_v38 = vld [vmem:[#allocation8 + $0xc] ss:$36 sps:$4 sm:$0xff]   ;;  %v14834_v44 = vld [vmem:[#allocation8 + $0x2a0] ss:$36 sps:$4 sm:$0xff]   ;;  %v14843_v17 = vld [vmem:[#allocation8 + $0x98] ss:$36 sps:$4 sm:$0xff]  }
 0x2c4   : > { %2291 = vmatprep.subr.bf16.mxu0 %v14809_v18  ;;  %v17405_v55 = vpack.c.bf16 %v853_v25, %v850_v20  ;;  %v14837_v6 = vld [vmem:[#allocation8 + $0x50] ss:$36 sps:$4 sm:$0xff]   ;;  %v14849_v21 = vld [vmem:[#allocation8 + $0xe0] ss:$36 sps:$4 sm:$0xff]   ;;  %v14855_v10 = vld [vmem:[#allocation8 + $0x128] ss:$36 sps:$4 sm:$0xff]  }
 0x2c5   : > { %2482 = vmatmul.mubr.bf16.gmra.mrb[8].mxu1 %v17386_v9  ;;  %v17407_v59 = vpack.c.bf16 %v851_v54, %v848_v23  ;;  %v14848_v18 = vld [vmem:[#allocation8 + $0x334] ss:$36 sps:$4 sm:$0xff]   ;;  %v14857_v27 = vld [vmem:[#allocation8 + $0x12c] ss:$36 sps:$4 sm:$0xff]   ;;  %v14860_v36 = vld [vmem:[#allocation8 + $0x3c4] ss:$36 sps:$4 sm:$0xff]  }
 0x2c6   : > { %2657 = vmatpush1.bf16.msra.mxu1 %v14804_v24  ;;  %2263 = vmatmul.mubr.bf16.gmra.mrb[8].mxu0 %v17390_v26  ;;  %v14854_v24 = vld [vmem:[#allocation8 + $0x37c] ss:$36 sps:$4 sm:$0xff]   ;;  %v14866_v63 = vld [vmem:[#allocation8 + $0x40c] ss:$36 sps:$4 sm:$0xff]   ;;  %v14872_v46 = vld [vmem:[#allocation8 + $0x454] ss:$36 sps:$4 sm:$0xff]  }
 0x2c7   : > { %2292 = vmatpush1.bf16.msra.mxu0 %v14807_v31  ;;  %2272 = vmatprep.mubr.bf16.mxu0 %v17394_v22  ;;  %v14852_v31 = vld [vmem:[#allocation8 + $0x378] ss:$36 sps:$4 sm:$0xff]   ;;  %v14858_v37 = vld [vmem:[#allocation8 + $0x3c0] ss:$36 sps:$4 sm:$0xff]   ;;  %v14870_v49 = vld [vmem:[#allocation8 + $0x450] ss:$36 sps:$4 sm:$0xff]  }
 0x2c8   : > { %2658 = vmatprep.subr.bf16.mxu1 %v14812_v43  ;;  %2293 = vmatprep.subr.bf16.mxu0 %v14815_v45  ;;  %v14869_v42 = vld [vmem:[#allocation8 + $0x1bc] ss:$36 sps:$4 sm:$0xff]   ;;  %v14864_v43 = vld [vmem:[#allocation8 + $0x408] ss:$36 sps:$4 sm:$0xff]  }
 0x2c9   : > { %2491 = vmatprep.mubr.bf16.mxu1 %v19246_v28  ;;  %v14867_v45 = vld [vmem:[#allocation8 + $0x1b8] ss:$36 sps:$4 sm:$0xff]   ;;  %v14881_v30 = vld [vmem:[#allocation8 + $0x24c] ss:$36 sps:$4 sm:$0xff]   ;;  %v14884_v25 = vld [vmem:[#allocation8 + $0x4e4] ss:$36 sps:$4 sm:$0xff]  }
 0x2ca   : > { %2659 = vmatpush1.bf16.msra.mxu1 %v14810_v5  ;;  %v14875_v5 = vld [vmem:[#allocation8 + $0x204] ss:$36 sps:$4 sm:$0xff]   ;;  %v14878_v40 = vld [vmem:[#allocation8 + $0x49c] ss:$36 sps:$4 sm:$0xff]   ;;  %v14890_v20 = vld [vmem:[#allocation8 + $0x52c] ss:$36 sps:$4 sm:$0xff]  }
 0x2cb   : > { %2294 = vmatpush1.bf16.msra.mxu0 %v14813_v0  ;;  %2660 = vmatprep.subr.bf16.mxu1 %v14818_v51  ;;  %v14873_v0 = vld [vmem:[#allocation8 + $0x200] ss:$36 sps:$4 sm:$0xff]   ;;  %v14876_v51 = vld [vmem:[#allocation8 + $0x498] ss:$36 sps:$4 sm:$0xff]   ;;  %v14888_v23 = vld [vmem:[#allocation8 + $0x528] ss:$36 sps:$4 sm:$0xff]  }
 0x2cc   : > { %2295 = vmatprep.subr.bf16.mxu0 %v14821_v52  ;;  %v14879_v52 = vld [vmem:[#allocation8 + $0x248] ss:$36 sps:$4 sm:$0xff]   ;;  %v14882_v54 = vld [vmem:[#allocation8 + $0x4e0] ss:$36 sps:$4 sm:$0xff]  }
 0x2cd   : > { %2492 = vmatmul.mubr.bf16.gmra.mrb[12].mxu1 %v17405_v55 }
 0x2ce   : > { %2661 = vmatpush1.bf16.msra.mxu1 %v14816_v53  ;;  %2273 = vmatmul.mubr.bf16.gmra.mrb[12].mxu0 %v17407_v59  ;;  %v14887_v53 = vld [vmem:[#allocation8 + $0x294] ss:$36 sps:$4 sm:$0xff]  }
 0x2cf   : > { %2296 = vmatpush1.bf16.msra.mxu0 %v14819_v3  ;;  %2680 = vmatprep.mubr.bf16.mxu1 %v17320_v4  ;;  %v14885_v3 = vld [vmem:[#allocation8 + $0x290] ss:$36 sps:$4 sm:$0xff]  }
 0x2d0   : > { %2662 = vmatprep.subr.bf16.mxu1 %v14824_v57  ;;  %2297 = vmatprep.subr.bf16.mxu0 %v14827_v58  ;;  %v14893_v57 = vld [vmem:[#allocation8 + $0x2dc] ss:$36 sps:$4 sm:$0xff]  }
 0x2d1   : > { %2315 = vmatprep.mubr.bf16.mxu0 %v19246_v28  ;;  %v14891_v58 = vld [vmem:[#allocation8 + $0x2d8] ss:$36 sps:$4 sm:$0xff]  }
 0x2d2   : > { %2663 = vmatpush1.bf16.msra.mxu1 %v14822_v60  ;;  %v14896_v60 = vld [vmem:[#allocation8 + $0x574] ss:$36 sps:$4 sm:$0xff]  }
 0x2d3   : > { %2298 = vmatpush1.bf16.msra.mxu0 %v14825_v62  ;;  %2664 = vmatprep.subr.bf16.mxu1 %v14830_v35  ;;  %v14899_v62 = vld [vmem:[#allocation8 + $0x324] ss:$36 sps:$4 sm:$0xff]   ;;  %v14894_v35 = vld [vmem:[#allocation8 + $0x570] ss:$36 sps:$4 sm:$0xff]  }
 0x2d4   : > { %2356 = vmatprep.subr.bf16.mxu0 %v14833_v38  ;;  %v14897_v38 = vld [vmem:[#allocation8 + $0x320] ss:$36 sps:$4 sm:$0xff]  }
 0x2d6   : > { %2665 = vmatpush1.bf16.msra.mxu1 %v14828_v14  ;;  %2316 = vmatmul.mubr.bf16.vlgmr.msra.gmra.mrb[0].mxu0 %v17322_v12  ;;  %v14902_v14 = vld [vmem:[#allocation8 + $0x5bc] ss:$36 sps:$4 sm:$0xff]  }
 0x2d7   : > { %2357 = vmatpush1.bf16.msra.mxu0 %v14831_v56  ;;  %2666 = vmatprep.subr.bf16.mxu1 %v14836_v50  ;;  %v14900_v56 = vld [vmem:[#allocation8 + $0x5b8] ss:$36 sps:$4 sm:$0xff]   ;;  %v14905_v50 = vld [vmem:[#allocation8 + $0x36c] ss:$36 sps:$4 sm:$0xff]  }
 0x2d8   : > { %2358 = vmatprep.subr.bf16.mxu0 %v14839_v16  ;;  %2325 = vmatprep.mubr.bf16.mxu0 %v19246_v28  ;;  %v14903_v16 = vld [vmem:[#allocation8 + $0x368] ss:$36 sps:$4 sm:$0xff]  }
 0x2da   : > { %2667 = vmatpush1.bf16.msra.mxu1 %v14834_v44  ;;  %v14908_v44 = vld [vmem:[#allocation8 + $0x604] ss:$36 sps:$4 sm:$0xff]  }
 0x2db   : > { %2359 = vmatpush1.bf16.msra.mxu0 %v14837_v6  ;;  %2668 = vmatprep.subr.bf16.mxu1 %v14842_v7  ;;  %v14911_v6 = vld [vmem:[#allocation8 + $0x3b4] ss:$36 sps:$4 sm:$0xff]   ;;  %v14906_v7 = vld [vmem:[#allocation8 + $0x600] ss:$36 sps:$4 sm:$0xff]  }
 0x2dc   : > { %2360 = vmatprep.subr.bf16.mxu0 %v14845_v15  ;;  %v14909_v15 = vld [vmem:[#allocation8 + $0x3b0] ss:$36 sps:$4 sm:$0xff]  }
 0x2de   : > { %2669 = vmatpush1.bf16.msra.mxu1 %v14840_v1  ;;  %2326 = vmatmul.mubr.bf16.gmra.mrb[4].mxu0 %v17353_v13  ;;  %v14914_v1 = vld [vmem:[#allocation8 + $0x64c] ss:$36 sps:$4 sm:$0xff]  }
 0x2df   : > { %2361 = vmatpush1.bf16.msra.mxu0 %v14843_v17  ;;  %2670 = vmatprep.subr.bf16.mxu1 %v14848_v18  ;;  %v14917_v17 = vld [vmem:[#allocation8 + $0x3fc] ss:$36 sps:$4 sm:$0xff]   ;;  %v14912_v18 = vld [vmem:[#allocation8 + $0x648] ss:$36 sps:$4 sm:$0xff]  }
 0x2e0   : > { %2362 = vmatprep.subr.bf16.mxu0 %v14851_v19  ;;  %2335 = vmatprep.mubr.bf16.mxu0 %v19246_v28  ;;  %v14915_v19 = vld [vmem:[#allocation8 + $0x3f8] ss:$36 sps:$4 sm:$0xff]  }
 0x2e2   : > { %2671 = vmatpush1.bf16.msra.mxu1 %v14846_v33  ;;  %v14920_v33 = vld [vmem:[#allocation8 + $0x694] ss:$36 sps:$4 sm:$0xff]  }
 0x2e3   : > { %2363 = vmatpush1.bf16.msra.mxu0 %v14849_v21  ;;  %2672 = vmatprep.subr.bf16.mxu1 %v14854_v24  ;;  %v14923_v21 = vld [vmem:[#allocation8 + $0x444] ss:$36 sps:$4 sm:$0xff]   ;;  %v14918_v24 = vld [vmem:[#allocation8 + $0x690] ss:$36 sps:$4 sm:$0xff]  }
 0x2e4   : > { %2364 = vmatprep.subr.bf16.mxu0 %v14857_v27  ;;  %v14921_v27 = vld [vmem:[#allocation8 + $0x440] ss:$36 sps:$4 sm:$0xff]  }
 0x2e6   : > { %2673 = vmatpush1.bf16.msra.mxu1 %v14852_v31  ;;  %2336 = vmatmul.mubr.bf16.gmra.mrb[8].mxu0 %v17386_v9  ;;  %v14924_v31 = vld [vmem:[#allocation8 + $0x4a0] ss:$36 sps:$4 sm:$0xff]  }
 0x2e7   : > { %2365 = vmatpush1.bf16.msra.mxu0 %v14855_v10  ;;  %2674 = vmatprep.subr.bf16.mxu1 %v14860_v36  ;;  %v14927_v10 = vld [vmem:[#allocation8 + $0x14] ss:$36 sps:$4 sm:$0xff]  }
 0x2e8   : > { %2366 = vmatprep.subr.bf16.mxu0 %v14863_v11  ;;  %2345 = vmatprep.mubr.bf16.mxu0 %v19246_v28  ;;  %v14925_v36 = vld [vmem:[#allocation8 + $0x10] ss:$36 sps:$4 sm:$0xff]   ;;  %v14928_v11 = vld [vmem:[#allocation8 + $0x4e8] ss:$36 sps:$4 sm:$0xff]  }
 0x2ea   : > { %2675 = vmatpush1.bf16.msra.mxu1 %v14858_v37  ;;  %v14931_v37 = vld [vmem:[#allocation8 + $0x5c] ss:$36 sps:$4 sm:$0xff]  }
 0x2eb   : > { %2367 = vmatpush1.bf16.msra.mxu0 %v14861_v34  ;;  %2676 = vmatprep.subr.bf16.mxu1 %v14866_v63  ;;  %v14929_v34 = vld [vmem:[#allocation8 + $0x58] ss:$36 sps:$4 sm:$0xff]   ;;  %v14932_v63 = vld [vmem:[#allocation8 + $0x530] ss:$36 sps:$4 sm:$0xff]  }
 0x2ec   : > { %2368 = vmatprep.subr.bf16.mxu0 %v14869_v42  ;;  %v14935_v42 = vld [vmem:[#allocation8 + $0xa4] ss:$36 sps:$4 sm:$0xff]  }
 0x2ee   : > { %2677 = vmatpush1.bf16.msra.mxu1 %v14864_v43  ;;  %2346 = vmatmul.mubr.bf16.gmra.mrb[12].mxu0 %v17405_v55  ;;  %v14933_v43 = vld [vmem:[#allocation8 + $0xa0] ss:$36 sps:$4 sm:$0xff]  }
 0x2ef   : > { %2369 = vmatpush1.bf16.msra.mxu0 %v14867_v45  ;;  %2388 = vmatprep.mubr.bf16.mxu0 %v17320_v4  ;;  %v14936_v45 = vld [vmem:[#allocation8 + $0x578] ss:$36 sps:$4 sm:$0xff]  }
 0x2f0   : > { %2678 = vmatprep.subr.bf16.mxu1 %v14872_v46  ;;  %2370 = vmatprep.subr.bf16.mxu0 %v14875_v5  ;;  %v14939_v46 = vld [vmem:[#allocation8 + $0xec] ss:$36 sps:$4 sm:$0xff]  }
 0x2f1   : > { %v14937_v5 = vld [vmem:[#allocation8 + $0xe8] ss:$36 sps:$4 sm:$0xff]  }
 0x2f2   : > { %2679 = vmatpush1.bf16.msra.mxu1 %v14870_v49  ;;  %v14940_v49 = vld [vmem:[#allocation8 + $0x5c0] ss:$36 sps:$4 sm:$0xff]  }
 0x2f3   : > { %2371 = vmatpush1.bf16.msra.mxu0 %v14873_v0  ;;  %2721 = vmatprep.subr.bf16.mxu1 %v14878_v40  ;;  %v14943_v0 = vld [vmem:[#allocation8 + $0x134] ss:$36 sps:$4 sm:$0xff]  }
 0x2f4   : > { %2372 = vmatprep.subr.bf16.mxu0 %v14881_v30  ;;  %v14941_v40 = vld [vmem:[#allocation8 + $0x130] ss:$36 sps:$4 sm:$0xff]   ;;  %v14944_v30 = vld [vmem:[#allocation8 + $0x608] ss:$36 sps:$4 sm:$0xff]  }
 0x2f5   : > { %2681 = vmatmul.mubr.bf16.vlgmr.msra.gmra.mrb[16].mxu1 %v17326_v29 }
 0x2f6   : > { %2690 = vmatprep.mubr.bf16.mxu1 %v17341_v41  ;;  %2722 = vmatpush1.bf16.msra.mxu1 %v14876_v51  ;;  %v14947_v51 = vld [vmem:[#allocation8 + $0x17c] ss:$36 sps:$4 sm:$0xff]  }
 0x2f7   : > { %2373 = vmatpush1.bf16.msra.mxu0 %v14879_v52  ;;  %2723 = vmatprep.subr.bf16.mxu1 %v14884_v25  ;;  %v14945_v52 = vld [vmem:[#allocation8 + $0x178] ss:$36 sps:$4 sm:$0xff]   ;;  %v14948_v25 = vld [vmem:[#allocation8 + $0x650] ss:$36 sps:$4 sm:$0xff]  }
 0x2f8   : > { %2374 = vmatprep.subr.bf16.mxu0 %v14887_v53  ;;  %v14951_v53 = vld [vmem:[#allocation8 + $0x1c4] ss:$36 sps:$4 sm:$0xff]  }
 0x2fa   : > { %2724 = vmatpush1.bf16.msra.mxu1 %v14882_v54  ;;  %v14949_v54 = vld [vmem:[#allocation8 + $0x1c0] ss:$36 sps:$4 sm:$0xff]  }
 0x2fb   : > { %2375 = vmatpush1.bf16.msra.mxu0 %v14885_v3  ;;  %2725 = vmatprep.subr.bf16.mxu1 %v14890_v20  ;;  %v14952_v3 = vld [vmem:[#allocation8 + $0x698] ss:$36 sps:$4 sm:$0xff]   ;;  %v14955_v20 = vld [vmem:[#allocation8 + $0x20c] ss:$36 sps:$4 sm:$0xff]  }
 0x2fc   : > { %2376 = vmatprep.subr.bf16.mxu0 %v14893_v57  ;;  %v14958_v57 = vld [vmem:[#allocation8 + $0x254] ss:$36 sps:$4 sm:$0xff]  }
 0x2fd   : > { %2691 = vmatmul.mubr.bf16.gmra.mrb[20].mxu1 %v17362_v8 }
 0x2fe   : > { %2700 = vmatprep.mubr.bf16.mxu1 %v17366_v2  ;;  %2726 = vmatpush1.bf16.msra.mxu1 %v14888_v23  ;;  %v14953_v23 = vld [vmem:[#allocation8 + $0x208] ss:$36 sps:$4 sm:$0xff]  }
 0x2ff   : > { %2377 = vmatpush1.bf16.msra.mxu0 %v14891_v58  ;;  %2727 = vmatprep.subr.bf16.mxu1 %v14896_v60  ;;  %v14956_v58 = vld [vmem:[#allocation8 + $0x250] ss:$36 sps:$4 sm:$0xff]   ;;  %v14961_v60 = vld [vmem:[#allocation8 + $0x29c] ss:$36 sps:$4 sm:$0xff]  }
 0x300   : > { %2378 = vmatprep.subr.bf16.mxu0 %v14899_v62  ;;  %v14959_v62 = vld [vmem:[#allocation8 + $0x298] ss:$36 sps:$4 sm:$0xff]  }
 0x302   : > { %2728 = vmatpush1.bf16.msra.mxu1 %v14894_v35  ;;  %v14964_v35 = vld [vmem:[#allocation8 + $0x2e4] ss:$36 sps:$4 sm:$0xff]  }
 0x303   : > { %2379 = vmatpush1.bf16.msra.mxu0 %v14897_v38  ;;  %2729 = vmatprep.subr.bf16.mxu1 %v14902_v14  ;;  %v14962_v38 = vld [vmem:[#allocation8 + $0x2e0] ss:$36 sps:$4 sm:$0xff]   ;;  %v14967_v14 = vld [vmem:[#allocation8 + $0x32c] ss:$36 sps:$4 sm:$0xff]  }
 0x304   : > { %2380 = vmatprep.subr.bf16.mxu0 %v14905_v50  ;;  %v14970_v50 = vld [vmem:[#allocation8 + $0x374] ss:$36 sps:$4 sm:$0xff]  }
 0x305   : > { %2701 = vmatmul.mubr.bf16.gmra.mrb[24].mxu1 %v17390_v26 }
 0x306   : > { %2710 = vmatprep.mubr.bf16.mxu1 %v17394_v22  ;;  %2730 = vmatpush1.bf16.msra.mxu1 %v14900_v56  ;;  %v14965_v56 = vld [vmem:[#allocation8 + $0x328] ss:$36 sps:$4 sm:$0xff]  }
 0x307   : > { %2381 = vmatpush1.bf16.msra.mxu0 %v14903_v16  ;;  %2731 = vmatprep.subr.bf16.mxu1 %v14908_v44  ;;  %v14968_v16 = vld [vmem:[#allocation8 + $0x370] ss:$36 sps:$4 sm:$0xff]   ;;  %v14973_v44 = vld [vmem:[#allocation8 + $0x3bc] ss:$36 sps:$4 sm:$0xff]  }
 0x308   : > { %2382 = vmatprep.subr.bf16.mxu0 %v14911_v6  ;;  %v14971_v6 = vld [vmem:[#allocation8 + $0x3b8] ss:$36 sps:$4 sm:$0xff]  }
 0x30a   : > { %2732 = vmatpush1.bf16.msra.mxu1 %v14906_v7  ;;  %v14976_v7 = vld [vmem:[#allocation8 + $0x404] ss:$36 sps:$4 sm:$0xff]  }
 0x30b   : > { %2383 = vmatpush1.bf16.msra.mxu0 %v14909_v15  ;;  %2733 = vmatprep.subr.bf16.mxu1 %v14914_v1  ;;  %v14974_v15 = vld [vmem:[#allocation8 + $0x400] ss:$36 sps:$4 sm:$0xff]   ;;  %v14979_v1 = vld [vmem:[#allocation8 + $0x44c] ss:$36 sps:$4 sm:$0xff]  }
 0x30c   : > { %2384 = vmatprep.subr.bf16.mxu0 %v14917_v17  ;;  %v14977_v17 = vld [vmem:[#allocation8 + $0x448] ss:$36 sps:$4 sm:$0xff]  }
 0x30d   : > { %2711 = vmatmul.mubr.bf16.gmra.mrb[28].mxu1 %v17407_v59 }
 0x30e   : > { %2734 = vmatpush1.bf16.msra.mxu1 %v14912_v18  ;;  %2753 = vmatprep.mubr.bf16.mxu1 %v19246_v28  ;;  %v14982_v18 = vld [vmem:[#allocation8 + $0x494] ss:$36 sps:$4 sm:$0xff]  }
 0x30f   : > { %2385 = vmatpush1.bf16.msra.mxu0 %v14915_v19  ;;  %2735 = vmatprep.subr.bf16.mxu1 %v14920_v33  ;;  %v14980_v19 = vld [vmem:[#allocation8 + $0x490] ss:$36 sps:$4 sm:$0xff]   ;;  %v14985_v33 = vld [vmem:[#allocation8 + $0x4dc] ss:$36 sps:$4 sm:$0xff]  }
 0x310   : > { %2386 = vmatprep.subr.bf16.mxu0 %v14923_v21  ;;  %v14983_v21 = vld [vmem:[#allocation8 + $0x4d8] ss:$36 sps:$4 sm:$0xff]  }
 0x312   : > { %2736 = vmatpush1.bf16.msra.mxu1 %v14918_v24  ;;  %v14988_v24 = vld [vmem:[#allocation8 + $0x524] ss:$36 sps:$4 sm:$0xff]  }
 0x313   : > { %2387 = vmatpush1.bf16.msra.mxu0 %v14921_v27  ;;  %13726 = vmatprep.subr.bf16.mxu1 %v14924_v31  ;;  %v14986_v27 = vld [vmem:[#allocation8 + $0x520] ss:$36 sps:$4 sm:$0xff]  }
 0x314   : > { %2502 = vmatprep.subr.bf16.mxu0 %v14927_v10  ;;  %v14989_v10 = vld [vmem:[#allocation8 + $0x568] ss:$36 sps:$4 sm:$0xff]  }
 0x315   : > { %2754 = vmatmul.mubr.bf16.vlgmr.msra.gmra.mrb[16].mxu1 %v17322_v12 }
 0x316   : > { %2389 = vmatmul.mubr.bf16.vlgmr.msra.gmra.mrb[16].mxu0 %v17326_v29  ;;  %13727 = vmatpush3.bf16.msra.mxu1 %v14924_v31  ;;  %v14991_v31 = vld [vmem:[#allocation8 + $0x56c] ss:$36 sps:$4 sm:$0xff]  }
 0x317   : > { %2398 = vmatprep.mubr.bf16.mxu0 %v17341_v41  ;;  %2503 = vmatpush1.bf16.msra.mxu0 %v14925_v36  ;;  %v14994_v36 = vld [vmem:[#allocation8 + $0x5b4] ss:$36 sps:$4 sm:$0xff]  }
 0x318   : > { %13728 = vmatprep.subr.bf16.mxu1 %v14928_v11  ;;  %2504 = vmatprep.subr.bf16.mxu0 %v14931_v37  ;;  %v14997_v37 = vld [vmem:[#allocation8 + $0x5fc] ss:$36 sps:$4 sm:$0xff]  }
 0x319   : > { %2763 = vmatprep.mubr.bf16.mxu1 %v19246_v28 }
 0x31a   : > { %13729 = vmatpush3.bf16.msra.mxu1 %v14928_v11  ;;  %v14992_v11 = vld [vmem:[#allocation8 + $0x5b0] ss:$36 sps:$4 sm:$0xff]  }
 0x31b   : > { %2505 = vmatpush1.bf16.msra.mxu0 %v14929_v34  ;;  %13730 = vmatprep.subr.bf16.mxu1 %v14932_v63  ;;  %v14995_v34 = vld [vmem:[#allocation8 + $0x5f8] ss:$36 sps:$4 sm:$0xff]  }
 0x31c   : > { %2506 = vmatprep.subr.bf16.mxu0 %v14935_v42  ;;  %v14998_v42 = vld [vmem:[#allocation8 + $0x640] ss:$36 sps:$4 sm:$0xff]  }
 0x31d   : > { %2764 = vmatmul.mubr.bf16.gmra.mrb[20].mxu1 %v17353_v13 }
 0x31e   : > { %2399 = vmatmul.mubr.bf16.gmra.mrb[20].mxu0 %v17362_v8  ;;  %13731 = vmatpush3.bf16.msra.mxu1 %v14932_v63  ;;  %v15000_v63 = vld [vmem:[#allocation8 + $0x644] ss:$36 sps:$4 sm:$0xff]  }
 0x31f   : > { %2408 = vmatprep.mubr.bf16.mxu0 %v17366_v2  ;;  %2507 = vmatpush1.bf16.msra.mxu0 %v14933_v43  ;;  %v15003_v43 = vld [vmem:[#allocation8 + $0x68c] ss:$36 sps:$4 sm:$0xff]  }
 0x320   : > { %13732 = vmatprep.subr.bf16.mxu1 %v14936_v45  ;;  %2508 = vmatprep.subr.bf16.mxu0 %v14939_v46  ;;  %v15004_v46 = vld [vmem:[#allocation8 + $0x260] ss:$36 sps:$4 sm:$0xff]  }
 0x321   : > { %2773 = vmatprep.mubr.bf16.mxu1 %v19246_v28 }
 0x322   : > { %13733 = vmatpush3.bf16.msra.mxu1 %v14936_v45  ;;  %v15001_v45 = vld [vmem:[#allocation8 + $0x688] ss:$36 sps:$4 sm:$0xff]  }
 0x323   : > { %2509 = vmatpush1.bf16.msra.mxu0 %v14937_v5  ;;  %13734 = vmatprep.subr.bf16.mxu1 %v14940_v49  ;;  %v15005_v5 = vld [vmem:[#allocation8 + $0x20] ss:$36 sps:$4 sm:$0xff]  }
 0x324   : > { %2510 = vmatprep.subr.bf16.mxu0 %v14943_v0  ;;  %v15007_v0 = vld [vmem:[#allocation8 + $0x68] ss:$36 sps:$4 sm:$0xff]  }
 0x325   : > { %2774 = vmatmul.mubr.bf16.gmra.mrb[24].mxu1 %v17386_v9 }
 0x326   : > { %2409 = vmatmul.mubr.bf16.gmra.mrb[24].mxu0 %v17390_v26  ;;  %13735 = vmatpush3.bf16.msra.mxu1 %v14940_v49  ;;  %v15006_v49 = vld [vmem:[#allocation8 + $0x2a8] ss:$36 sps:$4 sm:$0xff]  }
 0x327   : > { %2418 = vmatprep.mubr.bf16.mxu0 %v17394_v22  ;;  %2511 = vmatpush1.bf16.msra.mxu0 %v14941_v40  ;;  %v15008_v40 = vld [vmem:[#allocation8 + $0x2f0] ss:$36 sps:$4 sm:$0xff]  }
 0x328   : > { %13736 = vmatprep.subr.bf16.mxu1 %v14944_v30  ;;  %2512 = vmatprep.subr.bf16.mxu0 %v14947_v51  ;;  %v15010_v51 = vld [vmem:[#allocation8 + $0x338] ss:$36 sps:$4 sm:$0xff]  }
 0x329   : > { %2783 = vmatprep.mubr.bf16.mxu1 %v19246_v28 }
 0x32a   : > { %13737 = vmatpush3.bf16.msra.mxu1 %v14944_v30  ;;  %v15009_v30 = vld [vmem:[#allocation8 + $0xb0] ss:$36 sps:$4 sm:$0xff]  }
 0x32b   : > { %2513 = vmatpush1.bf16.msra.mxu0 %v14945_v52  ;;  %13738 = vmatprep.subr.bf16.mxu1 %v14948_v25  ;;  %v15011_v52 = vld [vmem:[#allocation8 + $0xf8] ss:$36 sps:$4 sm:$0xff]  }
 0x32c   : > { %2514 = vmatprep.subr.bf16.mxu0 %v14951_v53  ;;  %v15014_v53 = vld [vmem:[#allocation8 + $0x3c8] ss:$36 sps:$4 sm:$0xff]  }
 0x32d   : > { %2784 = vmatmul.mubr.bf16.gmra.mrb[28].mxu1 %v17405_v55 }
 0x32e   : > { %2419 = vmatmul.mubr.bf16.gmra.mrb[28].mxu0 %v17407_v59  ;;  %13739 = vmatpush3.bf16.msra.mxu1 %v14948_v25  ;;  %v15012_v25 = vld [vmem:[#allocation8 + $0x380] ss:$36 sps:$4 sm:$0xff]  }
 0x32f   : > { %13742 = vmatprep.mubr.bf16.mxu1 %v17322_v12  ;;  %2515 = vmatpush1.bf16.msra.mxu0 %v14949_v54  ;;  %v15015_v54 = vld [vmem:[#allocation8 + $0x188] ss:$36 sps:$4 sm:$0xff]  }
 0x330   : > { %2534 = vmatprep.mubr.bf16.mxu0 %v17320_v4  ;;  %13740 = vmatprep.subr.bf16.mxu1 %v14952_v3 }
 0x331   : > { %2516 = vmatprep.subr.bf16.mxu0 %v14955_v20 }
 0x332   : > { %13741 = vmatpush3.bf16.msra.mxu1 %v14952_v3 }
 0x333   : > { %2517 = vmatpush1.bf16.msra.mxu0 %v14953_v23 }
 0x334   : > { %2518 = vmatprep.subr.bf16.mxu0 %v14958_v57 }
 0x335   : > { %13743 = vmatmul.mubr.bf16.vlgmr.msra.gmra.mrb[32].mxu1 %v17353_v13 }
 0x336   : > { %13746 = vmatprep.mubr.bf16.mxu1 %v17386_v9 }
 0x337   : > { %2519 = vmatpush1.bf16.msra.mxu0 %v14956_v58  ;;  %v15017_v58 = vld [vmem:[#allocation8 + $0x1d0] ss:$36 sps:$4 sm:$0xff]  }
 0x338   : > { %2520 = vmatprep.subr.bf16.mxu0 %v14961_v60  ;;  %v15018_v60 = vld [vmem:[#allocation8 + $0x458] ss:$36 sps:$4 sm:$0xff]  }
 0x33b   : > { %2521 = vmatpush1.bf16.msra.mxu0 %v14959_v62 }
 0x33c   : > { %2522 = vmatprep.subr.bf16.mxu0 %v14964_v35 }
 0x33d   : > { %13747 = vmatmul.mubr.bf16.gmra.mrb[36].mxu1 %v17405_v55 }
 0x33f   : > { %2523 = vmatpush1.bf16.msra.mxu0 %v14962_v38 }
 0x340   : > { %2524 = vmatprep.subr.bf16.mxu0 %v14967_v14 }
 0x343   : > { %2525 = vmatpush1.bf16.msra.mxu0 %v14965_v56 }
 0x344   : > { %2526 = vmatprep.subr.bf16.mxu0 %v14970_v50 }
 0x347   : > { %2527 = vmatpush1.bf16.msra.mxu0 %v14968_v16 }
 0x348   : > { %2528 = vmatprep.subr.bf16.mxu0 %v14973_v44 }
 0x34b   : > { %2529 = vmatpush1.bf16.msra.mxu0 %v14971_v6 }
 0x34c   : > { %2530 = vmatprep.subr.bf16.mxu0 %v14976_v7 }
 0x34f   : > { %2531 = vmatpush1.bf16.msra.mxu0 %v14974_v15 }
 0x350   : > { %2532 = vmatprep.subr.bf16.mxu0 %v14979_v1 }
 0x353   : > { %2533 = vmatpush1.bf16.msra.mxu0 %v14977_v17 }
 0x354   : > { %2575 = vmatprep.subr.bf16.mxu0 %v14982_v18 }
 0x356   : > { %2535 = vmatmul.mubr.bf16.vlgmr.msra.gmra.mrb[32].mxu0 %v17326_v29 }
 0x357   : > { %2544 = vmatprep.mubr.bf16.mxu0 %v17341_v41  ;;  %2576 = vmatpush1.bf16.msra.mxu0 %v14980_v19 }
 0x358   : > { %2577 = vmatprep.subr.bf16.mxu0 %v14985_v33 }
 0x35b   : > { %2578 = vmatpush1.bf16.msra.mxu0 %v14983_v21 }
 0x35c   : > { %2579 = vmatprep.subr.bf16.mxu0 %v14988_v24 }
 0x35e   : > { %2545 = vmatmul.mubr.bf16.gmra.mrb[36].mxu0 %v17362_v8 }
 0x35f   : > { %2554 = vmatprep.mubr.bf16.mxu0 %v17366_v2  ;;  %2580 = vmatpush1.bf16.msra.mxu0 %v14986_v27 }
 0x360   : > { %2581 = vmatprep.subr.bf16.mxu0 %v14991_v31 }
 0x363   : > { %2582 = vmatpush1.bf16.msra.mxu0 %v14989_v10 }
 0x364   : > { %2583 = vmatprep.subr.bf16.mxu0 %v14994_v36 }
 0x366   : > { %2555 = vmatmul.mubr.bf16.gmra.mrb[40].mxu0 %v17390_v26 }
 0x367   : > { %2564 = vmatprep.mubr.bf16.mxu0 %v17394_v22  ;;  %2584 = vmatpush1.bf16.msra.mxu0 %v14992_v11 }
 0x368   : > { %2585 = vmatprep.subr.bf16.mxu0 %v14997_v37 }
 0x36b   : > { %2586 = vmatpush1.bf16.msra.mxu0 %v14995_v34 }
 0x36c   : > { %2587 = vmatprep.subr.bf16.mxu0 %v15000_v63 }
 0x36e   : > { %2565 = vmatmul.mubr.bf16.gmra.mrb[44].mxu0 %v17407_v59 }
 0x36f   : > { %2588 = vmatpush1.bf16.msra.mxu0 %v14998_v42  ;;  %2607 = vmatprep.mubr.bf16.mxu0 %v19246_v28 }
 0x370   : > { %2589 = vmatprep.subr.bf16.mxu0 %v15003_v43 }
 0x373   : > { %2590 = vmatpush1.bf16.msra.mxu0 %v15001_v45 }
 0x374   : > { %13290 = vmatprep.subr.bf16.mxu0 %v15004_v46 }
 0x376   : > { %2608 = vmatmul.mubr.bf16.vlgmr.msra.gmra.mrb[32].mxu0 %v17322_v12  ;;  %v15013_v12 = vld [vmem:[#allocation8 + $0x140] ss:$36 sps:$4 sm:$0xff]  }
 0x377   : > { %13291 = vmatpush3.bf16.msra.mxu0 %v15005_v5  ;;  %2617 = vmatprep.mubr.bf16.mxu0 %v19246_v28 }
 0x378   : > { %13292 = vmatprep.subr.bf16.mxu0 %v15006_v49 }
 0x37b   : > { %13293 = vmatpush3.bf16.msra.mxu0 %v15007_v0 }
 0x37c   : > { %13294 = vmatprep.subr.bf16.mxu0 %v15008_v40 }
 0x37e   : > { %2618 = vmatmul.mubr.bf16.gmra.mrb[36].mxu0 %v17353_v13  ;;  %v15016_v13 = vld [vmem:[#allocation8 + $0x410] ss:$36 sps:$4 sm:$0xff]  }
 0x37f   : > { %13295 = vmatpush3.bf16.msra.mxu0 %v15009_v30  ;;  %2627 = vmatprep.mubr.bf16.mxu0 %v19246_v28 }
 0x380   : > { %13296 = vmatprep.subr.bf16.mxu0 %v15010_v51 }
 0x383   : > { %13297 = vmatpush3.bf16.msra.mxu0 %v15011_v52 }
 0x384   : > { %13298 = vmatprep.subr.bf16.mxu0 %v15012_v25 }
 0x386   : > { %2628 = vmatmul.mubr.bf16.gmra.mrb[40].mxu0 %v17386_v9  ;;  %v15019_v9 = vld [vmem:[#allocation8 + $0x218] ss:$36 sps:$4 sm:$0xff]  }
 0x387   : > { %13299 = vmatpush3.bf16.msra.mxu0 %v15013_v12  ;;  %2637 = vmatprep.mubr.bf16.mxu0 %v19246_v28 }
 0x388   : > { %v17462_v3 = vpop.f32.mrb[0].mxu1  ;;  %13300 = vmatprep.subr.bf16.mxu0 %v15014_v53 }
 0x389   : > { %v17464_v20 = vpop.f32.mrb[1].mxu1 }
 0x38a   : > { %v17466_v23 = vpop.f32.mrb[2].mxu1 }
 0x38b   : > { %13301 = vmatpush3.bf16.msra.mxu0 %v15015_v54  ;;  %v17468_v57 = vpop.f32.mrb[3].mxu1 }
 0x38c   : > { %13302 = vmatprep.subr.bf16.mxu0 %v15016_v13 }
 0x38e   : > { %2638 = vmatmul.mubr.bf16.gmra.mrb[44].mxu0 %v17405_v55 }
 0x38f   : > { %13303 = vmatpush3.bf16.msra.mxu0 %v15017_v58  ;;  %2826 = vmatprep.mubr.bf16.mxu0 %v17320_v4 }
 0x390   : > { %v17472_v62 = vpop.f32.mrb[4].mxu1  ;;  %13304 = vmatprep.subr.bf16.mxu0 %v15018_v60 }
 0x391   : > { %v17474_v35 = vpop.f32.mrb[5].mxu1 }
 0x392   : > { %v17476_v38 = vpop.f32.mrb[6].mxu1 }
 0x393   : > { %13305 = vmatpush3.bf16.msra.mxu0 %v15019_v9  ;;  %v17478_v14 = vpop.f32.mrb[7].mxu1 }
 0x396   : > { %2827 = vmatmul.mubr.bf16.vlgmr.msra.gmra.mrb[48].mxu0 %v17326_v29 }
 0x397   : > { %2834 = vmatprep.mubr.bf16.mxu0 %v17341_v41 }
 0x398   : > { %v17482_v56 = vpop.f32.mrb[8].mxu1 }
 0x399   : > { %v17484_v55 = vpop.f32.mrb[9].mxu1 }
 0x39a   : > { %v17486_v4 = vpop.f32.mrb[10].mxu1 }
 0x39b   : > { %v17488_v50 = vpop.f32.mrb[11].mxu1 }
 0x39e   : > { %2835 = vmatmul.mubr.bf16.gmra.mrb[52].mxu0 %v17362_v8 }
 0x39f   : > { %2842 = vmatprep.mubr.bf16.mxu0 %v17366_v2 }
 0x3a0   : > { %v17492_v16 = vpop.f32.mrb[12].mxu1 }
 0x3a1   : > { %v17494_v44 = vpop.f32.mrb[13].mxu1 }
 0x3a2   : > { %v17496_v6 = vpop.f32.mrb[14].mxu1 }
 0x3a3   : > { %v17498_v29 = vpop.f32.mrb[15].mxu1 }
 0x3a6   : > { %2843 = vmatmul.mubr.bf16.gmra.mrb[56].mxu0 %v17390_v26 }
 0x3a7   : > { %2850 = vmatprep.mubr.bf16.mxu0 %v17394_v22 }
 0x3a9   : > { %v2317_v41 = vpop.f32.mrb[0].mxu0 }
 0x3aa   : > { %v2319_v7 = vpop.f32.mrb[1].mxu0 }
 0x3ab   : > { %v2321_v15 = vpop.f32.mrb[2].mxu0 }
 0x3ac   : > { %v17502_v1 = vpack.c.bf16 %v2321_v15, %v2317_v41  ;;  %v2323_v8 = vpop.f32.mrb[3].mxu0 }
 0x3ad   : > { %v17504_v2 = vpack.c.bf16 %v2323_v8, %v2319_v7 }
 0x3ae   : > { %2851 = vmatmul.mubr.bf16.gmra.mrb[60].mxu0 %v17407_v59 }
 0x3af   : > { %13758 = vmatprep.mubr.msk.bf16.mxu0 %vm3083_vm0, %v17502_v1 }
 0x3b1   : > { %v2327_v17 = vpop.f32.mrb[4].mxu0 }
 0x3b2   : > { %v2329_v18 = vpop.f32.mrb[5].mxu0 }
 0x3b3   : > { %v2331_v19 = vpop.f32.mrb[6].mxu0 }
 0x3b4   : > { %v17509_v26 = vpack.c.bf16 %v2331_v19, %v2327_v17  ;;  %v2333_v22 = vpop.f32.mrb[7].mxu0 }
 0x3b5   : > { %v17511_v33 = vpack.c.bf16 %v2333_v22, %v2329_v18 }
 0x3b9   : > { %v2337_v21 = vpop.f32.mrb[8].mxu0 }
 0x3ba   : > { %v2339_v24 = vpop.f32.mrb[9].mxu0 }
 0x3bb   : > { %v2341_v27 = vpop.f32.mrb[10].mxu0 }
 0x3bc   : > { %v17513_v31 = vpack.c.bf16 %v2341_v27, %v2337_v21  ;;  %v2343_v10 = vpop.f32.mrb[11].mxu0 }
 0x3bd   : > { %v17515_v36 = vpack.c.bf16 %v2343_v10, %v2339_v24 }
 0x3c1   : > { %v2347_v59 = vpop.f32.mrb[12].mxu0 }
 0x3c2   : > { %v2349_v11 = vpop.f32.mrb[13].mxu0 }
 0x3c3   : > { %v2351_v37 = vpop.f32.mrb[14].mxu0 }
 0x3c4   : > { %v17517_v34 = vpack.c.bf16 %v2351_v37, %v2347_v59  ;;  %v2353_v63 = vpop.f32.mrb[15].mxu0 }
 0x3c5   : > { %v17519_v42 = vpack.c.bf16 %v2353_v63, %v2349_v11 }
 0x3e8   : > { %v2755_v43 = vpop.f32.mrb[16].mxu1 }
 0x3e9   : > { %v2390_v45 = vpop.f32.mrb[16].mxu0  ;;  %v2757_v46 = vpop.f32.mrb[17].mxu1 }
 0x3ea   : > { %v2464_v5 = vadd.f32 %v17462_v3, %v2390_v45  ;;  %v2392_v49 = vpop.f32.mrb[17].mxu0  ;;  %v2759_v0 = vpop.f32.mrb[18].mxu1 }
 0x3eb   : > { %v2466_v40 = vadd.f32 %v17464_v20, %v2392_v49  ;;  %v17523_v30 = vpack.c.bf16 %v2759_v0, %v2755_v43  ;;  %v2394_v51 = vpop.f32.mrb[18].mxu0  ;;  %v2761_v52 = vpop.f32.mrb[19].mxu1 }
 0x3ec   : > { %v2468_v25 = vadd.f32 %v17466_v23, %v2394_v51  ;;  %v17526_v12 = vpack.c.bf16 %v2761_v52, %v2757_v46  ;;  %v2396_v53 = vpop.f32.mrb[19].mxu0 }
 0x3ed   : > { %v2470_v54 = vadd.f32 %v17468_v57, %v2396_v53  ;;  %13766 = vmatprep.subr.bf16.mxu1 %v17523_v30 }
 0x3ee   : > { %v17530_v13 = vpack.c.bf16 %v2468_v25, %v2464_v5  ;;  %13767 = vmatpush3.bf16.msra.mxu1 %v17523_v30 }
 0x3ef   : > { %v17533_v3 = vpack.c.bf16 %v2470_v54, %v2466_v40 }
 0x3f0   : > { %19311 = vst [vmem:[#allocation36_spill] sm:$0xff] %v17530_v13  ;;  %v2765_v20 = vpop.f32.mrb[20].mxu1 }
 0x3f1   : > { %v2400_v58 = vpop.f32.mrb[20].mxu0  ;;  %v2767_v60 = vpop.f32.mrb[21].mxu1  ;;  %14510 = vmatprep.subr.msk.bf16.mxu0 %vm3083_vm0, %v17533_v3  ;;  %v3097_v23 = vsel %vm3083_vm0, %v17533_v3, 0 }
 0x3f2   : > { %v2474_v9 = vadd.f32 %v17472_v62, %v2400_v58  ;;  %v2402_v57 = vpop.f32.mrb[21].mxu0  ;;  %v2769_v41 = vpop.f32.mrb[22].mxu1  ;;  %13751 = vmatpush3.bf16.xpose.msra.mxu0 %v3097_v23 }
 0x3f3   : > { %v2476_v7 = vadd.f32 %v17474_v35, %v2402_v57  ;;  %v17541_v15 = vpack.c.bf16 %v2769_v41, %v2765_v20  ;;  %v2404_v8 = vpop.f32.mrb[22].mxu0  ;;  %v2771_v17 = vpop.f32.mrb[23].mxu1 }
 0x3f4   : > { %v2478_v18 = vadd.f32 %v17476_v38, %v2404_v8  ;;  %v17544_v19 = vpack.c.bf16 %v2771_v17, %v2767_v60  ;;  %v2406_v22 = vpop.f32.mrb[23].mxu0 }
 0x3f5   : > { %v2480_v21 = vadd.f32 %v17478_v14, %v2406_v22  ;;  %13768 = vmatprep.subr.bf16.mxu1 %v17541_v15 }
 0x3f6   : > { %v17548_v24 = vpack.c.bf16 %v2478_v18, %v2474_v9  ;;  %13769 = vmatpush3.bf16.msra.mxu1 %v17541_v15 }
 0x3f7   : > { %v17551_v62 = vpack.c.bf16 %v2480_v21, %v2476_v7 }
 0x3f8   : > { %19312 = vst [vmem:[#allocation37_spill] sm:$0xff] %v17548_v24  ;;  %v2775_v35 = vpop.f32.mrb[24].mxu1 }
 0x3f9   : > { %v2410_v27 = vpop.f32.mrb[24].mxu0  ;;  %v2777_v10 = vpop.f32.mrb[25].mxu1  ;;  %14511 = vmatprep.subr.msk.bf16.mxu0 %vm3083_vm0, %v17551_v62  ;;  %v3100_v38 = vsel %vm3083_vm0, %v17551_v62, 0 }
 0x3fa   : > { %v2484_v59 = vadd.f32 %v17482_v56, %v2410_v27  ;;  %v2412_v14 = vpop.f32.mrb[25].mxu0  ;;  %v2779_v11 = vpop.f32.mrb[26].mxu1  ;;  %13753 = vmatpush3.bf16.xpose.msra.mxu0 %v3100_v38 }
 0x3fb   : > { %v2486_v37 = vadd.f32 %v17484_v55, %v2412_v14  ;;  %v17559_v63 = vpack.c.bf16 %v2779_v11, %v2775_v35  ;;  %v2414_v43 = vpop.f32.mrb[26].mxu0  ;;  %v2781_v45 = vpop.f32.mrb[27].mxu1 }
 0x3fc   : > { %v2488_v46 = vadd.f32 %v17486_v4, %v2414_v43  ;;  %v17562_v5 = vpack.c.bf16 %v2781_v45, %v2777_v10  ;;  %v2416_v49 = vpop.f32.mrb[27].mxu0 }
 0x3fd   : > { %v2490_v0 = vadd.f32 %v17488_v50, %v2416_v49  ;;  %13770 = vmatprep.subr.bf16.mxu1 %v17559_v63 }
 0x3fe   : > { %v17566_v40 = vpack.c.bf16 %v2488_v46, %v2484_v59  ;;  %13771 = vmatpush3.bf16.msra.mxu1 %v17559_v63 }
 0x3ff   : > { %v17569_v56 = vpack.c.bf16 %v2490_v0, %v2486_v37 }
 0x400   : > { %19313 = vst [vmem:[#allocation38_spill] sm:$0xff] %v17566_v40  ;;  %v2785_v55 = vpop.f32.mrb[28].mxu1 }
 0x401   : > { %v2420_v51 = vpop.f32.mrb[28].mxu0  ;;  %v2787_v52 = vpop.f32.mrb[29].mxu1  ;;  %14512 = vmatprep.subr.msk.bf16.mxu0 %vm3083_vm0, %v17569_v56  ;;  %v3103_v4 = vsel %vm3083_vm0, %v17569_v56, 0 }
 0x402   : > { %v2494_v25 = vadd.f32 %v17492_v16, %v2420_v51  ;;  %v2422_v50 = vpop.f32.mrb[29].mxu0  ;;  %v2789_v53 = vpop.f32.mrb[30].mxu1  ;;  %13755 = vmatpush3.bf16.xpose.msra.mxu0 %v3103_v4 }
 0x403   : > { %v2496_v54 = vadd.f32 %v17494_v44, %v2422_v50  ;;  %v17577_v20 = vpack.c.bf16 %v2789_v53, %v2785_v55  ;;  %v2424_v58 = vpop.f32.mrb[30].mxu0  ;;  %v2791_v60 = vpop.f32.mrb[31].mxu1 }
 0x404   : > { %v2498_v23 = vadd.f32 %v17496_v6, %v2424_v58  ;;  %v17580_v9 = vpack.c.bf16 %v2791_v60, %v2787_v52  ;;  %v2426_v57 = vpop.f32.mrb[31].mxu0 }
 0x405   : > { %v2500_v41 = vadd.f32 %v17498_v29, %v2426_v57  ;;  %13772 = vmatprep.subr.bf16.mxu1 %v17577_v20 }
 0x406   : > { %v17584_v7 = vpack.c.bf16 %v2498_v23, %v2494_v25  ;;  %13773 = vmatpush3.bf16.msra.mxu1 %v17577_v20 }
 0x407   : > { %v17587_v16 = vpack.c.bf16 %v2500_v41, %v2496_v54 }
 0x408   : > { %19314 = vst [vmem:[#allocation39_spill] sm:$0xff] %v17584_v7  ;;  %v13744_v44 = vpop.f32.mrb[32].mxu1 }
 0x409   : > { %v2893_v8 = vpop.f32.mrb[33].mxu1  ;;  %14513 = vmatprep.subr.msk.bf16.mxu0 %vm3083_vm0, %v17587_v16  ;;  %v3106_v6 = vsel %vm3083_vm0, %v17587_v16, 0 }
 0x40a   : > { %v13745_v17 = vpop.f32.mrb[34].mxu1  ;;  %13757 = vmatpush3.bf16.xpose.msra.mxu0 %v3106_v6 }
 0x40b   : > { %v2896_v18 = vpop.f32.mrb[35].mxu1 }
 0x410   : > { %v17593_v29 = vpop.f32.mrb[36].mxu1 }
 0x411   : > { %v2909_v22 = vpop.f32.mrb[37].mxu1  ;;  %13759 = vmatmul.mubr.msk.bf16.vlgmr.msra.gmra.mrb[64].mxu0 %vm3083_vm0, %v17509_v26 }
 0x412   : > { %v13749_v21 = vpop.f32.mrb[38].mxu1  ;;  %13762 = vmatprep.mubr.msk.bf16.mxu0 %vm3083_vm0, %v17513_v31 }
 0x413   : > { %v2912_v35 = vpop.f32.mrb[39].mxu1 }
 0x419   : > { %13763 = vmatmul.mubr.msk.bf16.gmra.mrb[68].mxu0 %vm3083_vm0, %v17517_v34 }
 0x449   : > { %v2609_v27 = vpop.f32.mrb[32].mxu0 }
 0x44a   : > { %v2611_v10 = vpop.f32.mrb[33].mxu0 }
 0x44b   : > { %v2613_v38 = vpop.f32.mrb[34].mxu0 }
 0x44c   : > { %v17601_v59 = vpack.c.bf16 %v2613_v38, %v2609_v27  ;;  %v2615_v14 = vpop.f32.mrb[35].mxu0 }
 0x44d   : > { %v17603_v11 = vpack.c.bf16 %v2615_v14, %v2611_v10 }
 0x451   : > { %v2619_v37 = vpop.f32.mrb[36].mxu0 }
 0x452   : > { %v2621_v43 = vpop.f32.mrb[37].mxu0 }
 0x453   : > { %v2623_v45 = vpop.f32.mrb[38].mxu0 }
 0x454   : > { %v17605_v46 = vpack.c.bf16 %v2623_v45, %v2619_v37  ;;  %v2625_v49 = vpop.f32.mrb[39].mxu0 }
 0x455   : > { %v17607_v0 = vpack.c.bf16 %v2625_v49, %v2621_v43 }
 0x459   : > { %v2629_v55 = vpop.f32.mrb[40].mxu0 }
 0x45a   : > { %v2631_v51 = vpop.f32.mrb[41].mxu0 }
 0x45b   : > { %v2633_v52 = vpop.f32.mrb[42].mxu0 }
 0x45c   : > { %v17609_v4 = vpack.c.bf16 %v2633_v52, %v2629_v55  ;;  %v2635_v25 = vpop.f32.mrb[43].mxu0 }
 0x45d   : > { %v17611_v50 = vpack.c.bf16 %v2635_v25, %v2631_v51 }
 0x461   : > { %v2639_v53 = vpop.f32.mrb[44].mxu0 }
 0x462   : > { %v2641_v54 = vpop.f32.mrb[45].mxu0 }
 0x463   : > { %v2643_v58 = vpop.f32.mrb[46].mxu0 }
 0x464   : > { %v17613_v60 = vpack.c.bf16 %v2643_v58, %v2639_v53  ;;  %v2645_v23 = vpop.f32.mrb[47].mxu0 }
 0x465   : > { %v17615_v57 = vpack.c.bf16 %v2645_v23, %v2641_v54 }
 0x467   : > { %19315 = vst [vmem:[#allocation40_spill] sm:$0xff] %v17615_v57 }
 0x469   : > { %v13306_v41 = vpop.f32.mrb[48].mxu0 }
 0x46a   : > { %v13307_v6 = vpop.f32.mrb[49].mxu0 }
 0x46b   : > { %v13308_v27 = vadd.f32 %v13307_v6, %v13306_v41  ;;  %v13309_v10 = vpop.f32.mrb[50].mxu0 }
 0x46c   : > { %v13310_v38 = vpop.f32.mrb[51].mxu0 }
 0x46d   : > { %v2894_v14 = vadd.f32 %v13308_v27, %v2893_v8  ;;  %v13311_v37 = vadd.f32 %v13310_v38, %v13309_v10 }
 0x46f   : > { %v2897_v43 = vadd.f32 %v13311_v37, %v2896_v18 }
 0x471   : > { %v13312_v45 = vpop.f32.mrb[52].mxu0  ;;  %v17617_v49 = vpack.c.bf16 %v2897_v43, %v2894_v14 }
 0x472   : > { %v13313_v55 = vpop.f32.mrb[53].mxu0 }
 0x473   : > { %v13314_v51 = vadd.f32 %v13313_v55, %v13312_v45  ;;  %v13315_v52 = vpop.f32.mrb[54].mxu0 }
 0x474   : > { %v13316_v25 = vpop.f32.mrb[55].mxu0 }
 0x475   : > { %v2902_v53 = vadd.f32 %v13744_v44, %v13314_v51  ;;  %v13317_v58 = vadd.f32 %v13316_v25, %v13315_v52  ;;  %v19316_v51 = vlaneseq  ;;  %v2963_v52 = vadd.s32 16, %v17266_v39 }
 0x477   : > { %v2905_v28 = vadd.f32 %v13745_v17, %v13317_v58 }
 0x479   : > { %v13318_v54 = vpop.f32.mrb[56].mxu0  ;;  %v17619_v23 = vpack.c.bf16 %v2905_v28, %v2902_v53 }
 0x47a   : > { %v13319_v32 = vpop.f32.mrb[57].mxu0 }
 0x47b   : > { %v13320_v41 = vadd.f32 %v13319_v32, %v13318_v54  ;;  %v13321_v6 = vpop.f32.mrb[58].mxu0  ;;  %v2970_v32 = vand.u32 127, %v19316_v51 }
 0x47c   : > { %v13322_v48 = vpop.f32.mrb[59].mxu0 }
 0x47d   : > { %v2910_v8 = vadd.f32 %v13320_v41, %v2909_v22  ;;  %v13323_v27 = vadd.f32 %v13322_v48, %v13321_v6  ;;  %v2962_v48 = vadd.s32 8, %v17266_v39  ;;  %vm2971_vm1 = vcmp.le.s32.totalorder %v2970_v32, %v17266_v39 }
 0x47e   : > { %v2964_v22 = vadd.s32 24, %v17266_v39  ;;  %vm2973_vm2 = vcmp.le.s32.totalorder %v2970_v32, %v2963_v52 }
 0x47f   : > { %v2913_v18 = vadd.f32 %v13323_v27, %v2912_v35  ;;  %vm2972_vm3 = vcmp.le.s32.totalorder %v2970_v32, %v2962_v48  ;;  %v16649_v35 = vmov -1e+30   ;;  %v2966_v27 = vadd.s32 40, %v17266_v39 }
 0x480   : > { %v17631_v25 = vsel %vm2971_vm1, 0.0, %v16649_v35  ;;  %vm2974_vm4 = vcmp.le.s32.totalorder %v2970_v32, %v2964_v22  ;;  %v17634_v53 = vsel %vm2973_vm2, 0.0, %v16649_v35  ;;  %v17636_v54 = vsel %vm2972_vm3, 0.0, %v16649_v35 }
 0x481   : > { %v13324_v10 = vpop.f32.mrb[60].mxu0  ;;  %v17621_v38 = vpack.c.bf16 %v2913_v18, %v2910_v8  ;;  %v2967_v8 = vadd.s32 48, %v17266_v39  ;;  %v17641_v18 = vsel %vm2974_vm4, 0.0, %v16649_v35  ;;  %vm2976_vm7 = vcmp.le.s32.totalorder %v2970_v32, %v2966_v27 }
 0x482   : > { %v13325_v14 = vpop.f32.mrb[61].mxu0 }
 0x483   : > { %v13326_v37 = vadd.f32 %v13325_v14, %v13324_v10  ;;  %v13327_v43 = vpop.f32.mrb[62].mxu0  ;;  %v2968_v14 = vadd.s32 56, %v17266_v39  ;;  %vm2977_vm6 = vcmp.le.s32.totalorder %v2970_v32, %v2967_v8 }
 0x484   : > { %v13328_v45 = vpop.f32.mrb[63].mxu0  ;;  %v17652_v48 = vsel %vm2977_vm6, 0.0, %v16649_v35 }
 0x485   : > { %v2918_v44 = vadd.f32 %v17593_v29, %v13326_v37  ;;  %v13329_v17 = vadd.f32 %v13328_v45, %v13327_v43  ;;  %vm2978_vm8 = vcmp.le.s32.totalorder %v2970_v32, %v2968_v14 }
 0x486   : > { %v17658_v8 = vsel %vm2978_vm8, 0.0, %v16649_v35 }
 0x487   : > { %v2921_v55 = vadd.f32 %v13749_v21, %v13329_v17  ;;  %v2965_v21 = vadd.s32 32, %v17266_v39 }
 0x489   : > { %v17624_v28 = vpack.c.bf16 %v2921_v55, %v2918_v44  ;;  %vm2975_vm5 = vcmp.le.s32.totalorder %v2970_v32, %v2965_v21 }
 0x48a   : > { %v17649_v55 = vsel %vm2975_vm5, 0.0, %v16649_v35 }
 0x4e4   : > { %v13760_v29 = vpop.f32.mrb[64].mxu0 }
 0x4e5   : > { %v3142_v58 = vpop.f32.mrb[65].mxu0  ;;  %v3151_v37 = vadd.f32 %v13760_v29, %v17634_v53  ;;  %v17654_v29 = vsel %vm2976_vm7, 0.0, %v16649_v35 }
 0x4e6   : > { %v3143_v41 = vadd.f32 %v3142_v58, %v17631_v25  ;;  %v13761_v6 = vpop.f32.mrb[66].mxu0 }
 0x4e7   : > { %v3145_v10 = vpop.f32.mrb[67].mxu0  ;;  %v3154_v44 = vadd.f32 %v13761_v6, %v17641_v18  ;;  %v3179_v52 = vsel %vm3083_vm0, %v3151_v37, -inf }
 0x4e8   : > { %v3146_v43 = vadd.f32 %v3145_v10, %v17636_v54  ;;  %v3173_v45 = vsel %vm3083_vm0, %v3143_v41, -inf }
 0x4e9   : > { %3174 = vmax.xlane.f32.xlu0 %v3173_v45  ;;  %v3182_v6 = vsel %vm3083_vm0, %v3154_v44, -inf }
 0x4ea   : > { %v3176_v17 = vsel %vm3083_vm0, %v3146_v43, -inf }
 0x4eb   : > { %3177 = vmax.xlane.f32.xlu1 %v3176_v17 }
 0x4ec   : > { %v13764_v51 = vpop.f32.mrb[68].mxu0 }
 0x4ed   : > { %v3158_v22 = vpop.f32.mrb[69].mxu0  ;;  %3180 = vmax.xlane.f32.xlu0 %v3179_v52  ;;  %v3167_v10 = vadd.f32 %v13764_v51, %v17652_v48 }
 0x4ee   : > { %v3159_v21 = vadd.f32 %v3158_v22, %v17649_v55  ;;  %v13765_v58 = vpop.f32.mrb[70].mxu0 }
 0x4ef   : > { %v3161_v27 = vpop.f32.mrb[71].mxu0  ;;  %3183 = vmax.xlane.f32.xlu1 %v3182_v6  ;;  %v3170_v14 = vadd.f32 %v13765_v58, %v17658_v8  ;;  %v3191_v52 = vsel %vm3083_vm0, %v3167_v10, -inf }
 0x4f0   : > { %v17662_v45 = vadd.f32 %v3161_v27, %v17654_v29  ;;  %v3185_v32 = vsel %vm3083_vm0, %v3159_v21, -inf }
 0x4f1   : > { %3186 = vmax.xlane.f32.xlu0 %v3185_v32  ;;  %v3194_v35 = vsel %vm3083_vm0, %v3170_v14, -inf }
 0x4f2   : > { %v3188_v17 = vsel %vm3083_vm0, %v17662_v45, -inf }
 0x4f3   : > { %3189 = vmax.xlane.f32.xlu1 %v3188_v17 }
 0x4f5   : > { %3192 = vmax.xlane.f32.xlu0 %v3191_v52 }
 0x4f7   : > { %3195 = vmax.xlane.f32.xlu1 %v3194_v35 }
 0x576   : > { %v3175_v22 = vpop.xlane.xlu0 %3174 }
 0x577   : > { %v3197_v51 = vsub.f32 %v3143_v41, %v3175_v22 }
 0x578   : > { %v3178_v6 = vpop.xlane.xlu1 %3177 }
 0x579   : > { %v3198_v39 = vsub.f32 %v3146_v43, %v3178_v6  ;;  %v3205_v61 = vmul.f32 1.442695, %v3197_v51 }
 0x57a   : > { %v3181_v27 = vpop.xlane.xlu0 %3180 }
 0x57b   : > { %v3199_v47 = vsub.f32 %v3151_v37, %v3181_v27  ;;  %v3207_v24 = vmul.f32 1.442695, %v3198_v39 }
 0x57c   : > { %v3184_v32 = vpop.xlane.xlu1 %3183 }
 0x57d   : > { %v3209_v7 = vmul.f32 1.442695, %v3199_v47  ;;  %v3200_v58 = vsub.f32 %v3154_v44, %v3184_v32 }
 0x57e   : > { %v3187_v40 = vpop.xlane.xlu0 %3186 }
 0x57f   : > { %15948 = vpow2.f32 %v3209_v7  ;;  %v3211_v17 = vmul.f32 1.442695, %v3200_v58  ;;  %v3201_v52 = vsub.f32 %v3159_v21, %v3187_v40 }
 0x580   : > { %15950 = vpow2.f32 %v3205_v61  ;;  %v3190_v21 = vpop.xlane.xlu1 %3189 }
 0x581   : > { %15952 = vpow2.f32 %v3211_v17  ;;  %v3213_v57 = vmul.f32 1.442695, %v3201_v52  ;;  %v3202_v6 = vsub.f32 %v17662_v45, %v3190_v21 }
 0x582   : > { %v3193_v13 = vpop.xlane.xlu0 %3192  ;;  %15954 = vpow2.f32 %v3207_v24 }
 0x583   : > { %v3203_v35 = vsub.f32 %v3167_v10, %v3193_v13  ;;  %v3215_v32 = vmul.f32 1.442695, %v3202_v6 }
 0x584   : > { %v3196_v10 = vpop.xlane.xlu1 %3195 }
 0x585   : > { %v3217_v41 = vmul.f32 1.442695, %v3203_v35  ;;  %v3204_v51 = vsub.f32 %v3170_v14, %v3196_v10 }
 0x587   : > { %15956 = vpow2.f32 %v3217_v41  ;;  %v3219_v27 = vmul.f32 1.442695, %v3204_v51 }
 0x588   : > { %15958 = vpow2.f32 %v3213_v57 }
 0x589   : > { %v15949_v22 = vpop.eup %15948  ;;  %15960 = vpow2.f32 %v3219_v27 }
 0x58a   : > { %v15951_v37 = vpop.eup %15950  ;;  %v3227_v43 = vsel %vm3083_vm0, %v15949_v22, 0.0  ;;  %15962 = vpow2.f32 %v3215_v32 }
 0x58b   : > { %v15953_v47 = vpop.eup %15952  ;;  %3228 = vadd.xlane.f32.xlu0 %v3227_v43  ;;  %v3221_v61 = vsel %vm3083_vm0, %v15951_v37, 0.0 }
 0x58c   : > { %v3230_v39 = vsel %vm3083_vm0, %v15953_v47, 0.0  ;;  %v15955_v7 = vpop.eup %15954 }
 0x58d   : > { %3231 = vadd.xlane.f32.xlu1 %v3230_v39  ;;  %v3224_v24 = vsel %vm3083_vm0, %v15955_v7, 0.0 }
 0x58f   : > { %3222 = vadd.xlane.f32.xlu0 %v3221_v61 }
 0x591   : > { %v17674_v13 = vpop.eup %15956  ;;  %3225 = vadd.xlane.f32.xlu1 %v3224_v24 }
 0x592   : > { %v3239_v40 = vsel %vm3083_vm0, %v17674_v13, 0.0  ;;  %v17678_v57 = vpop.eup %15958 }
 0x593   : > { %3240 = vadd.xlane.f32.xlu0 %v3239_v40  ;;  %v3233_v44 = vsel %vm3083_vm0, %v17678_v57, 0.0 }
 0x597   : > { %3234 = vadd.xlane.f32.xlu0 %v3233_v44 }
 0x5a2   : > { %3364 = vrot.lane.b32.xlu1 %v17551_v62, %s16650_s28  ;;  %v15961_v62 = vpop.eup %15960 }
 0x5a3   : > { %v15963_v58 = vpop.eup %15962 }
 0x5a6   : > { %3366 = vrot.lane.b32.xlu1 %v17569_v56, %s16650_s28  ;;  %v3242_v56 = vsel %vm3083_vm0, %v15961_v62, 0.0 }
 0x5ad   : > { %3362 = vrot.lane.b32.xlu0 %v17533_v3, %s16650_s28  ;;  %v3236_v3 = vsel %vm3083_vm0, %v15963_v58, 0.0 }
 0x5b1   : > { %3350 = vrot.lane.b32.xlu0 %v17502_v1, %s16650_s28 }
 0x5b5   : > { %3354 = vrot.lane.b32.xlu0 %v17513_v31, %s16650_s28 }
 0x5ca   : > { %3243 = vadd.xlane.f32.xlu1 %v3242_v56 }
 0x5ce   : > { %3237 = vadd.xlane.f32.xlu1 %v3236_v3 }
 0x5df   : > { %3368 = vrot.lane.b32.xlu1 %v17587_v16, %s16650_s28 }
 0x5e3   : > { %3352 = vrot.lane.b32.xlu1 %v17509_v26, %s16650_s28 }
 0x5e7   : > { %3356 = vrot.lane.b32.xlu1 %v17517_v34, %s16650_s28 }
 0x618   : > { %v3229_v1 = vpop.xlane.xlu0 %3228 }
 0x61a   : > { %v3232_v31 = vpop.xlane.xlu1 %3231 }
 0x61b   : > { %15964 = vrcp.f32 %v3232_v31 }
 0x61c   : > { %v3223_v45 = vpop.xlane.xlu0 %3222 }
 0x61d   : > { %15966 = vrcp.f32 %v3223_v45 }
 0x61e   : > { %15968 = vrcp.f32 %v3229_v1  ;;  %v3226_v14 = vpop.xlane.xlu1 %3225 }
 0x61f   : > { %15970 = vrcp.f32 %v3226_v14 }
 0x620   : > { %v3241_v17 = vpop.xlane.xlu0 %3240 }
 0x622   : > { %v3365_v10 = vpop.permute.xlu1 %3364 }
 0x623   : > { %v3386_v51 = vsel %vm3083_vm0, %v3365_v10, 0 }
 0x624   : > { %v3235_v52 = vpop.xlane.xlu0 %3234 }
 0x625   : > { %v15965_v35 = vpop.eup %15964 }
 0x626   : > { %v3256_v61 = vmul.f32 %v15965_v35, %v15953_v47  ;;  %v3367_v47 = vpop.permute.xlu1 %3366 }
 0x627   : > { %v15967_v41 = vpop.eup %15966 }
 0x628   : > { %v15969_v43 = vpop.eup %15968  ;;  %v3363_v16 = vpop.permute.xlu0 %3362  ;;  %v3253_v26 = vmul.f32 %v15967_v41, %v15951_v37 }
 0x629   : > { %v15971_v39 = vpop.eup %15970  ;;  %14514 = vmatprep.subr.msk.bf16.mxu1 %vm3083_vm0, %v3363_v16  ;;  %v3255_v24 = vmul.f32 %v15969_v43, %v15949_v22  ;;  %v3383_v21 = vsel %vm3083_vm0, %v3363_v16, 0  ;;  %v3389_v22 = vsel %vm3083_vm0, %v3367_v47, 0 }
 0x62a   : > { %v3254_v34 = vmul.f32 %v15971_v39, %v15955_v7 }
 0x62b   : > { %v3262_v44 = vpack.c.bf16 %v3256_v61, %v3255_v24 }
 0x62c   : > { %v3261_v40 = vpack.c.bf16 %v3254_v34, %v3253_v26  ;;  %v3351_v41 = vpop.permute.xlu0 %3350 }
 0x62e   : > { %13774 = vmatprep.mubr.msk.bf16.mxu1 %vm3083_vm0, %v3261_v40 }
 0x62f   : > { %13775 = vmatmul.mubr.msk.bf16.vlgmr.msra.gmra.mrb[40].mxu1 %vm3083_vm0, %v3262_v44 }
 0x630   : > { %13783 = vmatpush3.bf16.xpose.msra.mxu1 %v3383_v21  ;;  %v3355_v16 = vpop.permute.xlu0 %3354 }
 0x631   : > { %14515 = vmatprep.subr.msk.bf16.mxu1 %vm3083_vm0, %v3365_v10 }
 0x638   : > { %13785 = vmatpush3.bf16.xpose.msra.mxu1 %v3386_v51 }
 0x639   : > { %14516 = vmatprep.subr.msk.bf16.mxu1 %vm3083_vm0, %v3367_v47 }
 0x640   : > { %13787 = vmatpush3.bf16.xpose.msra.mxu1 %v3389_v22 }
 0x657   : > { %v3244_v37 = vpop.xlane.xlu1 %3243 }
 0x658   : > { %15972 = vrcp.f32 %v3244_v37 }
 0x659   : > { %15974 = vrcp.f32 %v3235_v52 }
 0x65a   : > { %15976 = vrcp.f32 %v3241_v17 }
 0x65b   : > { %v3238_v7 = vpop.xlane.xlu1 %3237 }
 0x65c   : > { %15978 = vrcp.f32 %v3238_v7 }
 0x65f   : > { %v3369_v6 = vpop.permute.xlu1 %3368 }
 0x660   : > { %14517 = vmatprep.subr.msk.bf16.mxu1 %vm3083_vm0, %v3369_v6  ;;  %v3392_v27 = vsel %vm3083_vm0, %v3369_v6, 0 }
 0x661   : > { %13789 = vmatpush3.bf16.xpose.msra.mxu1 %v3392_v27 }
 0x662   : > { %v15973_v32 = vpop.eup %15972 }
 0x663   : > { %v15975_v56 = vpop.eup %15974  ;;  %v3260_v31 = vmul.f32 %v15973_v32, %v15961_v62  ;;  %v3353_v43 = vpop.permute.xlu1 %3352 }
 0x664   : > { %v15977_v3 = vpop.eup %15976  ;;  %v3257_v45 = vmul.f32 %v15975_v56, %v17678_v57 }
 0x665   : > { %v3259_v35 = vmul.f32 %v15977_v3, %v17674_v13 }
 0x666   : > { %v15979_v1 = vpop.eup %15978 }
 0x667   : > { %v3258_v14 = vmul.f32 %v15979_v1, %v15963_v58  ;;  %v3264_v17 = vpack.c.bf16 %v3260_v31, %v3259_v35  ;;  %v3357_v62 = vpop.permute.xlu1 %3356 }
 0x669   : > { %v3263_v52 = vpack.c.bf16 %v3258_v14, %v3257_v45 }
 0x66b   : > { %13778 = vmatprep.mubr.msk.bf16.mxu1 %vm3083_vm0, %v3263_v52 }
 0x66c   : > { %13779 = vmatmul.mubr.msk.bf16.gmra.mrb[44].mxu1 %vm3083_vm0, %v3264_v17 }
 0x66d   : > { %13790 = vmatprep.mubr.msk.bf16.mxu1 %vm3083_vm0, %v3351_v41 }
 0x674   : > { %13791 = vmatmul.mubr.msk.bf16.vlgmr.msra.gmra.mrb[48].mxu1 %vm3083_vm0, %v3353_v43 }
 0x675   : > { %13794 = vmatprep.mubr.msk.bf16.mxu1 %vm3083_vm0, %v3355_v16 }
 0x67c   : > { %13795 = vmatmul.mubr.msk.bf16.gmra.mrb[52].mxu1 %vm3083_vm0, %v3357_v62 }
 0x702   : > { %v13776_v57 = vpop.f32.mrb[40].mxu1 }
 0x703   : > { %v3311_v13 = vpop.f32.mrb[41].mxu1 }
 0x704   : > { %v13777_v58 = vpop.f32.mrb[42].mxu1 }
 0x705   : > { %v17719_v39 = vpack.c.bf16 %v13777_v58, %v13776_v57  ;;  %v3314_v61 = vpop.f32.mrb[43].mxu1 }
 0x706   : > { %v17721_v26 = vpack.c.bf16 %v3314_v61, %v3311_v13 }
 0x73f   : > { %v13780_v34 = vpop.f32.mrb[44].mxu1 }
 0x740   : > { %v3327_v24 = vpop.f32.mrb[45].mxu1 }
 0x741   : > { %v13781_v40 = vpop.f32.mrb[46].mxu1 }
 0x742   : > { %v17723_v44 = vpack.c.bf16 %v13781_v40, %v13780_v34  ;;  %v3330_v21 = vpop.f32.mrb[47].mxu1 }
 0x743   : > { %v17725_v10 = vpack.c.bf16 %v3330_v21, %v3327_v24 }
 0x747   : > { %v13792_v51 = vpop.f32.mrb[48].mxu1 }
 0x748   : > { %v3428_v47 = vpop.f32.mrb[49].mxu1  ;;  %v3437_v6 = vadd.f32 %v13792_v51, %v17634_v53 }
 0x749   : > { %v3429_v22 = vadd.f32 %v3428_v47, %v17631_v25  ;;  %v13793_v37 = vpop.f32.mrb[50].mxu1 }
 0x74a   : > { %v3431_v7 = vpop.f32.mrb[51].mxu1  ;;  %v3440_v3 = vadd.f32 %v13793_v37, %v17641_v18  ;;  %v3465_v31 = vsel %vm3083_vm0, %v3437_v6, -inf }
 0x74b   : > { %v3432_v27 = vadd.f32 %v3431_v7, %v17636_v54  ;;  %v3459_v32 = vsel %vm3083_vm0, %v3429_v22, -inf }
 0x74c   : > { %3460 = vmax.xlane.f32.xlu0 %v3459_v32  ;;  %v3468_v41 = vsel %vm3083_vm0, %v3440_v3, -inf }
 0x74d   : > { %v3462_v56 = vsel %vm3083_vm0, %v3432_v27, -inf }
 0x74e   : > { %3463 = vmax.xlane.f32.xlu1 %v3462_v56 }
 0x74f   : > { %v13796_v1 = vpop.f32.mrb[52].mxu1 }
 0x750   : > { %3466 = vmax.xlane.f32.xlu0 %v3465_v31  ;;  %v3444_v45 = vpop.f32.mrb[53].mxu1  ;;  %v3453_v62 = vadd.f32 %v13796_v1, %v17652_v48 }
 0x751   : > { %v13797_v14 = vpop.f32.mrb[54].mxu1  ;;  %v3445_v52 = vadd.f32 %v3444_v45, %v17649_v55 }
 0x752   : > { %v3447_v35 = vpop.f32.mrb[55].mxu1  ;;  %v3456_v43 = vadd.f32 %v13797_v14, %v17658_v8  ;;  %v3477_v58 = vsel %vm3083_vm0, %v3453_v62, -inf }
 0x753   : > { %v3448_v17 = vadd.f32 %v3447_v35, %v17654_v29  ;;  %v3471_v57 = vsel %vm3083_vm0, %v3445_v52, -inf }
 0x754   : > { %3469 = vmax.xlane.f32.xlu0 %v3468_v41  ;;  %v3480_v13 = vsel %vm3083_vm0, %v3456_v43, -inf }
 0x755   : > { %v3474_v16 = vsel %vm3083_vm0, %v3448_v17, -inf }
 0x756   : > { %3475 = vmax.xlane.f32.xlu1 %v3474_v16 }
 0x758   : > { %3472 = vmax.xlane.f32.xlu0 %v3471_v57 }
 0x75a   : > { %3481 = vmax.xlane.f32.xlu1 %v3480_v13 }
 0x75c   : > { %3478 = vmax.xlane.f32.xlu0 %v3477_v58 }
 0x772   : > { %3555 = vrot.lane.b32.xlu0 %v17523_v30, %s16650_s28 }
 0x7d9   : > { %v3461_v61 = vpop.xlane.xlu0 %3460 }
 0x7da   : > { %v3483_v34 = vsub.f32 %v3429_v22, %v3461_v61 }
 0x7db   : > { %v3464_v24 = vpop.xlane.xlu1 %3463 }
 0x7dc   : > { %v3491_v51 = vmul.f32 1.442695, %v3483_v34  ;;  %v3484_v47 = vsub.f32 %v3432_v27, %v3464_v24 }
 0x7dd   : > { %v3467_v40 = vpop.xlane.xlu0 %3466 }
 0x7de   : > { %v3485_v21 = vsub.f32 %v3437_v6, %v3467_v40  ;;  %v3493_v1 = vmul.f32 1.442695, %v3484_v47 }
 0x7e0   : > { %v3495_v37 = vmul.f32 1.442695, %v3485_v21 }
 0x7e1   : > { %v3470_v7 = vpop.xlane.xlu0 %3469 }
 0x7e2   : > { %15980 = vpow2.f32 %v3495_v37  ;;  %v3486_v32 = vsub.f32 %v3440_v3, %v3470_v7 }
 0x7e3   : > { %v3476_v56 = vpop.xlane.xlu1 %3475  ;;  %15982 = vpow2.f32 %v3491_v51 }
 0x7e4   : > { %v3497_v31 = vmul.f32 1.442695, %v3486_v32 }
 0x7e5   : > { %v3473_v45 = vpop.xlane.xlu0 %3472 }
 0x7e6   : > { %15984 = vpow2.f32 %v3497_v31  ;;  %v3487_v14 = vsub.f32 %v3445_v52, %v3473_v45  ;;  %v3488_v52 = vsub.f32 %v3448_v17, %v3476_v56  ;;  %v15027_v31 = vld [vmem:[#allocation10 + $0x80] ss:$12 sps:$4 sm:$0xff]   ;;  %v15031_v45 = vld [vmem:[#allocation10 + $0x98] ss:$12 sps:$4 sm:$0xff]  }
 0x7e7   : > { %15986 = vpow2.f32 %v3493_v1  ;;  %v3482_v30 = vpop.xlane.xlu1 %3481  ;;  %v15023_v1 = vld [vmem:[#allocation10 + $0x68] ss:$12 sps:$4 sm:$0xff]  }
 0x7e8   : > { %v3499_v6 = vmul.f32 1.442695, %v3487_v14  ;;  %v3490_v16 = vsub.f32 %v3456_v43, %v3482_v30  ;;  %v3501_v24 = vmul.f32 1.442695, %v3488_v52  ;;  %13814 = vmatprep.subr.bf16.mxu1 %v15023_v1 }
 0x7e9   : > { %v3479_v35 = vpop.xlane.xlu0 %3478  ;;  %13815 = vmatpush3.bf16.msra.mxu1 %v15023_v1 }
 0x7ea   : > { %v3489_v22 = vsub.f32 %v3453_v62, %v3479_v35  ;;  %v3505_v61 = vmul.f32 1.442695, %v3490_v16  ;;  %13816 = vmatprep.subr.bf16.mxu1 %v15027_v31 }
 0x7ec   : > { %v17745_v41 = vpop.eup %15980  ;;  %v3503_v27 = vmul.f32 1.442695, %v3489_v22 }
 0x7ed   : > { %v3556_v57 = vpop.permute.xlu0 %3555  ;;  %v3513_v3 = vsel %vm3083_vm0, %v17745_v41, 0.0  ;;  %v15983_v13 = vpop.eup %15982  ;;  %13817 = vmatpush3.bf16.msra.mxu1 %v15027_v31  ;;  %v15020_v31 = vld [vmem:[#allocation10 + $0x60] ss:$12 sps:$4 sm:$0xff]  }
 0x7ee   : > { %15988 = vpow2.f32 %v3503_v27  ;;  %3514 = vadd.xlane.f32.xlu0 %v3513_v3  ;;  %13798 = vmatprep.subr.bf16.mxu0 %v3556_v57  ;;  %v3507_v62 = vsel %vm3083_vm0, %v15983_v13, 0.0 }
 0x7ef   : > { %13799 = vmatpush3.bf16.msra.mxu0 %v3556_v57  ;;  %15990 = vpow2.f32 %v3499_v6  ;;  %13818 = vmatprep.subr.bf16.mxu1 %v15031_v45 }
 0x7f0   : > { %v17749_v58 = vpop.eup %15984  ;;  %15992 = vpow2.f32 %v3505_v61 }
 0x7f1   : > { %v3516_v43 = vsel %vm3083_vm0, %v17749_v58, 0.0  ;;  %v15987_v34 = vpop.eup %15986  ;;  %15994 = vpow2.f32 %v3501_v24  ;;  %13819 = vmatpush3.bf16.msra.mxu1 %v15031_v45 }
 0x7f2   : > { %3508 = vadd.xlane.f32.xlu0 %v3507_v62  ;;  %3517 = vadd.xlane.f32.xlu1 %v3516_v43  ;;  %v3510_v40 = vsel %vm3083_vm0, %v15987_v34, 0.0 }
 0x7f6   : > { %3511 = vadd.xlane.f32.xlu1 %v3510_v40 }
 0x7f8   : > { %v17755_v21 = vpop.eup %15988 }
 0x7f9   : > { %v3525_v17 = vsel %vm3083_vm0, %v17755_v21, 0.0  ;;  %v15991_v51 = vpop.eup %15990 }
 0x7fa   : > { %3526 = vadd.xlane.f32.xlu1 %v3525_v17  ;;  %v3519_v47 = vsel %vm3083_vm0, %v15991_v51, 0.0  ;;  %v17760_v37 = vpop.eup %15992 }
 0x7fb   : > { %v3528_v7 = vsel %vm3083_vm0, %v17760_v37, 0.0  ;;  %v15995_v32 = vpop.eup %15994 }
 0x7fc   : > { %v3522_v56 = vsel %vm3083_vm0, %v15995_v32, 0.0 }
 0x7fe   : > { %3520 = vadd.xlane.f32.xlu1 %v3519_v47  ;;  %v15022_v47 = vld [vmem:[#allocation10 + $0x64] ss:$12 sps:$4 sm:$0xff]  }
 0x802   : > { %3529 = vadd.xlane.f32.xlu1 %v3528_v7 }
 0x806   : > { %3523 = vadd.xlane.f32.xlu1 %v3522_v56 }
 0x808   : > { %3559 = vrot.lane.b32.xlu0 %v17559_v63, %s16650_s28 }
 0x80c   : > { %3561 = vrot.lane.b32.xlu0 %v17577_v20, %s16650_s28 }
 0x817   : > { %3557 = vrot.lane.b32.xlu1 %v17541_v15, %s16650_s28 }
 0x87b   : > { %v3515_v14 = vpop.xlane.xlu0 %3514 }
 0x87f   : > { %v3518_v30 = vpop.xlane.xlu1 %3517  ;;  %v3509_v35 = vpop.xlane.xlu0 %3508 }
 0x880   : > { %15996 = vrcp.f32 %v3509_v35 }
 0x883   : > { %v3512_v63 = vpop.xlane.xlu1 %3511  ;;  %v3560_v61 = vpop.permute.xlu0 %3559 }
 0x884   : > { %15998 = vrcp.f32 %v3512_v63 }
 0x885   : > { %16000 = vrcp.f32 %v3518_v30 }
 0x886   : > { %16002 = vrcp.f32 %v3515_v14  ;;  %v15026_v14 = vld [vmem:[#allocation10 + $0x7c] ss:$12 sps:$4 sm:$0xff]  }
 0x887   : > { %v3527_v22 = vpop.xlane.xlu1 %3526 }
 0x88a   : > { %v15997_v6 = vpop.eup %15996 }
 0x88b   : > { %v3521_v20 = vpop.xlane.xlu1 %3520  ;;  %v3539_v27 = vmul.f32 %v15997_v6, %v15983_v13  ;;  %v3562_v13 = vpop.permute.xlu0 %3561  ;;  %v19317_v6 = vmov 0  }
 0x88c   : > { %16004 = vrcp.f32 %v3521_v20 }
 0x88e   : > { %v15999_v16 = vpop.eup %15998 }
 0x88f   : > { %v3530_v15 = vpop.xlane.xlu1 %3529  ;;  %v3540_v57 = vmul.f32 %v15999_v16, %v15987_v34  ;;  %v16001_v43 = vpop.eup %16000  ;;  %v15032_v16 = vld [vmem:[#allocation10 + $0xa8] ss:$12 sps:$4 sm:$0xff]  }
 0x890   : > { %v16003_v24 = vpop.eup %16002  ;;  %v3542_v17 = vmul.f32 %v16001_v43, %v17749_v58  ;;  %v15024_v58 = vld [vmem:[#allocation10 + $0x78] ss:$12 sps:$4 sm:$0xff]   ;;  %v15036_v43 = vld [vmem:[#allocation10] ss:$12 sps:$4 sm:$0xff]  }
 0x891   : > { %v3547_v3 = vpack.c.bf16 %v3540_v57, %v3539_v27  ;;  %v3541_v56 = vmul.f32 %v16003_v24, %v17745_v41  ;;  %v15035_v27 = vld [vmem:[#allocation10 + $0xb0] ss:$12 sps:$4 sm:$0xff]  }
 0x892   : > { %v15038_v57 = vld [vmem:[#allocation10 + $0x4] ss:$12 sps:$4 sm:$0xff]   ;;  %13820 = vmatprep.subr.bf16.mxu1 %v15035_v27 }
 0x893   : > { %v3524_v52 = vpop.xlane.xlu1 %3523  ;;  %13806 = vmatprep.mubr.msk.bf16.mxu0 %vm3083_vm0, %v3547_v3  ;;  %v3548_v45 = vpack.c.bf16 %v3542_v17, %v3541_v56  ;;  %13821 = vmatpush3.bf16.msra.mxu1 %v15035_v27  ;;  %v15047_v56 = vld [vmem:[#allocation10 + $0x38] ss:$12 sps:$4 sm:$0xff]  }
 0x894   : > { %16006 = vrcp.f32 %v3524_v52 }
 0x895   : > { %16008 = vrcp.f32 %v3530_v15  ;;  %v15034_v15 = vld [vmem:[#allocation10 + $0xac] ss:$12 sps:$4 sm:$0xff]  }
 0x896   : > { %16010 = vrcp.f32 %v3527_v22  ;;  %v16005_v40 = vpop.eup %16004 }
 0x897   : > { %v3558_v62 = vpop.permute.xlu1 %3557  ;;  %v3543_v1 = vmul.f32 %v16005_v40, %v15991_v51  ;;  %v15028_v51 = vld [vmem:[#allocation10 + $0x90] ss:$12 sps:$4 sm:$0xff]  }
 0x898   : > { %13800 = vmatprep.subr.bf16.mxu0 %v3558_v62  ;;  %v15042_v40 = vld [vmem:[#allocation10 + $0x1c] ss:$12 sps:$4 sm:$0xff]  }
 0x899   : > { %13801 = vmatpush3.bf16.msra.mxu0 %v3558_v62 }
 0x89a   : > { %13802 = vmatprep.subr.bf16.mxu0 %v3560_v61 }
 0x89d   : > { %13803 = vmatpush3.bf16.msra.mxu0 %v3560_v61 }
 0x89e   : > { %v16007_v34 = vpop.eup %16006  ;;  %13804 = vmatprep.subr.bf16.mxu0 %v3562_v13 }
 0x89f   : > { %v3544_v7 = vmul.f32 %v16007_v34, %v15995_v32  ;;  %v16009_v30 = vpop.eup %16008  ;;  %v15030_v32 = vld [vmem:[#allocation10 + $0x94] ss:$12 sps:$4 sm:$0xff]   ;;  %v15040_v34 = vld [vmem:[#allocation10 + $0x18] ss:$12 sps:$4 sm:$0xff]  }
 0x8a0   : > { %v16011_v63 = vpop.eup %16010  ;;  %v3546_v22 = vmul.f32 %v16009_v30, %v17760_v37  ;;  %v15039_v37 = vld [vmem:[#allocation10 + $0x8] ss:$12 sps:$4 sm:$0xff]  }
 0x8a1   : > { %13805 = vmatpush3.bf16.msra.mxu0 %v3562_v13  ;;  %v3549_v35 = vpack.c.bf16 %v3544_v7, %v3543_v1  ;;  %v3545_v41 = vmul.f32 %v16011_v63, %v17755_v21  ;;  %13830 = vmatprep.subr.bf16.mxu1 %v15039_v37  ;;  %v15043_v13 = vld [vmem:[#allocation10 + $0x20] ss:$12 sps:$4 sm:$0xff]   ;;  %v15051_v63 = vld [vmem:[#allocation10 + $0x50] ss:$12 sps:$4 sm:$0xff]  }
 0x8a2   : > { %3724 = vmatprep.subr.bf16.mxu0 %v15022_v47  ;;  %v15046_v47 = vld [vmem:[#allocation10 + $0x34] ss:$12 sps:$4 sm:$0xff]  }
 0x8a3   : > { %v3550_v20 = vpack.c.bf16 %v3546_v22, %v3545_v41  ;;  %v4089_v22 = vsel %vm3083_vm0, %v17601_v59, 0 }
 0x8a4   : > { %13807 = vmatmul.mubr.msk.bf16.vlgmr.msra.gmra.mrb[72].mxu0 %vm3083_vm0, %v3548_v45 }
 0x8a5   : > { %13810 = vmatprep.mubr.msk.bf16.mxu0 %vm3083_vm0, %v3549_v35  ;;  %3725 = vmatpush1.bf16.msra.mxu0 %v15020_v31  ;;  %v15050_v35 = vld [vmem:[#allocation10 + $0x4c] ss:$12 sps:$4 sm:$0xff]  }
 0x8a6   : > { %3726 = vmatprep.subr.bf16.mxu0 %v15026_v14  ;;  %v15044_v14 = vld [vmem:[#allocation10 + $0x30] ss:$12 sps:$4 sm:$0xff]  }
 0x8a9   : > { %3727 = vmatpush1.bf16.msra.mxu0 %v15024_v58  ;;  %v15048_v58 = vld [vmem:[#allocation10 + $0x48] ss:$12 sps:$4 sm:$0xff]  }
 0x8aa   : > { %3728 = vmatprep.subr.bf16.mxu0 %v15030_v32  ;;  %v4092_v32 = vsel %vm3083_vm0, %v17605_v46, 0 }
 0x8ac   : > { %13811 = vmatmul.mubr.msk.bf16.gmra.mrb[76].mxu0 %vm3083_vm0, %v3550_v20 }
 0x8ad   : > { %3729 = vmatpush1.bf16.msra.mxu0 %v15028_v51  ;;  %3756 = vmatprep.mubr.bf16.mxu0 %v19317_v6 }
 0x8ae   : > { %3730 = vmatprep.subr.bf16.mxu0 %v15034_v15 }
 0x8b1   : > { %3731 = vmatpush1.bf16.msra.mxu0 %v15032_v16 }
 0x8b2   : > { %3938 = vmatprep.subr.bf16.mxu0 %v15038_v57 }
 0x977   : > { %v13808_v21 = vpop.f32.mrb[72].mxu0 }
 0x978   : > { %v3613_v3 = vpop.f32.mrb[73].mxu0 }
 0x979   : > { %v13809_v52 = vpop.f32.mrb[74].mxu0 }
 0x97a   : > { %v3645_v61 = vpack.c.bf16 %v13809_v52, %v13808_v21  ;;  %v3616_v62 = vpop.f32.mrb[75].mxu0 }
 0x97b   : > { %v3644_v24 = vpack.c.bf16 %v3616_v62, %v3613_v3 }
 0x97d   : > { %12571 = vmatmul.mubr.msk.bf16.vlgmr.msra.gmra.mrb[80].mxu0 %vm3083_vm0, %v3644_v24  ;;  %13822 = vmatprep.mubr.msk.bf16.mxu1 %vm3083_vm0, %v3644_v24 }
 0x97e   : > { %3939 = vmatpush1.bf16.msra.mxu0 %v15036_v43  ;;  %13823 = vmatmul.mubr.msk.bf16.vlgmr.msra.gmra.mrb[56].mxu1 %vm3083_vm0, %v3645_v61 }
 0x97f   : > { %v13812_v17 = vpop.f32.mrb[76].mxu0  ;;  %13831 = vmatpush3.bf16.msra.mxu1 %v15039_v37  ;;  %3940 = vmatprep.subr.bf16.mxu0 %v15042_v40 }
 0x980   : > { %v3629_v7 = vpop.f32.mrb[77].mxu0  ;;  %13832 = vmatprep.subr.bf16.mxu1 %v15043_v13  ;;  %3766 = vmatprep.mubr.bf16.mxu0 %v19317_v6 }
 0x981   : > { %v13813_v1 = vpop.f32.mrb[78].mxu0 }
 0x982   : > { %v3647_v31 = vpack.c.bf16 %v13813_v1, %v13812_v17  ;;  %3941 = vmatpush1.bf16.msra.mxu0 %v15040_v34  ;;  %v3632_v45 = vpop.f32.mrb[79].mxu0 }
 0x983   : > { %v3646_v30 = vpack.c.bf16 %v3632_v45, %v3629_v7  ;;  %13833 = vmatpush3.bf16.msra.mxu1 %v15043_v13  ;;  %3942 = vmatprep.subr.bf16.mxu0 %v15046_v47 }
 0x984   : > { %13834 = vmatprep.subr.bf16.mxu1 %v15047_v56 }
 0x985   : > { %12572 = vmatmul.mubr.msk.bf16.gmra.mrb[84].mxu0 %vm3083_vm0, %v3645_v61  ;;  %13826 = vmatprep.mubr.msk.bf16.mxu1 %vm3083_vm0, %v3646_v30 }
 0x986   : > { %3943 = vmatpush1.bf16.msra.mxu0 %v15044_v14  ;;  %13827 = vmatmul.mubr.msk.bf16.gmra.mrb[60].mxu1 %vm3083_vm0, %v3647_v31 }
 0x987   : > { %13835 = vmatpush3.bf16.msra.mxu1 %v15047_v56  ;;  %13838 = vmatprep.mubr.msk.bf16.mxu1 %vm3083_vm0, %v17721_v26 }
 0x988   : > { %3944 = vmatprep.subr.bf16.mxu0 %v15050_v35  ;;  %13836 = vmatprep.subr.bf16.mxu1 %v15051_v63 }
 0x989   : > { %3776 = vmatprep.mubr.bf16.mxu0 %v19317_v6 }
 0x98a   : > { %3945 = vmatpush1.bf16.msra.mxu0 %v15048_v58 }
 0x98b   : > { %14518 = vmatprep.subr.msk.bf16.mxu0 %vm3083_vm0, %v17601_v59  ;;  %13837 = vmatpush3.bf16.msra.mxu1 %v15051_v63 }
 0x98d   : > { %12573 = vmatmul.mubr.msk.bf16.gmra.mrb[88].mxu0 %vm3083_vm0, %v3646_v30 }
 0x98e   : > { %13839 = vmatmul.mubr.msk.bf16.vlgmr.msra.gmra.mrb[56].mxu1 %vm3083_vm0, %v17719_v39  ;;  %3786 = vmatprep.mubr.bf16.mxu0 %v19317_v6 }
 0x98f   : > { %13842 = vmatprep.mubr.msk.bf16.mxu1 %vm3083_vm0, %v17725_v10 }
 0x995   : > { %12574 = vmatmul.mubr.msk.bf16.gmra.mrb[92].mxu0 %vm3083_vm0, %v3647_v31 }
 0x996   : > { %13843 = vmatmul.mubr.msk.bf16.gmra.mrb[60].mxu1 %vm3083_vm0, %v17723_v44  ;;  %3970 = vmatprep.mubr.bf16.mxu0 %v19317_v6 }
 0x99d   : > { %12591 = vmatmul.mubr.msk.bf16.vlgmr.msra.gmra.mrb[80].mxu0 %vm3083_vm0, %v17721_v26  ;;  %v4095_v26 = vsel %vm3083_vm0, %v17609_v4, 0 }
 0x99e   : > { %13847 = vmatpush3.bf16.xpose.msra.mxu0 %v4089_v22  ;;  %3980 = vmatprep.mubr.bf16.mxu0 %v19317_v6 }
 0x99f   : > { %14519 = vmatprep.subr.msk.bf16.mxu0 %vm3083_vm0, %v17605_v46 }
 0x9a5   : > { %12592 = vmatmul.mubr.msk.bf16.gmra.mrb[84].mxu0 %vm3083_vm0, %v17719_v39  ;;  %v4098_v39 = vsel %vm3083_vm0, %v17613_v60, 0 }
 0x9a6   : > { %13849 = vmatpush3.bf16.xpose.msra.mxu0 %v4092_v32  ;;  %3990 = vmatprep.mubr.bf16.mxu0 %v19317_v6 }
 0x9a7   : > { %14520 = vmatprep.subr.msk.bf16.mxu0 %vm3083_vm0, %v17609_v4 }
 0x9ad   : > { %12593 = vmatmul.mubr.msk.bf16.gmra.mrb[88].mxu0 %vm3083_vm0, %v17725_v10 }
 0x9ae   : > { %13851 = vmatpush3.bf16.xpose.msra.mxu0 %v4095_v26  ;;  %4000 = vmatprep.mubr.bf16.mxu0 %v19317_v6 }
 0x9af   : > { %14521 = vmatprep.subr.msk.bf16.mxu0 %vm3083_vm0, %v17613_v60 }
 0x9b5   : > { %12594 = vmatmul.mubr.msk.bf16.gmra.mrb[92].mxu0 %vm3083_vm0, %v17723_v44 }
 0x9b6   : > { %13853 = vmatpush3.bf16.xpose.msra.mxu0 %v4098_v39  ;;  %13854 = vmatprep.mubr.msk.bf16.mxu0 %vm3083_vm0, %v17504_v2 }
 0x9b7   : > { %13862 = vmatprep.subr.bf16.mxu0 %v17526_v12 }
 0x9bd   : > { %13855 = vmatmul.mubr.msk.bf16.vlgmr.msra.gmra.mrb[96].mxu0 %vm3083_vm0, %v17511_v33 }
 0x9be   : > { %13863 = vmatpush3.bf16.msra.mxu0 %v17526_v12  ;;  %13858 = vmatprep.mubr.msk.bf16.mxu0 %vm3083_vm0, %v17515_v36 }
 0x9bf   : > { %13864 = vmatprep.subr.bf16.mxu0 %v17544_v19 }
 0x9c2   : > { %13865 = vmatpush3.bf16.msra.mxu0 %v17544_v19 }
 0x9c3   : > { %13866 = vmatprep.subr.bf16.mxu0 %v17562_v5 }
 0x9c5   : > { %13859 = vmatmul.mubr.msk.bf16.gmra.mrb[100].mxu0 %vm3083_vm0, %v17519_v42 }
 0x9c6   : > { %13867 = vmatpush3.bf16.msra.mxu0 %v17562_v5 }
 0x9c7   : > { %13868 = vmatprep.subr.bf16.mxu0 %v17580_v9 }
 0x9ca   : > { %13869 = vmatpush3.bf16.msra.mxu0 %v17580_v9 }
 0xa90   : > { %v13856_v44 = vpop.f32.mrb[96].mxu0 }
 0xa91   : > { %v4134_v10 = vpop.f32.mrb[97].mxu0  ;;  %v4143_v16 = vadd.f32 %v13856_v44, %v17634_v53 }
 0xa92   : > { %v4135_v41 = vadd.f32 %v4134_v10, %v17631_v25  ;;  %v13857_v51 = vpop.f32.mrb[98].mxu0 }
 0xa93   : > { %v4137_v20 = vpop.f32.mrb[99].mxu0  ;;  %v4146_v37 = vadd.f32 %v13857_v51, %v17641_v18  ;;  %v4171_v3 = vsel %vm3083_vm0, %v4143_v16, -inf }
 0xa94   : > { %v4138_v15 = vadd.f32 %v4137_v20, %v17636_v54  ;;  %v4165_v27 = vsel %vm3083_vm0, %v4135_v41, -inf }
 0xa95   : > { %4166 = vmax.xlane.f32.xlu0 %v4165_v27  ;;  %v4174_v40 = vsel %vm3083_vm0, %v4146_v37, -inf }
 0xa96   : > { %v4168_v57 = vsel %vm3083_vm0, %v4138_v15, -inf }
 0xa97   : > { %4169 = vmax.xlane.f32.xlu1 %v4168_v57 }
 0xa98   : > { %v13860_v21 = vpop.f32.mrb[100].mxu0 }
 0xa99   : > { %v4150_v52 = vpop.f32.mrb[101].mxu0  ;;  %4172 = vmax.xlane.f32.xlu0 %v4171_v3  ;;  %v4159_v17 = vadd.f32 %v13860_v21, %v17652_v48 }
 0xa9a   : > { %v13861_v61 = vpop.f32.mrb[102].mxu0  ;;  %v4151_v43 = vadd.f32 %v4150_v52, %v17649_v55 }
 0xa9b   : > { %v4153_v62 = vpop.f32.mrb[103].mxu0  ;;  %v4162_v13 = vadd.f32 %v13861_v61, %v17658_v8  ;;  %v4183_v56 = vsel %vm3083_vm0, %v4159_v17, -inf }
 0xa9c   : > { %v4154_v24 = vadd.f32 %v4153_v62, %v17654_v29  ;;  %v4177_v47 = vsel %vm3083_vm0, %v4151_v43, -inf }
 0xa9d   : > { %4175 = vmax.xlane.f32.xlu0 %v4174_v40  ;;  %v4186_v7 = vsel %vm3083_vm0, %v4162_v13, -inf }
 0xa9e   : > { %v4180_v34 = vsel %vm3083_vm0, %v4154_v24, -inf }
 0xa9f   : > { %4181 = vmax.xlane.f32.xlu1 %v4180_v34 }
 0xaa1   : > { %4178 = vmax.xlane.f32.xlu0 %v4177_v47 }
 0xaa3   : > { %4187 = vmax.xlane.f32.xlu1 %v4186_v7 }
 0xaa5   : > { %4184 = vmax.xlane.f32.xlu0 %v4183_v56 }
 0xb22   : > { %v4167_v1 = vpop.xlane.xlu0 %4166 }
 0xb23   : > { %v4189_v31 = vsub.f32 %v4135_v41, %v4167_v1 }
 0xb24   : > { %v4170_v45 = vpop.xlane.xlu1 %4169 }
 0xb25   : > { %v4197_v14 = vmul.f32 1.442695, %v4189_v31  ;;  %v4190_v30 = vsub.f32 %v4138_v15, %v4170_v45 }
 0xb26   : > { %v4173_v35 = vpop.xlane.xlu0 %4172 }
 0xb27   : > { %16012 = vpow2.f32 %v4197_v14  ;;  %v4199_v63 = vmul.f32 1.442695, %v4190_v30  ;;  %v4191_v58 = vsub.f32 %v4143_v16, %v4173_v35  ;;  %v15052_v30 = vld [vmem:[#allocation10 + $0xc8] ss:$12 sps:$4 sm:$0xff]   ;;  %v15053_v35 = vld [vmem:[#allocation10 + $0xe0] ss:$12 sps:$4 sm:$0xff]  }
 0xb28   : > { %13878 = vmatprep.subr.bf16.mxu1 %v15052_v30 }
 0xb29   : > { %16014 = vpow2.f32 %v4199_v63  ;;  %v4201_v22 = vmul.f32 1.442695, %v4191_v58  ;;  %13879 = vmatpush3.bf16.msra.mxu1 %v15052_v30  ;;  %v15054_v63 = vld [vmem:[#allocation10 + $0xf8] ss:$12 sps:$4 sm:$0xff]   ;;  %v15055_v58 = vld [vmem:[#allocation10 + $0x110] ss:$12 sps:$4 sm:$0xff]  }
 0xb2a   : > { %v4176_v32 = vpop.xlane.xlu0 %4175  ;;  %13880 = vmatprep.subr.bf16.mxu1 %v15053_v35 }
 0xb2b   : > { %16016 = vpow2.f32 %v4201_v22  ;;  %v4192_v26 = vsub.f32 %v4146_v37, %v4176_v32 }
 0xb2c   : > { %v4182_v39 = vpop.xlane.xlu1 %4181 }
 0xb2d   : > { %v4203_v44 = vmul.f32 1.442695, %v4192_v26  ;;  %v4194_v10 = vsub.f32 %v4154_v24, %v4182_v39  ;;  %13881 = vmatpush3.bf16.msra.mxu1 %v15053_v35 }
 0xb2e   : > { %v4179_v51 = vpop.xlane.xlu0 %4178  ;;  %13882 = vmatprep.subr.bf16.mxu1 %v15054_v63 }
 0xb2f   : > { %16018 = vpow2.f32 %v4203_v44  ;;  %v4207_v20 = vmul.f32 1.442695, %v4194_v10  ;;  %v4193_v27 = vsub.f32 %v4151_v43, %v4179_v51 }
 0xb30   : > { %v4188_v41 = vpop.xlane.xlu1 %4187 }
 0xb31   : > { %v17859_v57 = vpop.eup %16012  ;;  %16020 = vpow2.f32 %v4207_v20  ;;  %v4205_v15 = vmul.f32 1.442695, %v4193_v27  ;;  %v4196_v21 = vsub.f32 %v4162_v13, %v4188_v41  ;;  %13883 = vmatpush3.bf16.msra.mxu1 %v15054_v63 }
 0xb32   : > { %v4185_v3 = vpop.xlane.xlu0 %4184  ;;  %v4213_v16 = vsel %vm3083_vm0, %v17859_v57, 0.0  ;;  %13884 = vmatprep.subr.bf16.mxu1 %v15055_v58 }
 0xb33   : > { %v17863_v52 = vpop.eup %16014  ;;  %16022 = vpow2.f32 %v4205_v15  ;;  %v4211_v37 = vmul.f32 1.442695, %v4196_v21  ;;  %v4195_v61 = vsub.f32 %v4159_v17, %v4185_v3  ;;  %4214 = vadd.xlane.f32.xlu0 %v4213_v16  ;;  %v15056_v21 = vld [vmem:[#allocation10 + $0xc0] ss:$12 sps:$4 sm:$0xff]  }
 0xb34   : > { %v4216_v62 = vsel %vm3083_vm0, %v17863_v52, 0.0 }
 0xb35   : > { %v17867_v43 = vpop.eup %16016  ;;  %16024 = vpow2.f32 %v4211_v37  ;;  %v4209_v24 = vmul.f32 1.442695, %v4195_v61  ;;  %4217 = vadd.xlane.f32.xlu1 %v4216_v62  ;;  %13885 = vmatpush3.bf16.msra.mxu1 %v15055_v58  ;;  %v15059_v62 = vld [vmem:[#allocation10 + $0xd8] ss:$12 sps:$4 sm:$0xff]  }
 0xb36   : > { %v4219_v40 = vsel %vm3083_vm0, %v17867_v43, 0.0 }
 0xb37   : > { %16026 = vpow2.f32 %v4209_v24  ;;  %4220 = vadd.xlane.f32.xlu0 %v4219_v40  ;;  %v15064_v24 = vld [vmem:[#allocation10 + $0xf4] ss:$12 sps:$4 sm:$0xff]  }
 0xb39   : > { %v16019_v13 = vpop.eup %16018 }
 0xb3a   : > { %v4222_v34 = vsel %vm3083_vm0, %v16019_v13, 0.0 }
 0xb3b   : > { %v17872_v47 = vpop.eup %16020  ;;  %4223 = vadd.xlane.f32.xlu1 %v4222_v34 }
 0xb3c   : > { %v4228_v7 = vsel %vm3083_vm0, %v17872_v47, 0.0 }
 0xb3d   : > { %v17874_v17 = vpop.eup %16022 }
 0xb3e   : > { %v4225_v56 = vsel %vm3083_vm0, %v17874_v17, 0.0 }
 0xb3f   : > { %v17880_v1 = vpop.eup %16024  ;;  %4229 = vadd.xlane.f32.xlu1 %v4228_v7  ;;  %4226 = vadd.xlane.f32.xlu0 %v4225_v56  ;;  %v15062_v56 = vld [vmem:[#allocation10 + $0xf0] ss:$12 sps:$4 sm:$0xff]  }
 0xb40   : > { %v4234_v45 = vsel %vm3083_vm0, %v17880_v1, 0.0 }
 0xb41   : > { %v17882_v31 = vpop.eup %16026 }
 0xb42   : > { %v4231_v14 = vsel %vm3083_vm0, %v17882_v31, 0.0 }
 0xb43   : > { %4235 = vadd.xlane.f32.xlu1 %v4234_v45  ;;  %4232 = vadd.xlane.f32.xlu0 %v4231_v14 }
 0xb54   : > { %4594 = vrot.lane.b32.xlu1 %v17605_v46, %s16650_s28  ;;  %v15058_v46 = vld [vmem:[#allocation10 + $0xc4] ss:$12 sps:$4 sm:$0xff]  }
 0xb55   : > { %4414 = vmatprep.subr.bf16.mxu0 %v15058_v46 }
 0xb58   : > { %4596 = vrot.lane.b32.xlu1 %v17609_v4, %s16650_s28 }
 0xb59   : > { %4592 = vrot.lane.b32.xlu0 %v17601_v59, %s16650_s28 }
 0xb5c   : > { %4598 = vrot.lane.b32.xlu1 %v17613_v60, %s16650_s28 }
 0xb5d   : > { %4580 = vrot.lane.b32.xlu0 %v17504_v2, %s16650_s28 }
 0xb60   : > { %4582 = vrot.lane.b32.xlu1 %v17511_v33, %s16650_s28 }
 0xb61   : > { %4584 = vrot.lane.b32.xlu0 %v17515_v36, %s16650_s28 }
 0xb64   : > { %4586 = vrot.lane.b32.xlu1 %v17519_v42, %s16650_s28 }
 0xbc0   : > { %v4215_v59 = vpop.xlane.xlu0 %4214 }
 0xbc1   : > { %16028 = vrcp.f32 %v4215_v59 }
 0xbc2   : > { %v4218_v4 = vpop.xlane.xlu1 %4217 }
 0xbc3   : > { %16030 = vrcp.f32 %v4218_v4 }
 0xbc4   : > { %v4221_v60 = vpop.xlane.xlu0 %4220 }
 0xbc5   : > { %16032 = vrcp.f32 %v4221_v60 }
 0xbc8   : > { %v4224_v22 = vpop.xlane.xlu1 %4223 }
 0xbc9   : > { %16034 = vrcp.f32 %v4224_v22 }
 0xbcb   : > { %v16029_v2 = vpop.eup %16028 }
 0xbcc   : > { %v4230_v32 = vpop.xlane.xlu1 %4229  ;;  %v4227_v26 = vpop.xlane.xlu0 %4226  ;;  %v4245_v36 = vmul.f32 %v16029_v2, %v17859_v57  ;;  %v15061_v57 = vld [vmem:[#allocation10 + $0xdc] ss:$12 sps:$4 sm:$0xff]  }
 0xbcd   : > { %v16031_v33 = vpop.eup %16030  ;;  %16036 = vrcp.f32 %v4230_v32 }
 0xbce   : > { %16038 = vrcp.f32 %v4227_v26  ;;  %v4246_v42 = vmul.f32 %v16031_v33, %v17863_v52 }
 0xbcf   : > { %v16033_v51 = vpop.eup %16032 }
 0xbd0   : > { %v4236_v39 = vpop.xlane.xlu1 %4235  ;;  %v4233_v44 = vpop.xlane.xlu0 %4232  ;;  %v4253_v10 = vpack.c.bf16 %v4246_v42, %v4245_v36  ;;  %v4247_v27 = vmul.f32 %v16033_v51, %v17867_v43  ;;  %v15069_v51 = vld [vmem:[#allocation10 + $0x140] ss:$12 sps:$4 sm:$0xff]  }
 0xbd1   : > { %16040 = vrcp.f32 %v4236_v39 }
 0xbd2   : > { %16042 = vrcp.f32 %v4233_v44  ;;  %13870 = vmatprep.mubr.msk.bf16.mxu0 %vm3083_vm0, %v4253_v10  ;;  %v15068_v44 = vld [vmem:[#allocation10 + $0x128] ss:$12 sps:$4 sm:$0xff]  }
 0xbd3   : > { %v16035_v20 = vpop.eup %16034 }
 0xbd4   : > { %v4248_v41 = vmul.f32 %v16035_v20, %v16019_v13  ;;  %v4593_v15 = vpop.permute.xlu0 %4592  ;;  %v4595_v46 = vpop.permute.xlu1 %4594 }
 0xbd5   : > { %14522 = vmatprep.subr.msk.bf16.mxu1 %vm3083_vm0, %v4593_v15  ;;  %v4616_v26 = vsel %vm3083_vm0, %v4595_v46, 0 }
 0xbd6   : > { %v4254_v3 = vpack.c.bf16 %v4248_v41, %v4247_v27  ;;  %v15070_v41 = vld [vmem:[#allocation10 + $0x158] ss:$12 sps:$4 sm:$0xff]  }
 0xbd7   : > { %v16037_v16 = vpop.eup %16036 }
 0xbd8   : > { %v16039_v52 = vpop.eup %16038  ;;  %13871 = vmatmul.mubr.msk.bf16.vlgmr.msra.gmra.mrb[104].mxu0 %vm3083_vm0, %v4254_v3  ;;  %v4250_v37 = vmul.f32 %v16037_v16, %v17872_v47  ;;  %v15065_v47 = vld [vmem:[#allocation10 + $0x108] ss:$12 sps:$4 sm:$0xff]   ;;  %v4581_v33 = vpop.permute.xlu0 %4580 }
 0xbd9   : > { %v4249_v61 = vmul.f32 %v16039_v52, %v17874_v17  ;;  %4415 = vmatpush1.bf16.msra.mxu0 %v15056_v21  ;;  %v15067_v17 = vld [vmem:[#allocation10 + $0x10c] ss:$12 sps:$4 sm:$0xff]   ;;  %v4597_v36 = vpop.permute.xlu1 %4596 }
 0xbda   : > { %4416 = vmatprep.subr.bf16.mxu0 %v15061_v57  ;;  %v4619_v42 = vsel %vm3083_vm0, %v4597_v36, 0 }
 0xbdb   : > { %v16041_v43 = vpop.eup %16040  ;;  %v4255_v40 = vpack.c.bf16 %v4250_v37, %v4249_v61 }
 0xbdc   : > { %v16043_v13 = vpop.eup %16042  ;;  %v4252_v34 = vmul.f32 %v16041_v43, %v17880_v1  ;;  %v4585_v27 = vpop.permute.xlu0 %4584 }
 0xbdd   : > { %13874 = vmatprep.mubr.msk.bf16.mxu0 %vm3083_vm0, %v4255_v40  ;;  %v4251_v7 = vmul.f32 %v16043_v13, %v17882_v31  ;;  %4417 = vmatpush1.bf16.msra.mxu0 %v15059_v62  ;;  %v4613_v31 = vsel %vm3083_vm0, %v4593_v15, 0  ;;  %v4599_v39 = vpop.permute.xlu1 %4598  ;;  %v15071_v15 = vld [vmem:[#allocation10 + $0x170] ss:$12 sps:$4 sm:$0xff]  }
 0xbde   : > { %4418 = vmatprep.subr.bf16.mxu0 %v15064_v24  ;;  %v4622_v10 = vsel %vm3083_vm0, %v4599_v39, 0 }
 0xbdf   : > { %v4256_v45 = vpack.c.bf16 %v4252_v34, %v4251_v7 }
 0xbe1   : > { %13875 = vmatmul.mubr.msk.bf16.gmra.mrb[108].mxu0 %vm3083_vm0, %v4256_v45  ;;  %v4583_v20 = vpop.permute.xlu1 %4582 }
 0xbe2   : > { %4419 = vmatpush1.bf16.msra.mxu0 %v15062_v56  ;;  %4446 = vmatprep.mubr.bf16.mxu0 %v19317_v6 }
 0xbe3   : > { %4420 = vmatprep.subr.bf16.mxu0 %v15067_v17 }
 0xbe5   : > { %v4587_v21 = vpop.permute.xlu1 %4586 }
 0xbe6   : > { %4421 = vmatpush1.bf16.msra.mxu0 %v15065_v47 }
 0xcab   : > { %v13872_v14 = vpop.f32.mrb[104].mxu0 }
 0xcac   : > { %v4303_v30 = vpop.f32.mrb[105].mxu0 }
 0xcad   : > { %v13873_v1 = vpop.f32.mrb[106].mxu0 }
 0xcae   : > { %v4335_v35 = vpack.c.bf16 %v13873_v1, %v13872_v14  ;;  %v4306_v63 = vpop.f32.mrb[107].mxu0 }
 0xcaf   : > { %v4334_v58 = vpack.c.bf16 %v4306_v63, %v4303_v30 }
 0xcb1   : > { %12619 = vmatmul.mubr.msk.bf16.vlgmr.msra.gmra.mrb[80].mxu0 %vm3083_vm0, %v4334_v58  ;;  %13886 = vmatprep.mubr.msk.bf16.mxu1 %vm3083_vm0, %v4334_v58 }
 0xcb2   : > { %13887 = vmatmul.mubr.msk.bf16.vlgmr.msra.gmra.mrb[56].mxu1 %vm3083_vm0, %v4335_v35  ;;  %4456 = vmatprep.mubr.bf16.mxu0 %v19317_v6 }
 0xcb3   : > { %13895 = vmatpush3.bf16.xpose.msra.mxu1 %v4613_v31 }
 0xcb4   : > { %v13876_v59 = vpop.f32.mrb[108].mxu0  ;;  %14523 = vmatprep.subr.msk.bf16.mxu1 %vm3083_vm0, %v4595_v46 }
 0xcb5   : > { %v4319_v4 = vpop.f32.mrb[109].mxu0 }
 0xcb6   : > { %v13877_v60 = vpop.f32.mrb[110].mxu0 }
 0xcb7   : > { %v4337_v22 = vpack.c.bf16 %v13877_v60, %v13876_v59  ;;  %v4322_v2 = vpop.f32.mrb[111].mxu0 }
 0xcb8   : > { %v4336_v32 = vpack.c.bf16 %v4322_v2, %v4319_v4 }
 0xcb9   : > { %12620 = vmatmul.mubr.msk.bf16.gmra.mrb[84].mxu0 %vm3083_vm0, %v4335_v35 }
 0xcba   : > { %13890 = vmatprep.mubr.msk.bf16.mxu1 %vm3083_vm0, %v4336_v32  ;;  %4466 = vmatprep.mubr.bf16.mxu0 %v19317_v6 }
 0xcbb   : > { %13891 = vmatmul.mubr.msk.bf16.gmra.mrb[60].mxu1 %vm3083_vm0, %v4337_v22 }
 0xcbc   : > { %13897 = vmatpush3.bf16.xpose.msra.mxu1 %v4616_v26  ;;  %13902 = vmatprep.mubr.msk.bf16.mxu1 %vm3083_vm0, %v4581_v33 }
 0xcbd   : > { %14524 = vmatprep.subr.msk.bf16.mxu1 %vm3083_vm0, %v4597_v36 }
 0xcc1   : > { %12621 = vmatmul.mubr.msk.bf16.gmra.mrb[88].mxu0 %vm3083_vm0, %v4336_v32 }
 0xcc2   : > { %4476 = vmatprep.mubr.bf16.mxu0 %v19317_v6 }
 0xcc4   : > { %13899 = vmatpush3.bf16.xpose.msra.mxu1 %v4619_v42 }
 0xcc5   : > { %14525 = vmatprep.subr.msk.bf16.mxu1 %vm3083_vm0, %v4599_v39 }
 0xcc9   : > { %12622 = vmatmul.mubr.msk.bf16.gmra.mrb[92].mxu0 %vm3083_vm0, %v4337_v22 }
 0xccc   : > { %13901 = vmatpush3.bf16.xpose.msra.mxu1 %v4622_v10 }
 0xccd   : > { %13926 = vmatprep.subr.bf16.mxu1 %v15068_v44 }
 0xcd3   : > { %13903 = vmatmul.mubr.msk.bf16.vlgmr.msra.gmra.mrb[64].mxu1 %vm3083_vm0, %v4583_v20 }
 0xcd4   : > { %13906 = vmatprep.mubr.msk.bf16.mxu1 %vm3083_vm0, %v4585_v27  ;;  %13927 = vmatpush3.bf16.msra.mxu1 %v15068_v44 }
 0xcd5   : > { %13928 = vmatprep.subr.bf16.mxu1 %v15069_v51 }
 0xcd8   : > { %13929 = vmatpush3.bf16.msra.mxu1 %v15069_v51 }
 0xcd9   : > { %13930 = vmatprep.subr.bf16.mxu1 %v15070_v41 }
 0xcdb   : > { %13907 = vmatmul.mubr.msk.bf16.gmra.mrb[68].mxu1 %vm3083_vm0, %v4587_v21 }
 0xcdc   : > { %13931 = vmatpush3.bf16.msra.mxu1 %v15070_v41 }
 0xcdd   : > { %13932 = vmatprep.subr.bf16.mxu1 %v15071_v15 }
 0xce0   : > { %13933 = vmatpush3.bf16.msra.mxu1 %v15071_v15 }
 0xce1   : > { %14526 = vmatprep.subr.msk.bf16.mxu1 %vm3083_vm0, %v17603_v11 }
 0xda6   : > { %v13904_v3 = vpop.f32.mrb[64].mxu1 }
 0xda7   : > { %v4658_v57 = vpop.f32.mrb[65].mxu1  ;;  %v4667_v61 = vadd.f32 %v13904_v3, %v17634_v53 }
 0xda8   : > { %v4659_v16 = vadd.f32 %v4658_v57, %v17631_v25  ;;  %v13905_v52 = vpop.f32.mrb[66].mxu1 }
 0xda9   : > { %v4661_v37 = vpop.f32.mrb[67].mxu1  ;;  %v4670_v40 = vadd.f32 %v13905_v52, %v17641_v18  ;;  %v4695_v34 = vsel %vm3083_vm0, %v4667_v61, -inf }
 0xdaa   : > { %v4662_v62 = vadd.f32 %v4661_v37, %v17636_v54  ;;  %v4689_v24 = vsel %vm3083_vm0, %v4659_v16, -inf }
 0xdab   : > { %4690 = vmax.xlane.f32.xlu0 %v4689_v24  ;;  %v4698_v14 = vsel %vm3083_vm0, %v4670_v40, -inf }
 0xdac   : > { %v4692_v43 = vsel %vm3083_vm0, %v4662_v62, -inf }
 0xdad   : > { %4693 = vmax.xlane.f32.xlu1 %v4692_v43 }
 0xdae   : > { %v13908_v13 = vpop.f32.mrb[68].mxu1 }
 0xdaf   : > { %4696 = vmax.xlane.f32.xlu0 %v4695_v34  ;;  %v4674_v7 = vpop.f32.mrb[69].mxu1  ;;  %v4683_v35 = vadd.f32 %v13908_v13, %v17652_v48 }
 0xdb0   : > { %v13909_v56 = vpop.f32.mrb[70].mxu1  ;;  %v4675_v17 = vadd.f32 %v4674_v7, %v17649_v55 }
 0xdb1   : > { %v17949_v45 = vadd.f32 %v13909_v56, %v17658_v8  ;;  %v4677_v47 = vpop.f32.mrb[71].mxu1  ;;  %v4707_v31 = vsel %vm3083_vm0, %v4683_v35, -inf }
 0xdb2   : > { %v4678_v30 = vadd.f32 %v4677_v47, %v17654_v29  ;;  %v4701_v63 = vsel %vm3083_vm0, %v4675_v17, -inf }
 0xdb3   : > { %4699 = vmax.xlane.f32.xlu0 %v4698_v14  ;;  %v4710_v1 = vsel %vm3083_vm0, %v17949_v45, -inf }
 0xdb4   : > { %4711 = vmax.xlane.f32.xlu1 %v4710_v1  ;;  %v4704_v58 = vsel %vm3083_vm0, %v4678_v30, -inf }
 0xdb7   : > { %4702 = vmax.xlane.f32.xlu0 %v4701_v63 }
 0xdb8   : > { %4705 = vmax.xlane.f32.xlu1 %v4704_v58 }
 0xdbb   : > { %4708 = vmax.xlane.f32.xlu0 %v4707_v31 }
 0xdc9   : > { %4787 = vrot.lane.b32.xlu1 %v17544_v19, %s16650_s28 }
 0xdcd   : > { %4789 = vrot.lane.b32.xlu1 %v17562_v5, %s16650_s28 }
 0xe38   : > { %v4691_v46 = vpop.xlane.xlu0 %4690 }
 0xe39   : > { %v4713_v59 = vsub.f32 %v4659_v16, %v4691_v46 }
 0xe3a   : > { %v4694_v4 = vpop.xlane.xlu1 %4693 }
 0xe3b   : > { %v4721_v2 = vmul.f32 1.442695, %v4713_v59  ;;  %v4714_v32 = vsub.f32 %v4662_v62, %v4694_v4 }
 0xe3c   : > { %v4697_v60 = vpop.xlane.xlu0 %4696 }
 0xe3d   : > { %v4715_v22 = vsub.f32 %v4667_v61, %v4697_v60  ;;  %v4723_v42 = vmul.f32 1.442695, %v4714_v32  ;;  %v15074_v32 = vld [vmem:[#allocation10 + $0x124] ss:$12 sps:$4 sm:$0xff]  }
 0xe3f   : > { %v4725_v26 = vmul.f32 1.442695, %v4715_v22 }
 0xe40   : > { %v4700_v33 = vpop.xlane.xlu0 %4699 }
 0xe41   : > { %16044 = vpow2.f32 %v4725_v26  ;;  %v4716_v36 = vsub.f32 %v4670_v40, %v4700_v33  ;;  %v4712_v52 = vpop.xlane.xlu1 %4711 }
 0xe42   : > { %16046 = vpow2.f32 %v4721_v2  ;;  %v4720_v40 = vsub.f32 %v17949_v45, %v4712_v52 }
 0xe43   : > { %v4727_v39 = vmul.f32 1.442695, %v4716_v36 }
 0xe44   : > { %v4703_v44 = vpop.xlane.xlu0 %4702  ;;  %v4735_v34 = vmul.f32 1.442695, %v4720_v40 }
 0xe45   : > { %16048 = vpow2.f32 %v4727_v39  ;;  %v4717_v19 = vsub.f32 %v4675_v17, %v4703_v44  ;;  %v4706_v62 = vpop.xlane.xlu1 %4705  ;;  %v15072_v39 = vld [vmem:[#allocation10 + $0x120] ss:$12 sps:$4 sm:$0xff]  }
 0xe46   : > { %16050 = vpow2.f32 %v4723_v42  ;;  %v4718_v24 = vsub.f32 %v4678_v30, %v4706_v62 }
 0xe47   : > { %v4729_v10 = vmul.f32 1.442695, %v4717_v19  ;;  %v15077_v19 = vld [vmem:[#allocation10 + $0x13c] ss:$12 sps:$4 sm:$0xff]  }
 0xe48   : > { %v4709_v37 = vpop.xlane.xlu0 %4708  ;;  %v4731_v13 = vmul.f32 1.442695, %v4718_v24 }
 0xe49   : > { %16052 = vpow2.f32 %v4729_v10  ;;  %v4719_v61 = vsub.f32 %v4683_v35, %v4709_v37  ;;  %v4788_v17 = vpop.permute.xlu1 %4787  ;;  %v15075_v10 = vld [vmem:[#allocation10 + $0x138] ss:$12 sps:$4 sm:$0xff]  }
 0xe4b   : > { %v17964_v5 = vpop.eup %16044  ;;  %v4733_v43 = vmul.f32 1.442695, %v4719_v61 }
 0xe4c   : > { %v4743_v51 = vsel %vm3083_vm0, %v17964_v5, 0.0  ;;  %v16047_v20 = vpop.eup %16046 }
 0xe4d   : > { %4744 = vadd.xlane.f32.xlu0 %v4743_v51  ;;  %v4737_v41 = vsel %vm3083_vm0, %v16047_v20, 0.0  ;;  %16054 = vpow2.f32 %v4733_v43  ;;  %v4790_v14 = vpop.permute.xlu1 %4789  ;;  %v15080_v51 = vld [vmem:[#allocation10 + $0x154] ss:$12 sps:$4 sm:$0xff]  }
 0xe4e   : > { %16056 = vpow2.f32 %v4731_v13 }
 0xe4f   : > { %v16049_v27 = vpop.eup %16048  ;;  %16058 = vpow2.f32 %v4735_v34 }
 0xe50   : > { %v4746_v15 = vsel %vm3083_vm0, %v16049_v27, 0.0  ;;  %v16051_v21 = vpop.eup %16050 }
 0xe51   : > { %4738 = vadd.xlane.f32.xlu0 %v4737_v41  ;;  %4747 = vadd.xlane.f32.xlu1 %v4746_v15  ;;  %v4740_v3 = vsel %vm3083_vm0, %v16051_v21, 0.0 }
 0xe53   : > { %v17971_v57 = vpop.eup %16052 }
 0xe54   : > { %v4749_v16 = vsel %vm3083_vm0, %v17971_v57, 0.0 }
 0xe55   : > { %4741 = vadd.xlane.f32.xlu1 %v4740_v3 }
 0xe57   : > { %v17980_v7 = vpop.eup %16054 }
 0xe58   : > { %v17984_v56 = vpop.eup %16056 }
 0xe59   : > { %4750 = vadd.xlane.f32.xlu1 %v4749_v16  ;;  %v17988_v47 = vpop.eup %16058 }
 0xe5a   : > { %v4758_v45 = vsel %vm3083_vm0, %v17988_v47, 0.0 }
 0xe67   : > { %4785 = vrot.lane.b32.xlu0 %v17526_v12, %s16650_s28  ;;  %v4755_v12 = vsel %vm3083_vm0, %v17980_v7, 0.0 }
 0xe6a   : > { %4791 = vrot.lane.b32.xlu1 %v17580_v9, %s16650_s28  ;;  %v4752_v9 = vsel %vm3083_vm0, %v17984_v56, 0.0 }
 0xe86   : > { %4756 = vadd.xlane.f32.xlu0 %v4755_v12 }
 0xe8a   : > { %4753 = vadd.xlane.f32.xlu0 %v4752_v9 }
 0xe8e   : > { %4759 = vadd.xlane.f32.xlu0 %v4758_v45 }
 0xeda   : > { %v4745_v30 = vpop.xlane.xlu0 %4744 }
 0xede   : > { %v4748_v1 = vpop.xlane.xlu1 %4747  ;;  %v4739_v35 = vpop.xlane.xlu0 %4738 }
 0xedf   : > { %16060 = vrcp.f32 %v4748_v1 }
 0xee0   : > { %16062 = vrcp.f32 %v4739_v35 }
 0xee1   : > { %16064 = vrcp.f32 %v4745_v30 }
 0xee2   : > { %v4742_v63 = vpop.xlane.xlu1 %4741  ;;  %v4786_v58 = vpop.permute.xlu0 %4785 }
 0xee3   : > { %16066 = vrcp.f32 %v4742_v63  ;;  %13910 = vmatprep.subr.bf16.mxu0 %v4786_v58 }
 0xee4   : > { %13911 = vmatpush3.bf16.msra.mxu0 %v4786_v58 }
 0xee5   : > { %13912 = vmatprep.subr.bf16.mxu0 %v4788_v17 }
 0xee6   : > { %v4751_v31 = vpop.xlane.xlu1 %4750 }
 0xee7   : > { %16068 = vrcp.f32 %v4751_v31 }
 0xee8   : > { %13913 = vmatpush3.bf16.msra.mxu0 %v4788_v17  ;;  %v5135_v17 = vsel %vm3083_vm0, %v17611_v50, 0 }
 0xee9   : > { %13914 = vmatprep.subr.bf16.mxu0 %v4790_v14  ;;  %v16061_v46 = vpop.eup %16060 }
 0xeea   : > { %v16063_v59 = vpop.eup %16062  ;;  %v4792_v60 = vpop.permute.xlu1 %4791  ;;  %v4772_v2 = vmul.f32 %v16061_v46, %v16049_v27  ;;  %v15078_v27 = vld [vmem:[#allocation10 + $0x150] ss:$12 sps:$4 sm:$0xff]  }
 0xeeb   : > { %v16065_v4 = vpop.eup %16064  ;;  %v4769_v26 = vmul.f32 %v16063_v59, %v16047_v20  ;;  %v15083_v20 = vld [vmem:[#allocation10 + $0x16c] ss:$12 sps:$4 sm:$0xff]   ;;  %v19319_v59 = vld [vmem:[#allocation36_spill] sm:$0xff] }
 0xeec   : > { %13915 = vmatpush3.bf16.msra.mxu0 %v4790_v14  ;;  %v4771_v36 = vmul.f32 %v16065_v4, %v17964_v5  ;;  %v15081_v5 = vld [vmem:[#allocation10 + $0x168] ss:$12 sps:$4 sm:$0xff]   ;;  %v19318_v14 = vld [vmem:[#allocation40_spill] sm:$0xff] }
 0xeed   : > { %v16067_v22 = vpop.eup %16066  ;;  %13916 = vmatprep.subr.bf16.mxu0 %v4792_v60  ;;  %v5138_v30 = vsel %vm3083_vm0, %v19318_v14, 0  ;;  %v19320_v4 = vld [vmem:[#allocation37_spill] sm:$0xff] }
 0xeee   : > { %v4770_v33 = vmul.f32 %v16067_v22, %v16051_v21  ;;  %v4778_v44 = vpack.c.bf16 %v4772_v2, %v4771_v36  ;;  %v19322_v22 = vld [vmem:[#allocation39_spill] sm:$0xff] }
 0xef0   : > { %13917 = vmatpush3.bf16.msra.mxu0 %v4792_v60  ;;  %v4777_v42 = vpack.c.bf16 %v4770_v33, %v4769_v26  ;;  %v19321_v60 = vld [vmem:[#allocation38_spill] sm:$0xff] }
 0xef1   : > { %4954 = vmatprep.subr.bf16.mxu0 %v15074_v32  ;;  %v16069_v3 = vpop.eup %16068 }
 0xef2   : > { %13918 = vmatprep.mubr.msk.bf16.mxu0 %vm3083_vm0, %v4777_v42  ;;  %v4773_v52 = vmul.f32 %v16069_v3, %v17971_v57 }
 0xef3   : > { %13919 = vmatmul.mubr.msk.bf16.vlgmr.msra.gmra.mrb[112].mxu0 %vm3083_vm0, %v4778_v44 }
 0xef4   : > { %4955 = vmatpush1.bf16.msra.mxu0 %v15072_v39 }
 0xef5   : > { %4956 = vmatprep.subr.bf16.mxu0 %v15077_v19 }
 0xef8   : > { %4957 = vmatpush1.bf16.msra.mxu0 %v15075_v10 }
 0xef9   : > { %4958 = vmatprep.subr.bf16.mxu0 %v15080_v51 }
 0xefc   : > { %4959 = vmatpush1.bf16.msra.mxu0 %v15078_v27 }
 0xefd   : > { %4960 = vmatprep.subr.bf16.mxu0 %v15083_v20 }
 0xf00   : > { %4961 = vmatpush1.bf16.msra.mxu0 %v15081_v5 }
 0xf01   : > { %13958 = vmatprep.subr.bf16.mxu0 %v17617_v49 }
 0xf13   : > { %v4757_v41 = vpop.xlane.xlu0 %4756 }
 0xf17   : > { %v4754_v15 = vpop.xlane.xlu0 %4753 }
 0xf18   : > { %16070 = vrcp.f32 %v4754_v15 }
 0xf19   : > { %16072 = vrcp.f32 %v4757_v41 }
 0xf1b   : > { %v4760_v21 = vpop.xlane.xlu0 %4759 }
 0xf1c   : > { %16074 = vrcp.f32 %v4760_v21 }
 0xf22   : > { %v16071_v16 = vpop.eup %16070 }
 0xf23   : > { %v4774_v37 = vmul.f32 %v16071_v16, %v17984_v56  ;;  %v16073_v61 = vpop.eup %16072 }
 0xf24   : > { %v4775_v43 = vmul.f32 %v16073_v61, %v17980_v7  ;;  %v5129_v7 = vsel %vm3083_vm0, %v17603_v11, 0 }
 0xf25   : > { %v4779_v62 = vpack.c.bf16 %v4774_v37, %v4773_v52 }
 0xf26   : > { %v16075_v24 = vpop.eup %16074 }
 0xf27   : > { %13922 = vmatprep.mubr.msk.bf16.mxu0 %vm3083_vm0, %v4779_v62  ;;  %v4776_v40 = vmul.f32 %v16075_v24, %v17988_v47  ;;  %v5132_v47 = vsel %vm3083_vm0, %v17607_v0, 0 }
 0xf29   : > { %v4780_v13 = vpack.c.bf16 %v4776_v40, %v4775_v43 }
 0xf2b   : > { %13923 = vmatmul.mubr.msk.bf16.gmra.mrb[116].mxu0 %vm3083_vm0, %v4780_v13 }
 0xf2c   : > { %4986 = vmatprep.mubr.bf16.mxu0 %v19317_v6 }
 0xfc6   : > { %v13920_v34 = vpop.f32.mrb[112].mxu0 }
 0xfc7   : > { %v4843_v12 = vpop.f32.mrb[113].mxu0 }
 0xfc8   : > { %v13921_v9 = vpop.f32.mrb[114].mxu0 }
 0xfc9   : > { %v4875_v57 = vpack.c.bf16 %v13921_v9, %v13920_v34  ;;  %v4846_v45 = vpop.f32.mrb[115].mxu0 }
 0xfca   : > { %v4874_v56 = vpack.c.bf16 %v4846_v45, %v4843_v12 }
 0xfcc   : > { %12647 = vmatmul.mubr.msk.bf16.vlgmr.msra.gmra.mrb[80].mxu0 %vm3083_vm0, %v4874_v56  ;;  %13934 = vmatprep.mubr.msk.bf16.mxu1 %vm3083_vm0, %v4874_v56 }
 0xfcd   : > { %13959 = vmatpush3.bf16.msra.mxu0 %v17617_v49  ;;  %13935 = vmatmul.mubr.msk.bf16.vlgmr.msra.gmra.mrb[56].mxu1 %vm3083_vm0, %v4875_v57 }
 0xfce   : > { %13943 = vmatpush3.bf16.xpose.msra.mxu1 %v5129_v7  ;;  %13960 = vmatprep.subr.bf16.mxu0 %v17619_v23 }
 0xfcf   : > { %14527 = vmatprep.subr.msk.bf16.mxu1 %vm3083_vm0, %v17607_v0  ;;  %4996 = vmatprep.mubr.bf16.mxu0 %v19317_v6 }
 0xfd1   : > { %13961 = vmatpush3.bf16.msra.mxu0 %v17619_v23 }
 0xfd2   : > { %13962 = vmatprep.subr.bf16.mxu0 %v17621_v38 }
 0xfd4   : > { %12648 = vmatmul.mubr.msk.bf16.gmra.mrb[84].mxu0 %vm3083_vm0, %v4875_v57 }
 0xfd5   : > { %13963 = vmatpush3.bf16.msra.mxu0 %v17621_v38  ;;  %5006 = vmatprep.mubr.bf16.mxu0 %v19317_v6 }
 0xfd6   : > { %13945 = vmatpush3.bf16.xpose.msra.mxu1 %v5132_v47  ;;  %13964 = vmatprep.subr.bf16.mxu0 %v17624_v28 }
 0xfd7   : > { %14528 = vmatprep.subr.msk.bf16.mxu1 %vm3083_vm0, %v17611_v50 }
 0xfd9   : > { %13965 = vmatpush3.bf16.msra.mxu0 %v17624_v28 }
 0xfde   : > { %13947 = vmatpush3.bf16.xpose.msra.mxu1 %v5135_v17 }
 0xfdf   : > { %14529 = vmatprep.subr.msk.bf16.mxu1 %vm3083_vm0, %v19318_v14 }
 0xfe6   : > { %13949 = vmatpush3.bf16.xpose.msra.mxu1 %v5138_v30 }
 0xffe   : > { %v13924_v1 = vpop.f32.mrb[116].mxu0 }
 0xfff   : > { %v4859_v35 = vpop.f32.mrb[117].mxu0 }
0x1000   : > { %v13925_v63 = vpop.f32.mrb[118].mxu0 }
0x1001   : > { %v4877_v58 = vpack.c.bf16 %v13925_v63, %v13924_v1  ;;  %v4862_v31 = vpop.f32.mrb[119].mxu0 }
0x1002   : > { %v4876_v46 = vpack.c.bf16 %v4862_v31, %v4859_v35 }
0x1004   : > { %12649 = vmatmul.mubr.msk.bf16.gmra.mrb[88].mxu0 %vm3083_vm0, %v4876_v46  ;;  %13938 = vmatprep.mubr.msk.bf16.mxu1 %vm3083_vm0, %v4876_v46 }
0x1005   : > { %13939 = vmatmul.mubr.msk.bf16.gmra.mrb[60].mxu1 %vm3083_vm0, %v4877_v58  ;;  %5016 = vmatprep.mubr.bf16.mxu0 %v19317_v6 }
0x1006   : > { %13950 = vmatprep.mubr.msk.bf16.mxu1 %vm3083_vm0, %v19319_v59 }
0x100c   : > { %12650 = vmatmul.mubr.msk.bf16.gmra.mrb[92].mxu0 %vm3083_vm0, %v4877_v58 }
0x100d   : > { %13951 = vmatmul.mubr.msk.bf16.vlgmr.msra.gmra.mrb[72].mxu1 %vm3083_vm0, %v19320_v4 }
0x100e   : > { %13954 = vmatprep.mubr.msk.bf16.mxu1 %vm3083_vm0, %v19321_v60 }
0x1015   : > { %13955 = vmatmul.mubr.msk.bf16.gmra.mrb[76].mxu1 %vm3083_vm0, %v19322_v22 }
0x10e0   : > { %v13952_v2 = vpop.f32.mrb[72].mxu1 }
0x10e1   : > { %v5183_v32 = vadd.f32 %v13952_v2, %v17634_v53  ;;  %v5174_v26 = vpop.f32.mrb[73].mxu1 }
0x10e2   : > { %v13953_v33 = vpop.f32.mrb[74].mxu1  ;;  %v5175_v36 = vadd.f32 %v5174_v26, %v17631_v25 }
0x10e3   : > { %v5177_v42 = vpop.f32.mrb[75].mxu1  ;;  %v5211_v39 = vsel %vm3083_vm0, %v5183_v32, -inf  ;;  %v5186_v5 = vadd.f32 %v13953_v33, %v17641_v18 }
0x10e4   : > { %5212 = vmax.xlane.f32.xlu0 %v5211_v39  ;;  %v5178_v44 = vadd.f32 %v5177_v42, %v17636_v54  ;;  %v5205_v19 = vsel %vm3083_vm0, %v5175_v36, -inf }
0x10e5   : > { %v5214_v16 = vsel %vm3083_vm0, %v5186_v5, -inf }
0x10e6   : > { %v5208_v15 = vsel %vm3083_vm0, %v5178_v44, -inf }
0x10e8   : > { %v13956_v10 = vpop.f32.mrb[76].mxu1  ;;  %5206 = vmax.xlane.f32.xlu0 %v5205_v19 }
0x10e9   : > { %v5190_v51 = vpop.f32.mrb[77].mxu1  ;;  %v5199_v3 = vadd.f32 %v13956_v10, %v17652_v48 }
0x10ea   : > { %v5191_v27 = vadd.f32 %v5190_v51, %v17649_v55  ;;  %v13957_v20 = vpop.f32.mrb[78].mxu1 }
0x10eb   : > { %v5193_v41 = vpop.f32.mrb[79].mxu1  ;;  %v5223_v37 = vsel %vm3083_vm0, %v5199_v3, -inf  ;;  %v5202_v61 = vadd.f32 %v13957_v20, %v17658_v8 }
0x10ec   : > { %5209 = vmax.xlane.f32.xlu0 %v5208_v15  ;;  %v5217_v21 = vsel %vm3083_vm0, %v5191_v27, -inf  ;;  %v5194_v52 = vadd.f32 %v5193_v41, %v17654_v29 }
0x10ed   : > { %5218 = vmax.xlane.f32.xlu1 %v5217_v21  ;;  %v5226_v24 = vsel %vm3083_vm0, %v5202_v61, -inf }
0x10ee   : > { %v5220_v62 = vsel %vm3083_vm0, %v5194_v52, -inf }
0x10f0   : > { %5215 = vmax.xlane.f32.xlu0 %v5214_v16 }
0x10f4   : > { %5224 = vmax.xlane.f32.xlu0 %v5223_v37 }
0x10f8   : > { %5221 = vmax.xlane.f32.xlu0 %v5220_v62  ;;  %v15085_v62 = vld [vmem:[#allocation10 + $0x1a0] ss:$12 sps:$4 sm:$0xff]  }
0x10fc   : > { %5227 = vmax.xlane.f32.xlu0 %v5226_v24  ;;  %v15086_v24 = vld [vmem:[#allocation10 + $0x1b8] ss:$12 sps:$4 sm:$0xff]  }
0x1171   : > { %v5213_v43 = vpop.xlane.xlu0 %5212 }
0x1172   : > { %v5231_v40 = vsub.f32 %v5183_v32, %v5213_v43  ;;  %v15087_v43 = vld [vmem:[#allocation10 + $0x1d0] ss:$12 sps:$4 sm:$0xff]  }
0x1174   : > { %v5241_v13 = vmul.f32 1.442695, %v5231_v40 }
0x1175   : > { %v5207_v34 = vpop.xlane.xlu0 %5206 }
0x1176   : > { %16076 = vpow2.f32 %v5241_v13  ;;  %v5229_v12 = vsub.f32 %v5175_v36, %v5207_v34 }
0x1178   : > { %v5237_v9 = vmul.f32 1.442695, %v5229_v12 }
0x1179   : > { %v5210_v57 = vpop.xlane.xlu0 %5209 }
0x117a   : > { %16078 = vpow2.f32 %v5237_v9  ;;  %v5230_v45 = vsub.f32 %v5178_v44, %v5210_v57  ;;  %v5219_v56 = vpop.xlane.xlu1 %5218 }
0x117b   : > { %v5233_v47 = vsub.f32 %v5191_v27, %v5219_v56 }
0x117c   : > { %v5239_v7 = vmul.f32 1.442695, %v5230_v45 }
0x117d   : > { %v5216_v17 = vpop.xlane.xlu0 %5215  ;;  %v5245_v35 = vmul.f32 1.442695, %v5233_v47 }
0x117e   : > { %16080 = vpow2.f32 %v5239_v7  ;;  %v5232_v30 = vsub.f32 %v5186_v5, %v5216_v17 }
0x1180   : > { %v18059_v1 = vpop.eup %16076  ;;  %v5243_v63 = vmul.f32 1.442695, %v5232_v30  ;;  %v15088_v30 = vld [vmem:[#allocation10 + $0x180] ss:$12 sps:$4 sm:$0xff]  }
0x1181   : > { %v5225_v58 = vpop.xlane.xlu0 %5224  ;;  %v5259_v31 = vsel %vm3083_vm0, %v18059_v1, 0.0 }
0x1182   : > { %16082 = vpow2.f32 %v5243_v63  ;;  %v5235_v46 = vsub.f32 %v5199_v3, %v5225_v58  ;;  %5260 = vadd.xlane.f32.xlu0 %v5259_v31  ;;  %v15093_v63 = vld [vmem:[#allocation10 + $0x19c] ss:$12 sps:$4 sm:$0xff]   ;;  %v15091_v31 = vld [vmem:[#allocation10 + $0x198] ss:$12 sps:$4 sm:$0xff]  }
0x1183   : > { %16084 = vpow2.f32 %v5245_v35 }
0x1184   : > { %v18063_v2 = vpop.eup %16078  ;;  %v5249_v32 = vmul.f32 1.442695, %v5235_v46  ;;  %v15096_v46 = vld [vmem:[#allocation10 + $0x1b4] ss:$12 sps:$4 sm:$0xff]  }
0x1185   : > { %v5222_v26 = vpop.xlane.xlu0 %5221  ;;  %v5253_v33 = vsel %vm3083_vm0, %v18063_v2, 0.0 }
0x1186   : > { %16086 = vpow2.f32 %v5249_v32  ;;  %v5234_v36 = vsub.f32 %v5194_v52, %v5222_v26  ;;  %5254 = vadd.xlane.f32.xlu0 %v5253_v33  ;;  %v15094_v33 = vld [vmem:[#allocation10 + $0x1b0] ss:$12 sps:$4 sm:$0xff]  }
0x1188   : > { %v16081_v42 = vpop.eup %16080  ;;  %v5247_v39 = vmul.f32 1.442695, %v5234_v36 }
0x1189   : > { %v5228_v44 = vpop.xlane.xlu0 %5227  ;;  %v5256_v19 = vsel %vm3083_vm0, %v16081_v42, 0.0 }
0x118a   : > { %16088 = vpow2.f32 %v5247_v39  ;;  %v5236_v10 = vsub.f32 %v5202_v61, %v5228_v44  ;;  %5257 = vadd.xlane.f32.xlu0 %v5256_v19  ;;  %v15084_v61 = vld [vmem:[#allocation10 + $0x188] ss:$12 sps:$4 sm:$0xff]  }
0x118b   : > { %13974 = vmatprep.subr.bf16.mxu1 %v15084_v61 }
0x118c   : > { %v18068_v51 = vpop.eup %16082  ;;  %v5251_v27 = vmul.f32 1.442695, %v5236_v10  ;;  %13975 = vmatpush3.bf16.msra.mxu1 %v15084_v61  ;;  %v15097_v10 = vld [vmem:[#allocation10 + $0x1c8] ss:$12 sps:$4 sm:$0xff]  }
0x118d   : > { %v5262_v20 = vsel %vm3083_vm0, %v18068_v51, 0.0  ;;  %v18072_v5 = vpop.eup %16084  ;;  %13976 = vmatprep.subr.bf16.mxu1 %v15085_v62 }
0x118e   : > { %16090 = vpow2.f32 %v5251_v27  ;;  %5263 = vadd.xlane.f32.xlu0 %v5262_v20  ;;  %v5265_v15 = vsel %vm3083_vm0, %v18072_v5, 0.0 }
0x1190   : > { %v18074_v41 = vpop.eup %16086  ;;  %13977 = vmatpush3.bf16.msra.mxu1 %v15085_v62 }
0x1191   : > { %v5271_v21 = vsel %vm3083_vm0, %v18074_v41, 0.0  ;;  %13978 = vmatprep.subr.bf16.mxu1 %v15086_v24 }
0x1192   : > { %5266 = vadd.xlane.f32.xlu0 %v5265_v15  ;;  %5272 = vadd.xlane.f32.xlu1 %v5271_v21 }
0x1194   : > { %v18080_v3 = vpop.eup %16088  ;;  %13979 = vmatpush3.bf16.msra.mxu1 %v15086_v24 }
0x1195   : > { %v5268_v16 = vsel %vm3083_vm0, %v18080_v3, 0.0  ;;  %13980 = vmatprep.subr.bf16.mxu1 %v15087_v43 }
0x1196   : > { %5269 = vadd.xlane.f32.xlu0 %v5268_v16 }
0x1198   : > { %v18084_v52 = vpop.eup %16090  ;;  %13981 = vmatpush3.bf16.msra.mxu1 %v15087_v43 }
0x1199   : > { %v5274_v37 = vsel %vm3083_vm0, %v18084_v52, 0.0 }
0x119a   : > { %5275 = vadd.xlane.f32.xlu0 %v5274_v37 }
0x11a3   : > { %5632 = vrot.lane.b32.xlu1 %v17603_v11, %s16650_s28  ;;  %v15090_v11 = vld [vmem:[#allocation10 + $0x184] ss:$12 sps:$4 sm:$0xff]  }
0x11a4   : > { %5454 = vmatprep.subr.bf16.mxu0 %v15090_v11 }
0x11a7   : > { %5636 = vrot.lane.b32.xlu1 %v17611_v50, %s16650_s28 }
0x11ab   : > { %5638 = vrot.lane.b32.xlu1 %v19318_v14, %s16650_s28 }
0x11af   : > { %5622 = vrot.lane.b32.xlu1 %v19320_v4, %s16650_s28 }
0x11b0   : > { %5634 = vrot.lane.b32.xlu0 %v17607_v0, %s16650_s28 }
0x11b3   : > { %5626 = vrot.lane.b32.xlu1 %v19322_v22, %s16650_s28 }
0x11b4   : > { %5620 = vrot.lane.b32.xlu0 %v19319_v59, %s16650_s28 }
0x11b8   : > { %5624 = vrot.lane.b32.xlu0 %v19321_v60, %s16650_s28 }
0x120f   : > { %v5261_v50 = vpop.xlane.xlu0 %5260 }
0x1213   : > { %v5255_v14 = vpop.xlane.xlu0 %5254 }
0x1214   : > { %16092 = vrcp.f32 %v5255_v14 }
0x1217   : > { %v5258_v40 = vpop.xlane.xlu0 %5257 }
0x1218   : > { %16094 = vrcp.f32 %v5258_v40 }
0x1219   : > { %16096 = vrcp.f32 %v5261_v50 }
0x121b   : > { %v5264_v4 = vpop.xlane.xlu0 %5263 }
0x121c   : > { %16098 = vrcp.f32 %v5264_v4 }
0x121e   : > { %v16093_v34 = vpop.eup %16092 }
0x121f   : > { %v5273_v0 = vpop.xlane.xlu1 %5272  ;;  %v5267_v13 = vpop.xlane.xlu0 %5266  ;;  %v5285_v9 = vmul.f32 %v16093_v34, %v18063_v2 }
0x1220   : > { %16100 = vrcp.f32 %v5267_v13 }
0x1222   : > { %v16095_v22 = vpop.eup %16094 }
0x1223   : > { %v5633_v12 = vpop.permute.xlu1 %5632  ;;  %v5270_v59 = vpop.xlane.xlu0 %5269  ;;  %v5286_v57 = vmul.f32 %v16095_v22, %v16081_v42 }
0x1224   : > { %v16097_v60 = vpop.eup %16096  ;;  %16102 = vrcp.f32 %v5270_v59  ;;  %14530 = vmatprep.subr.msk.bf16.mxu1 %vm3083_vm0, %v5633_v12 }
0x1225   : > { %v5293_v45 = vpack.c.bf16 %v5286_v57, %v5285_v9  ;;  %16104 = vrcp.f32 %v5273_v0  ;;  %v5287_v7 = vmul.f32 %v16097_v60, %v18059_v1 }
0x1226   : > { %v16099_v56 = vpop.eup %16098 }
0x1227   : > { %v5288_v47 = vmul.f32 %v16099_v56, %v18068_v51  ;;  %v5276_v17 = vpop.xlane.xlu0 %5275  ;;  %13966 = vmatprep.mubr.msk.bf16.mxu0 %vm3083_vm0, %v5293_v45  ;;  %v15099_v51 = vld [vmem:[#allocation10 + $0x1cc] ss:$12 sps:$4 sm:$0xff]   ;;  %v5637_v11 = vpop.permute.xlu1 %5636 }
0x1228   : > { %16106 = vrcp.f32 %v5276_v17  ;;  %v5659_v40 = vsel %vm3083_vm0, %v5637_v11, 0 }
0x1229   : > { %v5294_v35 = vpack.c.bf16 %v5288_v47, %v5287_v7 }
0x122a   : > { %v16101_v58 = vpop.eup %16100 }
0x122b   : > { %13967 = vmatmul.mubr.msk.bf16.vlgmr.msra.gmra.mrb[120].mxu0 %vm3083_vm0, %v5294_v35  ;;  %v5289_v32 = vmul.f32 %v16101_v58, %v18072_v5  ;;  %v5635_v16 = vpop.permute.xlu0 %5634  ;;  %v5639_v4 = vpop.permute.xlu1 %5638 }
0x122c   : > { %5455 = vmatpush1.bf16.msra.mxu0 %v15088_v30  ;;  %v5656_v62 = vsel %vm3083_vm0, %v5635_v16, 0  ;;  %v5662_v0 = vsel %vm3083_vm0, %v5639_v4, 0 }
0x122d   : > { %5456 = vmatprep.subr.bf16.mxu0 %v15093_v63 }
0x122e   : > { %v16103_v2 = vpop.eup %16102 }
0x122f   : > { %v5290_v1 = vmul.f32 %v16103_v2, %v18080_v3  ;;  %v16105_v26 = vpop.eup %16104  ;;  %v5621_v14 = vpop.permute.xlu0 %5620 }
0x1230   : > { %5457 = vmatpush1.bf16.msra.mxu0 %v15091_v31  ;;  %v5291_v39 = vmul.f32 %v16105_v26, %v18074_v41  ;;  %v5653_v41 = vsel %vm3083_vm0, %v5633_v12, 0  ;;  %v5623_v13 = vpop.permute.xlu1 %5622 }
0x1231   : > { %v5295_v36 = vpack.c.bf16 %v5290_v1, %v5289_v32  ;;  %5458 = vmatprep.subr.bf16.mxu0 %v15096_v46 }
0x1232   : > { %v16107_v42 = vpop.eup %16106 }
0x1233   : > { %13970 = vmatprep.mubr.msk.bf16.mxu0 %vm3083_vm0, %v5295_v36  ;;  %v5292_v44 = vmul.f32 %v16107_v42, %v18084_v52  ;;  %v5625_v34 = vpop.permute.xlu0 %5624 }
0x1234   : > { %5459 = vmatpush1.bf16.msra.mxu0 %v15094_v33  ;;  %v5627_v22 = vpop.permute.xlu1 %5626 }
0x1235   : > { %v5296_v19 = vpack.c.bf16 %v5292_v44, %v5291_v39  ;;  %5460 = vmatprep.subr.bf16.mxu0 %v15099_v51 }
0x1237   : > { %13971 = vmatmul.mubr.msk.bf16.gmra.mrb[124].mxu0 %vm3083_vm0, %v5296_v19 }
0x1238   : > { %5486 = vmatprep.mubr.bf16.mxu0 %v19317_v6  ;;  %5461 = vmatpush1.bf16.msra.mxu0 %v15097_v10 }
0x12fe   : > { %v13968_v27 = vpop.f32.mrb[120].mxu0 }
0x12ff   : > { %v5343_v20 = vpop.f32.mrb[121].mxu0 }
0x1300   : > { %v13969_v5 = vpop.f32.mrb[122].mxu0 }
0x1301   : > { %v5375_v15 = vpack.c.bf16 %v13969_v5, %v13968_v27  ;;  %v5346_v21 = vpop.f32.mrb[123].mxu0 }
0x1302   : > { %v5374_v3 = vpack.c.bf16 %v5346_v21, %v5343_v20 }
0x1304   : > { %12675 = vmatmul.mubr.msk.bf16.vlgmr.msra.gmra.mrb[80].mxu0 %vm3083_vm0, %v5374_v3  ;;  %13982 = vmatprep.mubr.msk.bf16.mxu1 %vm3083_vm0, %v5374_v3 }
0x1305   : > { %13983 = vmatmul.mubr.msk.bf16.vlgmr.msra.gmra.mrb[56].mxu1 %vm3083_vm0, %v5375_v15  ;;  %5496 = vmatprep.mubr.bf16.mxu0 %v19317_v6 }
0x1306   : > { %13991 = vmatpush3.bf16.xpose.msra.mxu1 %v5653_v41 }
0x1307   : > { %14531 = vmatprep.subr.msk.bf16.mxu1 %vm3083_vm0, %v5635_v16 }
0x130a   : > { %v13972_v52 = vpop.f32.mrb[124].mxu0 }
0x130b   : > { %v5359_v37 = vpop.f32.mrb[125].mxu0 }
0x130c   : > { %v13973_v61 = vpop.f32.mrb[126].mxu0  ;;  %12676 = vmatmul.mubr.msk.bf16.gmra.mrb[84].mxu0 %vm3083_vm0, %v5375_v15 }
0x130d   : > { %v5377_v24 = vpack.c.bf16 %v13973_v61, %v13972_v52  ;;  %v5362_v43 = vpop.f32.mrb[127].mxu0  ;;  %5506 = vmatprep.mubr.bf16.mxu0 %v19317_v6 }
0x130e   : > { %v5376_v50 = vpack.c.bf16 %v5362_v43, %v5359_v37  ;;  %13993 = vmatpush3.bf16.xpose.msra.mxu1 %v5656_v62 }
0x130f   : > { %14532 = vmatprep.subr.msk.bf16.mxu1 %vm3083_vm0, %v5637_v11 }
0x1310   : > { %13986 = vmatprep.mubr.msk.bf16.mxu1 %vm3083_vm0, %v5376_v50 }
0x1311   : > { %13987 = vmatmul.mubr.msk.bf16.gmra.mrb[60].mxu1 %vm3083_vm0, %v5377_v24 }
0x1312   : > { %13998 = vmatprep.mubr.msk.bf16.mxu1 %vm3083_vm0, %v5621_v14 }
0x1314   : > { %12677 = vmatmul.mubr.msk.bf16.gmra.mrb[88].mxu0 %vm3083_vm0, %v5376_v50 }
0x1315   : > { %5516 = vmatprep.mubr.bf16.mxu0 %v19317_v6 }
0x1316   : > { %13995 = vmatpush3.bf16.xpose.msra.mxu1 %v5659_v40 }
0x1317   : > { %14533 = vmatprep.subr.msk.bf16.mxu1 %vm3083_vm0, %v5639_v4 }
0x131c   : > { %12678 = vmatmul.mubr.msk.bf16.gmra.mrb[92].mxu0 %vm3083_vm0, %v5377_v24 }
0x131e   : > { %13997 = vmatpush3.bf16.xpose.msra.mxu1 %v5662_v0 }
0x1325   : > { %13999 = vmatmul.mubr.msk.bf16.vlgmr.msra.gmra.mrb[80].mxu1 %vm3083_vm0, %v5623_v13 }
0x1326   : > { %14002 = vmatprep.mubr.msk.bf16.mxu1 %vm3083_vm0, %v5625_v34 }
0x132d   : > { %14003 = vmatmul.mubr.msk.bf16.gmra.mrb[84].mxu1 %vm3083_vm0, %v5627_v22 }
0x13f8   : > { %v14000_v12 = vpop.f32.mrb[80].mxu1 }
0x13f9   : > { %v5698_v59 = vpop.f32.mrb[81].mxu1  ;;  %v5707_v45 = vadd.f32 %v14000_v12, %v17634_v53 }
0x13fa   : > { %v5699_v9 = vadd.f32 %v5698_v59, %v17631_v25  ;;  %v14001_v57 = vpop.f32.mrb[82].mxu1 }
0x13fb   : > { %v5701_v60 = vpop.f32.mrb[83].mxu1  ;;  %v5710_v17 = vadd.f32 %v14001_v57, %v17641_v18  ;;  %v5735_v35 = vsel %vm3083_vm0, %v5707_v45, -inf }
0x13fc   : > { %v5702_v56 = vadd.f32 %v5701_v60, %v17636_v54  ;;  %v5729_v7 = vsel %vm3083_vm0, %v5699_v9, -inf }
0x13fd   : > { %5730 = vmax.xlane.f32.xlu0 %v5729_v7  ;;  %v5738_v2 = vsel %vm3083_vm0, %v5710_v17, -inf  ;;  %v15111_v7 = vld [vmem:[#allocation10 + $0x218] ss:$12 sps:$4 sm:$0xff]  }
0x13fe   : > { %v5732_v47 = vsel %vm3083_vm0, %v5702_v56, -inf }
0x13ff   : > { %5733 = vmax.xlane.f32.xlu1 %v5732_v47 }
0x1400   : > { %v14004_v30 = vpop.f32.mrb[84].mxu1 }
0x1401   : > { %v5714_v63 = vpop.f32.mrb[85].mxu1  ;;  %5736 = vmax.xlane.f32.xlu0 %v5735_v35  ;;  %v5723_v53 = vadd.f32 %v14004_v30, %v17652_v48 }
0x1402   : > { %v5715_v25 = vadd.f32 %v5714_v63, %v17649_v55  ;;  %v14005_v58 = vpop.f32.mrb[86].mxu1 }
0x1403   : > { %v5717_v31 = vpop.f32.mrb[87].mxu1  ;;  %v5726_v18 = vadd.f32 %v14005_v58, %v17658_v8  ;;  %v5747_v32 = vsel %vm3083_vm0, %v5723_v53, -inf }
0x1404   : > { %v5718_v54 = vadd.f32 %v5717_v31, %v17654_v29  ;;  %v5741_v46 = vsel %vm3083_vm0, %v5715_v25, -inf }
0x1405   : > { %5742 = vmax.xlane.f32.xlu1 %v5741_v46  ;;  %5739 = vmax.xlane.f32.xlu0 %v5738_v2  ;;  %v5750_v55 = vsel %vm3083_vm0, %v5726_v18, -inf }
0x1406   : > { %v5744_v1 = vsel %vm3083_vm0, %v5718_v54, -inf }
0x1409   : > { %5748 = vmax.xlane.f32.xlu1 %v5747_v32  ;;  %5745 = vmax.xlane.f32.xlu0 %v5744_v1 }
0x140d   : > { %5751 = vmax.xlane.f32.xlu0 %v5750_v55 }
0x141a   : > { %5825 = vrot.lane.b32.xlu1 %v17617_v49, %s16650_s28 }
0x141e   : > { %5827 = vrot.lane.b32.xlu1 %v17619_v23, %s16650_s28 }
0x148a   : > { %v5731_v48 = vpop.xlane.xlu0 %5730 }
0x148b   : > { %v5753_v29 = vsub.f32 %v5699_v9, %v5731_v48  ;;  %v15102_v48 = vld [vmem:[#allocation10 + $0x1e4] ss:$12 sps:$4 sm:$0xff]  }
0x148c   : > { %v5734_v26 = vpop.xlane.xlu1 %5733 }
0x148d   : > { %v5761_v36 = vmul.f32 1.442695, %v5753_v29  ;;  %v5754_v39 = vsub.f32 %v5702_v56, %v5734_v26  ;;  %v15107_v56 = vld [vmem:[#allocation10 + $0x200] ss:$12 sps:$4 sm:$0xff]  }
0x148e   : > { %v5737_v33 = vpop.xlane.xlu0 %5736 }
0x148f   : > { %v5755_v8 = vsub.f32 %v5707_v45, %v5737_v33  ;;  %v5763_v27 = vmul.f32 1.442695, %v5754_v39  ;;  %v15103_v45 = vld [vmem:[#allocation10 + $0x1e8] ss:$12 sps:$4 sm:$0xff]   ;;  %v15100_v33 = vld [vmem:[#allocation10 + $0x1e0] ss:$12 sps:$4 sm:$0xff]  }
0x1490   : > { %14022 = vmatprep.subr.bf16.mxu1 %v15103_v45 }
0x1491   : > { %v5765_v42 = vmul.f32 1.442695, %v5755_v8  ;;  %14023 = vmatpush3.bf16.msra.mxu1 %v15103_v45 }
0x1492   : > { %v5743_v44 = vpop.xlane.xlu1 %5742  ;;  %v5740_v19 = vpop.xlane.xlu0 %5739  ;;  %14024 = vmatprep.subr.bf16.mxu1 %v15107_v56 }
0x1493   : > { %16108 = vpow2.f32 %v5765_v42  ;;  %v5756_v10 = vsub.f32 %v5710_v17, %v5740_v19  ;;  %v5757_v23 = vsub.f32 %v5715_v25, %v5743_v44  ;;  %v15106_v42 = vld [vmem:[#allocation10 + $0x1fc] ss:$12 sps:$4 sm:$0xff]  }
0x1494   : > { %16110 = vpow2.f32 %v5761_v36 }
0x1495   : > { %v5767_v51 = vmul.f32 1.442695, %v5756_v10  ;;  %v5769_v16 = vmul.f32 1.442695, %v5757_v23  ;;  %14025 = vmatpush3.bf16.msra.mxu1 %v15107_v56  ;;  %v15108_v23 = vld [vmem:[#allocation10 + $0x210] ss:$12 sps:$4 sm:$0xff]  }
0x1496   : > { %v5749_v20 = vpop.xlane.xlu1 %5748  ;;  %v5746_v49 = vpop.xlane.xlu0 %5745  ;;  %14026 = vmatprep.subr.bf16.mxu1 %v15111_v7  ;;  %v19325_v56 = vld [vmem:[#allocation34_spill] sm:$0xff] }
0x1497   : > { %v5759_v5 = vsub.f32 %v5723_v53, %v5749_v20  ;;  %16112 = vpow2.f32 %v5767_v51  ;;  %v5758_v43 = vsub.f32 %v5718_v54, %v5746_v49  ;;  %v15110_v49 = vld [vmem:[#allocation10 + $0x214] ss:$12 sps:$4 sm:$0xff]  }
0x1498   : > { %16114 = vpow2.f32 %v5763_v27  ;;  %v15104_v27 = vld [vmem:[#allocation10 + $0x1f8] ss:$12 sps:$4 sm:$0xff]  }
0x1499   : > { %v5773_v15 = vmul.f32 1.442695, %v5759_v5  ;;  %v5771_v4 = vmul.f32 1.442695, %v5758_v43  ;;  %14027 = vmatpush3.bf16.msra.mxu1 %v15111_v7 }
0x149a   : > { %v5826_v21 = vpop.permute.xlu1 %5825  ;;  %v5752_v3 = vpop.xlane.xlu0 %5751 }
0x149b   : > { %14006 = vmatprep.subr.bf16.mxu0 %v5826_v21  ;;  %16116 = vpow2.f32 %v5773_v15  ;;  %v5760_v52 = vsub.f32 %v5726_v18, %v5752_v3  ;;  %v15114_v3 = vld [vmem:[#allocation10 + $0x22c] ss:$12 sps:$4 sm:$0xff]  }
0x149c   : > { %14007 = vmatpush3.bf16.msra.mxu0 %v5826_v21  ;;  %16118 = vpow2.f32 %v5769_v16  ;;  %v15112_v21 = vld [vmem:[#allocation10 + $0x228] ss:$12 sps:$4 sm:$0xff]  }
0x149d   : > { %v18159_v41 = vpop.eup %16108  ;;  %v5775_v11 = vmul.f32 1.442695, %v5760_v52 }
0x149e   : > { %v5828_v37 = vpop.permute.xlu1 %5827  ;;  %v5783_v61 = vsel %vm3083_vm0, %v18159_v41, 0.0  ;;  %v16111_v62 = vpop.eup %16110 }
0x149f   : > { %14008 = vmatprep.subr.bf16.mxu0 %v5828_v37  ;;  %5784 = vadd.xlane.f32.xlu1 %v5783_v61  ;;  %v5777_v50 = vsel %vm3083_vm0, %v16111_v62, 0.0  ;;  %16120 = vpow2.f32 %v5775_v11 }
0x14a0   : > { %14009 = vmatpush3.bf16.msra.mxu0 %v5828_v37  ;;  %16122 = vpow2.f32 %v5771_v4 }
0x14a1   : > { %v18163_v24 = vpop.eup %16112 }
0x14a2   : > { %v5786_v14 = vsel %vm3083_vm0, %v18163_v24, 0.0  ;;  %v16115_v40 = vpop.eup %16114 }
0x14a3   : > { %5778 = vadd.xlane.f32.xlu1 %v5777_v50  ;;  %5787 = vadd.xlane.f32.xlu0 %v5786_v14  ;;  %v5780_v0 = vsel %vm3083_vm0, %v16115_v40, 0.0 }
0x14a5   : > { %v18169_v13 = vpop.eup %16116 }
0x14a6   : > { %v5795_v34 = vsel %vm3083_vm0, %v18169_v13, 0.0  ;;  %v16119_v22 = vpop.eup %16118 }
0x14a7   : > { %5781 = vadd.xlane.f32.xlu0 %v5780_v0  ;;  %v5789_v12 = vsel %vm3083_vm0, %v16119_v22, 0.0  ;;  %v6180_v0 = vld [vmem:[#allocation11] sm:$0x7] }
0x14a8   : > { %v18211_v7 = vrot.slane %v6180_v0, %v19325_v56 }
0x14a9   : > { %v18174_v59 = vpop.eup %16120 }
0x14aa   : > { %v5798_v9 = vsel %vm3083_vm0, %v18174_v59, 0.0  ;;  %v16123_v57 = vpop.eup %16122 }
0x14ab   : > { %5796 = vadd.xlane.f32.xlu0 %v5795_v34  ;;  %v5792_v60 = vsel %vm3083_vm0, %v16123_v57, 0.0 }
0x14af   : > { %5790 = vadd.xlane.f32.xlu0 %v5789_v12  ;;  %v19324_v12 = vld [vmem:[#allocation33_spill] sm:$0xff] }
0x14b3   : > { %5799 = vadd.xlane.f32.xlu0 %v5798_v9  ;;  %v16174_v9 = vld [vmem:[%s17072_s14] sm:$0xff] }
0x14b4   : > { %5831 = vrot.lane.b32.xlu1 %v17624_v28, %s16650_s28 }
0x14b7   : > { %5793 = vadd.xlane.f32.xlu0 %v5792_v60 }
0x14cd   : > { %5829 = vrot.lane.b32.xlu0 %v17621_v38, %s16650_s28 }
0x152c   : > { %v5785_v47 = vpop.xlane.xlu1 %5784 }
0x1530   : > { %v5779_v17 = vpop.xlane.xlu1 %5778  ;;  %v5788_v30 = vpop.xlane.xlu0 %5787 }
0x1531   : > { %16124 = vrcp.f32 %v5779_v17 }
0x1534   : > { %v5782_v28 = vpop.xlane.xlu0 %5781  ;;  %v5832_v1 = vpop.permute.xlu1 %5831 }
0x1535   : > { %16126 = vrcp.f32 %v5782_v28 }
0x1536   : > { %16128 = vrcp.f32 %v5788_v30 }
0x1537   : > { %16130 = vrcp.f32 %v5785_v47  ;;  %v16175_v47 = vld [vmem:[%s17072_s14 + $0x8] sm:$0xff] }
0x1538   : > { %v5797_v35 = vpop.xlane.xlu0 %5796 }
0x153b   : > { %v16125_v25 = vpop.eup %16124 }
0x153c   : > { %v5791_v63 = vpop.xlane.xlu0 %5790  ;;  %v5809_v31 = vmul.f32 %v16125_v25, %v16111_v62 }
0x153d   : > { %16132 = vrcp.f32 %v5791_v63  ;;  %v16176_v63 = vld [vmem:[%s17072_s14 + $0x18] sm:$0xff] }
0x153f   : > { %v16127_v38 = vpop.eup %16126 }
0x1540   : > { %v5800_v58 = vpop.xlane.xlu0 %5799  ;;  %v5810_v53 = vmul.f32 %v16127_v38, %v16115_v40  ;;  %v16129_v2 = vpop.eup %16128  ;;  %v16177_v38 = vld [vmem:[%s17072_s14 + $0x10] sm:$0xff] }
0x1541   : > { %v16131_v32 = vpop.eup %16130  ;;  %v5812_v55 = vmul.f32 %v16129_v2, %v18163_v24 }
0x1542   : > { %v5817_v54 = vpack.c.bf16 %v5810_v53, %v5809_v31  ;;  %v5811_v26 = vmul.f32 %v16131_v32, %v18159_v41  ;;  %v15115_v41 = vld [vmem:[#allocation10 + $0x230] ss:$12 sps:$4 sm:$0xff]  }
0x1543   : > { %14028 = vmatprep.subr.bf16.mxu1 %v15115_v41 }
0x1544   : > { %v5794_v46 = vpop.xlane.xlu0 %5793  ;;  %14014 = vmatprep.mubr.msk.bf16.mxu0 %vm3083_vm0, %v5817_v54  ;;  %v5818_v36 = vpack.c.bf16 %v5812_v55, %v5811_v26  ;;  %14029 = vmatpush3.bf16.msra.mxu1 %v15115_v41  ;;  %v16179_v55 = vld [vmem:[%s17072_s14 + $0x28] sm:$0xff] }
0x1545   : > { %16134 = vrcp.f32 %v5794_v46  ;;  %v16178_v46 = vld [vmem:[%s17072_s14 + $0x20] sm:$0xff] }
0x1546   : > { %16136 = vrcp.f32 %v5800_v58 }
0x1547   : > { %16138 = vrcp.f32 %v5797_v35  ;;  %v16133_v29 = vpop.eup %16132 }
0x1548   : > { %v5830_v18 = vpop.permute.xlu0 %5829  ;;  %v5813_v44 = vmul.f32 %v16133_v29, %v16119_v22 }
0x1549   : > { %14010 = vmatprep.subr.bf16.mxu0 %v5830_v18 }
0x154a   : > { %14011 = vmatpush3.bf16.msra.mxu0 %v5830_v18 }
0x154b   : > { %14012 = vmatprep.subr.bf16.mxu0 %v5832_v1 }
0x154e   : > { %14013 = vmatpush3.bf16.msra.mxu0 %v5832_v1 }
0x154f   : > { %v16135_v8 = vpop.eup %16134  ;;  %5994 = vmatprep.subr.bf16.mxu0 %v15102_v48 }
0x1550   : > { %v16137_v39 = vpop.eup %16136  ;;  %v5814_v19 = vmul.f32 %v16135_v8, %v16123_v57 }
0x1551   : > { %14015 = vmatmul.mubr.msk.bf16.vlgmr.msra.gmra.mrb[128].mxu0 %vm3083_vm0, %v5818_v36  ;;  %v16139_v10 = vpop.eup %16138  ;;  %v5816_v20 = vmul.f32 %v16137_v39, %v18174_v59  ;;  %v18207_v59 = vrot.slane %v6180_v0, %v19324_v12  ;;  %v16180_v39 = vld [vmem:[%s17072_s14 + $0x30] sm:$0xff] }
0x1552   : > { %v5819_v51 = vpack.c.bf16 %v5814_v19, %v5813_v44  ;;  %5995 = vmatpush1.bf16.msra.mxu0 %v15100_v33  ;;  %v5815_v5 = vmul.f32 %v16139_v10, %v18169_v13  ;;  %v19323_v13 = vld [vmem:[#allocation35_spill] sm:$0xff] }
0x1553   : > { %5996 = vmatprep.subr.bf16.mxu0 %v15106_v42  ;;  %v18204_v34 = vrot.slane %v6180_v0, %v19323_v13 }
0x1554   : > { %14018 = vmatprep.mubr.msk.bf16.mxu0 %vm3083_vm0, %v5819_v51  ;;  %v5820_v15 = vpack.c.bf16 %v5816_v20, %v5815_v5  ;;  %v16181_v51 = vld [vmem:[%s17072_s14 + $0x40] sm:$0xff]  ;;  %v16182_v20 = vld [vmem:[%s17072_s14 + $0x38] sm:$0xff] }
0x1556   : > { %5997 = vmatpush1.bf16.msra.mxu0 %v15104_v27 }
0x1557   : > { %5998 = vmatprep.subr.bf16.mxu0 %v15110_v49 }
0x1559   : > { %14019 = vmatmul.mubr.msk.bf16.gmra.mrb[132].mxu0 %vm3083_vm0, %v5820_v15 }
0x155a   : > { %5999 = vmatpush1.bf16.msra.mxu0 %v15108_v23  ;;  %6026 = vmatprep.mubr.bf16.mxu0 %v19317_v6 }
0x155b   : > { %6000 = vmatprep.subr.bf16.mxu0 %v15114_v3  ;;  %v16183_v3 = vld [vmem:[%s17072_s14 + $0x48] sm:$0xff] }
0x155e   : > { %6001 = vmatpush1.bf16.msra.mxu0 %v15112_v21 }
0x1624   : > { %v14016_v16 = vpop.f32.mrb[128].mxu0 }
0x1625   : > { %v5883_v52 = vpop.f32.mrb[129].mxu0 }
0x1626   : > { %v14017_v37 = vpop.f32.mrb[130].mxu0 }
0x1627   : > { %v5915_v61 = vpack.c.bf16 %v14017_v37, %v14016_v16  ;;  %v5886_v62 = vpop.f32.mrb[131].mxu0 }
0x1628   : > { %v5914_v24 = vpack.c.bf16 %v5886_v62, %v5883_v52 }
0x162a   : > { %12703 = vmatmul.mubr.msk.bf16.vlgmr.msra.gmra.mrb[80].mxu0 %vm3083_vm0, %v5914_v24  ;;  %14030 = vmatprep.mubr.msk.bf16.mxu1 %vm3083_vm0, %v5914_v24 }
0x162b   : > { %14031 = vmatmul.mubr.msk.bf16.vlgmr.msra.gmra.mrb[56].mxu1 %vm3083_vm0, %v5915_v61  ;;  %6036 = vmatprep.mubr.bf16.mxu0 %v19317_v6 }
0x162c   : > { %v14020_v43 = vpop.f32.mrb[132].mxu0 }
0x162d   : > { %v5899_v11 = vpop.f32.mrb[133].mxu0 }
0x162e   : > { %v14021_v50 = vpop.f32.mrb[134].mxu0 }
0x162f   : > { %v5917_v14 = vpack.c.bf16 %v14021_v50, %v14020_v43  ;;  %v5902_v40 = vpop.f32.mrb[135].mxu0  ;;  %v16185_v50 = vld [vmem:[%s17072_s14 + $0x58] sm:$0xff] }
0x1630   : > { %v5916_v4 = vpack.c.bf16 %v5902_v40, %v5899_v11 }
0x1632   : > { %12704 = vmatmul.mubr.msk.bf16.gmra.mrb[84].mxu0 %vm3083_vm0, %v5915_v61  ;;  %14034 = vmatprep.mubr.msk.bf16.mxu1 %vm3083_vm0, %v5916_v4  ;;  %v16184_v61 = vld [vmem:[%s17072_s14 + $0x50] sm:$0xff] }
0x1633   : > { %14035 = vmatmul.mubr.msk.bf16.gmra.mrb[60].mxu1 %vm3083_vm0, %v5917_v14  ;;  %6046 = vmatprep.mubr.bf16.mxu0 %v19317_v6 }
0x163a   : > { %12705 = vmatmul.mubr.msk.bf16.gmra.mrb[88].mxu0 %vm3083_vm0, %v5916_v4 }
0x163b   : > { %6056 = vmatprep.mubr.bf16.mxu0 %v19317_v6 }
0x1642   : > { %12706 = vmatmul.mubr.msk.bf16.gmra.mrb[92].mxu0 %vm3083_vm0, %v5917_v14 }
0x16fd   : > { %v6028_v22 = vpop.f32.mrb[80].mxu0 }
0x16fe   : > { %v6156_v57 = vadd.f32 %v16174_v9, %v6028_v22  ;;  %v6030_v60 = vpop.f32.mrb[81].mxu0  ;;  %v14032_v45 = vpop.f32.mrb[56].mxu1 }
0x16ff   : > { %v6157_v17 = vadd.f32 %v16175_v47, %v6030_v60  ;;  %v6032_v30 = vpop.f32.mrb[82].mxu0  ;;  %v6101_v28 = vpop.f32.mrb[57].mxu1  ;;  %v6164_v27 = vadd.f32 %v16181_v51, %v14032_v45 }
0x1700   : > { %v18215_v35 = vadd.f32 %v18204_v34, %v6156_v57  ;;  %v6159_v25 = vadd.f32 %v16176_v63, %v6032_v30  ;;  %v6158_v58 = vadd.f32 %v16177_v38, %v6101_v28  ;;  %v6034_v31 = vpop.f32.mrb[83].mxu0  ;;  %v14033_v53 = vpop.f32.mrb[58].mxu1  ;;  %v16186_v57 = vld [vmem:[%s17072_s14 + $0x60] sm:$0xff]  ;;  %v16188_v28 = vld [vmem:[%s17072_s14 + $0x68] sm:$0xff] }
0x1701   : > { %v18220_v54 = vadd.f32 %v18207_v59, %v6157_v17  ;;  %v6160_v2 = vadd.f32 %v16178_v46, %v6034_v31  ;;  %v6104_v18 = vpop.f32.mrb[59].mxu1  ;;  %v18257_v11 = vadd.f32 %v18211_v7, %v6164_v27  ;;  %v6167_v14 = vadd.f32 %v16185_v50, %v14033_v53  ;;  %v16187_v17 = vld [vmem:[%s17072_s14 + $0x70] sm:$0xff]  ;;  %v16190_v46 = vld [vmem:[%s17072_s14 + $0x88] sm:$0xff] }
0x1702   : > { %v18224_v32 = vadd.f32 %v18204_v34, %v6159_v25  ;;  %v18227_v1 = vadd.f32 %v18211_v7, %v6158_v58  ;;  %v6161_v48 = vadd.f32 %v16179_v55, %v6104_v18  ;;  %v16189_v58 = vld [vmem:[%s17072_s14 + $0x78] sm:$0xff]  ;;  %v16191_v55 = vld [vmem:[%s17072_s14 + $0x80] sm:$0xff] }
0x1703   : > { %v18231_v29 = vadd.f32 %v18207_v59, %v6160_v2  ;;  %v6223_v26 = vadd.f32 %v18220_v54, %v18215_v35  ;;  %v18270_v47 = vadd.f32 %v18211_v7, %v6167_v14 }
0x1704   : > { %v18236_v33 = vadd.f32 %v18211_v7, %v6161_v48 }
0x1705   : > { %v6038_v8 = vpop.f32.mrb[84].mxu0  ;;  %v6224_v36 = vadd.f32 %v6223_v26, %v18227_v1  ;;  %v6227_v42 = vadd.f32 %v18231_v29, %v18224_v32 }
0x1706   : > { %v6162_v44 = vadd.f32 %v16180_v39, %v6038_v8  ;;  %v6040_v19 = vpop.f32.mrb[85].mxu0  ;;  %v14036_v10 = vpop.f32.mrb[60].mxu1 }
0x1707   : > { %v6163_v49 = vadd.f32 %v16182_v20, %v6040_v19  ;;  %6225 = vadd.xlane.f32.xlu1 %v6224_v36  ;;  %v6042_v5 = vpop.f32.mrb[86].mxu0  ;;  %v6117_v23 = vpop.f32.mrb[61].mxu1  ;;  %v6228_v15 = vadd.f32 %v6227_v42, %v18236_v33  ;;  %v16192_v20 = vld [vmem:[%s17072_s14 + $0x90] sm:$0xff] }
0x1708   : > { %v18246_v21 = vadd.f32 %v18204_v34, %v6162_v44  ;;  %v6165_v41 = vadd.f32 %v16183_v3, %v6042_v5  ;;  %v6044_v16 = vpop.f32.mrb[87].mxu0  ;;  %v14037_v52 = vpop.f32.mrb[62].mxu1  ;;  %v6170_v30 = vadd.f32 %v16187_v17, %v6117_v23  ;;  %v16193_v23 = vld [vmem:[%s17072_s14 + $0xa0] sm:$0xff]  ;;  %v16194_v3 = vld [vmem:[%s17072_s14 + $0x98] sm:$0xff] }
0x1709   : > { %v18250_v37 = vadd.f32 %v18207_v59, %v6163_v49  ;;  %v6166_v62 = vadd.f32 %v16184_v61, %v6044_v16  ;;  %6229 = vadd.xlane.f32.xlu0 %v6228_v15  ;;  %v6120_v24 = vpop.f32.mrb[63].mxu1  ;;  %v6176_v15 = vadd.f32 %v16193_v23, %v14036_v10  ;;  %v15143_v23 = vld [vmem:[#allocation16 + $0x188] ss:$48 sps:$4 sm:$0xff]  }
0x170a   : > { %v18254_v43 = vadd.f32 %v18204_v34, %v6165_v41  ;;  %v6173_v2 = vadd.f32 %v16190_v46, %v6120_v24  ;;  %v18288_v36 = vadd.f32 %v18211_v7, %v6170_v30  ;;  %v16195_v24 = vld [vmem:[%s17072_s14 + $0xa8] sm:$0xff] }
0x170b   : > { %19326 = vst [vmem:[#allocation40_spill] sm:$0xff] %v18250_v37  ;;  %v18261_v40 = vadd.f32 %v18207_v59, %v6166_v62  ;;  %v6231_v4 = vadd.f32 %v18250_v37, %v18246_v21  ;;  %v15125_v46 = vld [vmem:[#allocation16 + $0x68] ss:$48 sps:$4 sm:$0xff]  }
0x170c   : > { %19327 = vst [vmem:[#allocation36_spill] sm:$0xff] %v18254_v43  ;;  %v18296_v44 = vadd.f32 %v18211_v7, %v6173_v2  ;;  %v15130_v2 = vld [vmem:[#allocation16 + $0xc4] ss:$48 sps:$4 sm:$0xff]  }
0x170d   : > { %19328 = vst [vmem:[#allocation37_spill] sm:$0xff] %v18261_v40  ;;  %v6048_v0 = vpop.f32.mrb[88].mxu0  ;;  %v6232_v22 = vadd.f32 %v6231_v4, %v18257_v11  ;;  %v6235_v9 = vadd.f32 %v18261_v40, %v18254_v43  ;;  %v16196_v4 = vld [vmem:[%s17072_s14 + $0xb8] sm:$0xff] }
0x170e   : > { %v6168_v60 = vadd.f32 %v16186_v57, %v6048_v0  ;;  %v6050_v45 = vpop.f32.mrb[89].mxu0  ;;  %v6179_v0 = vadd.f32 %v16196_v4, %v14037_v52  ;;  %v15160_v4 = vld [vmem:[#allocation16 + $0x2a4] ss:$48 sps:$4 sm:$0xff]  }
0x170f   : > { %v6169_v63 = vadd.f32 %v16188_v28, %v6050_v45  ;;  %6233 = vadd.xlane.f32.xlu1 %v6232_v22  ;;  %v6052_v25 = vpop.f32.mrb[90].mxu0  ;;  %v6236_v26 = vadd.f32 %v6235_v9, %v18270_v47  ;;  %v16197_v9 = vld [vmem:[%s17072_s14 + $0xb0] sm:$0xff] }
0x1710   : > { %v18275_v38 = vadd.f32 %v18204_v34, %v6168_v60  ;;  %v6171_v31 = vadd.f32 %v16189_v58, %v6052_v25  ;;  %v6054_v53 = vpop.f32.mrb[91].mxu0  ;;  %v18318_v60 = vadd.f32 %v18211_v7, %v6176_v15  ;;  %v18326_v52 = vadd.f32 %v18211_v7, %v6179_v0  ;;  %v15118_v25 = vld [vmem:[#allocation16 + $0x4] ss:$48 sps:$4 sm:$0xff]   ;;  %v15119_v58 = vld [vmem:[#allocation16 + $0x8] ss:$48 sps:$4 sm:$0xff]  }
0x1711   : > { %v18280_v18 = vadd.f32 %v18207_v59, %v6169_v63  ;;  %v6172_v48 = vadd.f32 %v16191_v55, %v6054_v53  ;;  %v15116_v63 = vld [vmem:[#allocation16] ss:$48 sps:$4 sm:$0xff]   ;;  %8275 = vmatprep.subr.bf16.mxu1 %v15118_v25  ;;  %v15127_v53 = vld [vmem:[#allocation16 + $0x6c] ss:$48 sps:$4 sm:$0xff]   ;;  %v15148_v15 = vld [vmem:[#allocation16 + $0x1e4] ss:$48 sps:$4 sm:$0xff]  }
0x1712   : > { %19329 = vst [vmem:[#allocation38_spill] sm:$0xff] %v18275_v38  ;;  %v18285_v8 = vadd.f32 %v18204_v34, %v6171_v31  ;;  %v15124_v31 = vld [vmem:[#allocation16 + $0x64] ss:$48 sps:$4 sm:$0xff]   ;;  %8276 = vmatpush1.bf16.msra.mxu1 %v15116_v63  ;;  %v15122_v7 = vld [vmem:[#allocation16 + $0x60] ss:$48 sps:$4 sm:$0xff]  }
0x1713   : > { %19330 = vst [vmem:[#allocation39_spill] sm:$0xff] %v18280_v18  ;;  %v18291_v42 = vadd.f32 %v18207_v59, %v6172_v48  ;;  %6237 = vadd.xlane.f32.xlu1 %v6236_v26  ;;  %v6239_v39 = vadd.f32 %v18280_v18, %v18275_v38  ;;  %8277 = vmatprep.subr.bf16.mxu1 %v15124_v31  ;;  %v15133_v55 = vld [vmem:[#allocation16 + $0xcc] ss:$48 sps:$4 sm:$0xff]   ;;  %v15128_v48 = vld [vmem:[#allocation16 + $0xc0] ss:$48 sps:$4 sm:$0xff]  }
0x1714   : > { %19331 = vst [vmem:[#allocation35_spill] sm:$0xff] %v18285_v8  ;;  %v15131_v26 = vld [vmem:[#allocation16 + $0xc8] ss:$48 sps:$4 sm:$0xff]   ;;  %v15163_v0 = vld [vmem:[#allocation16 + $0x2ac] ss:$48 sps:$4 sm:$0xff]  }
0x1715   : > { %19332 = vst [vmem:[#allocation33_spill] sm:$0xff] %v18291_v42  ;;  %v6058_v19 = vpop.f32.mrb[92].mxu0  ;;  %v6240_v51 = vadd.f32 %v6239_v39, %v18288_v36  ;;  %v6243_v27 = vadd.f32 %v18291_v42, %v18285_v8  ;;  %v15136_v39 = vld [vmem:[#allocation16 + $0x124] ss:$48 sps:$4 sm:$0xff]   ;;  %v15175_v25 = vld [vmem:[#allocation16 + $0x36c] ss:$48 sps:$4 sm:$0xff]  }
0x1716   : > { %v6174_v49 = vadd.f32 %v16192_v20, %v6058_v19  ;;  %v6060_v5 = vpop.f32.mrb[93].mxu0  ;;  %8278 = vmatpush1.bf16.msra.mxu1 %v15122_v7  ;;  %v15139_v19 = vld [vmem:[#allocation16 + $0x12c] ss:$48 sps:$4 sm:$0xff]   ;;  %v15142_v20 = vld [vmem:[#allocation16 + $0x184] ss:$48 sps:$4 sm:$0xff]  }
0x1717   : > { %v6175_v41 = vadd.f32 %v16194_v3, %v6060_v5  ;;  %6241 = vadd.xlane.f32.xlu1 %v6240_v51  ;;  %v6062_v16 = vpop.f32.mrb[94].mxu0  ;;  %v6244_v61 = vadd.f32 %v6243_v27, %v18296_v44  ;;  %8279 = vmatprep.subr.bf16.mxu1 %v15130_v2  ;;  %v15134_v51 = vld [vmem:[#allocation16 + $0x120] ss:$48 sps:$4 sm:$0xff]   ;;  %v15137_v27 = vld [vmem:[#allocation16 + $0x128] ss:$48 sps:$4 sm:$0xff]  }
0x1718   : > { %v18306_v62 = vadd.f32 %v18204_v34, %v6174_v49  ;;  %v6177_v50 = vadd.f32 %v16195_v24, %v6062_v16  ;;  %v6064_v14 = vpop.f32.mrb[95].mxu0  ;;  %v15145_v49 = vld [vmem:[#allocation16 + $0x18c] ss:$48 sps:$4 sm:$0xff]   ;;  %v15140_v5 = vld [vmem:[#allocation16 + $0x180] ss:$48 sps:$4 sm:$0xff]  }
0x1719   : > { %v18311_v22 = vadd.f32 %v18207_v59, %v6175_v41  ;;  %v6178_v57 = vadd.f32 %v16197_v9, %v6064_v14  ;;  %6245 = vadd.xlane.f32.xlu0 %v6244_v61  ;;  %v15151_v3 = vld [vmem:[#allocation16 + $0x1ec] ss:$48 sps:$4 sm:$0xff]   ;;  %v15146_v41 = vld [vmem:[#allocation16 + $0x1e0] ss:$48 sps:$4 sm:$0xff]   ;;  %v15149_v16 = vld [vmem:[#allocation16 + $0x1e8] ss:$48 sps:$4 sm:$0xff]  }
0x171a   : > { %19333 = vst [vmem:[#allocation34_spill] sm:$0xff] %v18306_v62  ;;  %v18315_v10 = vadd.f32 %v18204_v34, %v6177_v50  ;;  %8280 = vmatpush1.bf16.msra.mxu1 %v15128_v48  ;;  %v15154_v61 = vld [vmem:[#allocation16 + $0x244] ss:$48 sps:$4 sm:$0xff]   ;;  %v15157_v24 = vld [vmem:[#allocation16 + $0x24c] ss:$48 sps:$4 sm:$0xff]  }
0x171b   : > { %19334 = vst [vmem:[#allocation41_spill] sm:$0xff] %v18311_v22  ;;  %v18321_v45 = vadd.f32 %v18207_v59, %v6178_v57  ;;  %v6247_v17 = vadd.f32 %v18311_v22, %v18306_v62  ;;  %v15121_v59 = vld [vmem:[#allocation16 + $0xc] ss:$48 sps:$4 sm:$0xff]   ;;  %8281 = vmatprep.subr.bf16.mxu1 %v15136_v39  ;;  %v15152_v50 = vld [vmem:[#allocation16 + $0x240] ss:$48 sps:$4 sm:$0xff]  }
0x171c   : > { %19335 = vst [vmem:[#allocation42_spill] sm:$0xff] %v18315_v10  ;;  %8421 = vmatprep.subr.bf16.mxu0 %v15121_v59  ;;  %v15155_v14 = vld [vmem:[#allocation16 + $0x248] ss:$48 sps:$4 sm:$0xff]   ;;  %v15158_v9 = vld [vmem:[#allocation16 + $0x2a0] ss:$48 sps:$4 sm:$0xff]  }
0x171d   : > { %19336 = vst [vmem:[#allocation43_spill] sm:$0xff] %v18321_v45  ;;  %v6248_v30 = vadd.f32 %v6247_v17, %v18318_v60  ;;  %v6251_v28 = vadd.f32 %v18321_v45, %v18315_v10  ;;  %8422 = vmatpush1.bf16.msra.mxu0 %v15119_v58  ;;  %v15161_v57 = vld [vmem:[#allocation16 + $0x2a8] ss:$48 sps:$4 sm:$0xff]   ;;  %v15166_v17 = vld [vmem:[#allocation16 + $0x304] ss:$48 sps:$4 sm:$0xff]  }
0x171e   : > { %8423 = vmatprep.subr.bf16.mxu0 %v15127_v53  ;;  %8282 = vmatpush1.bf16.msra.mxu1 %v15134_v51  ;;  %v15172_v63 = vld [vmem:[#allocation16 + $0x364] ss:$48 sps:$4 sm:$0xff]   ;;  %v15170_v58 = vld [vmem:[#allocation16 + $0x360] ss:$48 sps:$4 sm:$0xff]   ;;  %v15173_v59 = vld [vmem:[#allocation16 + $0x368] ss:$48 sps:$4 sm:$0xff]  }
0x171f   : > { %6249 = vadd.xlane.f32.xlu1 %v6248_v30  ;;  %v6252_v34 = vadd.f32 %v6251_v28, %v18326_v52  ;;  %8283 = vmatprep.subr.bf16.mxu1 %v15142_v20  ;;  %v15169_v30 = vld [vmem:[#allocation16 + $0x30c] ss:$48 sps:$4 sm:$0xff]   ;;  %v15164_v28 = vld [vmem:[#allocation16 + $0x300] ss:$48 sps:$4 sm:$0xff]  }
0x1721   : > { %6253 = vadd.xlane.f32.xlu0 %v6252_v34  ;;  %8424 = vmatpush1.bf16.msra.mxu0 %v15125_v46  ;;  %v15167_v34 = vld [vmem:[#allocation16 + $0x308] ss:$48 sps:$4 sm:$0xff]  }
0x1722   : > { %8425 = vmatprep.subr.bf16.mxu0 %v15133_v55  ;;  %8284 = vmatpush1.bf16.msra.mxu1 %v15140_v5 }
0x1723   : > { %8285 = vmatprep.subr.bf16.mxu1 %v15148_v15 }
0x1725   : > { %8426 = vmatpush1.bf16.msra.mxu0 %v15131_v26 }
0x1726   : > { %8427 = vmatprep.subr.bf16.mxu0 %v15139_v19  ;;  %8286 = vmatpush1.bf16.msra.mxu1 %v15146_v41 }
0x1727   : > { %8287 = vmatprep.subr.bf16.mxu1 %v15154_v61 }
0x1729   : > { %8428 = vmatpush1.bf16.msra.mxu0 %v15137_v27 }
0x172a   : > { %8429 = vmatprep.subr.bf16.mxu0 %v15145_v49  ;;  %8288 = vmatpush1.bf16.msra.mxu1 %v15152_v50 }
0x172b   : > { %8289 = vmatprep.subr.bf16.mxu1 %v15160_v4 }
0x172d   : > { %8430 = vmatpush1.bf16.msra.mxu0 %v15143_v23 }
0x172e   : > { %8431 = vmatprep.subr.bf16.mxu0 %v15151_v3  ;;  %8290 = vmatpush1.bf16.msra.mxu1 %v15158_v9 }
0x172f   : > { %8291 = vmatprep.subr.bf16.mxu1 %v15166_v17 }
0x1731   : > { %8432 = vmatpush1.bf16.msra.mxu0 %v15149_v16 }
0x1732   : > { %8433 = vmatprep.subr.bf16.mxu0 %v15157_v24  ;;  %8292 = vmatpush1.bf16.msra.mxu1 %v15164_v28 }
0x1733   : > { %8293 = vmatprep.subr.bf16.mxu1 %v15172_v63 }
0x1735   : > { %8434 = vmatpush1.bf16.msra.mxu0 %v15155_v14 }
0x1736   : > { %8435 = vmatprep.subr.bf16.mxu0 %v15163_v0  ;;  %8294 = vmatpush1.bf16.msra.mxu1 %v15170_v58 }
0x1739   : > { %8436 = vmatpush1.bf16.msra.mxu0 %v15161_v57 }
0x173a   : > { %8437 = vmatprep.subr.bf16.mxu0 %v15169_v30 }
0x173d   : > { %8438 = vmatpush1.bf16.msra.mxu0 %v15167_v34 }
0x173e   : > { %8439 = vmatprep.subr.bf16.mxu0 %v15175_v25 }
0x1741   : > { %8440 = vmatpush1.bf16.msra.mxu0 %v15173_v59 }
0x1794   : > { %v6226_v31 = vpop.xlane.xlu1 %6225 }
0x1795   : > { %v6255_v53 = vmul.f32 0.0026041667, %v6226_v31 }
0x1796   : > { %v6230_v7 = vpop.xlane.xlu0 %6229 }
0x1797   : > { %v18333_v46 = vsub.f32 %v18215_v35, %v6255_v53  ;;  %v18336_v2 = vsub.f32 %v18220_v54, %v6255_v53  ;;  %v18339_v55 = vsub.f32 %v18227_v1, %v6255_v53  ;;  %v6256_v48 = vmul.f32 0.0026041667, %v6230_v7 }
0x1799   : > { %v6287_v26 = vmul.f32 %v18333_v46, %v18333_v46  ;;  %v6288_v39 = vmul.f32 %v18336_v2, %v18336_v2  ;;  %v18346_v19 = vsub.f32 %v18224_v32, %v6256_v48  ;;  %v18349_v51 = vsub.f32 %v18231_v29, %v6256_v48 }
0x179a   : > { %v18352_v27 = vsub.f32 %v18236_v33, %v6256_v48  ;;  %v6289_v5 = vmul.f32 %v18339_v55, %v18339_v55 }
0x179b   : > { %v6290_v20 = vmul.f32 %v18346_v19, %v18346_v19  ;;  %v6291_v49 = vmul.f32 %v18349_v51, %v18349_v51  ;;  %v6311_v23 = vadd.f32 %v6288_v39, %v6287_v26 }
0x179c   : > { %v6234_v15 = vpop.xlane.xlu1 %6233  ;;  %v6292_v16 = vmul.f32 %v18352_v27, %v18352_v27 }
0x179d   : > { %v6257_v3 = vmul.f32 0.0026041667, %v6234_v15  ;;  %v6312_v41 = vadd.f32 %v6311_v23, %v6289_v5  ;;  %v6315_v61 = vadd.f32 %v6291_v49, %v6290_v20 }
0x179f   : > { %v18363_v24 = vsub.f32 %v18246_v21, %v6257_v3  ;;  %v18366_v50 = vsub.f32 %v18250_v37, %v6257_v3  ;;  %v18369_v14 = vsub.f32 %v18257_v11, %v6257_v3  ;;  %6313 = vadd.xlane.f32.xlu1 %v6312_v41  ;;  %v6316_v4 = vadd.f32 %v6315_v61, %v6292_v16 }
0x17a0   : > { %v6238_v0 = vpop.xlane.xlu1 %6237 }
0x17a1   : > { %v6293_v9 = vmul.f32 %v18363_v24, %v18363_v24  ;;  %v6294_v57 = vmul.f32 %v18366_v50, %v18366_v50  ;;  %v6258_v17 = vmul.f32 0.0026041667, %v6238_v0  ;;  %6317 = vadd.xlane.f32.xlu0 %v6316_v4  ;;  %v6295_v34 = vmul.f32 %v18369_v14, %v18369_v14 }
0x17a3   : > { %v18376_v30 = vsub.f32 %v18254_v43, %v6258_v17  ;;  %v18379_v28 = vsub.f32 %v18261_v40, %v6258_v17  ;;  %v6319_v63 = vadd.f32 %v6294_v57, %v6293_v9  ;;  %v18384_v25 = vsub.f32 %v18270_v47, %v6258_v17  ;;  %v15229_v43 = vld [vmem:[#allocation16 + $0x6cc] ss:$48 sps:$4 sm:$0xff]  }
0x17a4   : > { %v6242_v58 = vpop.xlane.xlu1 %6241 }
0x17a5   : > { %v6296_v59 = vmul.f32 %v18376_v30, %v18376_v30  ;;  %v6297_v31 = vmul.f32 %v18379_v28, %v18379_v28  ;;  %v6259_v53 = vmul.f32 0.0026041667, %v6242_v58  ;;  %v6320_v7 = vadd.f32 %v6319_v63, %v6295_v34 }
0x17a6   : > { %v6246_v48 = vpop.xlane.xlu0 %6245  ;;  %v6298_v5 = vmul.f32 %v18384_v25, %v18384_v25 }
0x17a7   : > { %v18391_v26 = vsub.f32 %v18275_v38, %v6259_v53  ;;  %v18394_v39 = vsub.f32 %v18280_v18, %v6259_v53  ;;  %v18397_v20 = vsub.f32 %v18288_v36, %v6259_v53  ;;  %v6260_v49 = vmul.f32 0.0026041667, %v6246_v48  ;;  %6321 = vadd.xlane.f32.xlu1 %v6320_v7 }
0x17a8   : > { %v6323_v23 = vadd.f32 %v6297_v31, %v6296_v59 }
0x17a9   : > { %v6299_v15 = vmul.f32 %v18391_v26, %v18391_v26  ;;  %v6300_v3 = vmul.f32 %v18394_v39, %v18394_v39  ;;  %v18406_v41 = vsub.f32 %v18285_v8, %v6260_v49  ;;  %v18409_v16 = vsub.f32 %v18291_v42, %v6260_v49  ;;  %v15185_v8 = vld [vmem:[#allocation16 + $0x428] ss:$48 sps:$4 sm:$0xff]  }
0x17aa   : > { %v18412_v61 = vsub.f32 %v18296_v44, %v6260_v49  ;;  %v6324_v4 = vadd.f32 %v6323_v23, %v6298_v5  ;;  %v6301_v57 = vmul.f32 %v18397_v20, %v18397_v20 }
0x17ab   : > { %v6302_v0 = vmul.f32 %v18406_v41, %v18406_v41  ;;  %v6303_v9 = vmul.f32 %v18409_v16, %v18409_v16  ;;  %v6327_v17 = vadd.f32 %v6300_v3, %v6299_v15 }
0x17ac   : > { %6325 = vadd.xlane.f32.xlu0 %v6324_v4  ;;  %v6250_v34 = vpop.xlane.xlu1 %6249  ;;  %v6304_v53 = vmul.f32 %v18412_v61, %v18412_v61 }
0x17ad   : > { %v6261_v63 = vmul.f32 0.0026041667, %v6250_v34  ;;  %v6328_v58 = vadd.f32 %v6327_v17, %v6301_v57  ;;  %v6331_v59 = vadd.f32 %v6303_v9, %v6302_v0 }
0x17ae   : > { %v6254_v31 = vpop.xlane.xlu0 %6253 }
0x17af   : > { %v18423_v7 = vsub.f32 %v18306_v62, %v6261_v63  ;;  %v18426_v48 = vsub.f32 %v18311_v22, %v6261_v63  ;;  %v18429_v49 = vsub.f32 %v18318_v60, %v6261_v63  ;;  %v6262_v5 = vmul.f32 0.0026041667, %v6254_v31  ;;  %6329 = vadd.xlane.f32.xlu1 %v6328_v58  ;;  %v15176_v58 = vld [vmem:[#allocation16 + $0x3c0] ss:$48 sps:$4 sm:$0xff]   ;;  %v15179_v31 = vld [vmem:[#allocation16 + $0x3c8] ss:$48 sps:$4 sm:$0xff]  }
0x17b0   : > { %v6332_v23 = vadd.f32 %v6331_v59, %v6304_v53  ;;  %v15178_v59 = vld [vmem:[#allocation16 + $0x3c4] ss:$48 sps:$4 sm:$0xff]   ;;  %v15181_v53 = vld [vmem:[#allocation16 + $0x3cc] ss:$48 sps:$4 sm:$0xff]   ;;  %v15182_v62 = vld [vmem:[#allocation16 + $0x420] ss:$48 sps:$4 sm:$0xff]  }
0x17b1   : > { %v6305_v15 = vmul.f32 %v18423_v7, %v18423_v7  ;;  %v6306_v3 = vmul.f32 %v18426_v48, %v18426_v48  ;;  %v18436_v4 = vsub.f32 %v18315_v10, %v6262_v5  ;;  %v18439_v0 = vsub.f32 %v18321_v45, %v6262_v5  ;;  %v15184_v45 = vld [vmem:[#allocation16 + $0x424] ss:$48 sps:$4 sm:$0xff]   ;;  %8295 = vmatprep.subr.bf16.mxu1 %v15178_v59  ;;  %v15187_v22 = vld [vmem:[#allocation16 + $0x42c] ss:$48 sps:$4 sm:$0xff]  }
0x17b2   : > { %v18442_v9 = vsub.f32 %v18326_v52, %v6262_v5  ;;  %6333 = vadd.xlane.f32.xlu0 %v6332_v23  ;;  %v6307_v34 = vmul.f32 %v18429_v49, %v18429_v49  ;;  %8441 = vmatprep.subr.bf16.mxu0 %v15181_v53  ;;  %v15211_v59 = vld [vmem:[#allocation16 + $0x5ac] ss:$48 sps:$4 sm:$0xff]   ;;  %v15209_v53 = vld [vmem:[#allocation16 + $0x5a8] ss:$48 sps:$4 sm:$0xff]  }
0x17b3   : > { %v6308_v57 = vmul.f32 %v18436_v4, %v18436_v4  ;;  %v6309_v17 = vmul.f32 %v18439_v0, %v18439_v0  ;;  %v6335_v63 = vadd.f32 %v6306_v3, %v6305_v15  ;;  %8296 = vmatpush1.bf16.msra.mxu1 %v15176_v58  ;;  %8442 = vmatpush1.bf16.msra.mxu0 %v15179_v31  ;;  %v15190_v15 = vld [vmem:[#allocation16 + $0x484] ss:$48 sps:$4 sm:$0xff]   ;;  %v15188_v3 = vld [vmem:[#allocation16 + $0x480] ss:$48 sps:$4 sm:$0xff]   ;;  %v15197_v58 = vld [vmem:[#allocation16 + $0x4e8] ss:$48 sps:$4 sm:$0xff]  }
0x17b4   : > { %v6310_v5 = vmul.f32 %v18442_v9, %v18442_v9  ;;  %8297 = vmatprep.subr.bf16.mxu1 %v15184_v45  ;;  %8443 = vmatprep.subr.bf16.mxu0 %v15187_v22  ;;  %v15202_v22 = vld [vmem:[#allocation16 + $0x544] ss:$48 sps:$4 sm:$0xff]   ;;  %v15200_v45 = vld [vmem:[#allocation16 + $0x540] ss:$48 sps:$4 sm:$0xff]  }
0x17b5   : > { %v6336_v10 = vadd.f32 %v6335_v63, %v6307_v34  ;;  %v6339_v23 = vadd.f32 %v6309_v17, %v6308_v57  ;;  %v15193_v34 = vld [vmem:[#allocation16 + $0x48c] ss:$48 sps:$4 sm:$0xff]   ;;  %v15191_v63 = vld [vmem:[#allocation16 + $0x488] ss:$48 sps:$4 sm:$0xff]   ;;  %v15194_v57 = vld [vmem:[#allocation16 + $0x4e0] ss:$48 sps:$4 sm:$0xff]  }
0x17b6   : > { %v15196_v17 = vld [vmem:[#allocation16 + $0x4e4] ss:$48 sps:$4 sm:$0xff]   ;;  %v15206_v31 = vld [vmem:[#allocation16 + $0x5a0] ss:$48 sps:$4 sm:$0xff]  }
0x17b7   : > { %6337 = vadd.xlane.f32.xlu1 %v6336_v10  ;;  %v6340_v42 = vadd.f32 %v6339_v23, %v6310_v5  ;;  %8298 = vmatpush1.bf16.msra.mxu1 %v15182_v62  ;;  %v15199_v10 = vld [vmem:[#allocation16 + $0x4ec] ss:$48 sps:$4 sm:$0xff]   ;;  %v15203_v62 = vld [vmem:[#allocation16 + $0x548] ss:$48 sps:$4 sm:$0xff]   ;;  %v15214_v5 = vld [vmem:[#allocation16 + $0x604] ss:$48 sps:$4 sm:$0xff]  }
0x17b8   : > { %8444 = vmatpush1.bf16.msra.mxu0 %v15185_v8  ;;  %8299 = vmatprep.subr.bf16.mxu1 %v15190_v15  ;;  %v15208_v8 = vld [vmem:[#allocation16 + $0x5a4] ss:$48 sps:$4 sm:$0xff]   ;;  %v15217_v23 = vld [vmem:[#allocation16 + $0x60c] ss:$48 sps:$4 sm:$0xff]  }
0x17b9   : > { %6341 = vadd.xlane.f32.xlu0 %v6340_v42  ;;  %8445 = vmatprep.subr.bf16.mxu0 %v15193_v34  ;;  %v15205_v42 = vld [vmem:[#allocation16 + $0x54c] ss:$48 sps:$4 sm:$0xff]  }
0x17bb   : > { %8300 = vmatpush1.bf16.msra.mxu1 %v15188_v3 }
0x17bc   : > { %8446 = vmatpush1.bf16.msra.mxu0 %v15191_v63  ;;  %8301 = vmatprep.subr.bf16.mxu1 %v15196_v17 }
0x17bd   : > { %8447 = vmatprep.subr.bf16.mxu0 %v15199_v10 }
0x17bf   : > { %8302 = vmatpush1.bf16.msra.mxu1 %v15194_v57 }
0x17c0   : > { %8448 = vmatpush1.bf16.msra.mxu0 %v15197_v58  ;;  %8303 = vmatprep.subr.bf16.mxu1 %v15202_v22 }
0x17c1   : > { %8449 = vmatprep.subr.bf16.mxu0 %v15205_v42  ;;  %v18452_v42 = vld [vmem:[#allocation13] sm:$0x7] }
0x17c3   : > { %8304 = vmatpush1.bf16.msra.mxu1 %v15200_v45 }
0x17c4   : > { %8450 = vmatpush1.bf16.msra.mxu0 %v15203_v62  ;;  %8305 = vmatprep.subr.bf16.mxu1 %v15208_v8  ;;  %v18454_v8 = vld [vmem:[#allocation14] sm:$0x7] }
0x17c5   : > { %8451 = vmatprep.subr.bf16.mxu0 %v15211_v59  ;;  %v18458_v59 = vrot.slane %v18452_v42, %v19324_v12 }
0x17c7   : > { %8306 = vmatpush1.bf16.msra.mxu1 %v15206_v31 }
0x17c8   : > { %8452 = vmatpush1.bf16.msra.mxu0 %v15209_v53  ;;  %8348 = vmatprep.subr.bf16.mxu1 %v15214_v5  ;;  %v18464_v53 = vrot.slane %v18452_v42, %v19323_v13 }
0x17c9   : > { %8494 = vmatprep.subr.bf16.mxu0 %v15217_v23 }
0x182c   : > { %v6314_v15 = vpop.xlane.xlu1 %6313 }
0x182d   : > { %v6343_v3 = vmul.f32 0.0026041667, %v6314_v15 }
0x182e   : > { %v6318_v34 = vpop.xlane.xlu0 %6317 }
0x182f   : > { %v6351_v63 = vadd.f32 1e-05, %v6343_v3  ;;  %v6344_v57 = vmul.f32 0.0026041667, %v6318_v34 }
0x1831   : > { %16140 = vrsqrt.f32 %v6351_v63  ;;  %v6352_v17 = vadd.f32 1e-05, %v6344_v57  ;;  %v18474_v57 = vrot.slane %v18454_v8, %v19324_v12 }
0x1833   : > { %16142 = vrsqrt.f32 %v6352_v17  ;;  %v18478_v17 = vrot.slane %v18454_v8, %v19323_v13 }
0x1834   : > { %v6322_v58 = vpop.xlane.xlu1 %6321 }
0x1835   : > { %v6345_v10 = vmul.f32 0.0026041667, %v6322_v58 }
0x1837   : > { %v6353_v22 = vadd.f32 1e-05, %v6345_v10 }
0x1839   : > { %16144 = vrsqrt.f32 %v6353_v22  ;;  %v6326_v45 = vpop.xlane.xlu0 %6325 }
0x183a   : > { %v6346_v62 = vmul.f32 0.0026041667, %v6326_v45 }
0x183b   : > { %v18460_v31 = vpop.eup %16140 }
0x183c   : > { %v6354_v5 = vadd.f32 1e-05, %v6346_v62  ;;  %v6330_v23 = vpop.xlane.xlu1 %6329  ;;  %v6368_v15 = vmul.f32 %v18460_v31, %v18336_v2  ;;  %v6367_v3 = vmul.f32 %v18460_v31, %v18333_v46 }
0x183d   : > { %v18470_v34 = vpop.eup %16142  ;;  %v6347_v63 = vmul.f32 0.0026041667, %v6330_v23 }
0x183e   : > { %16146 = vrsqrt.f32 %v6354_v5  ;;  %v6371_v58 = vmul.f32 %v18470_v34, %v18349_v51  ;;  %v6408_v2 = vmul.f32 %v18458_v59, %v6368_v15  ;;  %v6370_v46 = vmul.f32 %v18470_v34, %v18346_v19 }
0x183f   : > { %v6355_v10 = vadd.f32 1e-05, %v6347_v63  ;;  %v6334_v22 = vpop.xlane.xlu0 %6333  ;;  %v6407_v45 = vmul.f32 %v18464_v53, %v6367_v3 }
0x1840   : > { %v6348_v62 = vmul.f32 0.0026041667, %v6334_v22  ;;  %v6411_v23 = vmul.f32 %v18458_v59, %v6371_v58  ;;  %v6410_v18 = vmul.f32 %v18464_v53, %v6370_v46  ;;  %v6448_v5 = vadd.f32 %v18474_v57, %v6408_v2  ;;  %v15212_v58 = vld [vmem:[#allocation16 + $0x600] ss:$48 sps:$4 sm:$0xff]   ;;  %v15215_v46 = vld [vmem:[#allocation16 + $0x608] ss:$48 sps:$4 sm:$0xff]  }
0x1841   : > { %16148 = vrsqrt.f32 %v6355_v10  ;;  %v6447_v15 = vadd.f32 %v18478_v17, %v6407_v45 }
0x1842   : > { %v6356_v38 = vadd.f32 1e-05, %v6348_v62  ;;  %v6451_v51 = vadd.f32 %v18474_v57, %v6411_v23  ;;  %v6450_v40 = vadd.f32 %v18478_v17, %v6410_v18  ;;  %v15220_v62 = vld [vmem:[#allocation16 + $0x664] ss:$48 sps:$4 sm:$0xff]   ;;  %v15223_v23 = vld [vmem:[#allocation16 + $0x66c] ss:$48 sps:$4 sm:$0xff]  }
0x1843   : > { %v18492_v19 = vpop.eup %16144 }
0x1844   : > { %16150 = vrsqrt.f32 %v6356_v38  ;;  %v6338_v63 = vpop.xlane.xlu1 %6337  ;;  %v18494_v3 = vpack.c.bf16 %v6451_v51, %v6448_v5  ;;  %v18496_v22 = vpack.c.bf16 %v6450_v40, %v6447_v15  ;;  %v6374_v2 = vmul.f32 %v18492_v19, %v18366_v50  ;;  %v15218_v50 = vld [vmem:[#allocation16 + $0x660] ss:$48 sps:$4 sm:$0xff]   ;;  %v15221_v51 = vld [vmem:[#allocation16 + $0x668] ss:$48 sps:$4 sm:$0xff]  }
0x1845   : > { %v6349_v10 = vmul.f32 0.0026041667, %v6338_v63  ;;  %v6373_v45 = vmul.f32 %v18492_v19, %v18363_v24 }
0x1846   : > { %8307 = vmatprep.mubr.bf16.mxu1 %v18494_v3  ;;  %8453 = vmatprep.mubr.bf16.mxu0 %v18494_v3  ;;  %v6342_v38 = vpop.xlane.xlu0 %6341  ;;  %v6414_v15 = vmul.f32 %v18458_v59, %v6374_v2 }
0x1847   : > { %v6357_v18 = vadd.f32 1e-05, %v6349_v10  ;;  %v6350_v5 = vmul.f32 0.0026041667, %v6342_v38  ;;  %8308 = vmatmul.mubr.bf16.vlgmr.msra.gmra.mrb[88].mxu1 %v18496_v22  ;;  %8454 = vmatmul.mubr.bf16.vlgmr.msra.gmra.mrb[136].mxu0 %v18496_v22  ;;  %v6413_v24 = vmul.f32 %v18464_v53, %v6373_v45  ;;  %v15226_v38 = vld [vmem:[#allocation16 + $0x6c4] ss:$48 sps:$4 sm:$0xff]  }
0x1848   : > { %v18506_v40 = vpop.eup %16146  ;;  %8349 = vmatpush1.bf16.msra.mxu1 %v15212_v58  ;;  %8495 = vmatpush1.bf16.msra.mxu0 %v15215_v46  ;;  %v15227_v45 = vld [vmem:[#allocation16 + $0x6c8] ss:$48 sps:$4 sm:$0xff]  }
0x1849   : > { %16152 = vrsqrt.f32 %v6357_v18  ;;  %v6358_v63 = vadd.f32 1e-05, %v6350_v5  ;;  %8350 = vmatprep.subr.bf16.mxu1 %v15220_v62  ;;  %8496 = vmatprep.subr.bf16.mxu0 %v15223_v23  ;;  %v6377_v10 = vmul.f32 %v18506_v40, %v18379_v28  ;;  %v6376_v37 = vmul.f32 %v18506_v40, %v18376_v30  ;;  %v15224_v23 = vld [vmem:[#allocation16 + $0x6c0] ss:$48 sps:$4 sm:$0xff]  }
0x184a   : > { %v6454_v62 = vadd.f32 %v18474_v57, %v6414_v15  ;;  %v6453_v28 = vadd.f32 %v18478_v17, %v6413_v24  ;;  %v15232_v24 = vld [vmem:[#allocation16 + $0x724] ss:$48 sps:$4 sm:$0xff]  }
0x184b   : > { %v18514_v58 = vpop.eup %16148  ;;  %16154 = vrsqrt.f32 %v6358_v63  ;;  %v6417_v46 = vmul.f32 %v18458_v59, %v6377_v10  ;;  %v6416_v2 = vmul.f32 %v18464_v53, %v6376_v37  ;;  %v15235_v10 = vld [vmem:[#allocation16 + $0x72c] ss:$48 sps:$4 sm:$0xff]  }
0x184c   : > { %8351 = vmatpush1.bf16.msra.mxu1 %v15218_v50  ;;  %8497 = vmatpush1.bf16.msra.mxu0 %v15221_v51  ;;  %v6380_v18 = vmul.f32 %v18514_v58, %v18394_v39  ;;  %v6379_v37 = vmul.f32 %v18514_v58, %v18391_v26  ;;  %v15233_v26 = vld [vmem:[#allocation16 + $0x728] ss:$48 sps:$4 sm:$0xff]  }
0x184d   : > { %v6457_v30 = vadd.f32 %v18474_v57, %v6417_v46  ;;  %8352 = vmatprep.subr.bf16.mxu1 %v15226_v38  ;;  %8498 = vmatprep.subr.bf16.mxu0 %v15229_v43  ;;  %v6456_v5 = vadd.f32 %v18478_v17, %v6416_v2  ;;  %v15230_v38 = vld [vmem:[#allocation16 + $0x720] ss:$48 sps:$4 sm:$0xff]   ;;  %v15238_v2 = vld [vmem:[#allocation16 + $0x784] ss:$48 sps:$4 sm:$0xff]  }
0x184e   : > { %v18526_v50 = vpop.eup %16150  ;;  %v6420_v51 = vmul.f32 %v18458_v59, %v6380_v18 }
0x184f   : > { %v18529_v15 = vpack.c.bf16 %v6457_v30, %v6454_v62  ;;  %v18531_v63 = vpack.c.bf16 %v6456_v5, %v6453_v28  ;;  %v6383_v39 = vmul.f32 %v18526_v50, %v18409_v16  ;;  %v6382_v43 = vmul.f32 %v18526_v50, %v18406_v41  ;;  %v15241_v62 = vld [vmem:[#allocation16 + $0x78c] ss:$48 sps:$4 sm:$0xff]   ;;  %v15239_v30 = vld [vmem:[#allocation16 + $0x788] ss:$48 sps:$4 sm:$0xff]  }
0x1850   : > { %8353 = vmatpush1.bf16.msra.mxu1 %v15224_v23  ;;  %8499 = vmatpush1.bf16.msra.mxu0 %v15227_v45  ;;  %v6419_v28 = vmul.f32 %v18464_v53, %v6379_v37  ;;  %v6460_v16 = vadd.f32 %v18474_v57, %v6420_v51  ;;  %v15236_v45 = vld [vmem:[#allocation16 + $0x780] ss:$48 sps:$4 sm:$0xff]   ;;  %v15244_v51 = vld [vmem:[#allocation16 + $0x7e4] ss:$48 sps:$4 sm:$0xff]  }
0x1851   : > { %8317 = vmatprep.mubr.bf16.mxu1 %v18529_v15  ;;  %8463 = vmatprep.mubr.bf16.mxu0 %v18529_v15  ;;  %v6423_v46 = vmul.f32 %v18458_v59, %v6383_v39  ;;  %v6422_v18 = vmul.f32 %v18464_v53, %v6382_v43 }
0x1852   : > { %8318 = vmatmul.mubr.bf16.gmra.mrb[92].mxu1 %v18531_v63  ;;  %8464 = vmatmul.mubr.bf16.gmra.mrb[140].mxu0 %v18531_v63 }
0x1853   : > { %v18544_v41 = vpop.eup %16152  ;;  %8354 = vmatprep.subr.bf16.mxu1 %v15232_v24  ;;  %8500 = vmatprep.subr.bf16.mxu0 %v15235_v10  ;;  %v6463_v23 = vadd.f32 %v18474_v57, %v6423_v46  ;;  %v6462_v5 = vadd.f32 %v18478_v17, %v6422_v18  ;;  %v6459_v24 = vadd.f32 %v18478_v17, %v6419_v28  ;;  %v15247_v10 = vld [vmem:[#allocation16 + $0x7ec] ss:$48 sps:$4 sm:$0xff]   ;;  %v15245_v28 = vld [vmem:[#allocation16 + $0x7e8] ss:$48 sps:$4 sm:$0xff]  }
0x1854   : > { %8355 = vmatpush1.bf16.msra.mxu1 %v15230_v38  ;;  %8501 = vmatpush1.bf16.msra.mxu0 %v15233_v26  ;;  %v6386_v37 = vmul.f32 %v18544_v41, %v18426_v48  ;;  %v6385_v46 = vmul.f32 %v18544_v41, %v18423_v7  ;;  %v15250_v7 = vld [vmem:[#allocation16 + $0x844] ss:$48 sps:$4 sm:$0xff]  }
0x1855   : > { %v18551_v39 = vpop.eup %16154  ;;  %v18553_v43 = vpack.c.bf16 %v6463_v23, %v6460_v16  ;;  %8356 = vmatprep.subr.bf16.mxu1 %v15238_v2  ;;  %8502 = vmatprep.subr.bf16.mxu0 %v15241_v62  ;;  %v18565_v2 = vpack.c.bf16 %v6462_v5, %v6459_v24  ;;  %v15242_v62 = vld [vmem:[#allocation16 + $0x7e0] ss:$48 sps:$4 sm:$0xff]   ;;  %v15253_v16 = vld [vmem:[#allocation16 + $0x84c] ss:$48 sps:$4 sm:$0xff]   ;;  %v15251_v5 = vld [vmem:[#allocation16 + $0x848] ss:$48 sps:$4 sm:$0xff]   ;;  %v6372_v24 = vmul.f32 %v18470_v34, %v18352_v27 }
0x1856   : > { %v6389_v38 = vmul.f32 %v18551_v39, %v18439_v0  ;;  %v6426_v26 = vmul.f32 %v18458_v59, %v6386_v37  ;;  %v6388_v48 = vmul.f32 %v18551_v39, %v18436_v4  ;;  %v15254_v27 = vld [vmem:[#allocation16 + $0x8a0] ss:$48 sps:$4 sm:$0xff]   ;;  %v15257_v34 = vld [vmem:[#allocation16 + $0x8a8] ss:$48 sps:$4 sm:$0xff]  }
0x1857   : > { %8327 = vmatprep.mubr.bf16.mxu1 %v18553_v43  ;;  %8473 = vmatprep.mubr.bf16.mxu0 %v18553_v43 }
0x1858   : > { %8357 = vmatpush1.bf16.msra.mxu1 %v15236_v45  ;;  %8503 = vmatpush1.bf16.msra.mxu0 %v15239_v30  ;;  %v6429_v0 = vmul.f32 %v18458_v59, %v6389_v38  ;;  %v6428_v18 = vmul.f32 %v18464_v53, %v6388_v48  ;;  %v6466_v4 = vadd.f32 %v18474_v57, %v6426_v26  ;;  %v15248_v59 = vld [vmem:[#allocation16 + $0x840] ss:$48 sps:$4 sm:$0xff]   ;;  %v15262_v48 = vld [vmem:[#allocation16 + $0x14] ss:$48 sps:$4 sm:$0xff]  }
0x1859   : > { %8358 = vmatprep.subr.bf16.mxu1 %v15244_v51  ;;  %8504 = vmatprep.subr.bf16.mxu0 %v15247_v10  ;;  %v6425_v45 = vmul.f32 %v18464_v53, %v6385_v46  ;;  %v15256_v51 = vld [vmem:[#allocation16 + $0x8a4] ss:$48 sps:$4 sm:$0xff]   ;;  %v15259_v10 = vld [vmem:[#allocation16 + $0x8ac] ss:$48 sps:$4 sm:$0xff]   ;;  %v18586_v38 = vrot.slane %v18452_v42, %v19325_v56  ;;  %v18596_v42 = vrot.slane %v18454_v8, %v19325_v56  ;;  %v15260_v8 = vld [vmem:[#allocation16 + $0x10] ss:$48 sps:$4 sm:$0xff]  }
0x185a   : > { %8328 = vmatmul.mubr.bf16.gmra.mrb[96].mxu1 %v18565_v2  ;;  %8474 = vmatmul.mubr.bf16.gmra.mrb[144].mxu0 %v18565_v2  ;;  %v6469_v23 = vadd.f32 %v18474_v57, %v6429_v0  ;;  %v6468_v37 = vadd.f32 %v18478_v17, %v6428_v18  ;;  %v6369_v57 = vmul.f32 %v18460_v31, %v18339_v55  ;;  %v15263_v18 = vld [vmem:[#allocation16 + $0x18] ss:$48 sps:$4 sm:$0xff]  }
0x185b   : > { %v6465_v53 = vadd.f32 %v18478_v17, %v6425_v45  ;;  %v6412_v46 = vmul.f32 %v18586_v38, %v6372_v24  ;;  %v6378_v17 = vmul.f32 %v18506_v40, %v18384_v25  ;;  %v6375_v0 = vmul.f32 %v18492_v19, %v18369_v14  ;;  %v15266_v40 = vld [vmem:[#allocation16 + $0x70] ss:$48 sps:$4 sm:$0xff]   ;;  %v15269_v45 = vld [vmem:[#allocation16 + $0x78] ss:$48 sps:$4 sm:$0xff]   ;;  %v15274_v14 = vld [vmem:[#allocation16 + $0xd4] ss:$48 sps:$4 sm:$0xff]  }
0x185c   : > { %8359 = vmatpush1.bf16.msra.mxu1 %v15242_v62  ;;  %8505 = vmatpush1.bf16.msra.mxu0 %v15245_v28  ;;  %v18574_v30 = vpack.c.bf16 %v6469_v23, %v6466_v4  ;;  %v15265_v62 = vld [vmem:[#allocation16 + $0x1c] ss:$48 sps:$4 sm:$0xff]   ;;  %v6409_v55 = vmul.f32 %v18586_v38, %v6369_v57  ;;  %v6381_v24 = vmul.f32 %v18514_v58, %v18397_v20  ;;  %v15280_v57 = vld [vmem:[#allocation16 + $0x134] ss:$48 sps:$4 sm:$0xff]   ;;  %v15278_v20 = vld [vmem:[#allocation16 + $0x130] ss:$48 sps:$4 sm:$0xff]  }
0x185d   : > { %8360 = vmatprep.subr.bf16.mxu1 %v15250_v7  ;;  %8506 = vmatprep.subr.bf16.mxu0 %v15253_v16  ;;  %v18588_v26 = vpack.c.bf16 %v6468_v37, %v6465_v53  ;;  %v6452_v31 = vadd.f32 %v18596_v42, %v6412_v46  ;;  %v15268_v16 = vld [vmem:[#allocation16 + $0x74] ss:$48 sps:$4 sm:$0xff]   ;;  %v15271_v4 = vld [vmem:[#allocation16 + $0x7c] ss:$48 sps:$4 sm:$0xff]   ;;  %v6418_v23 = vmul.f32 %v18586_v38, %v6378_v17  ;;  %v15281_v58 = vld [vmem:[#allocation16 + $0x138] ss:$48 sps:$4 sm:$0xff]  }
0x185e   : > { %8337 = vmatprep.mubr.bf16.mxu1 %v18574_v30  ;;  %8483 = vmatprep.mubr.bf16.mxu0 %v18574_v30  ;;  %v6449_v28 = vadd.f32 %v18596_v42, %v6409_v55  ;;  %v6415_v25 = vmul.f32 %v18586_v38, %v6375_v0  ;;  %v15277_v19 = vld [vmem:[#allocation16 + $0xdc] ss:$48 sps:$4 sm:$0xff]   ;;  %v15284_v17 = vld [vmem:[#allocation16 + $0x190] ss:$48 sps:$4 sm:$0xff]  }
0x185f   : > { %v15289_v46 = vld [vmem:[#allocation16 + $0x19c] ss:$48 sps:$4 sm:$0xff]  }
0x1860   : > { %8361 = vmatpush1.bf16.msra.mxu1 %v15248_v59  ;;  %8507 = vmatpush1.bf16.msra.mxu0 %v15251_v5  ;;  %v18606_v7 = vpack.c.bf16 %v6452_v31, %v6449_v28  ;;  %v6458_v59 = vadd.f32 %v18596_v42, %v6418_v23  ;;  %v6384_v5 = vmul.f32 %v18526_v50, %v18412_v61  ;;  %v15287_v28 = vld [vmem:[#allocation16 + $0x198] ss:$48 sps:$4 sm:$0xff]  }
0x1861   : > { %8362 = vmatprep.subr.bf16.mxu1 %v15256_v51  ;;  %8508 = vmatprep.subr.bf16.mxu0 %v15259_v10  ;;  %v6455_v37 = vadd.f32 %v18596_v42, %v6415_v25  ;;  %v15272_v51 = vld [vmem:[#allocation16 + $0xd0] ss:$48 sps:$4 sm:$0xff]   ;;  %v15275_v10 = vld [vmem:[#allocation16 + $0xd8] ss:$48 sps:$4 sm:$0xff]   ;;  %v6421_v50 = vmul.f32 %v18586_v38, %v6381_v24  ;;  %v6387_v31 = vmul.f32 %v18544_v41, %v18429_v49 }
0x1862   : > { %8338 = vmatmul.mubr.bf16.gmra.mrb[100].mxu1 %v18588_v26  ;;  %8484 = vmatmul.mubr.bf16.gmra.mrb[148].mxu0 %v18588_v26  ;;  %v6424_v61 = vmul.f32 %v18586_v38, %v6384_v5  ;;  %v15290_v49 = vld [vmem:[#allocation16 + $0x1f0] ss:$48 sps:$4 sm:$0xff]   ;;  %v15293_v41 = vld [vmem:[#allocation16 + $0x1f8] ss:$48 sps:$4 sm:$0xff]  }
0x1863   : > { %8380 = vmatprep.mubr.bf16.mxu1 %v19317_v6  ;;  %8526 = vmatprep.mubr.bf16.mxu0 %v19317_v6  ;;  %v18620_v53 = vpack.c.bf16 %v6458_v59, %v6455_v37  ;;  %v6461_v55 = vadd.f32 %v18596_v42, %v6421_v50  ;;  %v15302_v59 = vld [vmem:[#allocation16 + $0x2b0] ss:$48 sps:$4 sm:$0xff]   ;;  %v15305_v5 = vld [vmem:[#allocation16 + $0x2b8] ss:$48 sps:$4 sm:$0xff]   ;;  %v15313_v37 = vld [vmem:[#allocation16 + $0x31c] ss:$48 sps:$4 sm:$0xff]  }
0x1864   : > { %8363 = vmatpush1.bf16.msra.mxu1 %v15254_v27  ;;  %8509 = vmatpush1.bf16.msra.mxu0 %v15257_v34  ;;  %v15283_v27 = vld [vmem:[#allocation16 + $0x13c] ss:$48 sps:$4 sm:$0xff]   ;;  %v15286_v34 = vld [vmem:[#allocation16 + $0x194] ss:$48 sps:$4 sm:$0xff]   ;;  %v15308_v24 = vld [vmem:[#allocation16 + $0x310] ss:$48 sps:$4 sm:$0xff]  }
0x1865   : > { %8567 = vmatprep.subr.bf16.mxu1 %v15262_v48  ;;  %8713 = vmatprep.subr.bf16.mxu0 %v15265_v62  ;;  %v6464_v48 = vadd.f32 %v18596_v42, %v6424_v61  ;;  %v6390_v62 = vmul.f32 %v18551_v39, %v18442_v9  ;;  %v6427_v39 = vmul.f32 %v18586_v38, %v6387_v31  ;;  %v15317_v61 = vld [vmem:[#allocation16 + $0x378] ss:$48 sps:$4 sm:$0xff]   ;;  %v15322_v50 = vld [vmem:[#allocation16 + $0x3d4] ss:$48 sps:$4 sm:$0xff]  }
0x1866   : > { %v15334_v31 = vld [vmem:[#allocation16 + $0x494] ss:$48 sps:$4 sm:$0xff]  }
0x1867   : > { %v18634_v0 = vpack.c.bf16 %v6464_v48, %v6461_v55  ;;  %v6430_v9 = vmul.f32 %v18586_v38, %v6390_v62  ;;  %v6467_v25 = vadd.f32 %v18596_v42, %v6427_v39  ;;  %v15299_v38 = vld [vmem:[#allocation16 + $0x258] ss:$48 sps:$4 sm:$0xff]   ;;  %v15331_v48 = vld [vmem:[#allocation16 + $0x43c] ss:$48 sps:$4 sm:$0xff]   ;;  %v15326_v62 = vld [vmem:[#allocation16 + $0x430] ss:$48 sps:$4 sm:$0xff]  }
0x1868   : > { %v15329_v55 = vld [vmem:[#allocation16 + $0x438] ss:$48 sps:$4 sm:$0xff]   ;;  %v15338_v39 = vld [vmem:[#allocation16 + $0x4f0] ss:$48 sps:$4 sm:$0xff]  }
0x1869   : > { %v6470_v23 = vadd.f32 %v18596_v42, %v6430_v9  ;;  %v15310_v42 = vld [vmem:[#allocation16 + $0x314] ss:$48 sps:$4 sm:$0xff]   ;;  %v15343_v9 = vld [vmem:[#allocation16 + $0x4fc] ss:$48 sps:$4 sm:$0xff]  }
0x186a   : > { %8381 = vmatmul.mubr.bf16.vlgmr.msra.gmra.mrb[88].mxu1 %v18606_v7  ;;  %8527 = vmatmul.mubr.bf16.vlgmr.msra.gmra.mrb[136].mxu0 %v18606_v7 }
0x186b   : > { %8568 = vmatpush1.bf16.msra.mxu1 %v15260_v8  ;;  %8714 = vmatpush1.bf16.msra.mxu0 %v15263_v18  ;;  %v15292_v8 = vld [vmem:[#allocation16 + $0x1f4] ss:$48 sps:$4 sm:$0xff]   ;;  %v15295_v18 = vld [vmem:[#allocation16 + $0x1fc] ss:$48 sps:$4 sm:$0xff]  }
0x186c   : > { %8569 = vmatprep.subr.bf16.mxu1 %v15268_v16  ;;  %8715 = vmatprep.subr.bf16.mxu0 %v15271_v4  ;;  %v15298_v16 = vld [vmem:[#allocation16 + $0x254] ss:$48 sps:$4 sm:$0xff]   ;;  %v15301_v4 = vld [vmem:[#allocation16 + $0x25c] ss:$48 sps:$4 sm:$0xff]  }
0x186d   : > { %8390 = vmatprep.mubr.bf16.mxu1 %v19317_v6  ;;  %8536 = vmatprep.mubr.bf16.mxu0 %v19317_v6 }
0x186f   : > { %8570 = vmatpush1.bf16.msra.mxu1 %v15266_v40  ;;  %8716 = vmatpush1.bf16.msra.mxu0 %v15269_v45  ;;  %v15296_v40 = vld [vmem:[#allocation16 + $0x250] ss:$48 sps:$4 sm:$0xff]   ;;  %v18644_v45 = vpack.c.bf16 %v6470_v23, %v6467_v25  ;;  %v15347_v23 = vld [vmem:[#allocation16 + $0x558] ss:$48 sps:$4 sm:$0xff]   ;;  %v15352_v25 = vld [vmem:[#allocation16 + $0x5b4] ss:$48 sps:$4 sm:$0xff]  }
0x1870   : > { %8571 = vmatprep.subr.bf16.mxu1 %v15274_v14  ;;  %8717 = vmatprep.subr.bf16.mxu0 %v15277_v19  ;;  %v15304_v14 = vld [vmem:[#allocation16 + $0x2b4] ss:$48 sps:$4 sm:$0xff]   ;;  %v15307_v19 = vld [vmem:[#allocation16 + $0x2bc] ss:$48 sps:$4 sm:$0xff]  }
0x1872   : > { %8391 = vmatmul.mubr.bf16.gmra.mrb[92].mxu1 %v18620_v53  ;;  %8537 = vmatmul.mubr.bf16.gmra.mrb[140].mxu0 %v18620_v53 }
0x1873   : > { %8572 = vmatpush1.bf16.msra.mxu1 %v15272_v51  ;;  %8718 = vmatpush1.bf16.msra.mxu0 %v15275_v10  ;;  %v15311_v51 = vld [vmem:[#allocation16 + $0x318] ss:$48 sps:$4 sm:$0xff]   ;;  %v15316_v10 = vld [vmem:[#allocation16 + $0x374] ss:$48 sps:$4 sm:$0xff]  }
0x1874   : > { %8573 = vmatprep.subr.bf16.mxu1 %v15280_v57  ;;  %8719 = vmatprep.subr.bf16.mxu0 %v15283_v27  ;;  %v15319_v57 = vld [vmem:[#allocation16 + $0x37c] ss:$48 sps:$4 sm:$0xff]   ;;  %v15314_v27 = vld [vmem:[#allocation16 + $0x370] ss:$48 sps:$4 sm:$0xff]  }
0x1875   : > { %8400 = vmatprep.mubr.bf16.mxu1 %v19317_v6  ;;  %8546 = vmatprep.mubr.bf16.mxu0 %v19317_v6 }
0x1877   : > { %8574 = vmatpush1.bf16.msra.mxu1 %v15278_v20  ;;  %8720 = vmatpush1.bf16.msra.mxu0 %v15281_v58  ;;  %v15325_v20 = vld [vmem:[#allocation16 + $0x3dc] ss:$48 sps:$4 sm:$0xff]   ;;  %v15320_v58 = vld [vmem:[#allocation16 + $0x3d0] ss:$48 sps:$4 sm:$0xff]  }
0x1878   : > { %8575 = vmatprep.subr.bf16.mxu1 %v15286_v34  ;;  %8721 = vmatprep.subr.bf16.mxu0 %v15289_v46  ;;  %v15323_v34 = vld [vmem:[#allocation16 + $0x3d8] ss:$48 sps:$4 sm:$0xff]   ;;  %v15328_v46 = vld [vmem:[#allocation16 + $0x434] ss:$48 sps:$4 sm:$0xff]  }
0x187a   : > { %8401 = vmatmul.mubr.bf16.gmra.mrb[96].mxu1 %v18634_v0  ;;  %8547 = vmatmul.mubr.bf16.gmra.mrb[144].mxu0 %v18634_v0 }
0x187b   : > { %8576 = vmatpush1.bf16.msra.mxu1 %v15284_v17  ;;  %8722 = vmatpush1.bf16.msra.mxu0 %v15287_v28  ;;  %v15337_v17 = vld [vmem:[#allocation16 + $0x49c] ss:$48 sps:$4 sm:$0xff]   ;;  %v15332_v28 = vld [vmem:[#allocation16 + $0x490] ss:$48 sps:$4 sm:$0xff]  }
0x187c   : > { %8577 = vmatprep.subr.bf16.mxu1 %v15292_v8  ;;  %8723 = vmatprep.subr.bf16.mxu0 %v15295_v18  ;;  %v15335_v8 = vld [vmem:[#allocation16 + $0x498] ss:$48 sps:$4 sm:$0xff]   ;;  %v15340_v18 = vld [vmem:[#allocation16 + $0x4f4] ss:$48 sps:$4 sm:$0xff]  }
0x187d   : > { %8410 = vmatprep.mubr.bf16.mxu1 %v19317_v6  ;;  %8556 = vmatprep.mubr.bf16.mxu0 %v19317_v6 }
0x187f   : > { %8578 = vmatpush1.bf16.msra.mxu1 %v15290_v49  ;;  %8724 = vmatpush1.bf16.msra.mxu0 %v15293_v41  ;;  %v15341_v49 = vld [vmem:[#allocation16 + $0x4f8] ss:$48 sps:$4 sm:$0xff]   ;;  %v15346_v41 = vld [vmem:[#allocation16 + $0x554] ss:$48 sps:$4 sm:$0xff]  }
0x1880   : > { %8579 = vmatprep.subr.bf16.mxu1 %v15298_v16  ;;  %8725 = vmatprep.subr.bf16.mxu0 %v15301_v4  ;;  %v15349_v16 = vld [vmem:[#allocation16 + $0x55c] ss:$48 sps:$4 sm:$0xff]   ;;  %v15344_v4 = vld [vmem:[#allocation16 + $0x550] ss:$48 sps:$4 sm:$0xff]  }
0x1882   : > { %8411 = vmatmul.mubr.bf16.gmra.mrb[100].mxu1 %v18644_v45  ;;  %8557 = vmatmul.mubr.bf16.gmra.mrb[148].mxu0 %v18644_v45 }
0x1883   : > { %8580 = vmatpush1.bf16.msra.mxu1 %v15296_v40  ;;  %8726 = vmatpush1.bf16.msra.mxu0 %v15299_v38  ;;  %v15355_v40 = vld [vmem:[#allocation16 + $0x5bc] ss:$48 sps:$4 sm:$0xff]   ;;  %v15350_v38 = vld [vmem:[#allocation16 + $0x5b0] ss:$48 sps:$4 sm:$0xff]  }
0x1884   : > { %8599 = vmatprep.mubr.bf16.mxu1 %v18494_v3  ;;  %8745 = vmatprep.mubr.bf16.mxu0 %v18494_v3 }
0x1885   : > { %8581 = vmatprep.subr.bf16.mxu1 %v15304_v14  ;;  %8727 = vmatprep.subr.bf16.mxu0 %v15307_v19  ;;  %v15353_v14 = vld [vmem:[#allocation16 + $0x5b8] ss:$48 sps:$4 sm:$0xff]   ;;  %v15358_v19 = vld [vmem:[#allocation16 + $0x614] ss:$48 sps:$4 sm:$0xff]  }
0x1887   : > { %8582 = vmatpush1.bf16.msra.mxu1 %v15302_v59  ;;  %8728 = vmatpush1.bf16.msra.mxu0 %v15305_v5  ;;  %v15361_v59 = vld [vmem:[#allocation16 + $0x61c] ss:$48 sps:$4 sm:$0xff]   ;;  %v15356_v5 = vld [vmem:[#allocation16 + $0x610] ss:$48 sps:$4 sm:$0xff]  }
0x1888   : > { %8583 = vmatprep.subr.bf16.mxu1 %v15310_v42  ;;  %8729 = vmatprep.subr.bf16.mxu0 %v15313_v37  ;;  %v15359_v42 = vld [vmem:[#allocation16 + $0x618] ss:$48 sps:$4 sm:$0xff]   ;;  %v15364_v37 = vld [vmem:[#allocation16 + $0x674] ss:$48 sps:$4 sm:$0xff]  }
0x188b   : > { %8584 = vmatpush1.bf16.msra.mxu1 %v15308_v24  ;;  %8730 = vmatpush1.bf16.msra.mxu0 %v15311_v51  ;;  %v15367_v24 = vld [vmem:[#allocation16 + $0x67c] ss:$48 sps:$4 sm:$0xff]   ;;  %v15362_v51 = vld [vmem:[#allocation16 + $0x670] ss:$48 sps:$4 sm:$0xff]  }
0x188c   : > { %8585 = vmatprep.subr.bf16.mxu1 %v15316_v10  ;;  %8731 = vmatprep.subr.bf16.mxu0 %v15319_v57  ;;  %v15365_v10 = vld [vmem:[#allocation16 + $0x678] ss:$48 sps:$4 sm:$0xff]   ;;  %v15370_v57 = vld [vmem:[#allocation16 + $0x6d4] ss:$48 sps:$4 sm:$0xff]  }
0x188f   : > { %8586 = vmatpush1.bf16.msra.mxu1 %v15314_v27  ;;  %8732 = vmatpush1.bf16.msra.mxu0 %v15317_v61  ;;  %v15373_v27 = vld [vmem:[#allocation16 + $0x6dc] ss:$48 sps:$4 sm:$0xff]   ;;  %v15368_v61 = vld [vmem:[#allocation16 + $0x6d0] ss:$48 sps:$4 sm:$0xff]  }
0x1890   : > { %8587 = vmatprep.subr.bf16.mxu1 %v15322_v50  ;;  %8733 = vmatprep.subr.bf16.mxu0 %v15325_v20  ;;  %v15371_v50 = vld [vmem:[#allocation16 + $0x6d8] ss:$48 sps:$4 sm:$0xff]   ;;  %v15376_v20 = vld [vmem:[#allocation16 + $0x734] ss:$48 sps:$4 sm:$0xff]  }
0x1893   : > { %8588 = vmatpush1.bf16.msra.mxu1 %v15320_v58  ;;  %8734 = vmatpush1.bf16.msra.mxu0 %v15323_v34  ;;  %v15379_v58 = vld [vmem:[#allocation16 + $0x73c] ss:$48 sps:$4 sm:$0xff]   ;;  %v15374_v34 = vld [vmem:[#allocation16 + $0x730] ss:$48 sps:$4 sm:$0xff]  }
0x1894   : > { %8589 = vmatprep.subr.bf16.mxu1 %v15328_v46  ;;  %8735 = vmatprep.subr.bf16.mxu0 %v15331_v48  ;;  %v15377_v46 = vld [vmem:[#allocation16 + $0x738] ss:$48 sps:$4 sm:$0xff]   ;;  %v15382_v48 = vld [vmem:[#allocation16 + $0x794] ss:$48 sps:$4 sm:$0xff]  }
0x1897   : > { %8590 = vmatpush1.bf16.msra.mxu1 %v15326_v62  ;;  %8736 = vmatpush1.bf16.msra.mxu0 %v15329_v55  ;;  %v15385_v62 = vld [vmem:[#allocation16 + $0x79c] ss:$48 sps:$4 sm:$0xff]   ;;  %v15380_v55 = vld [vmem:[#allocation16 + $0x790] ss:$48 sps:$4 sm:$0xff]  }
0x1898   : > { %8591 = vmatprep.subr.bf16.mxu1 %v15334_v31  ;;  %8737 = vmatprep.subr.bf16.mxu0 %v15337_v17  ;;  %v15383_v31 = vld [vmem:[#allocation16 + $0x798] ss:$48 sps:$4 sm:$0xff]   ;;  %v15388_v17 = vld [vmem:[#allocation16 + $0x7f4] ss:$48 sps:$4 sm:$0xff]  }
0x189b   : > { %8592 = vmatpush1.bf16.msra.mxu1 %v15332_v28  ;;  %8738 = vmatpush1.bf16.msra.mxu0 %v15335_v8  ;;  %v15391_v28 = vld [vmem:[#allocation16 + $0x7fc] ss:$48 sps:$4 sm:$0xff]   ;;  %v15386_v8 = vld [vmem:[#allocation16 + $0x7f0] ss:$48 sps:$4 sm:$0xff]  }
0x189c   : > { %8593 = vmatprep.subr.bf16.mxu1 %v15340_v18  ;;  %8739 = vmatprep.subr.bf16.mxu0 %v15343_v9  ;;  %v15389_v18 = vld [vmem:[#allocation16 + $0x7f8] ss:$48 sps:$4 sm:$0xff]   ;;  %v15394_v9 = vld [vmem:[#allocation16 + $0x854] ss:$48 sps:$4 sm:$0xff]  }
0x189f   : > { %8594 = vmatpush1.bf16.msra.mxu1 %v15338_v39  ;;  %8740 = vmatpush1.bf16.msra.mxu0 %v15341_v49  ;;  %v15397_v39 = vld [vmem:[#allocation16 + $0x85c] ss:$48 sps:$4 sm:$0xff]   ;;  %v15392_v49 = vld [vmem:[#allocation16 + $0x850] ss:$48 sps:$4 sm:$0xff]  }
0x18a0   : > { %8595 = vmatprep.subr.bf16.mxu1 %v15346_v41  ;;  %8741 = vmatprep.subr.bf16.mxu0 %v15349_v16  ;;  %v15395_v41 = vld [vmem:[#allocation16 + $0x858] ss:$48 sps:$4 sm:$0xff]   ;;  %v15400_v16 = vld [vmem:[#allocation16 + $0x8b4] ss:$48 sps:$4 sm:$0xff]  }
0x18a3   : > { %8596 = vmatpush1.bf16.msra.mxu1 %v15344_v4  ;;  %8742 = vmatpush1.bf16.msra.mxu0 %v15347_v23  ;;  %v15403_v4 = vld [vmem:[#allocation16 + $0x8bc] ss:$48 sps:$4 sm:$0xff]   ;;  %v15398_v23 = vld [vmem:[#allocation16 + $0x8b0] ss:$48 sps:$4 sm:$0xff]  }
0x18a4   : > { %8597 = vmatprep.subr.bf16.mxu1 %v15352_v25  ;;  %8743 = vmatprep.subr.bf16.mxu0 %v15355_v40  ;;  %v15401_v25 = vld [vmem:[#allocation16 + $0x8b8] ss:$48 sps:$4 sm:$0xff]   ;;  %v15406_v40 = vld [vmem:[#allocation16 + $0x24] ss:$48 sps:$4 sm:$0xff]  }
0x18a7   : > { %8598 = vmatpush1.bf16.msra.mxu1 %v15350_v38  ;;  %8744 = vmatpush1.bf16.msra.mxu0 %v15353_v14  ;;  %v15409_v38 = vld [vmem:[#allocation16 + $0x2c] ss:$48 sps:$4 sm:$0xff]   ;;  %v15404_v14 = vld [vmem:[#allocation16 + $0x20] ss:$48 sps:$4 sm:$0xff]  }
0x18a8   : > { %8640 = vmatprep.subr.bf16.mxu1 %v15358_v19  ;;  %8786 = vmatprep.subr.bf16.mxu0 %v15361_v59  ;;  %v15407_v19 = vld [vmem:[#allocation16 + $0x28] ss:$48 sps:$4 sm:$0xff]   ;;  %v15412_v59 = vld [vmem:[#allocation16 + $0x84] ss:$48 sps:$4 sm:$0xff]  }
0x18aa   : > { %8600 = vmatmul.mubr.bf16.vlgmr.msra.gmra.mrb[104].mxu1 %v18496_v22  ;;  %8746 = vmatmul.mubr.bf16.vlgmr.msra.gmra.mrb[152].mxu0 %v18496_v22 }
0x18ab   : > { %8609 = vmatprep.mubr.bf16.mxu1 %v18529_v15  ;;  %8641 = vmatpush1.bf16.msra.mxu1 %v15356_v5  ;;  %v15415_v5 = vld [vmem:[#allocation16 + $0x8c] ss:$48 sps:$4 sm:$0xff]  }
0x18ac   : > { %8755 = vmatprep.mubr.bf16.mxu0 %v18529_v15  ;;  %8787 = vmatpush1.bf16.msra.mxu0 %v15359_v42  ;;  %v15410_v42 = vld [vmem:[#allocation16 + $0x80] ss:$48 sps:$4 sm:$0xff]  }
0x18ad   : > { %8642 = vmatprep.subr.bf16.mxu1 %v15364_v37  ;;  %8788 = vmatprep.subr.bf16.mxu0 %v15367_v24  ;;  %v15413_v37 = vld [vmem:[#allocation16 + $0x88] ss:$48 sps:$4 sm:$0xff]   ;;  %v15418_v24 = vld [vmem:[#allocation16 + $0xe4] ss:$48 sps:$4 sm:$0xff]  }
0x18af   : > { %8643 = vmatpush1.bf16.msra.mxu1 %v15362_v51  ;;  %v15421_v51 = vld [vmem:[#allocation16 + $0xec] ss:$48 sps:$4 sm:$0xff]  }
0x18b0   : > { %8789 = vmatpush1.bf16.msra.mxu0 %v15365_v10  ;;  %8644 = vmatprep.subr.bf16.mxu1 %v15370_v57  ;;  %v15416_v10 = vld [vmem:[#allocation16 + $0xe0] ss:$48 sps:$4 sm:$0xff]   ;;  %v15419_v57 = vld [vmem:[#allocation16 + $0xe8] ss:$48 sps:$4 sm:$0xff]  }
0x18b1   : > { %8790 = vmatprep.subr.bf16.mxu0 %v15373_v27  ;;  %v15424_v27 = vld [vmem:[#allocation16 + $0x144] ss:$48 sps:$4 sm:$0xff]  }
0x18b2   : > { %8610 = vmatmul.mubr.bf16.gmra.mrb[108].mxu1 %v18531_v63  ;;  %8756 = vmatmul.mubr.bf16.gmra.mrb[156].mxu0 %v18531_v63 }
0x18b3   : > { %8619 = vmatprep.mubr.bf16.mxu1 %v18553_v43  ;;  %8645 = vmatpush1.bf16.msra.mxu1 %v15368_v61  ;;  %v15427_v61 = vld [vmem:[#allocation16 + $0x14c] ss:$48 sps:$4 sm:$0xff]  }
0x18b4   : > { %8765 = vmatprep.mubr.bf16.mxu0 %v18553_v43  ;;  %8791 = vmatpush1.bf16.msra.mxu0 %v15371_v50  ;;  %v15422_v50 = vld [vmem:[#allocation16 + $0x140] ss:$48 sps:$4 sm:$0xff]  }
0x18b5   : > { %8646 = vmatprep.subr.bf16.mxu1 %v15376_v20  ;;  %8792 = vmatprep.subr.bf16.mxu0 %v15379_v58  ;;  %v15425_v20 = vld [vmem:[#allocation16 + $0x148] ss:$48 sps:$4 sm:$0xff]   ;;  %v15430_v58 = vld [vmem:[#allocation16 + $0x1a4] ss:$48 sps:$4 sm:$0xff]  }
0x18b7   : > { %8647 = vmatpush1.bf16.msra.mxu1 %v15374_v34  ;;  %v15433_v34 = vld [vmem:[#allocation16 + $0x1ac] ss:$48 sps:$4 sm:$0xff]  }
0x18b8   : > { %8793 = vmatpush1.bf16.msra.mxu0 %v15377_v46  ;;  %8648 = vmatprep.subr.bf16.mxu1 %v15382_v48  ;;  %v15428_v46 = vld [vmem:[#allocation16 + $0x1a0] ss:$48 sps:$4 sm:$0xff]   ;;  %v15431_v48 = vld [vmem:[#allocation16 + $0x1a8] ss:$48 sps:$4 sm:$0xff]  }
0x18b9   : > { %8794 = vmatprep.subr.bf16.mxu0 %v15385_v62  ;;  %v15436_v62 = vld [vmem:[#allocation16 + $0x204] ss:$48 sps:$4 sm:$0xff]  }
0x18ba   : > { %8620 = vmatmul.mubr.bf16.gmra.mrb[112].mxu1 %v18565_v2  ;;  %8766 = vmatmul.mubr.bf16.gmra.mrb[160].mxu0 %v18565_v2 }
0x18bb   : > { %8629 = vmatprep.mubr.bf16.mxu1 %v18574_v30  ;;  %8649 = vmatpush1.bf16.msra.mxu1 %v15380_v55  ;;  %v15439_v55 = vld [vmem:[#allocation16 + $0x20c] ss:$48 sps:$4 sm:$0xff]  }
0x18bc   : > { %8775 = vmatprep.mubr.bf16.mxu0 %v18574_v30  ;;  %8795 = vmatpush1.bf16.msra.mxu0 %v15383_v31  ;;  %v15434_v31 = vld [vmem:[#allocation16 + $0x200] ss:$48 sps:$4 sm:$0xff]  }
0x18bd   : > { %8650 = vmatprep.subr.bf16.mxu1 %v15388_v17  ;;  %8796 = vmatprep.subr.bf16.mxu0 %v15391_v28  ;;  %v15437_v17 = vld [vmem:[#allocation16 + $0x208] ss:$48 sps:$4 sm:$0xff]   ;;  %v15442_v28 = vld [vmem:[#allocation16 + $0x264] ss:$48 sps:$4 sm:$0xff]  }
0x18bf   : > { %8651 = vmatpush1.bf16.msra.mxu1 %v15386_v8  ;;  %v15445_v8 = vld [vmem:[#allocation16 + $0x26c] ss:$48 sps:$4 sm:$0xff]  }
0x18c0   : > { %8797 = vmatpush1.bf16.msra.mxu0 %v15389_v18  ;;  %8652 = vmatprep.subr.bf16.mxu1 %v15394_v9  ;;  %v15440_v18 = vld [vmem:[#allocation16 + $0x260] ss:$48 sps:$4 sm:$0xff]   ;;  %v15443_v9 = vld [vmem:[#allocation16 + $0x268] ss:$48 sps:$4 sm:$0xff]  }
0x18c1   : > { %8798 = vmatprep.subr.bf16.mxu0 %v15397_v39  ;;  %v15448_v39 = vld [vmem:[#allocation16 + $0x2c4] ss:$48 sps:$4 sm:$0xff]  }
0x18c2   : > { %8630 = vmatmul.mubr.bf16.gmra.mrb[116].mxu1 %v18588_v26  ;;  %8776 = vmatmul.mubr.bf16.gmra.mrb[164].mxu0 %v18588_v26 }
0x18c3   : > { %8653 = vmatpush1.bf16.msra.mxu1 %v15392_v49  ;;  %8672 = vmatprep.mubr.bf16.mxu1 %v19317_v6  ;;  %v15451_v49 = vld [vmem:[#allocation16 + $0x2cc] ss:$48 sps:$4 sm:$0xff]  }
0x18c4   : > { %8799 = vmatpush1.bf16.msra.mxu0 %v15395_v41  ;;  %8654 = vmatprep.subr.bf16.mxu1 %v15400_v16  ;;  %v15446_v41 = vld [vmem:[#allocation16 + $0x2c0] ss:$48 sps:$4 sm:$0xff]   ;;  %v15449_v16 = vld [vmem:[#allocation16 + $0x2c8] ss:$48 sps:$4 sm:$0xff]  }
0x18c5   : > { %8800 = vmatprep.subr.bf16.mxu0 %v15403_v4  ;;  %8818 = vmatprep.mubr.bf16.mxu0 %v19317_v6  ;;  %v15454_v4 = vld [vmem:[#allocation16 + $0x324] ss:$48 sps:$4 sm:$0xff]  }
0x18c7   : > { %8655 = vmatpush1.bf16.msra.mxu1 %v15398_v23  ;;  %v15457_v23 = vld [vmem:[#allocation16 + $0x32c] ss:$48 sps:$4 sm:$0xff]  }
0x18c8   : > { %8801 = vmatpush1.bf16.msra.mxu0 %v15401_v25  ;;  %8859 = vmatprep.subr.bf16.mxu1 %v15406_v40  ;;  %v15452_v25 = vld [vmem:[#allocation16 + $0x320] ss:$48 sps:$4 sm:$0xff]   ;;  %v15455_v40 = vld [vmem:[#allocation16 + $0x328] ss:$48 sps:$4 sm:$0xff]  }
0x18c9   : > { %9005 = vmatprep.subr.bf16.mxu0 %v15409_v38  ;;  %v15460_v38 = vld [vmem:[#allocation16 + $0x384] ss:$48 sps:$4 sm:$0xff]  }
0x18ca   : > { %8673 = vmatmul.mubr.bf16.vlgmr.msra.gmra.mrb[104].mxu1 %v18606_v7 }
0x18cb   : > { %8819 = vmatmul.mubr.bf16.vlgmr.msra.gmra.mrb[152].mxu0 %v18606_v7  ;;  %8860 = vmatpush1.bf16.msra.mxu1 %v15404_v14  ;;  %v15463_v14 = vld [vmem:[#allocation16 + $0x38c] ss:$48 sps:$4 sm:$0xff]  }
0x18cc   : > { %9006 = vmatpush1.bf16.msra.mxu0 %v15407_v19  ;;  %8861 = vmatprep.subr.bf16.mxu1 %v15412_v59  ;;  %v15458_v19 = vld [vmem:[#allocation16 + $0x380] ss:$48 sps:$4 sm:$0xff]   ;;  %v15461_v59 = vld [vmem:[#allocation16 + $0x388] ss:$48 sps:$4 sm:$0xff]  }
0x18cd   : > { %9007 = vmatprep.subr.bf16.mxu0 %v15415_v5  ;;  %8682 = vmatprep.mubr.bf16.mxu1 %v19317_v6  ;;  %v15466_v5 = vld [vmem:[#allocation16 + $0x3e4] ss:$48 sps:$4 sm:$0xff]  }
0x18ce   : > { %8828 = vmatprep.mubr.bf16.mxu0 %v19317_v6 }
0x18cf   : > { %8862 = vmatpush1.bf16.msra.mxu1 %v15410_v42  ;;  %v15469_v42 = vld [vmem:[#allocation16 + $0x3ec] ss:$48 sps:$4 sm:$0xff]  }
0x18d0   : > { %9008 = vmatpush1.bf16.msra.mxu0 %v15413_v37  ;;  %8863 = vmatprep.subr.bf16.mxu1 %v15418_v24  ;;  %v15467_v37 = vld [vmem:[#allocation16 + $0x3e8] ss:$48 sps:$4 sm:$0xff]   ;;  %v15472_v24 = vld [vmem:[#allocation16 + $0x444] ss:$48 sps:$4 sm:$0xff]  }
0x18d1   : > { %9009 = vmatprep.subr.bf16.mxu0 %v15421_v51  ;;  %v15475_v51 = vld [vmem:[#allocation16 + $0x44c] ss:$48 sps:$4 sm:$0xff]  }
0x18d2   : > { %8683 = vmatmul.mubr.bf16.gmra.mrb[108].mxu1 %v18620_v53 }
0x18d3   : > { %8829 = vmatmul.mubr.bf16.gmra.mrb[156].mxu0 %v18620_v53  ;;  %8864 = vmatpush1.bf16.msra.mxu1 %v15416_v10  ;;  %v15470_v10 = vld [vmem:[#allocation16 + $0x440] ss:$48 sps:$4 sm:$0xff]  }
0x18d4   : > { %9010 = vmatpush1.bf16.msra.mxu0 %v15419_v57  ;;  %8865 = vmatprep.subr.bf16.mxu1 %v15424_v27  ;;  %v15473_v57 = vld [vmem:[#allocation16 + $0x448] ss:$48 sps:$4 sm:$0xff]   ;;  %v15478_v27 = vld [vmem:[#allocation16 + $0x4a4] ss:$48 sps:$4 sm:$0xff]  }
0x18d5   : > { %9011 = vmatprep.subr.bf16.mxu0 %v15427_v61  ;;  %8692 = vmatprep.mubr.bf16.mxu1 %v19317_v6  ;;  %v15481_v61 = vld [vmem:[#allocation16 + $0x4ac] ss:$48 sps:$4 sm:$0xff]  }
0x18d6   : > { %8838 = vmatprep.mubr.bf16.mxu0 %v19317_v6 }
0x18d7   : > { %8866 = vmatpush1.bf16.msra.mxu1 %v15422_v50  ;;  %v15476_v50 = vld [vmem:[#allocation16 + $0x4a0] ss:$48 sps:$4 sm:$0xff]  }
0x18d8   : > { %9012 = vmatpush1.bf16.msra.mxu0 %v15425_v20  ;;  %8867 = vmatprep.subr.bf16.mxu1 %v15430_v58  ;;  %v15479_v20 = vld [vmem:[#allocation16 + $0x4a8] ss:$48 sps:$4 sm:$0xff]   ;;  %v15484_v58 = vld [vmem:[#allocation16 + $0x504] ss:$48 sps:$4 sm:$0xff]  }
0x18d9   : > { %9013 = vmatprep.subr.bf16.mxu0 %v15433_v34  ;;  %v15487_v34 = vld [vmem:[#allocation16 + $0x50c] ss:$48 sps:$4 sm:$0xff]  }
0x18da   : > { %8693 = vmatmul.mubr.bf16.gmra.mrb[112].mxu1 %v18634_v0 }
0x18db   : > { %8839 = vmatmul.mubr.bf16.gmra.mrb[160].mxu0 %v18634_v0  ;;  %8868 = vmatpush1.bf16.msra.mxu1 %v15428_v46  ;;  %v15482_v46 = vld [vmem:[#allocation16 + $0x500] ss:$48 sps:$4 sm:$0xff]  }
0x18dc   : > { %9014 = vmatpush1.bf16.msra.mxu0 %v15431_v48  ;;  %8869 = vmatprep.subr.bf16.mxu1 %v15436_v62  ;;  %v15485_v48 = vld [vmem:[#allocation16 + $0x508] ss:$48 sps:$4 sm:$0xff]   ;;  %v15490_v62 = vld [vmem:[#allocation16 + $0x564] ss:$48 sps:$4 sm:$0xff]  }
0x18dd   : > { %9015 = vmatprep.subr.bf16.mxu0 %v15439_v55  ;;  %8702 = vmatprep.mubr.bf16.mxu1 %v19317_v6  ;;  %v15493_v55 = vld [vmem:[#allocation16 + $0x56c] ss:$48 sps:$4 sm:$0xff]  }
0x18de   : > { %8848 = vmatprep.mubr.bf16.mxu0 %v19317_v6 }
0x18df   : > { %8870 = vmatpush1.bf16.msra.mxu1 %v15434_v31  ;;  %v15488_v31 = vld [vmem:[#allocation16 + $0x560] ss:$48 sps:$4 sm:$0xff]  }
0x18e0   : > { %9016 = vmatpush1.bf16.msra.mxu0 %v15437_v17  ;;  %8871 = vmatprep.subr.bf16.mxu1 %v15442_v28  ;;  %v15491_v17 = vld [vmem:[#allocation16 + $0x568] ss:$48 sps:$4 sm:$0xff]   ;;  %v15496_v28 = vld [vmem:[#allocation16 + $0x5c4] ss:$48 sps:$4 sm:$0xff]  }
0x18e1   : > { %9017 = vmatprep.subr.bf16.mxu0 %v15445_v8  ;;  %v15499_v8 = vld [vmem:[#allocation16 + $0x5cc] ss:$48 sps:$4 sm:$0xff]  }
0x18e2   : > { %8703 = vmatmul.mubr.bf16.gmra.mrb[116].mxu1 %v18644_v45 }
0x18e3   : > { %8849 = vmatmul.mubr.bf16.gmra.mrb[164].mxu0 %v18644_v45  ;;  %8872 = vmatpush1.bf16.msra.mxu1 %v15440_v18  ;;  %v15494_v18 = vld [vmem:[#allocation16 + $0x5c0] ss:$48 sps:$4 sm:$0xff]  }
0x18e4   : > { %8891 = vmatprep.mubr.bf16.mxu1 %v18494_v3  ;;  %9018 = vmatpush1.bf16.msra.mxu0 %v15443_v9  ;;  %v15497_v9 = vld [vmem:[#allocation16 + $0x5c8] ss:$48 sps:$4 sm:$0xff]  }
0x18e5   : > { %9037 = vmatprep.mubr.bf16.mxu0 %v18494_v3  ;;  %8873 = vmatprep.subr.bf16.mxu1 %v15448_v39  ;;  %v15464_v3 = vld [vmem:[#allocation16 + $0x3e0] ss:$48 sps:$4 sm:$0xff]   ;;  %v15502_v39 = vld [vmem:[#allocation16 + $0x624] ss:$48 sps:$4 sm:$0xff]  }
0x18e6   : > { %9019 = vmatprep.subr.bf16.mxu0 %v15451_v49  ;;  %v15505_v49 = vld [vmem:[#allocation16 + $0x62c] ss:$48 sps:$4 sm:$0xff]  }
0x18e7   : > { %8874 = vmatpush1.bf16.msra.mxu1 %v15446_v41  ;;  %v15500_v41 = vld [vmem:[#allocation16 + $0x620] ss:$48 sps:$4 sm:$0xff]  }
0x18e8   : > { %9020 = vmatpush1.bf16.msra.mxu0 %v15449_v16  ;;  %8875 = vmatprep.subr.bf16.mxu1 %v15454_v4  ;;  %v15503_v16 = vld [vmem:[#allocation16 + $0x628] ss:$48 sps:$4 sm:$0xff]   ;;  %v15508_v4 = vld [vmem:[#allocation16 + $0x684] ss:$48 sps:$4 sm:$0xff]  }
0x18e9   : > { %9021 = vmatprep.subr.bf16.mxu0 %v15457_v23  ;;  %v15511_v23 = vld [vmem:[#allocation16 + $0x68c] ss:$48 sps:$4 sm:$0xff]  }
0x18eb   : > { %8876 = vmatpush1.bf16.msra.mxu1 %v15452_v25  ;;  %v15506_v25 = vld [vmem:[#allocation16 + $0x680] ss:$48 sps:$4 sm:$0xff]  }
0x18ec   : > { %9022 = vmatpush1.bf16.msra.mxu0 %v15455_v40  ;;  %8877 = vmatprep.subr.bf16.mxu1 %v15460_v38  ;;  %v15509_v40 = vld [vmem:[#allocation16 + $0x688] ss:$48 sps:$4 sm:$0xff]   ;;  %v15514_v38 = vld [vmem:[#allocation16 + $0x6e4] ss:$48 sps:$4 sm:$0xff]  }
0x18ed   : > { %9023 = vmatprep.subr.bf16.mxu0 %v15463_v14  ;;  %v15517_v14 = vld [vmem:[#allocation16 + $0x6ec] ss:$48 sps:$4 sm:$0xff]  }
0x18ef   : > { %8878 = vmatpush1.bf16.msra.mxu1 %v15458_v19  ;;  %v15512_v19 = vld [vmem:[#allocation16 + $0x6e0] ss:$48 sps:$4 sm:$0xff]  }
0x18f0   : > { %9024 = vmatpush1.bf16.msra.mxu0 %v15461_v59  ;;  %8879 = vmatprep.subr.bf16.mxu1 %v15466_v5  ;;  %v15515_v59 = vld [vmem:[#allocation16 + $0x6e8] ss:$48 sps:$4 sm:$0xff]   ;;  %v15520_v5 = vld [vmem:[#allocation16 + $0x744] ss:$48 sps:$4 sm:$0xff]  }
0x18f1   : > { %9025 = vmatprep.subr.bf16.mxu0 %v15469_v42  ;;  %v15521_v42 = vld [vmem:[#allocation16 + $0x748] ss:$48 sps:$4 sm:$0xff]  }
0x18f3   : > { %8880 = vmatpush1.bf16.msra.mxu1 %v15464_v3  ;;  %v15526_v3 = vld [vmem:[#allocation16 + $0x7a4] ss:$48 sps:$4 sm:$0xff]  }
0x18f4   : > { %9026 = vmatpush1.bf16.msra.mxu0 %v15467_v37  ;;  %8881 = vmatprep.subr.bf16.mxu1 %v15472_v24  ;;  %v15529_v37 = vld [vmem:[#allocation16 + $0x7ac] ss:$48 sps:$4 sm:$0xff]   ;;  %v15524_v24 = vld [vmem:[#allocation16 + $0x7a0] ss:$48 sps:$4 sm:$0xff]  }
0x18f5   : > { %9027 = vmatprep.subr.bf16.mxu0 %v15475_v51  ;;  %v15527_v51 = vld [vmem:[#allocation16 + $0x7a8] ss:$48 sps:$4 sm:$0xff]  }
0x18f7   : > { %8882 = vmatpush1.bf16.msra.mxu1 %v15470_v10  ;;  %v15532_v10 = vld [vmem:[#allocation16 + $0x804] ss:$48 sps:$4 sm:$0xff]  }
0x18f8   : > { %9028 = vmatpush1.bf16.msra.mxu0 %v15473_v57  ;;  %8883 = vmatprep.subr.bf16.mxu1 %v15478_v27  ;;  %v15533_v57 = vld [vmem:[#allocation16 + $0x808] ss:$48 sps:$4 sm:$0xff]   ;;  %v15538_v27 = vld [vmem:[#allocation16 + $0x864] ss:$48 sps:$4 sm:$0xff]  }
0x18f9   : > { %9029 = vmatprep.subr.bf16.mxu0 %v15481_v61  ;;  %v15541_v61 = vld [vmem:[#allocation16 + $0x86c] ss:$48 sps:$4 sm:$0xff]  }
0x18fb   : > { %8884 = vmatpush1.bf16.msra.mxu1 %v15476_v50  ;;  %v15536_v50 = vld [vmem:[#allocation16 + $0x860] ss:$48 sps:$4 sm:$0xff]  }
0x18fc   : > { %9030 = vmatpush1.bf16.msra.mxu0 %v15479_v20  ;;  %8885 = vmatprep.subr.bf16.mxu1 %v15484_v58  ;;  %v15539_v20 = vld [vmem:[#allocation16 + $0x868] ss:$48 sps:$4 sm:$0xff]   ;;  %v15544_v58 = vld [vmem:[#allocation16 + $0x8c4] ss:$48 sps:$4 sm:$0xff]  }
0x18fd   : > { %9031 = vmatprep.subr.bf16.mxu0 %v15487_v34  ;;  %v15545_v34 = vld [vmem:[#allocation16 + $0x8c8] ss:$48 sps:$4 sm:$0xff]  }
0x18ff   : > { %8886 = vmatpush1.bf16.msra.mxu1 %v15482_v46  ;;  %v15550_v46 = vld [vmem:[#allocation19 + $0x4] ss:$12 sps:$4 sm:$0xff]  }
0x1900   : > { %9032 = vmatpush1.bf16.msra.mxu0 %v15485_v48  ;;  %8887 = vmatprep.subr.bf16.mxu1 %v15490_v62  ;;  %v15551_v48 = vld [vmem:[#allocation19 + $0xc8] ss:$12 sps:$4 sm:$0xff]   ;;  %v15548_v62 = vld [vmem:[#allocation19] ss:$12 sps:$4 sm:$0xff]  }
0x1901   : > { %9033 = vmatprep.subr.bf16.mxu0 %v15493_v55  ;;  %v15552_v55 = vld [vmem:[#allocation19 + $0x8] ss:$12 sps:$4 sm:$0xff]  }
0x1903   : > { %8888 = vmatpush1.bf16.msra.mxu1 %v15488_v31  ;;  %v15555_v31 = vld [vmem:[#allocation19 + $0x1c] ss:$12 sps:$4 sm:$0xff]  }
0x1904   : > { %9034 = vmatpush1.bf16.msra.mxu0 %v15491_v17  ;;  %8889 = vmatprep.subr.bf16.mxu1 %v15496_v28  ;;  %v15553_v17 = vld [vmem:[#allocation19 + $0x18] ss:$12 sps:$4 sm:$0xff]   ;;  %v15557_v28 = vld [vmem:[#allocation19 + $0x20] ss:$12 sps:$4 sm:$0xff]  }
0x1905   : > { %9035 = vmatprep.subr.bf16.mxu0 %v15499_v8  ;;  %v15560_v8 = vld [vmem:[#allocation19 + $0x34] ss:$12 sps:$4 sm:$0xff]  }
0x1907   : > { %8890 = vmatpush1.bf16.msra.mxu1 %v15494_v18  ;;  %v15561_v18 = vld [vmem:[#allocation19 + $0xf8] ss:$12 sps:$4 sm:$0xff]  }
0x1908   : > { %9036 = vmatpush1.bf16.msra.mxu0 %v15497_v9  ;;  %8932 = vmatprep.subr.bf16.mxu1 %v15502_v39  ;;  %v15558_v9 = vld [vmem:[#allocation19 + $0x30] ss:$12 sps:$4 sm:$0xff]   ;;  %v15562_v39 = vld [vmem:[#allocation19 + $0x38] ss:$12 sps:$4 sm:$0xff]  }
0x1909   : > { %9078 = vmatprep.subr.bf16.mxu0 %v15505_v49  ;;  %v15565_v49 = vld [vmem:[#allocation19 + $0x4c] ss:$12 sps:$4 sm:$0xff]  }
0x190a   : > { %8892 = vmatmul.mubr.bf16.vlgmr.msra.gmra.mrb[120].mxu1 %v18496_v22 }
0x190b   : > { %9038 = vmatmul.mubr.bf16.vlgmr.msra.gmra.mrb[168].mxu0 %v18496_v22  ;;  %8901 = vmatprep.mubr.bf16.mxu1 %v18529_v15  ;;  %v15523_v22 = vld [vmem:[#allocation16 + $0x74c] ss:$48 sps:$4 sm:$0xff]  }
0x190c   : > { %8933 = vmatpush1.bf16.msra.mxu1 %v15500_v41  ;;  %9047 = vmatprep.mubr.bf16.mxu0 %v18529_v15  ;;  %v15518_v15 = vld [vmem:[#allocation16 + $0x740] ss:$48 sps:$4 sm:$0xff]  }
0x190d   : > { %9079 = vmatpush1.bf16.msra.mxu0 %v15503_v16  ;;  %8934 = vmatprep.subr.bf16.mxu1 %v15508_v4  ;;  %v15563_v41 = vld [vmem:[#allocation19 + $0x48] ss:$12 sps:$4 sm:$0xff]   ;;  %v15567_v16 = vld [vmem:[#allocation19 + $0x50] ss:$12 sps:$4 sm:$0xff]  }
0x190e   : > { %9080 = vmatprep.subr.bf16.mxu0 %v15511_v23  ;;  %v15570_v4 = vld [vmem:[#allocation19 + $0x64] ss:$12 sps:$4 sm:$0xff]   ;;  %v15571_v23 = vld [vmem:[#allocation19 + $0x128] ss:$12 sps:$4 sm:$0xff]  }
0x1910   : > { %8935 = vmatpush1.bf16.msra.mxu1 %v15506_v25  ;;  %v18706_v25 = vld [vmem:[#allocation17] sm:$0xff] }
0x1911   : > { %9081 = vmatpush1.bf16.msra.mxu0 %v15509_v40  ;;  %8936 = vmatprep.subr.bf16.mxu1 %v15514_v38  ;;  %v19337_v40 = vld [vmem:[#allocation32_spill] sm:$0xff] }
0x1912   : > { %8902 = vmatmul.mubr.bf16.gmra.mrb[124].mxu1 %v18531_v63  ;;  %9082 = vmatprep.subr.bf16.mxu0 %v15517_v14  ;;  %v6789_v38 = vsub.s32 3, %v19337_v40  ;;  %v15568_v14 = vld [vmem:[#allocation19 + $0x60] ss:$12 sps:$4 sm:$0xff]  }
0x1913   : > { %9048 = vmatmul.mubr.bf16.gmra.mrb[172].mxu0 %v18531_v63  ;;  %8911 = vmatprep.mubr.bf16.mxu1 %v18553_v43  ;;  %v15535_v63 = vld [vmem:[#allocation16 + $0x80c] ss:$48 sps:$4 sm:$0xff]  }
0x1914   : > { %8937 = vmatpush1.bf16.msra.mxu1 %v15512_v19  ;;  %9057 = vmatprep.mubr.bf16.mxu0 %v18553_v43  ;;  %v15530_v43 = vld [vmem:[#allocation16 + $0x800] ss:$48 sps:$4 sm:$0xff]   ;;  %v15575_v19 = vld [vmem:[#allocation19 + $0x7c] ss:$12 sps:$4 sm:$0xff]  }
0x1915   : > { %9083 = vmatpush1.bf16.msra.mxu0 %v15515_v59  ;;  %8938 = vmatprep.subr.bf16.mxu1 %v15520_v5  ;;  %v18711_v59 = vrot.slane %v18706_v25, %v19323_v13  ;;  %v18715_v5 = vrot.slane %v18706_v25, %v19325_v56 }
0x1916   : > { %9084 = vmatprep.subr.bf16.mxu0 %v15523_v22  ;;  %v15576_v22 = vld [vmem:[#allocation19 + $0x140] ss:$12 sps:$4 sm:$0xff]  }
0x1918   : > { %8939 = vmatpush1.bf16.msra.mxu1 %v15518_v15  ;;  %v18720_v15 = vrot.slane %v18706_v25, %v19324_v12 }
0x1919   : > { %9085 = vmatpush1.bf16.msra.mxu0 %v15521_v42  ;;  %8940 = vmatprep.subr.bf16.mxu1 %v15526_v3  ;;  %v18725_v42 = vrot.slane %v18706_v25, %v6789_v38  ;;  %v15573_v3 = vld [vmem:[#allocation19 + $0x78] ss:$12 sps:$4 sm:$0xff]  }
0x191a   : > { %8912 = vmatmul.mubr.bf16.gmra.mrb[128].mxu1 %v18565_v2  ;;  %9086 = vmatprep.subr.bf16.mxu0 %v15529_v37 }
0x191b   : > { %9058 = vmatmul.mubr.bf16.gmra.mrb[176].mxu0 %v18565_v2  ;;  %8921 = vmatprep.mubr.bf16.mxu1 %v18574_v30  ;;  %v15547_v2 = vld [vmem:[#allocation16 + $0x8cc] ss:$48 sps:$4 sm:$0xff]  }
0x191c   : > { %8941 = vmatpush1.bf16.msra.mxu1 %v15524_v24  ;;  %9067 = vmatprep.mubr.bf16.mxu0 %v18574_v30  ;;  %v15542_v30 = vld [vmem:[#allocation16 + $0x8c0] ss:$48 sps:$4 sm:$0xff]  }
0x191d   : > { %9087 = vmatpush1.bf16.msra.mxu0 %v15527_v51  ;;  %8942 = vmatprep.subr.bf16.mxu1 %v15532_v10  ;;  %v15577_v51 = vld [vmem:[#allocation19 + $0x80] ss:$12 sps:$4 sm:$0xff]  }
0x191e   : > { %9088 = vmatprep.subr.bf16.mxu0 %v15535_v63  ;;  %v15580_v10 = vld [vmem:[#allocation19 + $0x94] ss:$12 sps:$4 sm:$0xff]  }
0x1920   : > { %8943 = vmatpush1.bf16.msra.mxu1 %v15530_v43 }
0x1921   : > { %9089 = vmatpush1.bf16.msra.mxu0 %v15533_v57  ;;  %8944 = vmatprep.subr.bf16.mxu1 %v15538_v27 }
0x1922   : > { %8922 = vmatmul.mubr.bf16.gmra.mrb[132].mxu1 %v18588_v26  ;;  %9090 = vmatprep.subr.bf16.mxu0 %v15541_v61  ;;  %v15581_v61 = vld [vmem:[#allocation19 + $0x158] ss:$12 sps:$4 sm:$0xff]  }
0x1923   : > { %9068 = vmatmul.mubr.bf16.gmra.mrb[180].mxu0 %v18588_v26  ;;  %8964 = vmatprep.mubr.bf16.mxu1 %v19317_v6  ;;  %v15556_v26 = vld [vmem:[#allocation19 + $0xe0] ss:$12 sps:$4 sm:$0xff]  }
0x1924   : > { %8945 = vmatpush1.bf16.msra.mxu1 %v15536_v50  ;;  %9110 = vmatprep.mubr.bf16.mxu0 %v19317_v6 }
0x1925   : > { %9091 = vmatpush1.bf16.msra.mxu0 %v15539_v20  ;;  %8946 = vmatprep.subr.bf16.mxu1 %v15544_v58 }
0x1926   : > { %9092 = vmatprep.subr.bf16.mxu0 %v15547_v2 }
0x1928   : > { %8947 = vmatpush1.bf16.msra.mxu1 %v15542_v30 }
0x1929   : > { %9093 = vmatpush1.bf16.msra.mxu0 %v15545_v34  ;;  %11232 = vmatprep.subr.bf16.mxu1 %v15550_v46 }
0x192a   : > { %13486 = vmatprep.subr.bf16.mxu0 %v15551_v48  ;;  %v15578_v48 = vld [vmem:[#allocation19 + $0x90] ss:$12 sps:$4 sm:$0xff]  }
0x192b   : > { %8965 = vmatmul.mubr.bf16.vlgmr.msra.gmra.mrb[120].mxu1 %v18606_v7 }
0x192c   : > { %9111 = vmatmul.mubr.bf16.vlgmr.msra.gmra.mrb[168].mxu0 %v18606_v7  ;;  %11233 = vmatpush1.bf16.msra.mxu1 %v15548_v62  ;;  %v15566_v7 = vld [vmem:[#allocation19 + $0x110] ss:$12 sps:$4 sm:$0xff]  }
0x192d   : > { %13487 = vmatpush3.bf16.msra.mxu0 %v15552_v55  ;;  %11234 = vmatprep.subr.bf16.mxu1 %v15555_v31  ;;  %v15582_v31 = vld [vmem:[#allocation19 + $0x98] ss:$12 sps:$4 sm:$0xff]  }
0x192e   : > { %13488 = vmatprep.subr.bf16.mxu0 %v15556_v26  ;;  %8974 = vmatprep.mubr.bf16.mxu1 %v19317_v6  ;;  %v15585_v26 = vld [vmem:[#allocation19 + $0xac] ss:$12 sps:$4 sm:$0xff]  }
0x192f   : > { %9120 = vmatprep.mubr.bf16.mxu0 %v19317_v6 }
0x1930   : > { %11235 = vmatpush1.bf16.msra.mxu1 %v15553_v17 }
0x1931   : > { %13489 = vmatpush3.bf16.msra.mxu0 %v15557_v28  ;;  %11236 = vmatprep.subr.bf16.mxu1 %v15560_v8 }
0x1932   : > { %13490 = vmatprep.subr.bf16.mxu0 %v15561_v18  ;;  %v15586_v18 = vld [vmem:[#allocation19 + $0x170] ss:$12 sps:$4 sm:$0xff]  }
0x1933   : > { %8975 = vmatmul.mubr.bf16.gmra.mrb[124].mxu1 %v18620_v53 }
0x1934   : > { %9121 = vmatmul.mubr.bf16.gmra.mrb[172].mxu0 %v18620_v53  ;;  %11237 = vmatpush1.bf16.msra.mxu1 %v15558_v9  ;;  %v15572_v53 = vld [vmem:[#allocation19 + $0x68] ss:$12 sps:$4 sm:$0xff]  }
0x1935   : > { %13491 = vmatpush3.bf16.msra.mxu0 %v15562_v39  ;;  %11238 = vmatprep.subr.bf16.mxu1 %v15565_v49 }
0x1936   : > { %13492 = vmatprep.subr.bf16.mxu0 %v15566_v7  ;;  %8984 = vmatprep.mubr.bf16.mxu1 %v19317_v6 }
0x1937   : > { %9130 = vmatprep.mubr.bf16.mxu0 %v19317_v6 }
0x1938   : > { %11239 = vmatpush1.bf16.msra.mxu1 %v15563_v41 }
0x1939   : > { %13493 = vmatpush3.bf16.msra.mxu0 %v15567_v16  ;;  %11240 = vmatprep.subr.bf16.mxu1 %v15570_v4  ;;  %v15583_v4 = vld [vmem:[#allocation19 + $0xa8] ss:$12 sps:$4 sm:$0xff]  }
0x193a   : > { %13494 = vmatprep.subr.bf16.mxu0 %v15571_v23 }
0x193b   : > { %8985 = vmatmul.mubr.bf16.gmra.mrb[128].mxu1 %v18634_v0 }
0x193c   : > { %9131 = vmatmul.mubr.bf16.gmra.mrb[176].mxu0 %v18634_v0  ;;  %11241 = vmatpush1.bf16.msra.mxu1 %v15568_v14 }
0x193d   : > { %13495 = vmatpush3.bf16.msra.mxu0 %v15572_v53  ;;  %v8382_v37 = vpop.f32.mrb[88].mxu1  ;;  %v8528_v24 = vpop.f32.mrb[136].mxu0  ;;  %11242 = vmatprep.subr.bf16.mxu1 %v15575_v19 }
0x193e   : > { %v14054_v63 = vadd.f32 %v8382_v37, %v18711_v59  ;;  %v14070_v43 = vadd.f32 %v8528_v24, %v18715_v5  ;;  %13496 = vmatprep.subr.bf16.mxu0 %v15576_v22  ;;  %v8384_v57 = vpop.f32.mrb[89].mxu1  ;;  %v8530_v27 = vpop.f32.mrb[137].mxu0  ;;  %8994 = vmatprep.mubr.bf16.mxu1 %v19317_v6  ;;  %v15587_v22 = vld [vmem:[#allocation19 + $0xb0] ss:$12 sps:$4 sm:$0xff]  }
0x193f   : > { %v14055_v0 = vadd.f32 %v8384_v57, %v18720_v15  ;;  %v14071_v50 = vadd.f32 %v8530_v27, %v18725_v42  ;;  %v8386_v20 = vpop.f32.mrb[90].mxu1  ;;  %v8532_v58 = vpop.f32.mrb[138].mxu0  ;;  %9140 = vmatprep.mubr.bf16.mxu0 %v19317_v6 }
0x1940   : > { %11243 = vmatpush1.bf16.msra.mxu1 %v15573_v3  ;;  %v14056_v2 = vadd.f32 %v8386_v20, %v18711_v59  ;;  %v14072_v30 = vadd.f32 %v8532_v58, %v18715_v5  ;;  %v8388_v34 = vpop.f32.mrb[91].mxu1  ;;  %v8534_v46 = vpop.f32.mrb[139].mxu0  ;;  %v9151_v17 = vmax.f32 %v14054_v63, 0.0  ;;  %v9153_v28 = vmax.f32 %v14070_v43, 0.0  ;;  %v15590_v3 = vld [vmem:[#allocation19 + $0xc4] ss:$12 sps:$4 sm:$0xff]  }
0x1941   : > { %13497 = vmatpush3.bf16.msra.mxu0 %v15577_v51  ;;  %v14057_v62 = vadd.f32 %v8388_v34, %v18720_v15  ;;  %v14073_v55 = vadd.f32 %v8534_v46, %v18725_v42  ;;  %11244 = vmatprep.subr.bf16.mxu1 %v15580_v10  ;;  %v9152_v9 = vmax.f32 %v14055_v0, 0.0  ;;  %v9154_v39 = vmax.f32 %v14071_v50, 0.0  ;;  %v15591_v63 = vld [vmem:[#allocation19 + $0x248] ss:$12 sps:$4 sm:$0xff]   ;;  %v15588_v58 = vld [vmem:[#allocation19 + $0xc0] ss:$12 sps:$4 sm:$0xff]  }
0x1942   : > { %v9163_v8 = vmax.f32 %v14056_v2, 0.0  ;;  %v9165_v6 = vmax.f32 %v14072_v30, 0.0  ;;  %13498 = vmatprep.subr.bf16.mxu0 %v15581_v61  ;;  %v15592_v34 = vld [vmem:[#allocation19 + $0x188] ss:$12 sps:$4 sm:$0xff]  }
0x1943   : > { %v9164_v49 = vmax.f32 %v14057_v62, 0.0  ;;  %v9166_v7 = vmax.f32 %v14073_v55, 0.0  ;;  %8995 = vmatmul.mubr.bf16.gmra.mrb[132].mxu1 %v18644_v45  ;;  %v15595_v46 = vld [vmem:[#allocation19 + $0xdc] ss:$12 sps:$4 sm:$0xff]  }
0x1944   : > { %v18739_v41 = vpack.c.bf16 %v9163_v8, %v9151_v17  ;;  %v18741_v16 = vpack.c.bf16 %v9165_v6, %v9153_v28  ;;  %9141 = vmatmul.mubr.bf16.gmra.mrb[180].mxu0 %v18644_v45  ;;  %11245 = vmatpush1.bf16.msra.mxu1 %v15578_v48 }
0x1945   : > { %v9248_v23 = vpack.c.bf16 %v9164_v49, %v9152_v9  ;;  %v18744_v14 = vpack.c.bf16 %v9166_v7, %v9154_v39  ;;  %13499 = vmatpush3.bf16.msra.mxu0 %v15582_v31  ;;  %v8392_v53 = vpop.f32.mrb[92].mxu1  ;;  %v8538_v19 = vpop.f32.mrb[140].mxu0  ;;  %11246 = vmatprep.subr.bf16.mxu1 %v15585_v26  ;;  %v15596_v26 = vld [vmem:[#allocation19 + $0x260] ss:$12 sps:$4 sm:$0xff]   ;;  %v15593_v39 = vld [vmem:[#allocation19 + $0xd8] ss:$12 sps:$4 sm:$0xff]  }
0x1946   : > { %v14058_v37 = vadd.f32 %v8392_v53, %v18711_v59  ;;  %v14074_v24 = vadd.f32 %v8538_v19, %v18715_v5  ;;  %13500 = vmatprep.subr.bf16.mxu0 %v15586_v18  ;;  %v8394_v51 = vpop.f32.mrb[93].mxu1  ;;  %v8540_v10 = vpop.f32.mrb[141].mxu0  ;;  %v15597_v53 = vld [vmem:[#allocation19 + $0x1a0] ss:$12 sps:$4 sm:$0xff]  }
0x1947   : > { %v14059_v45 = vadd.f32 %v8394_v51, %v18720_v15  ;;  %v14075_v43 = vadd.f32 %v8540_v10, %v18725_v42  ;;  %v8396_v57 = vpop.f32.mrb[94].mxu1  ;;  %v8542_v27 = vpop.f32.mrb[142].mxu0  ;;  %11264 = vmatprep.mubr.bf16.mxu1 %v9248_v23  ;;  %11702 = vmatprep.mubr.bf16.mxu0 %v9248_v23  ;;  %v15600_v19 = vld [vmem:[#allocation19 + $0xf4] ss:$12 sps:$4 sm:$0xff]   ;;  %v15601_v51 = vld [vmem:[#allocation19 + $0x278] ss:$12 sps:$4 sm:$0xff]  }
0x1948   : > { %11247 = vmatpush1.bf16.msra.mxu1 %v15583_v4  ;;  %v14060_v61 = vadd.f32 %v8396_v57, %v18711_v59  ;;  %v14076_v0 = vadd.f32 %v8542_v27, %v18715_v5  ;;  %v8398_v50 = vpop.f32.mrb[95].mxu1  ;;  %v8544_v20 = vpop.f32.mrb[143].mxu0  ;;  %v9175_v48 = vmax.f32 %v14058_v37, 0.0  ;;  %v9177_v62 = vmax.f32 %v14074_v24, 0.0 }
0x1949   : > { %13501 = vmatpush3.bf16.msra.mxu0 %v15587_v22  ;;  %v14061_v2 = vadd.f32 %v8398_v50, %v18720_v15  ;;  %v14077_v30 = vadd.f32 %v8544_v20, %v18725_v42  ;;  %11248 = vmatprep.subr.bf16.mxu1 %v15590_v3  ;;  %v9176_v17 = vmax.f32 %v14059_v45, 0.0  ;;  %v9178_v28 = vmax.f32 %v14075_v43, 0.0  ;;  %v15598_v50 = vld [vmem:[#allocation19 + $0xf0] ss:$12 sps:$4 sm:$0xff]  }
0x194a   : > { %v9187_v55 = vmax.f32 %v14060_v61, 0.0  ;;  %v9189_v31 = vmax.f32 %v14076_v0, 0.0  ;;  %13526 = vmatprep.subr.bf16.mxu0 %v15591_v63 }
0x194b   : > { %v9188_v8 = vmax.f32 %v14061_v2, 0.0  ;;  %v9190_v6 = vmax.f32 %v14077_v30, 0.0  ;;  %v15602_v2 = vld [vmem:[#allocation19 + $0x1b8] ss:$12 sps:$4 sm:$0xff]  }
0x194c   : > { %v18754_v18 = vpack.c.bf16 %v9187_v55, %v9175_v48  ;;  %v18756_v9 = vpack.c.bf16 %v9189_v31, %v9177_v62  ;;  %11703 = vmatmul.mubr.bf16.vlgmr.msra.gmra.mrb[184].mxu0 %v18739_v41  ;;  %11249 = vmatpush1.bf16.msra.mxu1 %v15588_v58  ;;  %v15605_v30 = vld [vmem:[#allocation19 + $0x10c] ss:$12 sps:$4 sm:$0xff]   ;;  %v15606_v55 = vld [vmem:[#allocation19 + $0x290] ss:$12 sps:$4 sm:$0xff]  }
0x194d   : > { %v18759_v49 = vpack.c.bf16 %v9188_v8, %v9176_v17  ;;  %v18761_v7 = vpack.c.bf16 %v9190_v6, %v9178_v28  ;;  %13527 = vmatpush3.bf16.msra.mxu0 %v15592_v34  ;;  %v8402_v4 = vpop.f32.mrb[96].mxu1  ;;  %v8548_v23 = vpop.f32.mrb[144].mxu0  ;;  %11250 = vmatprep.subr.bf16.mxu1 %v15595_v46 }
0x194e   : > { %v14062_v22 = vadd.f32 %v8402_v4, %v18711_v59  ;;  %v14078_v3 = vadd.f32 %v8548_v23, %v18715_v5  ;;  %13528 = vmatprep.subr.bf16.mxu0 %v15596_v26  ;;  %v8404_v37 = vpop.f32.mrb[97].mxu1  ;;  %v8550_v24 = vpop.f32.mrb[145].mxu0 }
0x194f   : > { %v14063_v10 = vadd.f32 %v8404_v37, %v18720_v15  ;;  %v14079_v63 = vadd.f32 %v8550_v24, %v18725_v42  ;;  %v8406_v45 = vpop.f32.mrb[98].mxu1  ;;  %v8552_v43 = vpop.f32.mrb[146].mxu0  ;;  %11710 = vmatprep.mubr.bf16.mxu0 %v18759_v49 }
0x1950   : > { %11251 = vmatpush1.bf16.msra.mxu1 %v15593_v39  ;;  %v14064_v57 = vadd.f32 %v8406_v45, %v18711_v59  ;;  %v14080_v27 = vadd.f32 %v8552_v43, %v18715_v5  ;;  %v8408_v61 = vpop.f32.mrb[99].mxu1  ;;  %v8554_v0 = vpop.f32.mrb[147].mxu0  ;;  %v9199_v34 = vmax.f32 %v14062_v22, 0.0  ;;  %v9201_v46 = vmax.f32 %v14078_v3, 0.0  ;;  %v15603_v39 = vld [vmem:[#allocation19 + $0x108] ss:$12 sps:$4 sm:$0xff]  }
0x1951   : > { %13529 = vmatpush3.bf16.msra.mxu0 %v15597_v53  ;;  %v14065_v20 = vadd.f32 %v8408_v61, %v18720_v15  ;;  %v14081_v58 = vadd.f32 %v8554_v0, %v18725_v42  ;;  %11252 = vmatprep.subr.bf16.mxu1 %v15600_v19  ;;  %v9200_v31 = vmax.f32 %v14063_v10, 0.0  ;;  %v9202_v26 = vmax.f32 %v14079_v63, 0.0  ;;  %v15607_v22 = vld [vmem:[#allocation19 + $0x1d0] ss:$12 sps:$4 sm:$0xff]   ;;  %v15611_v63 = vld [vmem:[#allocation19 + $0x2a8] ss:$12 sps:$4 sm:$0xff]  }
0x1952   : > { %v9211_v48 = vmax.f32 %v14064_v57, 0.0  ;;  %v9213_v62 = vmax.f32 %v14080_v27, 0.0  ;;  %13530 = vmatprep.subr.bf16.mxu0 %v15601_v51  ;;  %v15610_v3 = vld [vmem:[#allocation19 + $0x124] ss:$12 sps:$4 sm:$0xff]  }
0x1953   : > { %v9212_v17 = vmax.f32 %v14065_v20, 0.0  ;;  %v9214_v28 = vmax.f32 %v14081_v58, 0.0  ;;  %v15608_v58 = vld [vmem:[#allocation19 + $0x120] ss:$12 sps:$4 sm:$0xff]  }
0x1954   : > { %v18772_v8 = vpack.c.bf16 %v9211_v48, %v9199_v34  ;;  %v18774_v6 = vpack.c.bf16 %v9213_v62, %v9201_v46  ;;  %11711 = vmatmul.mubr.bf16.gmra.mrb[188].mxu0 %v18754_v18  ;;  %11253 = vmatpush1.bf16.msra.mxu1 %v15598_v50  ;;  %v15612_v34 = vld [vmem:[#allocation19 + $0x1e8] ss:$12 sps:$4 sm:$0xff]  }
0x1955   : > { %v18777_v4 = vpack.c.bf16 %v9212_v17, %v9200_v31  ;;  %v18779_v23 = vpack.c.bf16 %v9214_v28, %v9202_v26  ;;  %13531 = vmatpush3.bf16.msra.mxu0 %v15602_v2  ;;  %v8412_v53 = vpop.f32.mrb[100].mxu1  ;;  %v8558_v19 = vpop.f32.mrb[148].mxu0  ;;  %11254 = vmatprep.subr.bf16.mxu1 %v15605_v30  ;;  %v15615_v46 = vld [vmem:[#allocation19 + $0x13c] ss:$12 sps:$4 sm:$0xff]   ;;  %v15616_v26 = vld [vmem:[#allocation19 + $0x2c0] ss:$12 sps:$4 sm:$0xff]  }
0x1956   : > { %v14066_v37 = vadd.f32 %v8412_v53, %v18711_v59  ;;  %v14082_v24 = vadd.f32 %v8558_v19, %v18715_v5  ;;  %13532 = vmatprep.subr.bf16.mxu0 %v15606_v55  ;;  %v8414_v51 = vpop.f32.mrb[101].mxu1  ;;  %v8560_v10 = vpop.f32.mrb[149].mxu0 }
0x1957   : > { %v14067_v45 = vadd.f32 %v8414_v51, %v18720_v15  ;;  %v14083_v43 = vadd.f32 %v8560_v10, %v18725_v42  ;;  %v8416_v57 = vpop.f32.mrb[102].mxu1  ;;  %v8562_v27 = vpop.f32.mrb[150].mxu0  ;;  %11718 = vmatprep.mubr.bf16.mxu0 %v18777_v4  ;;  %v15622_v51 = vld [vmem:[#allocation19 + $0x218] ss:$12 sps:$4 sm:$0xff]  }
0x1958   : > { %11255 = vmatpush1.bf16.msra.mxu1 %v15603_v39  ;;  %v14068_v61 = vadd.f32 %v8416_v57, %v18711_v59  ;;  %v14084_v0 = vadd.f32 %v8562_v27, %v18715_v5  ;;  %v8418_v50 = vpop.f32.mrb[103].mxu1  ;;  %v8564_v20 = vpop.f32.mrb[151].mxu0  ;;  %v9223_v48 = vmax.f32 %v14066_v37, 0.0  ;;  %v9225_v62 = vmax.f32 %v14082_v24, 0.0  ;;  %v15621_v37 = vld [vmem:[#allocation19 + $0x2d8] ss:$12 sps:$4 sm:$0xff]  }
0x1959   : > { %13533 = vmatpush3.bf16.msra.mxu0 %v15607_v22  ;;  %v14069_v2 = vadd.f32 %v8418_v50, %v18720_v15  ;;  %v14085_v30 = vadd.f32 %v8564_v20, %v18725_v42  ;;  %11256 = vmatprep.subr.bf16.mxu1 %v15610_v3  ;;  %v9224_v59 = vmax.f32 %v14067_v45, 0.0  ;;  %v9226_v17 = vmax.f32 %v14083_v43, 0.0  ;;  %v15613_v15 = vld [vmem:[#allocation19 + $0x138] ss:$12 sps:$4 sm:$0xff]   ;;  %v15617_v22 = vld [vmem:[#allocation19 + $0x200] ss:$12 sps:$4 sm:$0xff]  }
0x195a   : > { %v9235_v55 = vmax.f32 %v14068_v61, 0.0  ;;  %v9237_v31 = vmax.f32 %v14084_v0, 0.0  ;;  %13534 = vmatprep.subr.bf16.mxu0 %v15611_v63  ;;  %v15620_v3 = vld [vmem:[#allocation19 + $0x154] ss:$12 sps:$4 sm:$0xff]   ;;  %v15618_v24 = vld [vmem:[#allocation19 + $0x150] ss:$12 sps:$4 sm:$0xff]  }
0x195b   : > { %v9236_v5 = vmax.f32 %v14069_v2, 0.0  ;;  %v9238_v28 = vmax.f32 %v14085_v30, 0.0  ;;  %v15625_v10 = vld [vmem:[#allocation19 + $0x16c] ss:$12 sps:$4 sm:$0xff]   ;;  %v15626_v63 = vld [vmem:[#allocation19 + $0x2f0] ss:$12 sps:$4 sm:$0xff]  }
0x195c   : > { %v18790_v39 = vpack.c.bf16 %v9235_v55, %v9223_v48  ;;  %v18792_v53 = vpack.c.bf16 %v9237_v31, %v9225_v62  ;;  %11719 = vmatmul.mubr.bf16.gmra.mrb[192].mxu0 %v18772_v8  ;;  %11257 = vmatpush1.bf16.msra.mxu1 %v15608_v58  ;;  %v15623_v45 = vld [vmem:[#allocation19 + $0x168] ss:$12 sps:$4 sm:$0xff]   ;;  %v15627_v43 = vld [vmem:[#allocation19 + $0x230] ss:$12 sps:$4 sm:$0xff]   ;;  %v15628_v61 = vld [vmem:[#allocation19 + $0x180] ss:$12 sps:$4 sm:$0xff]  }
0x195d   : > { %v18795_v42 = vpack.c.bf16 %v9236_v5, %v9224_v59  ;;  %v18797_v19 = vpack.c.bf16 %v9238_v28, %v9226_v17  ;;  %13535 = vmatpush3.bf16.msra.mxu0 %v15612_v34  ;;  %11258 = vmatprep.subr.bf16.mxu1 %v15615_v46  ;;  %v15630_v57 = vld [vmem:[#allocation19 + $0x184] ss:$12 sps:$4 sm:$0xff]   ;;  %v15652_v27 = vld [vmem:[#allocation19 + $0x3c8] ss:$12 sps:$4 sm:$0xff]   ;;  %v15657_v20 = vld [vmem:[#allocation19 + $0x3e0] ss:$12 sps:$4 sm:$0xff]  }
0x195e   : > { %13536 = vmatprep.subr.bf16.mxu0 %v15616_v26  ;;  %v15633_v0 = vld [vmem:[#allocation19 + $0x19c] ss:$12 sps:$4 sm:$0xff]   ;;  %v15631_v58 = vld [vmem:[#allocation19 + $0x198] ss:$12 sps:$4 sm:$0xff]   ;;  %v15636_v2 = vld [vmem:[#allocation19 + $0x1b4] ss:$12 sps:$4 sm:$0xff]  }
0x195f   : > { %11726 = vmatprep.mubr.bf16.mxu0 %v18795_v42  ;;  %v15653_v50 = vld [vmem:[#allocation19 + $0x308] ss:$12 sps:$4 sm:$0xff]   ;;  %v15658_v30 = vld [vmem:[#allocation19 + $0x320] ss:$12 sps:$4 sm:$0xff]   ;;  %v15662_v34 = vld [vmem:[#allocation19 + $0x3f8] ss:$12 sps:$4 sm:$0xff]  }
0x1960   : > { %11259 = vmatpush1.bf16.msra.mxu1 %v15613_v15  ;;  %v15634_v46 = vld [vmem:[#allocation19 + $0x1b0] ss:$12 sps:$4 sm:$0xff]   ;;  %v15639_v48 = vld [vmem:[#allocation19 + $0x1cc] ss:$12 sps:$4 sm:$0xff]   ;;  %v15637_v62 = vld [vmem:[#allocation19 + $0x1c8] ss:$12 sps:$4 sm:$0xff]  }
0x1961   : > { %13537 = vmatpush3.bf16.msra.mxu0 %v15617_v22  ;;  %11260 = vmatprep.subr.bf16.mxu1 %v15620_v3  ;;  %v15642_v55 = vld [vmem:[#allocation19 + $0x1e4] ss:$12 sps:$4 sm:$0xff]   ;;  %v15672_v26 = vld [vmem:[#allocation19 + $0x428] ss:$12 sps:$4 sm:$0xff]   ;;  %v15640_v59 = vld [vmem:[#allocation19 + $0x1e0] ss:$12 sps:$4 sm:$0xff]  }
0x1962   : > { %13538 = vmatprep.subr.bf16.mxu0 %v15621_v37  ;;  %v15668_v31 = vld [vmem:[#allocation19 + $0x350] ss:$12 sps:$4 sm:$0xff]   ;;  %v15673_v17 = vld [vmem:[#allocation19 + $0x368] ss:$12 sps:$4 sm:$0xff]   ;;  %v15643_v5 = vld [vmem:[#allocation19 + $0x1f8] ss:$12 sps:$4 sm:$0xff]  }
0x1963   : > { %v15648_v28 = vld [vmem:[#allocation19 + $0x214] ss:$12 sps:$4 sm:$0xff]   ;;  %v15682_v22 = vld [vmem:[#allocation19 + $0x458] ss:$12 sps:$4 sm:$0xff]   ;;  %v15646_v3 = vld [vmem:[#allocation19 + $0x210] ss:$12 sps:$4 sm:$0xff]  }
0x1964   : > { %11727 = vmatmul.mubr.bf16.gmra.mrb[196].mxu0 %v18790_v39  ;;  %11261 = vmatpush1.bf16.msra.mxu1 %v15618_v24  ;;  %v15678_v15 = vld [vmem:[#allocation19 + $0x380] ss:$12 sps:$4 sm:$0xff]   ;;  %v15683_v37 = vld [vmem:[#allocation19 + $0x398] ss:$12 sps:$4 sm:$0xff]   ;;  %v15649_v24 = vld [vmem:[#allocation19 + $0x228] ss:$12 sps:$4 sm:$0xff]  }
0x1965   : > { %13539 = vmatpush3.bf16.msra.mxu0 %v15622_v51  ;;  %11767 = vmatprep.mubr.bf16.mxu0 %v18744_v14  ;;  %v15656_v51 = vld [vmem:[#allocation19 + $0x244] ss:$12 sps:$4 sm:$0xff]  }
0x1966   : > { %11262 = vmatprep.subr.bf16.mxu1 %v15625_v10  ;;  %13540 = vmatprep.subr.bf16.mxu0 %v15626_v63  ;;  %v15688_v10 = vld [vmem:[#allocation19 + $0x3b0] ss:$12 sps:$4 sm:$0xff]   ;;  %v15692_v63 = vld [vmem:[#allocation19 + $0x548] ss:$12 sps:$4 sm:$0xff]  }
0x1968   : > { %11263 = vmatpush1.bf16.msra.mxu1 %v15623_v45  ;;  %v15654_v45 = vld [vmem:[#allocation19 + $0x240] ss:$12 sps:$4 sm:$0xff]  }
0x1969   : > { %13541 = vmatpush3.bf16.msra.mxu0 %v15627_v43  ;;  %11305 = vmatprep.subr.bf16.mxu1 %v15630_v57  ;;  %v15661_v43 = vld [vmem:[#allocation19 + $0x25c] ss:$12 sps:$4 sm:$0xff]   ;;  %v15666_v57 = vld [vmem:[#allocation19 + $0x274] ss:$12 sps:$4 sm:$0xff]  }
0x196a   : > { %13566 = vmatprep.subr.bf16.mxu0 %v15652_v27  ;;  %v15671_v27 = vld [vmem:[#allocation19 + $0x28c] ss:$12 sps:$4 sm:$0xff]  }
0x196b   : > { %11265 = vmatmul.mubr.bf16.vlgmr.msra.gmra.mrb[136].mxu1 %v18739_v41  ;;  %v15663_v41 = vld [vmem:[#allocation19 + $0x338] ss:$12 sps:$4 sm:$0xff]  }
0x196c   : > { %11768 = vmatmul.mubr.bf16.vlgmr.msra.gmra.mrb[200].mxu0 %v18741_v16  ;;  %11274 = vmatprep.mubr.bf16.mxu1 %v18759_v49  ;;  %v15667_v49 = vld [vmem:[#allocation19 + $0x410] ss:$12 sps:$4 sm:$0xff]  }
0x196d   : > { %11306 = vmatpush1.bf16.msra.mxu1 %v15628_v61  ;;  %11775 = vmatprep.mubr.bf16.mxu0 %v18761_v7  ;;  %v15669_v61 = vld [vmem:[#allocation19 + $0x288] ss:$12 sps:$4 sm:$0xff]  }
0x196e   : > { %11307 = vmatprep.subr.bf16.mxu1 %v15633_v0  ;;  %13567 = vmatpush3.bf16.msra.mxu0 %v15653_v50  ;;  %v15676_v0 = vld [vmem:[#allocation19 + $0x2a4] ss:$12 sps:$4 sm:$0xff]   ;;  %v6793_v50 = vsub.s32 4, %v19337_v40 }
0x196f   : > { %13568 = vmatprep.subr.bf16.mxu0 %v15657_v20  ;;  %v6801_v20 = vsub.s32 6, %v19337_v40 }
0x1971   : > { %11308 = vmatpush1.bf16.msra.mxu1 %v15631_v58  ;;  %v6797_v58 = vsub.s32 5, %v19337_v40 }
0x1972   : > { %11309 = vmatprep.subr.bf16.mxu1 %v15636_v2  ;;  %13569 = vmatpush3.bf16.msra.mxu0 %v15658_v30  ;;  %v6805_v2 = vsub.s32 7, %v19337_v40  ;;  %v15674_v30 = vld [vmem:[#allocation19 + $0x2a0] ss:$12 sps:$4 sm:$0xff]  }
0x1973   : > { %11275 = vmatmul.mubr.bf16.gmra.mrb[140].mxu1 %v18754_v18  ;;  %13570 = vmatprep.subr.bf16.mxu0 %v15662_v34  ;;  %v15645_v18 = vld [vmem:[#allocation19 + $0x1fc] ss:$12 sps:$4 sm:$0xff]   ;;  %v18822_v34 = vrot.slane %v18706_v25, %v6793_v50 }
0x1974   : > { %11776 = vmatmul.mubr.bf16.gmra.mrb[204].mxu0 %v18756_v9  ;;  %11284 = vmatprep.mubr.bf16.mxu1 %v18777_v4  ;;  %v15677_v4 = vld [vmem:[#allocation19 + $0x440] ss:$12 sps:$4 sm:$0xff]  }
0x1975   : > { %11310 = vmatpush1.bf16.msra.mxu1 %v15634_v46  ;;  %11783 = vmatprep.mubr.bf16.mxu0 %v18779_v23  ;;  %v15681_v46 = vld [vmem:[#allocation19 + $0x2bc] ss:$12 sps:$4 sm:$0xff]  }
0x1976   : > { %11311 = vmatprep.subr.bf16.mxu1 %v15639_v48  ;;  %13571 = vmatpush3.bf16.msra.mxu0 %v15663_v41  ;;  %v18825_v48 = vrot.slane %v18706_v25, %v6801_v20  ;;  %v18828_v41 = vrot.slane %v18706_v25, %v6797_v58 }
0x1977   : > { %13572 = vmatprep.subr.bf16.mxu0 %v15667_v49  ;;  %v18831_v49 = vrot.slane %v18706_v25, %v6805_v2  ;;  %v15689_v2 = vld [vmem:[#allocation19 + $0x2e8] ss:$12 sps:$4 sm:$0xff]  }
0x1979   : > { %11312 = vmatpush1.bf16.msra.mxu1 %v15637_v62 }
0x197a   : > { %11313 = vmatprep.subr.bf16.mxu1 %v15642_v55  ;;  %13573 = vmatpush3.bf16.msra.mxu0 %v15668_v31  ;;  %v15679_v55 = vld [vmem:[#allocation19 + $0x2b8] ss:$12 sps:$4 sm:$0xff]  }
0x197b   : > { %11285 = vmatmul.mubr.bf16.gmra.mrb[144].mxu1 %v18772_v8  ;;  %13574 = vmatprep.subr.bf16.mxu0 %v15672_v26  ;;  %v15651_v8 = vld [vmem:[#allocation19 + $0x22c] ss:$12 sps:$4 sm:$0xff]  }
0x197c   : > { %11784 = vmatmul.mubr.bf16.gmra.mrb[208].mxu0 %v18774_v6  ;;  %11294 = vmatprep.mubr.bf16.mxu1 %v18795_v42  ;;  %v15687_v42 = vld [vmem:[#allocation19 + $0x470] ss:$12 sps:$4 sm:$0xff]  }
0x197d   : > { %11314 = vmatpush1.bf16.msra.mxu1 %v15640_v59  ;;  %11791 = vmatprep.mubr.bf16.mxu0 %v18797_v19 }
0x197e   : > { %11315 = vmatprep.subr.bf16.mxu1 %v15645_v18  ;;  %13575 = vmatpush3.bf16.msra.mxu0 %v15673_v17  ;;  %v15686_v18 = vld [vmem:[#allocation19 + $0x2d4] ss:$12 sps:$4 sm:$0xff]  }
0x197f   : > { %13576 = vmatprep.subr.bf16.mxu0 %v15677_v4 }
0x1981   : > { %11316 = vmatpush1.bf16.msra.mxu1 %v15643_v5 }
0x1982   : > { %11317 = vmatprep.subr.bf16.mxu1 %v15648_v28  ;;  %13577 = vmatpush3.bf16.msra.mxu0 %v15678_v15 }
0x1983   : > { %11295 = vmatmul.mubr.bf16.gmra.mrb[148].mxu1 %v18790_v39  ;;  %13578 = vmatprep.subr.bf16.mxu0 %v15682_v22  ;;  %v15659_v39 = vld [vmem:[#allocation19 + $0x258] ss:$12 sps:$4 sm:$0xff]  }
0x1984   : > { %11792 = vmatmul.mubr.bf16.gmra.mrb[212].mxu0 %v18792_v53  ;;  %11337 = vmatprep.mubr.bf16.mxu1 %v18744_v14  ;;  %v15664_v14 = vld [vmem:[#allocation19 + $0x270] ss:$12 sps:$4 sm:$0xff]  }
0x1985   : > { %11318 = vmatpush1.bf16.msra.mxu1 %v15646_v3 }
0x1986   : > { %11319 = vmatprep.subr.bf16.mxu1 %v15651_v8  ;;  %13579 = vmatpush3.bf16.msra.mxu0 %v15683_v37 }
0x1987   : > { %13580 = vmatprep.subr.bf16.mxu0 %v15687_v42 }
0x1989   : > { %11320 = vmatpush1.bf16.msra.mxu1 %v15649_v24  ;;  %v15684_v24 = vld [vmem:[#allocation19 + $0x2d0] ss:$12 sps:$4 sm:$0xff]  }
0x198a   : > { %11321 = vmatprep.subr.bf16.mxu1 %v15656_v51  ;;  %13581 = vmatpush3.bf16.msra.mxu0 %v15688_v10 }
0x198b   : > { %13606 = vmatprep.subr.bf16.mxu0 %v15692_v63 }
0x198d   : > { %11322 = vmatpush1.bf16.msra.mxu1 %v15654_v45  ;;  %v15691_v45 = vld [vmem:[#allocation19 + $0x2ec] ss:$12 sps:$4 sm:$0xff]  }
0x198e   : > { %11323 = vmatprep.subr.bf16.mxu1 %v15661_v43 }
0x1991   : > { %11324 = vmatpush1.bf16.msra.mxu1 %v15659_v39 }
0x1992   : > { %11325 = vmatprep.subr.bf16.mxu1 %v15666_v57 }
0x1995   : > { %11326 = vmatpush1.bf16.msra.mxu1 %v15664_v14 }
0x1996   : > { %11327 = vmatprep.subr.bf16.mxu1 %v15671_v27 }
0x1999   : > { %11328 = vmatpush1.bf16.msra.mxu1 %v15669_v61 }
0x199a   : > { %11329 = vmatprep.subr.bf16.mxu1 %v15676_v0 }
0x199d   : > { %11330 = vmatpush1.bf16.msra.mxu1 %v15674_v30  ;;  %v8674_v62 = vpop.f32.mrb[104].mxu1  ;;  %v15693_v30 = vld [vmem:[#allocation19 + $0x488] ss:$12 sps:$4 sm:$0xff]  }
0x199e   : > { %v14086_v31 = vadd.f32 %v8674_v62, %v18822_v34  ;;  %v8820_v26 = vpop.f32.mrb[152].mxu0  ;;  %v8676_v59 = vpop.f32.mrb[105].mxu1  ;;  %11331 = vmatprep.subr.bf16.mxu1 %v15681_v46 }
0x199f   : > { %v14102_v17 = vadd.f32 %v8820_v26, %v18825_v48  ;;  %v14087_v4 = vadd.f32 %v8676_v59, %v18828_v41  ;;  %v8822_v5 = vpop.f32.mrb[153].mxu0  ;;  %v8678_v28 = vpop.f32.mrb[106].mxu1  ;;  %v15696_v26 = vld [vmem:[#allocation19 + $0x304] ss:$12 sps:$4 sm:$0xff]   ;;  %v15697_v59 = vld [vmem:[#allocation19 + $0x560] ss:$12 sps:$4 sm:$0xff]  }
0x19a0   : > { %v14103_v15 = vadd.f32 %v8822_v5, %v18831_v49  ;;  %v14088_v25 = vadd.f32 %v8678_v28, %v18822_v34  ;;  %v8824_v22 = vpop.f32.mrb[154].mxu0  ;;  %v8680_v3 = vpop.f32.mrb[107].mxu1  ;;  %v9155_v51 = vmax.f32 %v14086_v31, 0.0 }
0x19a1   : > { %v14104_v8 = vadd.f32 %v8824_v22, %v18825_v48  ;;  %11332 = vmatpush1.bf16.msra.mxu1 %v15679_v55  ;;  %v14089_v37 = vadd.f32 %v8680_v3, %v18828_v41  ;;  %v8826_v42 = vpop.f32.mrb[155].mxu0  ;;  %v9157_v43 = vmax.f32 %v14102_v17, 0.0  ;;  %v9156_v39 = vmax.f32 %v14087_v4, 0.0 }
0x19a2   : > { %v9167_v10 = vmax.f32 %v14088_v25, 0.0  ;;  %v14105_v63 = vadd.f32 %v8826_v42, %v18831_v49  ;;  %11333 = vmatprep.subr.bf16.mxu1 %v15686_v18  ;;  %v9158_v27 = vmax.f32 %v14103_v15, 0.0  ;;  %v15694_v42 = vld [vmem:[#allocation19 + $0x300] ss:$12 sps:$4 sm:$0xff]  }
0x19a3   : > { %v9169_v57 = vmax.f32 %v14104_v8, 0.0  ;;  %v9168_v14 = vmax.f32 %v14089_v37, 0.0 }
0x19a4   : > { %v18841_v61 = vpack.c.bf16 %v9167_v10, %v9155_v51  ;;  %v9170_v0 = vmax.f32 %v14105_v63, 0.0  ;;  %v15698_v63 = vld [vmem:[#allocation19 + $0x4a0] ss:$12 sps:$4 sm:$0xff]  }
0x19a5   : > { %v18843_v50 = vpack.c.bf16 %v9169_v57, %v9157_v43  ;;  %v18845_v20 = vpack.c.bf16 %v9168_v14, %v9156_v39  ;;  %11334 = vmatpush1.bf16.msra.mxu1 %v15684_v24  ;;  %v8684_v58 = vpop.f32.mrb[108].mxu1 }
0x19a6   : > { %v18847_v46 = vpack.c.bf16 %v9170_v0, %v9158_v27  ;;  %v14090_v62 = vadd.f32 %v8684_v58, %v18822_v34  ;;  %v8830_v55 = vpop.f32.mrb[156].mxu0  ;;  %v8686_v31 = vpop.f32.mrb[109].mxu1  ;;  %11335 = vmatprep.subr.bf16.mxu1 %v15691_v45  ;;  %v15701_v45 = vld [vmem:[#allocation19 + $0x31c] ss:$12 sps:$4 sm:$0xff]   ;;  %v15702_v27 = vld [vmem:[#allocation19 + $0x578] ss:$12 sps:$4 sm:$0xff]  }
0x19a7   : > { %v14106_v18 = vadd.f32 %v8830_v55, %v18825_v48  ;;  %v14091_v17 = vadd.f32 %v8686_v31, %v18828_v41  ;;  %v8832_v4 = vpop.f32.mrb[157].mxu0  ;;  %v8688_v5 = vpop.f32.mrb[110].mxu1  ;;  %11832 = vmatprep.mubr.bf16.mxu0 %v18845_v20  ;;  %v15699_v31 = vld [vmem:[#allocation19 + $0x318] ss:$12 sps:$4 sm:$0xff]  }
0x19a8   : > { %v14107_v28 = vadd.f32 %v8832_v4, %v18831_v49  ;;  %v14092_v15 = vadd.f32 %v8688_v5, %v18822_v34  ;;  %v8834_v25 = vpop.f32.mrb[158].mxu0  ;;  %v8690_v22 = vpop.f32.mrb[111].mxu1  ;;  %11833 = vmatmul.mubr.bf16.vlgmr.msra.gmra.mrb[216].mxu0 %v18841_v61  ;;  %v9179_v24 = vmax.f32 %v14090_v62, 0.0  ;;  %v15703_v4 = vld [vmem:[#allocation19 + $0x4b8] ss:$12 sps:$4 sm:$0xff]  }
0x19a9   : > { %v14108_v3 = vadd.f32 %v8834_v25, %v18825_v48  ;;  %11336 = vmatpush1.bf16.msra.mxu1 %v15689_v2  ;;  %v14093_v8 = vadd.f32 %v8690_v22, %v18828_v41  ;;  %v8836_v37 = vpop.f32.mrb[159].mxu0  ;;  %13607 = vmatpush3.bf16.msra.mxu0 %v15693_v30  ;;  %v9181_v43 = vmax.f32 %v14106_v18, 0.0  ;;  %v9180_v39 = vmax.f32 %v14091_v17, 0.0  ;;  %v15706_v5 = vld [vmem:[#allocation19 + $0x334] ss:$12 sps:$4 sm:$0xff]  }
0x19aa   : > { %v9191_v51 = vmax.f32 %v14092_v15, 0.0  ;;  %v14109_v10 = vadd.f32 %v8836_v37, %v18831_v49  ;;  %11378 = vmatprep.subr.bf16.mxu1 %v15696_v26  ;;  %13608 = vmatprep.subr.bf16.mxu0 %v15697_v59  ;;  %v9182_v0 = vmax.f32 %v14107_v28, 0.0 }
0x19ab   : > { %v9193_v57 = vmax.f32 %v14108_v3, 0.0  ;;  %v9192_v14 = vmax.f32 %v14093_v8, 0.0 }
0x19ac   : > { %v18859_v58 = vpack.c.bf16 %v9191_v51, %v9179_v24  ;;  %v9194_v2 = vmax.f32 %v14109_v10, 0.0  ;;  %11338 = vmatmul.mubr.bf16.vlgmr.msra.gmra.mrb[136].mxu1 %v18741_v16  ;;  %v15704_v10 = vld [vmem:[#allocation19 + $0x330] ss:$12 sps:$4 sm:$0xff]  }
0x19ad   : > { %v18862_v30 = vpack.c.bf16 %v9193_v57, %v9181_v43  ;;  %v18864_v62 = vpack.c.bf16 %v9192_v14, %v9180_v39  ;;  %11347 = vmatprep.mubr.bf16.mxu1 %v18761_v7  ;;  %11379 = vmatpush1.bf16.msra.mxu1 %v15694_v42  ;;  %v8694_v55 = vpop.f32.mrb[112].mxu1  ;;  %v15707_v7 = vld [vmem:[#allocation19 + $0x590] ss:$12 sps:$4 sm:$0xff]   ;;  %v15711_v57 = vld [vmem:[#allocation19 + $0x34c] ss:$12 sps:$4 sm:$0xff]  }
0x19ae   : > { %v18867_v26 = vpack.c.bf16 %v9194_v2, %v9182_v0  ;;  %v14094_v59 = vadd.f32 %v8694_v55, %v18822_v34  ;;  %v8840_v18 = vpop.f32.mrb[160].mxu0  ;;  %13609 = vmatpush3.bf16.msra.mxu0 %v15698_v63  ;;  %v8696_v17 = vpop.f32.mrb[113].mxu1  ;;  %11380 = vmatprep.subr.bf16.mxu1 %v15701_v45  ;;  %v15708_v39 = vld [vmem:[#allocation19 + $0x4d0] ss:$12 sps:$4 sm:$0xff]   ;;  %v15712_v55 = vld [vmem:[#allocation19 + $0x5a8] ss:$12 sps:$4 sm:$0xff]  }
0x19af   : > { %v14110_v16 = vadd.f32 %v8840_v18, %v18825_v48  ;;  %v14095_v28 = vadd.f32 %v8696_v17, %v18828_v41  ;;  %v8842_v15 = vpop.f32.mrb[161].mxu0  ;;  %v8698_v25 = vpop.f32.mrb[114].mxu1  ;;  %11840 = vmatprep.mubr.bf16.mxu0 %v18864_v62  ;;  %13610 = vmatprep.subr.bf16.mxu0 %v15702_v27 }
0x19b0   : > { %v14111_v22 = vadd.f32 %v8842_v15, %v18831_v49  ;;  %v14096_v3 = vadd.f32 %v8698_v25, %v18822_v34  ;;  %v8844_v8 = vpop.f32.mrb[162].mxu0  ;;  %v8700_v37 = vpop.f32.mrb[115].mxu1  ;;  %11841 = vmatmul.mubr.bf16.gmra.mrb[220].mxu0 %v18859_v58  ;;  %v9203_v63 = vmax.f32 %v14094_v59, 0.0 }
0x19b1   : > { %v14112_v42 = vadd.f32 %v8844_v8, %v18825_v48  ;;  %11381 = vmatpush1.bf16.msra.mxu1 %v15699_v31  ;;  %v14097_v24 = vadd.f32 %v8700_v37, %v18828_v41  ;;  %v8846_v51 = vpop.f32.mrb[163].mxu0  ;;  %v9205_v14 = vmax.f32 %v14110_v16, 0.0  ;;  %v9204_v27 = vmax.f32 %v14095_v28, 0.0 }
0x19b2   : > { %v9215_v45 = vmax.f32 %v14096_v3, 0.0  ;;  %v14113_v43 = vadd.f32 %v8846_v51, %v18831_v49  ;;  %13611 = vmatpush3.bf16.msra.mxu0 %v15703_v4  ;;  %11382 = vmatprep.subr.bf16.mxu1 %v15706_v5  ;;  %v9206_v18 = vmax.f32 %v14111_v22, 0.0  ;;  %v15709_v5 = vld [vmem:[#allocation19 + $0x348] ss:$12 sps:$4 sm:$0xff]   ;;  %v15716_v3 = vld [vmem:[#allocation19 + $0x364] ss:$12 sps:$4 sm:$0xff]  }
0x19b3   : > { %v9217_v0 = vmax.f32 %v14112_v42, 0.0  ;;  %v9216_v2 = vmax.f32 %v14097_v24, 0.0  ;;  %13612 = vmatprep.subr.bf16.mxu0 %v15707_v7  ;;  %v15713_v22 = vld [vmem:[#allocation19 + $0x4e8] ss:$12 sps:$4 sm:$0xff]  }
0x19b4   : > { %v18879_v31 = vpack.c.bf16 %v9215_v45, %v9203_v63  ;;  %v9218_v17 = vmax.f32 %v14113_v43, 0.0  ;;  %11348 = vmatmul.mubr.bf16.gmra.mrb[140].mxu1 %v18756_v9 }
0x19b5   : > { %v18882_v59 = vpack.c.bf16 %v9217_v0, %v9205_v14  ;;  %v18884_v15 = vpack.c.bf16 %v9216_v2, %v9204_v27  ;;  %11357 = vmatprep.mubr.bf16.mxu1 %v18779_v23  ;;  %11383 = vmatpush1.bf16.msra.mxu1 %v15704_v10  ;;  %v8704_v4 = vpop.f32.mrb[116].mxu1  ;;  %v15717_v23 = vld [vmem:[#allocation19 + $0x5c0] ss:$12 sps:$4 sm:$0xff]  }
0x19b6   : > { %v18887_v16 = vpack.c.bf16 %v9218_v17, %v9206_v18  ;;  %v14098_v28 = vadd.f32 %v8704_v4, %v18822_v34  ;;  %v8850_v25 = vpop.f32.mrb[164].mxu0  ;;  %13613 = vmatpush3.bf16.msra.mxu0 %v15708_v39  ;;  %v8706_v7 = vpop.f32.mrb[117].mxu1  ;;  %11384 = vmatprep.subr.bf16.mxu1 %v15711_v57  ;;  %v15714_v57 = vld [vmem:[#allocation19 + $0x360] ss:$12 sps:$4 sm:$0xff]  }
0x19b7   : > { %v14114_v9 = vadd.f32 %v8850_v25, %v18825_v48  ;;  %v14099_v8 = vadd.f32 %v8706_v7, %v18828_v41  ;;  %v8852_v37 = vpop.f32.mrb[165].mxu0  ;;  %v8708_v42 = vpop.f32.mrb[118].mxu1  ;;  %11848 = vmatprep.mubr.bf16.mxu0 %v18884_v15  ;;  %13614 = vmatprep.subr.bf16.mxu0 %v15712_v55  ;;  %v15718_v2 = vld [vmem:[#allocation19 + $0x500] ss:$12 sps:$4 sm:$0xff]   ;;  %v15721_v55 = vld [vmem:[#allocation19 + $0x37c] ss:$12 sps:$4 sm:$0xff]  }
0x19b8   : > { %v14115_v24 = vadd.f32 %v8852_v37, %v18831_v49  ;;  %v14100_v51 = vadd.f32 %v8708_v42, %v18822_v34  ;;  %v8854_v10 = vpop.f32.mrb[166].mxu0  ;;  %v8710_v63 = vpop.f32.mrb[119].mxu1  ;;  %11849 = vmatmul.mubr.bf16.gmra.mrb[224].mxu0 %v18879_v31  ;;  %v9227_v14 = vmax.f32 %v14098_v28, 0.0  ;;  %v15722_v25 = vld [vmem:[#allocation19 + $0x5d8] ss:$12 sps:$4 sm:$0xff]  }
0x19b9   : > { %v14116_v45 = vadd.f32 %v8854_v10, %v18825_v48  ;;  %11385 = vmatpush1.bf16.msra.mxu1 %v15709_v5  ;;  %v14101_v43 = vadd.f32 %v8710_v63, %v18828_v41  ;;  %v8856_v39 = vpop.f32.mrb[167].mxu0  ;;  %v9229_v34 = vmax.f32 %v14114_v9, 0.0  ;;  %v9228_v18 = vmax.f32 %v14099_v8, 0.0  ;;  %v15726_v9 = vld [vmem:[#allocation19 + $0x394] ss:$12 sps:$4 sm:$0xff]  }
0x19ba   : > { %v9239_v27 = vmax.f32 %v14100_v51, 0.0  ;;  %v14117_v0 = vadd.f32 %v8856_v39, %v18831_v49  ;;  %13615 = vmatpush3.bf16.msra.mxu0 %v15713_v22  ;;  %11386 = vmatprep.subr.bf16.mxu1 %v15716_v3  ;;  %v9230_v48 = vmax.f32 %v14115_v24, 0.0  ;;  %v15719_v49 = vld [vmem:[#allocation19 + $0x378] ss:$12 sps:$4 sm:$0xff]   ;;  %v15727_v8 = vld [vmem:[#allocation19 + $0x5f0] ss:$12 sps:$4 sm:$0xff]  }
0x19bb   : > { %v9241_v17 = vmax.f32 %v14116_v45, 0.0  ;;  %v9240_v4 = vmax.f32 %v14101_v43, 0.0  ;;  %13616 = vmatprep.subr.bf16.mxu0 %v15717_v23  ;;  %v15723_v3 = vld [vmem:[#allocation19 + $0x518] ss:$12 sps:$4 sm:$0xff]   ;;  %v15756_v42 = vld [vmem:[#allocation19 + $0x6c8] ss:$12 sps:$4 sm:$0xff]  }
0x19bc   : > { %v18899_v5 = vpack.c.bf16 %v9239_v27, %v9227_v14  ;;  %v9242_v41 = vmax.f32 %v14117_v0, 0.0  ;;  %11358 = vmatmul.mubr.bf16.gmra.mrb[144].mxu1 %v18774_v6  ;;  %v15724_v6 = vld [vmem:[#allocation19 + $0x390] ss:$12 sps:$4 sm:$0xff]   ;;  %v15731_v37 = vld [vmem:[#allocation19 + $0x3ac] ss:$12 sps:$4 sm:$0xff]  }
0x19bd   : > { %v18902_v28 = vpack.c.bf16 %v9241_v17, %v9229_v34  ;;  %v18904_v7 = vpack.c.bf16 %v9240_v4, %v9228_v18  ;;  %11367 = vmatprep.mubr.bf16.mxu1 %v18797_v19  ;;  %11387 = vmatpush1.bf16.msra.mxu1 %v15714_v57  ;;  %v15728_v19 = vld [vmem:[#allocation19 + $0x530] ss:$12 sps:$4 sm:$0xff]   ;;  %v15729_v23 = vld [vmem:[#allocation19 + $0x3a8] ss:$12 sps:$4 sm:$0xff]   ;;  %v15761_v10 = vld [vmem:[#allocation19 + $0x6e0] ss:$12 sps:$4 sm:$0xff]  }
0x19be   : > { %v18907_v22 = vpack.c.bf16 %v9242_v41, %v9230_v48  ;;  %13617 = vmatpush3.bf16.msra.mxu0 %v15718_v2  ;;  %11388 = vmatprep.subr.bf16.mxu1 %v15721_v55  ;;  %v15734_v24 = vld [vmem:[#allocation19 + $0x3c4] ss:$12 sps:$4 sm:$0xff]   ;;  %v15757_v51 = vld [vmem:[#allocation19 + $0x608] ss:$12 sps:$4 sm:$0xff]   ;;  %v15732_v63 = vld [vmem:[#allocation19 + $0x3c0] ss:$12 sps:$4 sm:$0xff]  }
0x19bf   : > { %11856 = vmatprep.mubr.bf16.mxu0 %v18904_v7  ;;  %13618 = vmatprep.subr.bf16.mxu0 %v15722_v25  ;;  %v15737_v45 = vld [vmem:[#allocation19 + $0x3dc] ss:$12 sps:$4 sm:$0xff]   ;;  %v15766_v43 = vld [vmem:[#allocation19 + $0x6f8] ss:$12 sps:$4 sm:$0xff]   ;;  %v15740_v39 = vld [vmem:[#allocation19 + $0x3f4] ss:$12 sps:$4 sm:$0xff]  }
0x19c0   : > { %11857 = vmatmul.mubr.bf16.gmra.mrb[228].mxu0 %v18899_v5  ;;  %v15767_v57 = vld [vmem:[#allocation19 + $0x638] ss:$12 sps:$4 sm:$0xff]   ;;  %v15771_v14 = vld [vmem:[#allocation19 + $0x710] ss:$12 sps:$4 sm:$0xff]   ;;  %v15776_v55 = vld [vmem:[#allocation19 + $0x728] ss:$12 sps:$4 sm:$0xff]  }
0x19c1   : > { %11389 = vmatpush1.bf16.msra.mxu1 %v15719_v49  ;;  %11897 = vmatprep.mubr.bf16.mxu0 %v18847_v46  ;;  %v15738_v27 = vld [vmem:[#allocation19 + $0x3f0] ss:$12 sps:$4 sm:$0xff]   ;;  %v15743_v0 = vld [vmem:[#allocation19 + $0x40c] ss:$12 sps:$4 sm:$0xff]   ;;  %v15741_v34 = vld [vmem:[#allocation19 + $0x408] ss:$12 sps:$4 sm:$0xff]  }
0x19c2   : > { %13619 = vmatpush3.bf16.msra.mxu0 %v15723_v3  ;;  %11390 = vmatprep.subr.bf16.mxu1 %v15726_v9  ;;  %v15772_v2 = vld [vmem:[#allocation19 + $0x650] ss:$12 sps:$4 sm:$0xff]   ;;  %v15777_v17 = vld [vmem:[#allocation19 + $0x668] ss:$12 sps:$4 sm:$0xff]   ;;  %v15781_v4 = vld [vmem:[#allocation19 + $0x740] ss:$12 sps:$4 sm:$0xff]  }
0x19c3   : > { %13620 = vmatprep.subr.bf16.mxu0 %v15727_v8  ;;  %v15746_v18 = vld [vmem:[#allocation19 + $0x424] ss:$12 sps:$4 sm:$0xff]   ;;  %v15744_v25 = vld [vmem:[#allocation19 + $0x420] ss:$12 sps:$4 sm:$0xff]   ;;  %v15749_v48 = vld [vmem:[#allocation19 + $0x43c] ss:$12 sps:$4 sm:$0xff]  }
0x19c4   : > { %11368 = vmatmul.mubr.bf16.gmra.mrb[148].mxu1 %v18792_v53  ;;  %v15762_v53 = vld [vmem:[#allocation19 + $0x620] ss:$12 sps:$4 sm:$0xff]   ;;  %v15786_v49 = vld [vmem:[#allocation19 + $0x758] ss:$12 sps:$4 sm:$0xff]  }
0x19c5   : > { %11391 = vmatpush1.bf16.msra.mxu1 %v15724_v6  ;;  %11410 = vmatprep.mubr.bf16.mxu1 %v18845_v20  ;;  %v15735_v20 = vld [vmem:[#allocation19 + $0x3d8] ss:$12 sps:$4 sm:$0xff]   ;;  %v15782_v41 = vld [vmem:[#allocation19 + $0x680] ss:$12 sps:$4 sm:$0xff]   ;;  %v15791_v6 = vld [vmem:[#allocation19 + $0x770] ss:$12 sps:$4 sm:$0xff]  }
0x19c6   : > { %13621 = vmatpush3.bf16.msra.mxu0 %v15728_v19  ;;  %11392 = vmatprep.subr.bf16.mxu1 %v15731_v37  ;;  %v15747_v3 = vld [vmem:[#allocation19 + $0x438] ss:$12 sps:$4 sm:$0xff]   ;;  %v15752_v9 = vld [vmem:[#allocation19 + $0x454] ss:$12 sps:$4 sm:$0xff]   ;;  %v15750_v19 = vld [vmem:[#allocation19 + $0x450] ss:$12 sps:$4 sm:$0xff]  }
0x19c7   : > { %13646 = vmatprep.subr.bf16.mxu0 %v15756_v42  ;;  %v15787_v8 = vld [vmem:[#allocation19 + $0x698] ss:$12 sps:$4 sm:$0xff]   ;;  %v15792_v42 = vld [vmem:[#allocation19 + $0x6b0] ss:$12 sps:$4 sm:$0xff]  }
0x19c8   : > { %v15755_v37 = vld [vmem:[#allocation19 + $0x46c] ss:$12 sps:$4 sm:$0xff]  }
0x19c9   : > { %11393 = vmatpush1.bf16.msra.mxu1 %v15729_v23  ;;  %11898 = vmatmul.mubr.bf16.vlgmr.msra.gmra.mrb[232].mxu0 %v18843_v50  ;;  %v15796_v23 = vld [vmem:[#allocation19 + $0x848] ss:$12 sps:$4 sm:$0xff]  }
0x19ca   : > { %11905 = vmatprep.mubr.bf16.mxu0 %v18867_v26  ;;  %11394 = vmatprep.subr.bf16.mxu1 %v15734_v24  ;;  %v15753_v24 = vld [vmem:[#allocation19 + $0x468] ss:$12 sps:$4 sm:$0xff]  }
0x19cb   : > { %13647 = vmatpush3.bf16.msra.mxu0 %v15757_v51  ;;  %v15760_v51 = vld [vmem:[#allocation19 + $0x484] ss:$12 sps:$4 sm:$0xff]  }
0x19cc   : > { %13648 = vmatprep.subr.bf16.mxu0 %v15761_v10  ;;  %v15758_v10 = vld [vmem:[#allocation19 + $0x480] ss:$12 sps:$4 sm:$0xff]  }
0x19cd   : > { %11395 = vmatpush1.bf16.msra.mxu1 %v15732_v63  ;;  %v15765_v63 = vld [vmem:[#allocation19 + $0x49c] ss:$12 sps:$4 sm:$0xff]  }
0x19ce   : > { %11396 = vmatprep.subr.bf16.mxu1 %v15737_v45  ;;  %v15763_v45 = vld [vmem:[#allocation19 + $0x498] ss:$12 sps:$4 sm:$0xff]  }
0x19cf   : > { %13649 = vmatpush3.bf16.msra.mxu0 %v15762_v53  ;;  %v15770_v53 = vld [vmem:[#allocation19 + $0x4b4] ss:$12 sps:$4 sm:$0xff]  }
0x19d0   : > { %13650 = vmatprep.subr.bf16.mxu0 %v15766_v43  ;;  %v15768_v43 = vld [vmem:[#allocation19 + $0x4b0] ss:$12 sps:$4 sm:$0xff]  }
0x19d1   : > { %11397 = vmatpush1.bf16.msra.mxu1 %v15735_v20  ;;  %11906 = vmatmul.mubr.bf16.gmra.mrb[236].mxu0 %v18862_v30  ;;  %v15775_v20 = vld [vmem:[#allocation19 + $0x4cc] ss:$12 sps:$4 sm:$0xff]  }
0x19d2   : > { %11913 = vmatprep.mubr.bf16.mxu0 %v18887_v16  ;;  %11398 = vmatprep.subr.bf16.mxu1 %v15740_v39  ;;  %v15773_v39 = vld [vmem:[#allocation19 + $0x4c8] ss:$12 sps:$4 sm:$0xff]  }
0x19d3   : > { %13651 = vmatpush3.bf16.msra.mxu0 %v15767_v57  ;;  %v15780_v57 = vld [vmem:[#allocation19 + $0x4e4] ss:$12 sps:$4 sm:$0xff]  }
0x19d4   : > { %13652 = vmatprep.subr.bf16.mxu0 %v15771_v14  ;;  %v6772_v14 = vld [vmem:[#allocation17 + $0x8] sm:$0xf] }
0x19d5   : > { %11399 = vmatpush1.bf16.msra.mxu1 %v15738_v27  ;;  %v18926_v27 = vrot.slane %v6772_v14, %v19323_v13 }
0x19d6   : > { %11400 = vmatprep.subr.bf16.mxu1 %v15743_v0  ;;  %v18930_v0 = vrot.slane %v6772_v14, %v19325_v56 }
0x19d7   : > { %13653 = vmatpush3.bf16.msra.mxu0 %v15772_v2  ;;  %v15783_v2 = vld [vmem:[#allocation19 + $0x4f8] ss:$12 sps:$4 sm:$0xff]  }
0x19d8   : > { %13654 = vmatprep.subr.bf16.mxu0 %v15776_v55 }
0x19d9   : > { %11401 = vmatpush1.bf16.msra.mxu1 %v15741_v34  ;;  %11914 = vmatmul.mubr.bf16.gmra.mrb[240].mxu0 %v18882_v59  ;;  %v15790_v34 = vld [vmem:[#allocation19 + $0x514] ss:$12 sps:$4 sm:$0xff]  }
0x19da   : > { %11921 = vmatprep.mubr.bf16.mxu0 %v18907_v22  ;;  %11402 = vmatprep.subr.bf16.mxu1 %v15746_v18 }
0x19db   : > { %13655 = vmatpush3.bf16.msra.mxu0 %v15777_v17 }
0x19dc   : > { %13656 = vmatprep.subr.bf16.mxu0 %v15781_v4 }
0x19dd   : > { %11403 = vmatpush1.bf16.msra.mxu1 %v15744_v25 }
0x19de   : > { %11404 = vmatprep.subr.bf16.mxu1 %v15749_v48 }
0x19df   : > { %13657 = vmatpush3.bf16.msra.mxu0 %v15782_v41 }
0x19e0   : > { %13658 = vmatprep.subr.bf16.mxu0 %v15786_v49 }
0x19e1   : > { %11405 = vmatpush1.bf16.msra.mxu1 %v15747_v3  ;;  %11922 = vmatmul.mubr.bf16.gmra.mrb[244].mxu0 %v18902_v28  ;;  %v15788_v3 = vld [vmem:[#allocation19 + $0x510] ss:$12 sps:$4 sm:$0xff]  }
0x19e2   : > { %11406 = vmatprep.subr.bf16.mxu1 %v15752_v9 }
0x19e3   : > { %13659 = vmatpush3.bf16.msra.mxu0 %v15787_v8 }
0x19e4   : > { %13660 = vmatprep.subr.bf16.mxu0 %v15791_v6 }
0x19e5   : > { %11407 = vmatpush1.bf16.msra.mxu1 %v15750_v19  ;;  %v15795_v19 = vld [vmem:[#allocation19 + $0x52c] ss:$12 sps:$4 sm:$0xff]  }
0x19e6   : > { %11408 = vmatprep.subr.bf16.mxu1 %v15755_v37 }
0x19e7   : > { %13661 = vmatpush3.bf16.msra.mxu0 %v15792_v42 }
0x19e8   : > { %13686 = vmatprep.subr.bf16.mxu0 %v15796_v23 }
0x19e9   : > { %11409 = vmatpush1.bf16.msra.mxu1 %v15753_v24 }
0x19ea   : > { %11451 = vmatprep.subr.bf16.mxu1 %v15760_v51 }
0x19ec   : > { %11411 = vmatmul.mubr.bf16.vlgmr.msra.gmra.mrb[136].mxu1 %v18841_v61  ;;  %v15778_v61 = vld [vmem:[#allocation19 + $0x4e0] ss:$12 sps:$4 sm:$0xff]  }
0x19ed   : > { %11420 = vmatprep.mubr.bf16.mxu1 %v18864_v62  ;;  %11452 = vmatpush1.bf16.msra.mxu1 %v15758_v10  ;;  %v15785_v62 = vld [vmem:[#allocation19 + $0x4fc] ss:$12 sps:$4 sm:$0xff]  }
0x19ee   : > { %11453 = vmatprep.subr.bf16.mxu1 %v15765_v63 }
0x19f1   : > { %11454 = vmatpush1.bf16.msra.mxu1 %v15763_v45 }
0x19f2   : > { %11455 = vmatprep.subr.bf16.mxu1 %v15770_v53 }
0x19f4   : > { %11421 = vmatmul.mubr.bf16.gmra.mrb[140].mxu1 %v18859_v58  ;;  %v18933_v58 = vrot.slane %v6772_v14, %v19324_v12 }
0x19f5   : > { %11430 = vmatprep.mubr.bf16.mxu1 %v18884_v15  ;;  %11456 = vmatpush1.bf16.msra.mxu1 %v15768_v43  ;;  %v18938_v15 = vrot.slane %v6772_v14, %v6789_v38 }
0x19f6   : > { %11457 = vmatprep.subr.bf16.mxu1 %v15775_v20  ;;  %v15793_v20 = vld [vmem:[#allocation19 + $0x528] ss:$12 sps:$4 sm:$0xff]  }
0x19f9   : > { %11458 = vmatpush1.bf16.msra.mxu1 %v15773_v39 }
0x19fa   : > { %11459 = vmatprep.subr.bf16.mxu1 %v15780_v57 }
0x19fc   : > { %11431 = vmatmul.mubr.bf16.gmra.mrb[144].mxu1 %v18879_v31 }
0x19fd   : > { %11440 = vmatprep.mubr.bf16.mxu1 %v18904_v7  ;;  %11460 = vmatpush1.bf16.msra.mxu1 %v15778_v61  ;;  %v15797_v61 = vld [vmem:[#allocation19 + $0x788] ss:$12 sps:$4 sm:$0xff]  }
0x19fe   : > { %v8966_v55 = vpop.f32.mrb[120].mxu1  ;;  %11461 = vmatprep.subr.bf16.mxu1 %v15785_v62  ;;  %v15800_v62 = vld [vmem:[#allocation19 + $0x544] ss:$12 sps:$4 sm:$0xff]  }
0x19ff   : > { %v14118_v18 = vadd.f32 %v8966_v55, %v18926_v27  ;;  %v9112_v31 = vpop.f32.mrb[168].mxu0  ;;  %v8968_v17 = vpop.f32.mrb[121].mxu1 }
0x1a00   : > { %v14134_v4 = vadd.f32 %v9112_v31, %v18930_v0  ;;  %v14119_v25 = vadd.f32 %v8968_v17, %v18933_v58  ;;  %v9114_v48 = vpop.f32.mrb[169].mxu0  ;;  %v8970_v41 = vpop.f32.mrb[122].mxu1 }
0x1a01   : > { %v14135_v7 = vadd.f32 %v9114_v48, %v18938_v15  ;;  %v14120_v40 = vadd.f32 %v8970_v41, %v18926_v27  ;;  %v9116_v38 = vpop.f32.mrb[170].mxu0  ;;  %11462 = vmatpush1.bf16.msra.mxu1 %v15783_v2  ;;  %v8972_v49 = vpop.f32.mrb[123].mxu1  ;;  %v9159_v37 = vmax.f32 %v14118_v18, 0.0  ;;  %v15801_v18 = vld [vmem:[#allocation19 + $0x860] ss:$12 sps:$4 sm:$0xff]  }
0x1a02   : > { %v14136_v9 = vadd.f32 %v9116_v38, %v18930_v0  ;;  %v14121_v8 = vadd.f32 %v8972_v49, %v18933_v58  ;;  %v9118_v6 = vpop.f32.mrb[171].mxu0  ;;  %11463 = vmatprep.subr.bf16.mxu1 %v15790_v34  ;;  %v9161_v24 = vmax.f32 %v14134_v4, 0.0  ;;  %v9160_v51 = vmax.f32 %v14119_v25, 0.0 }
0x1a03   : > { %v9171_v42 = vmax.f32 %v14120_v40, 0.0  ;;  %v14137_v23 = vadd.f32 %v9118_v6, %v18938_v15  ;;  %v9162_v45 = vmax.f32 %v14135_v7, 0.0  ;;  %v15798_v40 = vld [vmem:[#allocation19 + $0x540] ss:$12 sps:$4 sm:$0xff]  }
0x1a04   : > { %v9173_v10 = vmax.f32 %v14136_v9, 0.0  ;;  %v9172_v63 = vmax.f32 %v14121_v8, 0.0  ;;  %11441 = vmatmul.mubr.bf16.gmra.mrb[148].mxu1 %v18899_v5  ;;  %v15802_v9 = vld [vmem:[#allocation19 + $0x7a0] ss:$12 sps:$4 sm:$0xff]   ;;  %v15805_v8 = vld [vmem:[#allocation19 + $0x55c] ss:$12 sps:$4 sm:$0xff]  }
0x1a05   : > { %v18949_v53 = vpack.c.bf16 %v9171_v42, %v9159_v37  ;;  %v9174_v43 = vmax.f32 %v14137_v23, 0.0  ;;  %11464 = vmatpush1.bf16.msra.mxu1 %v15788_v3  ;;  %11483 = vmatprep.mubr.bf16.mxu1 %v18847_v46  ;;  %v15806_v42 = vld [vmem:[#allocation19 + $0x878] ss:$12 sps:$4 sm:$0xff]  }
0x1a06   : > { %v18952_v39 = vpack.c.bf16 %v9173_v10, %v9161_v24  ;;  %v18954_v57 = vpack.c.bf16 %v9172_v63, %v9160_v51  ;;  %v8976_v14 = vpop.f32.mrb[124].mxu1  ;;  %11465 = vmatprep.subr.bf16.mxu1 %v15795_v19 }
0x1a07   : > { %v18956_v2 = vpack.c.bf16 %v9174_v43, %v9162_v45  ;;  %v14122_v5 = vadd.f32 %v8976_v14, %v18926_v27  ;;  %v9122_v55 = vpop.f32.mrb[172].mxu0  ;;  %v8978_v34 = vpop.f32.mrb[125].mxu1 }
0x1a08   : > { %v14138_v31 = vadd.f32 %v9122_v55, %v18930_v0  ;;  %v14123_v46 = vadd.f32 %v8978_v34, %v18933_v58  ;;  %v9124_v17 = vpop.f32.mrb[173].mxu0  ;;  %v8980_v4 = vpop.f32.mrb[126].mxu1  ;;  %11962 = vmatprep.mubr.bf16.mxu0 %v18954_v57  ;;  %v15810_v55 = vld [vmem:[#allocation19 + $0x574] ss:$12 sps:$4 sm:$0xff]  }
0x1a09   : > { %v14139_v25 = vadd.f32 %v9124_v17, %v18938_v15  ;;  %v14124_v48 = vadd.f32 %v8980_v4, %v18926_v27  ;;  %v9126_v41 = vpop.f32.mrb[174].mxu0  ;;  %11466 = vmatpush1.bf16.msra.mxu1 %v15793_v20  ;;  %v8982_v7 = vpop.f32.mrb[127].mxu1  ;;  %11963 = vmatmul.mubr.bf16.vlgmr.msra.gmra.mrb[248].mxu0 %v18949_v53  ;;  %v9183_v6 = vmax.f32 %v14122_v5, 0.0  ;;  %v15803_v20 = vld [vmem:[#allocation19 + $0x558] ss:$12 sps:$4 sm:$0xff]  }
0x1a0a   : > { %v14140_v38 = vadd.f32 %v9126_v41, %v18930_v0  ;;  %v14125_v49 = vadd.f32 %v8982_v7, %v18933_v58  ;;  %v9128_v3 = vpop.f32.mrb[175].mxu0  ;;  %13687 = vmatpush3.bf16.msra.mxu0 %v15797_v61  ;;  %11467 = vmatprep.subr.bf16.mxu1 %v15800_v62  ;;  %v9185_v23 = vmax.f32 %v14138_v31, 0.0  ;;  %v9184_v24 = vmax.f32 %v14123_v46, 0.0  ;;  %v15807_v5 = vld [vmem:[#allocation19 + $0x7b8] ss:$12 sps:$4 sm:$0xff]  }
0x1a0b   : > { %v9195_v19 = vmax.f32 %v14124_v48, 0.0  ;;  %v14141_v37 = vadd.f32 %v9128_v3, %v18938_v15  ;;  %13688 = vmatprep.subr.bf16.mxu0 %v15801_v18  ;;  %v9186_v63 = vmax.f32 %v14139_v25, 0.0  ;;  %v15811_v17 = vld [vmem:[#allocation19 + $0x890] ss:$12 sps:$4 sm:$0xff]  }
0x1a0c   : > { %v9197_v51 = vmax.f32 %v14140_v38, 0.0  ;;  %v9196_v10 = vmax.f32 %v14125_v49, 0.0  ;;  %v15808_v3 = vld [vmem:[#allocation19 + $0x570] ss:$12 sps:$4 sm:$0xff]  }
0x1a0d   : > { %v18968_v45 = vpack.c.bf16 %v9195_v19, %v9183_v6  ;;  %v9198_v43 = vmax.f32 %v14141_v37, 0.0  ;;  %11468 = vmatpush1.bf16.msra.mxu1 %v15798_v40  ;;  %v15812_v19 = vld [vmem:[#allocation19 + $0x7d0] ss:$12 sps:$4 sm:$0xff]   ;;  %v15815_v37 = vld [vmem:[#allocation19 + $0x58c] ss:$12 sps:$4 sm:$0xff]  }
0x1a0e   : > { %v18970_v14 = vpack.c.bf16 %v9197_v51, %v9185_v23  ;;  %v18972_v61 = vpack.c.bf16 %v9196_v10, %v9184_v24  ;;  %v8986_v62 = vpop.f32.mrb[128].mxu1  ;;  %13689 = vmatpush3.bf16.msra.mxu0 %v15802_v9  ;;  %11469 = vmatprep.subr.bf16.mxu1 %v15805_v8  ;;  %v15816_v51 = vld [vmem:[#allocation19 + $0x8a8] ss:$12 sps:$4 sm:$0xff]  }
0x1a0f   : > { %v18974_v34 = vpack.c.bf16 %v9198_v43, %v9186_v63  ;;  %v14126_v18 = vadd.f32 %v8986_v62, %v18926_v27  ;;  %v9132_v31 = vpop.f32.mrb[176].mxu0  ;;  %v8988_v46 = vpop.f32.mrb[129].mxu1  ;;  %13690 = vmatprep.subr.bf16.mxu0 %v15806_v42 }
0x1a10   : > { %v14142_v4 = vadd.f32 %v9132_v31, %v18930_v0  ;;  %v14127_v25 = vadd.f32 %v8988_v46, %v18933_v58  ;;  %v9134_v48 = vpop.f32.mrb[177].mxu0  ;;  %v8990_v41 = vpop.f32.mrb[130].mxu1  ;;  %11970 = vmatprep.mubr.bf16.mxu0 %v18972_v61 }
0x1a11   : > { %v14143_v7 = vadd.f32 %v9134_v48, %v18938_v15  ;;  %v14128_v40 = vadd.f32 %v8990_v41, %v18926_v27  ;;  %v9136_v38 = vpop.f32.mrb[178].mxu0  ;;  %11470 = vmatpush1.bf16.msra.mxu1 %v15803_v20  ;;  %v8992_v49 = vpop.f32.mrb[131].mxu1  ;;  %11971 = vmatmul.mubr.bf16.gmra.mrb[252].mxu0 %v18968_v45  ;;  %v9207_v42 = vmax.f32 %v14126_v18, 0.0  ;;  %v15813_v48 = vld [vmem:[#allocation19 + $0x588] ss:$12 sps:$4 sm:$0xff]  }
0x1a12   : > { %v14144_v9 = vadd.f32 %v9136_v38, %v18930_v0  ;;  %v14129_v8 = vadd.f32 %v8992_v49, %v18933_v58  ;;  %v9138_v6 = vpop.f32.mrb[179].mxu0  ;;  %13691 = vmatpush3.bf16.msra.mxu0 %v15807_v5  ;;  %11471 = vmatprep.subr.bf16.mxu1 %v15810_v55  ;;  %v9209_v10 = vmax.f32 %v14142_v4, 0.0  ;;  %v9208_v63 = vmax.f32 %v14127_v25, 0.0  ;;  %v15817_v41 = vld [vmem:[#allocation19 + $0x7e8] ss:$12 sps:$4 sm:$0xff]  }
0x1a13   : > { %v9219_v23 = vmax.f32 %v14128_v40, 0.0  ;;  %v14145_v24 = vadd.f32 %v9138_v6, %v18938_v15  ;;  %13692 = vmatprep.subr.bf16.mxu0 %v15811_v17  ;;  %v9210_v62 = vmax.f32 %v14143_v7, 0.0  ;;  %v15820_v17 = vld [vmem:[#allocation19 + $0x5a4] ss:$12 sps:$4 sm:$0xff]   ;;  %v15821_v38 = vld [vmem:[#allocation19 + $0x8c0] ss:$12 sps:$4 sm:$0xff]  }
0x1a14   : > { %v9221_v43 = vmax.f32 %v14144_v9, 0.0  ;;  %v9220_v20 = vmax.f32 %v14129_v8, 0.0 }
0x1a15   : > { %v18986_v31 = vpack.c.bf16 %v9219_v23, %v9207_v42  ;;  %v9222_v46 = vmax.f32 %v14145_v24, 0.0  ;;  %11472 = vmatpush1.bf16.msra.mxu1 %v15808_v3  ;;  %v15818_v23 = vld [vmem:[#allocation19 + $0x5a0] ss:$12 sps:$4 sm:$0xff]  }
0x1a16   : > { %v18988_v5 = vpack.c.bf16 %v9221_v43, %v9209_v10  ;;  %v18990_v55 = vpack.c.bf16 %v9220_v20, %v9208_v63  ;;  %v8996_v18 = vpop.f32.mrb[132].mxu1  ;;  %13693 = vmatpush3.bf16.msra.mxu0 %v15812_v19  ;;  %11473 = vmatprep.subr.bf16.mxu1 %v15815_v37  ;;  %v15822_v63 = vld [vmem:[#allocation19 + $0x800] ss:$12 sps:$4 sm:$0xff]   ;;  %v15825_v43 = vld [vmem:[#allocation19 + $0x5bc] ss:$12 sps:$4 sm:$0xff]  }
0x1a17   : > { %v18992_v40 = vpack.c.bf16 %v9222_v46, %v9210_v62  ;;  %v14130_v4 = vadd.f32 %v8996_v18, %v18926_v27  ;;  %v9142_v25 = vpop.f32.mrb[180].mxu0  ;;  %v8998_v7 = vpop.f32.mrb[133].mxu1  ;;  %13694 = vmatprep.subr.bf16.mxu0 %v15816_v51 }
0x1a18   : > { %v14146_v49 = vadd.f32 %v9142_v25, %v18930_v0  ;;  %v14131_v3 = vadd.f32 %v8998_v7, %v18933_v58  ;;  %v9144_v9 = vpop.f32.mrb[181].mxu0  ;;  %v9000_v8 = vpop.f32.mrb[134].mxu1  ;;  %11978 = vmatprep.mubr.bf16.mxu0 %v18990_v55 }
0x1a19   : > { %v14147_v6 = vadd.f32 %v9144_v9, %v18938_v15  ;;  %v14132_v19 = vadd.f32 %v9000_v8, %v18926_v27  ;;  %v9146_v37 = vpop.f32.mrb[182].mxu0  ;;  %11474 = vmatpush1.bf16.msra.mxu1 %v15813_v48  ;;  %v9002_v42 = vpop.f32.mrb[135].mxu1  ;;  %11979 = vmatmul.mubr.bf16.gmra.mrb[0].mxu0 %v18986_v31  ;;  %v9231_v20 = vmax.f32 %v14130_v4, 0.0  ;;  %v15826_v27 = vld [vmem:[#allocation19 + $0x8d8] ss:$12 sps:$4 sm:$0xff]  }
0x1a1a   : > { %v14148_v24 = vadd.f32 %v9146_v37, %v18930_v0  ;;  %v14133_v51 = vadd.f32 %v9002_v42, %v18933_v58  ;;  %v9148_v10 = vpop.f32.mrb[183].mxu0  ;;  %13695 = vmatpush3.bf16.msra.mxu0 %v15817_v41  ;;  %11475 = vmatprep.subr.bf16.mxu1 %v15820_v17  ;;  %v9233_v48 = vmax.f32 %v14146_v49, 0.0  ;;  %v9232_v18 = vmax.f32 %v14131_v3, 0.0  ;;  %v15823_v58 = vld [vmem:[#allocation19 + $0x5b8] ss:$12 sps:$4 sm:$0xff]  }
0x1a1b   : > { %v9243_v62 = vmax.f32 %v14132_v19, 0.0  ;;  %v14149_v46 = vadd.f32 %v9148_v10, %v18938_v15  ;;  %13696 = vmatprep.subr.bf16.mxu0 %v15821_v38  ;;  %v9234_v9 = vmax.f32 %v14147_v6, 0.0  ;;  %v15827_v4 = vld [vmem:[#allocation19 + $0x818] ss:$12 sps:$4 sm:$0xff]   ;;  %v15830_v49 = vld [vmem:[#allocation19 + $0x5d4] ss:$12 sps:$4 sm:$0xff]  }
0x1a1c   : > { %v9245_v25 = vmax.f32 %v14148_v24, 0.0  ;;  %v9244_v7 = vmax.f32 %v14133_v51, 0.0  ;;  %v15831_v3 = vld [vmem:[#allocation19 + $0x8f0] ss:$12 sps:$4 sm:$0xff]   ;;  %v15835_v51 = vld [vmem:[#allocation19 + $0x5ec] ss:$12 sps:$4 sm:$0xff]  }
0x1a1d   : > { %v19004_v8 = vpack.c.bf16 %v9243_v62, %v9231_v20  ;;  %v9246_v0 = vmax.f32 %v14149_v46, 0.0  ;;  %11476 = vmatpush1.bf16.msra.mxu1 %v15818_v23  ;;  %v15828_v42 = vld [vmem:[#allocation19 + $0x5d0] ss:$12 sps:$4 sm:$0xff]  }
0x1a1e   : > { %v19006_v41 = vpack.c.bf16 %v9245_v25, %v9233_v48  ;;  %v19008_v17 = vpack.c.bf16 %v9244_v7, %v9232_v18  ;;  %13697 = vmatpush3.bf16.msra.mxu0 %v15822_v63  ;;  %11477 = vmatprep.subr.bf16.mxu1 %v15825_v43  ;;  %v15832_v24 = vld [vmem:[#allocation19 + $0x830] ss:$12 sps:$4 sm:$0xff]   ;;  %v15833_v63 = vld [vmem:[#allocation19 + $0x5e8] ss:$12 sps:$4 sm:$0xff]   ;;  %v15836_v48 = vld [vmem:[#allocation19 + $0x600] ss:$12 sps:$4 sm:$0xff]  }
0x1a1f   : > { %v19010_v15 = vpack.c.bf16 %v9246_v0, %v9234_v9  ;;  %v13502_v38 = vpop.f32.mrb[184].mxu0  ;;  %13698 = vmatprep.subr.bf16.mxu0 %v15826_v27  ;;  %v15838_v43 = vld [vmem:[#allocation19 + $0x604] ss:$12 sps:$4 sm:$0xff]   ;;  %v15841_v25 = vld [vmem:[#allocation19 + $0x61c] ss:$12 sps:$4 sm:$0xff]  }
0x1a20   : > { %v13503_v19 = vpop.f32.mrb[185].mxu0  ;;  %11986 = vmatprep.mubr.bf16.mxu0 %v19008_v17  ;;  %v15839_v9 = vld [vmem:[#allocation19 + $0x618] ss:$12 sps:$4 sm:$0xff]   ;;  %v15844_v0 = vld [vmem:[#allocation19 + $0x634] ss:$12 sps:$4 sm:$0xff]  }
0x1a21   : > { %v19013_v6 = vadd.f32 %v13503_v19, %v13502_v38  ;;  %11478 = vmatpush1.bf16.msra.mxu1 %v15823_v58  ;;  %v13505_v37 = vpop.f32.mrb[186].mxu0  ;;  %11987 = vmatmul.mubr.bf16.gmra.mrb[4].mxu0 %v19004_v8 }
0x1a22   : > { %v13506_v23 = vpop.f32.mrb[187].mxu0  ;;  %13699 = vmatpush3.bf16.msra.mxu0 %v15827_v4  ;;  %12027 = vmatprep.mubr.bf16.mxu0 %v18956_v2 }
0x1a23   : > { %v19017_v10 = vadd.f32 %v13506_v23, %v13505_v37  ;;  %11479 = vmatprep.subr.bf16.mxu1 %v15830_v49  ;;  %13700 = vmatprep.subr.bf16.mxu0 %v15831_v3  ;;  %v15842_v3 = vld [vmem:[#allocation19 + $0x630] ss:$12 sps:$4 sm:$0xff]  }
0x1a25   : > { %11480 = vmatpush1.bf16.msra.mxu1 %v15828_v42  ;;  %v15850_v42 = vld [vmem:[#allocation19 + $0x664] ss:$12 sps:$4 sm:$0xff]  }
0x1a26   : > { %13701 = vmatpush3.bf16.msra.mxu0 %v15832_v24  ;;  %11481 = vmatprep.subr.bf16.mxu1 %v15835_v51 }
0x1a27   : > { %v13508_v20 = vpop.f32.mrb[188].mxu0 }
0x1a28   : > { %v13509_v62 = vpop.f32.mrb[189].mxu0 }
0x1a29   : > { %v19019_v46 = vadd.f32 %v13509_v62, %v13508_v20  ;;  %11482 = vmatpush1.bf16.msra.mxu1 %v15833_v63  ;;  %v13511_v27 = vpop.f32.mrb[190].mxu0  ;;  %12028 = vmatmul.mubr.bf16.vlgmr.msra.gmra.mrb[8].mxu0 %v18952_v39  ;;  %v19038_v20 = vld [vmem:[#allocation20] sm:$0x7] }
0x1a2a   : > { %v13512_v18 = vpop.f32.mrb[191].mxu0  ;;  %12035 = vmatprep.mubr.bf16.mxu0 %v18974_v34  ;;  %11524 = vmatprep.subr.bf16.mxu1 %v15838_v43  ;;  %v15848_v43 = vld [vmem:[#allocation19 + $0x660] ss:$12 sps:$4 sm:$0xff]  }
0x1a2b   : > { %v19023_v7 = vadd.f32 %v13512_v18, %v13511_v27  ;;  %v19046_v27 = vrot.slane %v19038_v20, %v19325_v56  ;;  %v15856_v18 = vld [vmem:[#allocation19 + $0x694] ss:$12 sps:$4 sm:$0xff]   ;;  %v15859_v56 = vld [vmem:[#allocation19 + $0x6ac] ss:$12 sps:$4 sm:$0xff]  }
0x1a2c   : > { %11484 = vmatmul.mubr.bf16.vlgmr.msra.gmra.mrb[136].mxu1 %v18843_v50  ;;  %v15847_v50 = vld [vmem:[#allocation19 + $0x64c] ss:$12 sps:$4 sm:$0xff]  }
0x1a2d   : > { %11493 = vmatprep.mubr.bf16.mxu1 %v18867_v26  ;;  %11525 = vmatpush1.bf16.msra.mxu1 %v15836_v48  ;;  %v15845_v26 = vld [vmem:[#allocation19 + $0x648] ss:$12 sps:$4 sm:$0xff]   ;;  %v15851_v48 = vld [vmem:[#allocation19 + $0x678] ss:$12 sps:$4 sm:$0xff]  }
0x1a2e   : > { %11526 = vmatprep.subr.bf16.mxu1 %v15841_v25 }
0x1a2f   : > { %v13514_v58 = vpop.f32.mrb[192].mxu0 }
0x1a30   : > { %v13515_v4 = vpop.f32.mrb[193].mxu0 }
0x1a31   : > { %v19027_v38 = vadd.f32 %v13515_v4, %v13514_v58  ;;  %11527 = vmatpush1.bf16.msra.mxu1 %v15839_v9  ;;  %v13517_v49 = vpop.f32.mrb[194].mxu0  ;;  %12036 = vmatmul.mubr.bf16.gmra.mrb[12].mxu0 %v18970_v14 }
0x1a32   : > { %v13518_v19 = vpop.f32.mrb[195].mxu0  ;;  %12043 = vmatprep.mubr.bf16.mxu0 %v18992_v40  ;;  %11528 = vmatprep.subr.bf16.mxu1 %v15844_v0  ;;  %v11705_v0 = vadd.f32 %v19013_v6, %v19046_v27  ;;  %v15857_v6 = vld [vmem:[#allocation19 + $0x6a8] ss:$12 sps:$4 sm:$0xff]  }
0x1a33   : > { %v19031_v37 = vadd.f32 %v13518_v19, %v13517_v49 }
0x1a34   : > { %11494 = vmatmul.mubr.bf16.gmra.mrb[140].mxu1 %v18862_v30  ;;  %v15853_v30 = vld [vmem:[#allocation19 + $0x67c] ss:$12 sps:$4 sm:$0xff]  }
0x1a35   : > { %11503 = vmatprep.mubr.bf16.mxu1 %v18887_v16  ;;  %11529 = vmatpush1.bf16.msra.mxu1 %v15842_v3 }
0x1a36   : > { %11530 = vmatprep.subr.bf16.mxu1 %v15847_v50 }
0x1a37   : > { %v13520_v23 = vpop.f32.mrb[196].mxu0 }
0x1a38   : > { %v13521_v24 = vpop.f32.mrb[197].mxu0 }
0x1a39   : > { %v19035_v51 = vadd.f32 %v13521_v24, %v13520_v23  ;;  %11531 = vmatpush1.bf16.msra.mxu1 %v15845_v26  ;;  %v13523_v63 = vpop.f32.mrb[198].mxu0  ;;  %12044 = vmatmul.mubr.bf16.gmra.mrb[16].mxu0 %v18988_v5  ;;  %v15862_v26 = vld [vmem:[#allocation19 + $0x6c4] ss:$12 sps:$4 sm:$0xff]   ;;  %v11713_v24 = vadd.f32 %v19019_v46, %v19046_v27 }
0x1a3a   : > { %v13524_v62 = vpop.f32.mrb[199].mxu0  ;;  %12051 = vmatprep.mubr.bf16.mxu0 %v19010_v15  ;;  %11532 = vmatprep.subr.bf16.mxu1 %v15850_v42 }
0x1a3b   : > { %v19041_v16 = vadd.f32 %v13524_v62, %v13523_v63 }
0x1a3c   : > { %11504 = vmatmul.mubr.bf16.gmra.mrb[144].mxu1 %v18882_v59  ;;  %v15854_v59 = vld [vmem:[#allocation19 + $0x690] ss:$12 sps:$4 sm:$0xff]  }
0x1a3d   : > { %11513 = vmatprep.mubr.bf16.mxu1 %v18907_v22  ;;  %11533 = vmatpush1.bf16.msra.mxu1 %v15848_v43  ;;  %v11708_v22 = vadd.f32 %v19017_v10, %v19046_v27  ;;  %v15860_v43 = vld [vmem:[#allocation19 + $0x6c0] ss:$12 sps:$4 sm:$0xff]  }
0x1a3e   : > { %11534 = vmatprep.subr.bf16.mxu1 %v15853_v30  ;;  %v11716_v30 = vadd.f32 %v19023_v7, %v19046_v27  ;;  %v15871_v7 = vld [vmem:[#allocation19 + $0x70c] ss:$12 sps:$4 sm:$0xff]  }
0x1a3f   : > { %v13542_v25 = vpop.f32.mrb[200].mxu0 }
0x1a40   : > { %v13543_v9 = vpop.f32.mrb[201].mxu0 }
0x1a41   : > { %v13544_v58 = vadd.f32 %v13543_v9, %v13542_v25  ;;  %11535 = vmatpush1.bf16.msra.mxu1 %v15851_v48  ;;  %v13545_v4 = vpop.f32.mrb[202].mxu0  ;;  %12052 = vmatmul.mubr.bf16.gmra.mrb[20].mxu0 %v19006_v41  ;;  %v15863_v25 = vld [vmem:[#allocation19 + $0x6d8] ss:$12 sps:$4 sm:$0xff]   ;;  %v15868_v9 = vld [vmem:[#allocation19 + $0x6f4] ss:$12 sps:$4 sm:$0xff]  }
0x1a42   : > { %v13546_v49 = vpop.f32.mrb[203].mxu0  ;;  %11536 = vmatprep.subr.bf16.mxu1 %v15856_v18 }
0x1a43   : > { %v19054_v3 = vadd.f32 %v13544_v58, %v11705_v0  ;;  %v13547_v19 = vadd.f32 %v13546_v49, %v13545_v4  ;;  %v11721_v58 = vadd.f32 %v19027_v38, %v19046_v27  ;;  %v15866_v49 = vld [vmem:[#allocation19 + $0x6f0] ss:$12 sps:$4 sm:$0xff]  }
0x1a44   : > { %11514 = vmatmul.mubr.bf16.gmra.mrb[148].mxu1 %v18902_v28  ;;  %v15865_v28 = vld [vmem:[#allocation19 + $0x6dc] ss:$12 sps:$4 sm:$0xff]  }
0x1a45   : > { %v19057_v50 = vadd.f32 %v13547_v19, %v11708_v22  ;;  %11537 = vmatpush1.bf16.msra.mxu1 %v15854_v59  ;;  %11556 = vmatprep.mubr.bf16.mxu1 %v18954_v57  ;;  %v11724_v22 = vadd.f32 %v19031_v37, %v19046_v27  ;;  %v15877_v37 = vld [vmem:[#allocation19 + $0x73c] ss:$12 sps:$4 sm:$0xff]  }
0x1a46   : > { %11538 = vmatprep.subr.bf16.mxu1 %v15859_v56 }
0x1a47   : > { %v13548_v42 = vpop.f32.mrb[204].mxu0 }
0x1a48   : > { %v13549_v23 = vpop.f32.mrb[205].mxu0 }
0x1a49   : > { %v13550_v63 = vadd.f32 %v13549_v23, %v13548_v42  ;;  %11539 = vmatpush1.bf16.msra.mxu1 %v15857_v6  ;;  %v13551_v10 = vpop.f32.mrb[206].mxu0  ;;  %v15869_v42 = vld [vmem:[#allocation19 + $0x708] ss:$12 sps:$4 sm:$0xff]   ;;  %v15874_v23 = vld [vmem:[#allocation19 + $0x724] ss:$12 sps:$4 sm:$0xff]  }
0x1a4a   : > { %v13552_v62 = vpop.f32.mrb[207].mxu0  ;;  %11540 = vmatprep.subr.bf16.mxu1 %v15862_v26 }
0x1a4b   : > { %v19064_v48 = vadd.f32 %v13550_v63, %v11713_v24  ;;  %v13553_v57 = vadd.f32 %v13552_v62, %v13551_v10  ;;  %v11729_v63 = vadd.f32 %v19035_v51, %v19046_v27  ;;  %v15872_v62 = vld [vmem:[#allocation19 + $0x720] ss:$12 sps:$4 sm:$0xff]   ;;  %v15878_v51 = vld [vmem:[#allocation19 + $0x750] ss:$12 sps:$4 sm:$0xff]  }
0x1a4d   : > { %v19066_v18 = vadd.f32 %v13553_v57, %v11716_v30  ;;  %11541 = vmatpush1.bf16.msra.mxu1 %v15860_v43  ;;  %v11732_v30 = vadd.f32 %v19041_v16, %v19046_v27  ;;  %v15889_v16 = vld [vmem:[#allocation19 + $0x79c] ss:$12 sps:$4 sm:$0xff]   ;;  %v15887_v27 = vld [vmem:[#allocation19 + $0x798] ss:$12 sps:$4 sm:$0xff]  }
0x1a4e   : > { %11542 = vmatprep.subr.bf16.mxu1 %v15865_v28 }
0x1a4f   : > { %v13554_v46 = vpop.f32.mrb[208].mxu0 }
0x1a50   : > { %v13555_v0 = vpop.f32.mrb[209].mxu0 }
0x1a51   : > { %v13556_v4 = vadd.f32 %v13555_v0, %v13554_v46  ;;  %11543 = vmatpush1.bf16.msra.mxu1 %v15863_v25  ;;  %v13557_v59 = vpop.f32.mrb[210].mxu0  ;;  %v15875_v46 = vld [vmem:[#allocation19 + $0x738] ss:$12 sps:$4 sm:$0xff]   ;;  %v15880_v0 = vld [vmem:[#allocation19 + $0x754] ss:$12 sps:$4 sm:$0xff]  }
0x1a52   : > { %v13558_v56 = vpop.f32.mrb[211].mxu0  ;;  %11544 = vmatprep.subr.bf16.mxu1 %v15868_v9 }
0x1a53   : > { %v19072_v19 = vadd.f32 %v13556_v4, %v11721_v58  ;;  %v13559_v6 = vadd.f32 %v13558_v56, %v13557_v59  ;;  %v15883_v58 = vld [vmem:[#allocation19 + $0x76c] ss:$12 sps:$4 sm:$0xff]   ;;  %v15881_v4 = vld [vmem:[#allocation19 + $0x768] ss:$12 sps:$4 sm:$0xff]   ;;  %v15886_v59 = vld [vmem:[#allocation19 + $0x784] ss:$12 sps:$4 sm:$0xff]  }
0x1a54   : > { %v15892_v56 = vld [vmem:[#allocation19 + $0x7b4] ss:$12 sps:$4 sm:$0xff]  }
0x1a55   : > { %v19074_v26 = vadd.f32 %v13559_v6, %v11724_v22  ;;  %11545 = vmatpush1.bf16.msra.mxu1 %v15866_v49  ;;  %v15884_v49 = vld [vmem:[#allocation19 + $0x780] ss:$12 sps:$4 sm:$0xff]   ;;  %v15893_v6 = vld [vmem:[#allocation19 + $0x7c8] ss:$12 sps:$4 sm:$0xff]  }
0x1a56   : > { %11546 = vmatprep.subr.bf16.mxu1 %v15871_v7  ;;  %v15890_v7 = vld [vmem:[#allocation19 + $0x7b0] ss:$12 sps:$4 sm:$0xff]   ;;  %v15895_v22 = vld [vmem:[#allocation19 + $0x7cc] ss:$12 sps:$4 sm:$0xff]  }
0x1a57   : > { %v13560_v38 = vpop.f32.mrb[212].mxu0 }
0x1a58   : > { %v13561_v24 = vpop.f32.mrb[213].mxu0 }
0x1a59   : > { %v13562_v10 = vadd.f32 %v13561_v24, %v13560_v38  ;;  %11547 = vmatpush1.bf16.msra.mxu1 %v15869_v42  ;;  %v13563_v43 = vpop.f32.mrb[214].mxu0  ;;  %v15898_v42 = vld [vmem:[#allocation19 + $0x7e4] ss:$12 sps:$4 sm:$0xff]  }
0x1a5a   : > { %v13564_v28 = vpop.f32.mrb[215].mxu0  ;;  %11548 = vmatprep.subr.bf16.mxu1 %v15874_v23 }
0x1a5b   : > { %v19080_v57 = vadd.f32 %v13562_v10, %v11729_v63  ;;  %v13565_v25 = vadd.f32 %v13564_v28, %v13563_v43  ;;  %v15904_v10 = vld [vmem:[#allocation19 + $0x814] ss:$12 sps:$4 sm:$0xff]  }
0x1a5d   : > { %v19082_v9 = vadd.f32 %v13565_v25, %v11732_v30  ;;  %11549 = vmatpush1.bf16.msra.mxu1 %v15872_v62 }
0x1a5e   : > { %11550 = vmatprep.subr.bf16.mxu1 %v15877_v37  ;;  %v15902_v37 = vld [vmem:[#allocation19 + $0x810] ss:$12 sps:$4 sm:$0xff]  }
0x1a61   : > { %11551 = vmatpush1.bf16.msra.mxu1 %v15875_v46 }
0x1a62   : > { %11552 = vmatprep.subr.bf16.mxu1 %v15880_v0  ;;  %v15905_v0 = vld [vmem:[#allocation19 + $0x828] ss:$12 sps:$4 sm:$0xff]  }
0x1a65   : > { %11553 = vmatpush1.bf16.msra.mxu1 %v15878_v51  ;;  %v15910_v51 = vld [vmem:[#allocation19 + $0x844] ss:$12 sps:$4 sm:$0xff]  }
0x1a66   : > { %11554 = vmatprep.subr.bf16.mxu1 %v15883_v58 }
0x1a69   : > { %11555 = vmatpush1.bf16.msra.mxu1 %v15881_v4 }
0x1a6a   : > { %11597 = vmatprep.subr.bf16.mxu1 %v15886_v59  ;;  %v15908_v59 = vld [vmem:[#allocation19 + $0x840] ss:$12 sps:$4 sm:$0xff]  }
0x1a6c   : > { %11557 = vmatmul.mubr.bf16.vlgmr.msra.gmra.mrb[136].mxu1 %v18949_v53  ;;  %v15896_v53 = vld [vmem:[#allocation19 + $0x7e0] ss:$12 sps:$4 sm:$0xff]  }
0x1a6d   : > { %11566 = vmatprep.mubr.bf16.mxu1 %v18972_v61  ;;  %11598 = vmatpush1.bf16.msra.mxu1 %v15884_v49  ;;  %v15901_v61 = vld [vmem:[#allocation19 + $0x7fc] ss:$12 sps:$4 sm:$0xff]  }
0x1a6e   : > { %11599 = vmatprep.subr.bf16.mxu1 %v15889_v16 }
0x1a71   : > { %11600 = vmatpush1.bf16.msra.mxu1 %v15887_v27 }
0x1a72   : > { %11601 = vmatprep.subr.bf16.mxu1 %v15892_v56  ;;  %v15911_v56 = vld [vmem:[#allocation19 + $0x858] ss:$12 sps:$4 sm:$0xff]  }
0x1a74   : > { %11567 = vmatmul.mubr.bf16.gmra.mrb[140].mxu1 %v18968_v45  ;;  %v15899_v45 = vld [vmem:[#allocation19 + $0x7f8] ss:$12 sps:$4 sm:$0xff]  }
0x1a75   : > { %11576 = vmatprep.mubr.bf16.mxu1 %v18990_v55  ;;  %11602 = vmatpush1.bf16.msra.mxu1 %v15890_v7 }
0x1a76   : > { %11603 = vmatprep.subr.bf16.mxu1 %v15895_v22  ;;  %v15916_v22 = vld [vmem:[#allocation19 + $0x874] ss:$12 sps:$4 sm:$0xff]  }
0x1a79   : > { %11604 = vmatpush1.bf16.msra.mxu1 %v15893_v6 }
0x1a7a   : > { %11605 = vmatprep.subr.bf16.mxu1 %v15898_v42 }
0x1a7b   : > { %v13582_v23 = vpop.f32.mrb[216].mxu0 }
0x1a7c   : > { %11577 = vmatmul.mubr.bf16.gmra.mrb[144].mxu1 %v18986_v31  ;;  %v13583_v38 = vpop.f32.mrb[217].mxu0  ;;  %v15907_v31 = vld [vmem:[#allocation19 + $0x82c] ss:$12 sps:$4 sm:$0xff]  }
0x1a7d   : > { %11586 = vmatprep.mubr.bf16.mxu1 %v19008_v17  ;;  %11606 = vmatpush1.bf16.msra.mxu1 %v15896_v53  ;;  %v13584_v24 = vadd.f32 %v13583_v38, %v13582_v23  ;;  %v13585_v63 = vpop.f32.mrb[218].mxu0  ;;  %v15919_v53 = vld [vmem:[#allocation19 + $0x88c] ss:$12 sps:$4 sm:$0xff]  }
0x1a7e   : > { %11607 = vmatprep.subr.bf16.mxu1 %v15901_v61  ;;  %v13586_v55 = vpop.f32.mrb[219].mxu0 }
0x1a7f   : > { %v19091_v43 = vadd.f32 %v13584_v24, %v19054_v3  ;;  %v13587_v62 = vadd.f32 %v13586_v55, %v13585_v63  ;;  %v15917_v63 = vld [vmem:[#allocation19 + $0x888] ss:$12 sps:$4 sm:$0xff]   ;;  %v15922_v55 = vld [vmem:[#allocation19 + $0x8a4] ss:$12 sps:$4 sm:$0xff]  }
0x1a81   : > { %v19094_v28 = vadd.f32 %v13587_v62, %v19057_v50  ;;  %11608 = vmatpush1.bf16.msra.mxu1 %v15899_v45 }
0x1a82   : > { %11609 = vmatprep.subr.bf16.mxu1 %v15904_v10 }
0x1a83   : > { %v13588_v30 = vpop.f32.mrb[220].mxu0 }
0x1a84   : > { %11587 = vmatmul.mubr.bf16.gmra.mrb[148].mxu1 %v19004_v8  ;;  %v13589_v17 = vpop.f32.mrb[221].mxu0  ;;  %v15913_v8 = vld [vmem:[#allocation19 + $0x85c] ss:$12 sps:$4 sm:$0xff]  }
0x1a85   : > { %11610 = vmatpush1.bf16.msra.mxu1 %v15902_v37  ;;  %11629 = vmatprep.mubr.bf16.mxu1 %v18956_v2  ;;  %v13590_v25 = vadd.f32 %v13589_v17, %v13588_v30  ;;  %v13591_v46 = vpop.f32.mrb[222].mxu0  ;;  %v15925_v37 = vld [vmem:[#allocation19 + $0x8bc] ss:$12 sps:$4 sm:$0xff]   ;;  %v15923_v17 = vld [vmem:[#allocation19 + $0x8b8] ss:$12 sps:$4 sm:$0xff]  }
0x1a86   : > { %11611 = vmatprep.subr.bf16.mxu1 %v15907_v31  ;;  %v13592_v3 = vpop.f32.mrb[223].mxu0 }
0x1a87   : > { %v19099_v50 = vadd.f32 %v13590_v25, %v19064_v48  ;;  %v13593_v58 = vadd.f32 %v13592_v3, %v13591_v46 }
0x1a89   : > { %v19102_v4 = vadd.f32 %v13593_v58, %v19066_v18  ;;  %11612 = vmatpush1.bf16.msra.mxu1 %v15905_v0  ;;  %v15914_v18 = vld [vmem:[#allocation19 + $0x870] ss:$12 sps:$4 sm:$0xff]   ;;  %v15928_v0 = vld [vmem:[#allocation19 + $0x8d4] ss:$12 sps:$4 sm:$0xff]  }
0x1a8a   : > { %11613 = vmatprep.subr.bf16.mxu1 %v15910_v51 }
0x1a8b   : > { %v13594_v49 = vpop.f32.mrb[224].mxu0 }
0x1a8c   : > { %v13595_v16 = vpop.f32.mrb[225].mxu0 }
0x1a8d   : > { %11614 = vmatpush1.bf16.msra.mxu1 %v15908_v59  ;;  %v13596_v2 = vadd.f32 %v13595_v16, %v13594_v49  ;;  %v13597_v27 = vpop.f32.mrb[226].mxu0  ;;  %v15931_v59 = vld [vmem:[#allocation19 + $0x8ec] ss:$12 sps:$4 sm:$0xff]   ;;  %v15929_v16 = vld [vmem:[#allocation19 + $0x8e8] ss:$12 sps:$4 sm:$0xff]  }
0x1a8e   : > { %11615 = vmatprep.subr.bf16.mxu1 %v15913_v8  ;;  %v13598_v7 = vpop.f32.mrb[227].mxu0 }
0x1a8f   : > { %v11851_v48 = vadd.f32 %v13596_v2, %v19072_v19  ;;  %v13599_v6 = vadd.f32 %v13598_v7, %v13597_v27 }
0x1a91   : > { %v11854_v42 = vadd.f32 %v13599_v6, %v19074_v26  ;;  %11616 = vmatpush1.bf16.msra.mxu1 %v15911_v56  ;;  %v15920_v26 = vld [vmem:[#allocation19 + $0x8a0] ss:$12 sps:$4 sm:$0xff]  }
0x1a92   : > { %11617 = vmatprep.subr.bf16.mxu1 %v15916_v22 }
0x1a93   : > { %v13600_v61 = vpop.f32.mrb[228].mxu0 }
0x1a94   : > { %v13601_v23 = vpop.f32.mrb[229].mxu0 }
0x1a95   : > { %11618 = vmatpush1.bf16.msra.mxu1 %v15914_v18  ;;  %v13602_v38 = vadd.f32 %v13601_v23, %v13600_v61  ;;  %v13603_v24 = vpop.f32.mrb[230].mxu0 }
0x1a96   : > { %11619 = vmatprep.subr.bf16.mxu1 %v15919_v53  ;;  %v13604_v45 = vpop.f32.mrb[231].mxu0 }
0x1a97   : > { %v11859_v10 = vadd.f32 %v13602_v38, %v19080_v57  ;;  %v13605_v62 = vadd.f32 %v13604_v45, %v13603_v24  ;;  %v15926_v57 = vld [vmem:[#allocation19 + $0x8d0] ss:$12 sps:$4 sm:$0xff]  }
0x1a99   : > { %v11862_v19 = vadd.f32 %v13605_v62, %v19082_v9  ;;  %11620 = vmatpush1.bf16.msra.mxu1 %v15917_v63 }
0x1a9a   : > { %11621 = vmatprep.subr.bf16.mxu1 %v15922_v55 }
0x1a9c   : > { %v13622_v31 = vpop.f32.mrb[232].mxu0 }
0x1a9d   : > { %11622 = vmatpush1.bf16.msra.mxu1 %v15920_v26  ;;  %v13623_v30 = vpop.f32.mrb[233].mxu0 }
0x1a9e   : > { %v13624_v25 = vadd.f32 %v13623_v30, %v13622_v31  ;;  %v13625_v46 = vpop.f32.mrb[234].mxu0  ;;  %11623 = vmatprep.subr.bf16.mxu1 %v15925_v37 }
0x1a9f   : > { %v13626_v3 = vpop.f32.mrb[235].mxu0 }
0x1aa0   : > { %v11900_v51 = vadd.f32 %v13624_v25, %v19091_v43  ;;  %v13627_v58 = vadd.f32 %v13626_v3, %v13625_v46 }
0x1aa1   : > { %11624 = vmatpush1.bf16.msra.mxu1 %v15923_v17 }
0x1aa2   : > { %v11903_v9 = vadd.f32 %v13627_v58, %v19094_v28  ;;  %11625 = vmatprep.subr.bf16.mxu1 %v15928_v0 }
0x1aa4   : > { %v13628_v8 = vpop.f32.mrb[236].mxu0 }
0x1aa5   : > { %11626 = vmatpush1.bf16.msra.mxu1 %v15926_v57  ;;  %v13629_v49 = vpop.f32.mrb[237].mxu0 }
0x1aa6   : > { %v13630_v2 = vadd.f32 %v13629_v49, %v13628_v8  ;;  %v13631_v27 = vpop.f32.mrb[238].mxu0  ;;  %11627 = vmatprep.subr.bf16.mxu1 %v15931_v59 }
0x1aa7   : > { %v13632_v56 = vpop.f32.mrb[239].mxu0 }
0x1aa8   : > { %v11908_v7 = vadd.f32 %v13630_v2, %v19099_v50  ;;  %v13633_v22 = vadd.f32 %v13632_v56, %v13631_v27 }
0x1aa9   : > { %11628 = vmatpush1.bf16.msra.mxu1 %v15929_v16 }
0x1aaa   : > { %v11911_v43 = vadd.f32 %v13633_v22, %v19102_v4 }
0x1aac   : > { %11630 = vmatmul.mubr.bf16.vlgmr.msra.gmra.mrb[136].mxu1 %v18952_v39  ;;  %v13634_v6 = vpop.f32.mrb[240].mxu0 }
0x1aad   : > { %11639 = vmatprep.mubr.bf16.mxu1 %v18974_v34  ;;  %v13635_v28 = vpop.f32.mrb[241].mxu0 }
0x1aae   : > { %v13636_v18 = vadd.f32 %v13635_v28, %v13634_v6  ;;  %v13637_v53 = vpop.f32.mrb[242].mxu0 }
0x1aaf   : > { %v13638_v61 = vpop.f32.mrb[243].mxu0 }
0x1ab0   : > { %v11916_v23 = vadd.f32 %v13636_v18, %v11851_v48  ;;  %v13639_v38 = vadd.f32 %v13638_v61, %v13637_v53 }
0x1ab2   : > { %v11919_v24 = vadd.f32 %v13639_v38, %v11854_v42 }
0x1ab4   : > { %11640 = vmatmul.mubr.bf16.gmra.mrb[140].mxu1 %v18970_v14  ;;  %v13640_v63 = vpop.f32.mrb[244].mxu0 }
0x1ab5   : > { %11649 = vmatprep.mubr.bf16.mxu1 %v18992_v40  ;;  %v13641_v50 = vpop.f32.mrb[245].mxu0 }
0x1ab6   : > { %v13642_v45 = vadd.f32 %v13641_v50, %v13640_v63  ;;  %v13643_v4 = vpop.f32.mrb[246].mxu0 }
0x1ab7   : > { %v13644_v55 = vpop.f32.mrb[247].mxu0 }
0x1ab8   : > { %v11924_v39 = vadd.f32 %v13642_v45, %v11859_v10  ;;  %v13645_v62 = vadd.f32 %v13644_v55, %v13643_v4 }
0x1aba   : > { %v11927_v26 = vadd.f32 %v13645_v62, %v11862_v19 }
0x1abc   : > { %11650 = vmatmul.mubr.bf16.gmra.mrb[144].mxu1 %v18988_v5 }
0x1abd   : > { %11659 = vmatprep.mubr.bf16.mxu1 %v19010_v15 }
0x1ac4   : > { %11660 = vmatmul.mubr.bf16.gmra.mrb[148].mxu1 %v19006_v41 }
0x1adc   : > { %v13662_v34 = vpop.f32.mrb[248].mxu0 }
0x1add   : > { %v13663_v48 = vpop.f32.mrb[249].mxu0 }
0x1ade   : > { %v13664_v42 = vadd.f32 %v13663_v48, %v13662_v34  ;;  %v13665_v14 = vpop.f32.mrb[250].mxu0 }
0x1adf   : > { %v13666_v37 = vpop.f32.mrb[251].mxu0 }
0x1ae0   : > { %v11965_v31 = vadd.f32 %v13664_v42, %v11900_v51  ;;  %v13667_v40 = vadd.f32 %v13666_v37, %v13665_v14 }
0x1ae2   : > { %v11968_v30 = vadd.f32 %v13667_v40, %v11903_v9 }
0x1ae4   : > { %v13668_v17 = vpop.f32.mrb[252].mxu0 }
0x1ae5   : > { %v13669_v25 = vpop.f32.mrb[253].mxu0 }
0x1ae6   : > { %v13670_v46 = vadd.f32 %v13669_v25, %v13668_v17  ;;  %v13671_v10 = vpop.f32.mrb[254].mxu0 }
0x1ae7   : > { %v13672_v0 = vpop.f32.mrb[255].mxu0 }
0x1ae8   : > { %v11973_v19 = vadd.f32 %v13670_v46, %v11908_v7  ;;  %v13673_v3 = vadd.f32 %v13672_v0, %v13671_v10 }
0x1aea   : > { %v11976_v5 = vadd.f32 %v13673_v3, %v11911_v43 }
0x1aec   : > { %v13674_v58 = vpop.f32.mrb[0].mxu0 }
0x1aed   : > { %v13675_v15 = vpop.f32.mrb[1].mxu0 }
0x1aee   : > { %v13676_v57 = vadd.f32 %v13675_v15, %v13674_v58  ;;  %v13677_v41 = vpop.f32.mrb[2].mxu0 }
0x1aef   : > { %v13678_v59 = vpop.f32.mrb[3].mxu0 }
0x1af0   : > { %v11981_v8 = vadd.f32 %v13676_v57, %v11916_v23  ;;  %v13679_v49 = vadd.f32 %v13678_v59, %v13677_v41  ;;  %v9688_v41 = vrot.slane %v19038_v20, %v19324_v12 }
0x1af2   : > { %v11984_v16 = vadd.f32 %v13679_v49, %v11919_v24 }
0x1af4   : > { %v13680_v2 = vpop.f32.mrb[4].mxu0 }
0x1af5   : > { %v13681_v51 = vpop.f32.mrb[5].mxu0 }
0x1af6   : > { %v13682_v9 = vadd.f32 %v13681_v51, %v13680_v2  ;;  %v13683_v27 = vpop.f32.mrb[6].mxu0 }
0x1af7   : > { %v13684_v56 = vpop.f32.mrb[7].mxu0 }
0x1af8   : > { %v11989_v22 = vadd.f32 %v13682_v9, %v11924_v39  ;;  %v13685_v6 = vadd.f32 %v13684_v56, %v13683_v27 }
0x1afa   : > { %v11992_v28 = vadd.f32 %v13685_v6, %v11927_v26 }
0x1afc   : > { %v13702_v7 = vpop.f32.mrb[8].mxu0 }
0x1afd   : > { %v13703_v18 = vpop.f32.mrb[9].mxu0 }
0x1afe   : > { %v13704_v43 = vadd.f32 %v13703_v18, %v13702_v7  ;;  %v13705_v53 = vpop.f32.mrb[10].mxu0  ;;  %v19338_v18 = vld [vmem:[#allocation40_spill] sm:$0xff] }
0x1aff   : > { %v13706_v61 = vpop.f32.mrb[11].mxu0 }
0x1b00   : > { %v12030_v38 = vadd.f32 %v13704_v43, %v11965_v31  ;;  %v13707_v63 = vadd.f32 %v13706_v61, %v13705_v53  ;;  %v19339_v53 = vld [vmem:[#allocation36_spill] sm:$0xff]  ;;  %v19340_v61 = vld [vmem:[#allocation37_spill] sm:$0xff] }
0x1b02   : > { %v12062_v23 = vadd.f32 %v12030_v38, %v18227_v1  ;;  %v12033_v50 = vadd.f32 %v13707_v63, %v11968_v30 }
0x1b04   : > { %12086 = vst [vmem:[%s19122_s5 + $0x10] sm:$0xff] %v12062_v23  ;;  %v12065_v24 = vadd.f32 %v12033_v50, %v18236_v33  ;;  %v13708_v45 = vpop.f32.mrb[12].mxu0 }
0x1b05   : > { %v13709_v4 = vpop.f32.mrb[13].mxu0 }
0x1b06   : > { %12089 = vst [vmem:[%s19122_s5 + $0x28] sm:$0xff] %v12065_v24  ;;  %v13710_v55 = vadd.f32 %v13709_v4, %v13708_v45  ;;  %v13711_v39 = vpop.f32.mrb[14].mxu0  ;;  %v19341_v45 = vld [vmem:[#allocation38_spill] sm:$0xff] }
0x1b07   : > { %v13712_v62 = vpop.f32.mrb[15].mxu0 }
0x1b08   : > { %v12038_v26 = vadd.f32 %v13710_v55, %v11973_v19  ;;  %v13713_v1 = vadd.f32 %v13712_v62, %v13711_v39  ;;  %v19342_v62 = vld [vmem:[#allocation39_spill] sm:$0xff] }
0x1b0a   : > { %v12068_v34 = vadd.f32 %v12038_v26, %v18257_v11  ;;  %v12041_v48 = vadd.f32 %v13713_v1, %v11976_v5 }
0x1b0c   : > { %12092 = vst [vmem:[%s19122_s5 + $0x40] sm:$0xff] %v12068_v34  ;;  %v12071_v42 = vadd.f32 %v12041_v48, %v18270_v47  ;;  %v13714_v14 = vpop.f32.mrb[16].mxu0  ;;  %v19343_v34 = vld [vmem:[#allocation35_spill] sm:$0xff] }
0x1b0d   : > { %v13715_v37 = vpop.f32.mrb[17].mxu0 }
0x1b0e   : > { %12095 = vst [vmem:[%s19122_s5 + $0x58] sm:$0xff] %v12071_v42  ;;  %v13716_v33 = vadd.f32 %v13715_v37, %v13714_v14  ;;  %v13717_v31 = vpop.f32.mrb[18].mxu0  ;;  %v19344_v42 = vld [vmem:[#allocation33_spill] sm:$0xff] }
0x1b0f   : > { %v13718_v40 = vpop.f32.mrb[19].mxu0 }
0x1b10   : > { %v12046_v30 = vadd.f32 %v13716_v33, %v11981_v8  ;;  %v13719_v17 = vadd.f32 %v13718_v40, %v13717_v31 }
0x1b12   : > { %v12074_v25 = vadd.f32 %v12046_v30, %v18288_v36  ;;  %v12049_v46 = vadd.f32 %v13719_v17, %v11984_v16  ;;  %v19345_v17 = vld [vmem:[#allocation34_spill] sm:$0xff] }
0x1b14   : > { %12098 = vst [vmem:[%s19122_s5 + $0x70] sm:$0xff] %v12074_v25  ;;  %v12077_v11 = vadd.f32 %v12049_v46, %v18296_v44  ;;  %v13720_v10 = vpop.f32.mrb[20].mxu0  ;;  %v9684_v44 = vrot.slane %v19038_v20, %v19323_v13 }
0x1b15   : > { %v13721_v0 = vpop.f32.mrb[21].mxu0 }
0x1b16   : > { %12101 = vst [vmem:[%s19122_s5 + $0x88] sm:$0xff] %v12077_v11  ;;  %v13722_v47 = vadd.f32 %v13721_v0, %v13720_v10  ;;  %v13723_v19 = vpop.f32.mrb[22].mxu0  ;;  %v19346_v10 = vld [vmem:[#allocation41_spill] sm:$0xff] }
0x1b17   : > { %v13724_v3 = vpop.f32.mrb[23].mxu0 }
0x1b18   : > { %v12054_v5 = vadd.f32 %v13722_v47, %v11989_v22  ;;  %v13725_v58 = vadd.f32 %v13724_v3, %v13723_v19  ;;  %v19347_v19 = vld [vmem:[#allocation42_spill] sm:$0xff] }
0x1b1a   : > { %v12080_v15 = vadd.f32 %v12054_v5, %v18318_v60  ;;  %v12057_v57 = vadd.f32 %v13725_v58, %v11992_v28  ;;  %v19349_v5 = vld [vmem:[#allocation43_spill] sm:$0xff] }
0x1b1c   : > { %12104 = vst [vmem:[%s19122_s5 + $0xa0] sm:$0xff] %v12080_v15  ;;  %v12083_v36 = vadd.f32 %v12057_v57, %v18326_v52 }
0x1b1e   : > { %12107 = vst [vmem:[%s19122_s5 + $0xb8] sm:$0xff] %v12083_v36 }
0x1b7f   : > { %v11631_v59 = vpop.f32.mrb[136].mxu1 }
0x1b80   : > { %v14150_v8 = vadd.f32 %v11631_v59, %v9684_v44  ;;  %v11633_v49 = vpop.f32.mrb[137].mxu1 }
0x1b81   : > { %v14151_v16 = vadd.f32 %v11633_v49, %v9688_v41  ;;  %v11635_v60 = vpop.f32.mrb[138].mxu1 }
0x1b82   : > { %v12060_v2 = vadd.f32 %v14150_v8, %v18215_v35  ;;  %v14152_v51 = vadd.f32 %v11635_v60, %v9684_v44  ;;  %v11637_v9 = vpop.f32.mrb[139].mxu1 }
0x1b83   : > { %v12061_v52 = vadd.f32 %v14151_v16, %v18220_v54  ;;  %v14153_v27 = vadd.f32 %v11637_v9, %v9688_v41 }
0x1b84   : > { %12084 = vst [vmem:[%s19122_s5] sm:$0xff] %v12060_v2  ;;  %v12063_v13 = vadd.f32 %v14152_v51, %v18224_v32 }
0x1b85   : > { %12085 = vst [vmem:[%s19122_s5 + $0x8] sm:$0xff] %v12061_v52  ;;  %v12064_v12 = vadd.f32 %v14153_v27, %v18231_v29 }
0x1b86   : > { %12087 = vst [vmem:[%s19122_s5 + $0x18] sm:$0xff] %v12063_v13 }
0x1b87   : > { %12088 = vst [vmem:[%s19122_s5 + $0x20] sm:$0xff] %v12064_v12  ;;  %v11641_v20 = vpop.f32.mrb[140].mxu1 }
0x1b88   : > { %v14154_v56 = vadd.f32 %v11641_v20, %v9684_v44  ;;  %v11643_v35 = vpop.f32.mrb[141].mxu1 }
0x1b89   : > { %v14155_v22 = vadd.f32 %v11643_v35, %v9688_v41  ;;  %v11645_v6 = vpop.f32.mrb[142].mxu1 }
0x1b8a   : > { %v12066_v54 = vadd.f32 %v14154_v56, %v18246_v21  ;;  %v14156_v28 = vadd.f32 %v11645_v6, %v9684_v44  ;;  %v11647_v7 = vpop.f32.mrb[143].mxu1 }
0x1b8b   : > { %v12067_v43 = vadd.f32 %v14155_v22, %v19338_v18  ;;  %v14157_v32 = vadd.f32 %v11647_v7, %v9688_v41 }
0x1b8c   : > { %12090 = vst [vmem:[%s19122_s5 + $0x30] sm:$0xff] %v12066_v54  ;;  %v12069_v29 = vadd.f32 %v14156_v28, %v19339_v53 }
0x1b8d   : > { %12091 = vst [vmem:[%s19122_s5 + $0x38] sm:$0xff] %v12067_v43  ;;  %v12070_v38 = vadd.f32 %v14157_v32, %v19340_v61 }
0x1b8e   : > { %12093 = vst [vmem:[%s19122_s5 + $0x48] sm:$0xff] %v12069_v29 }
0x1b8f   : > { %12094 = vst [vmem:[%s19122_s5 + $0x50] sm:$0xff] %v12070_v38  ;;  %v11651_v63 = vpop.f32.mrb[144].mxu1 }
0x1b90   : > { %v14158_v23 = vadd.f32 %v11651_v63, %v9684_v44  ;;  %v11653_v21 = vpop.f32.mrb[145].mxu1 }
0x1b91   : > { %v14159_v50 = vadd.f32 %v11653_v21, %v9688_v41  ;;  %v11655_v24 = vpop.f32.mrb[146].mxu1 }
0x1b92   : > { %v12072_v4 = vadd.f32 %v14158_v23, %v19341_v45  ;;  %v14160_v55 = vadd.f32 %v11655_v24, %v9684_v44  ;;  %v11657_v39 = vpop.f32.mrb[147].mxu1 }
0x1b93   : > { %v12073_v26 = vadd.f32 %v14159_v50, %v19342_v62  ;;  %v14161_v1 = vadd.f32 %v11657_v39, %v9688_v41 }
0x1b94   : > { %12096 = vst [vmem:[%s19122_s5 + $0x60] sm:$0xff] %v12072_v4  ;;  %v12075_v48 = vadd.f32 %v14160_v55, %v19343_v34 }
0x1b95   : > { %12097 = vst [vmem:[%s19122_s5 + $0x68] sm:$0xff] %v12073_v26  ;;  %v12076_v14 = vadd.f32 %v14161_v1, %v19344_v42 }
0x1b96   : > { %12099 = vst [vmem:[%s19122_s5 + $0x78] sm:$0xff] %v12075_v48 }
0x1b97   : > { %12100 = vst [vmem:[%s19122_s5 + $0x80] sm:$0xff] %v12076_v14  ;;  %v11661_v37 = vpop.f32.mrb[148].mxu1 }
0x1b98   : > { %v14162_v33 = vadd.f32 %v11661_v37, %v9684_v44  ;;  %v11663_v31 = vpop.f32.mrb[149].mxu1 }
0x1b99   : > { %v14163_v40 = vadd.f32 %v11663_v31, %v9688_v41  ;;  %v11665_v30 = vpop.f32.mrb[150].mxu1 }
0x1b9a   : > { %v12078_v25 = vadd.f32 %v14162_v33, %v19345_v17  ;;  %v14164_v46 = vadd.f32 %v11665_v30, %v9684_v44  ;;  %v11667_v11 = vpop.f32.mrb[151].mxu1 }
0x1b9b   : > { %v12079_v0 = vadd.f32 %v14163_v40, %v19346_v10  ;;  %v14165_v47 = vadd.f32 %v11667_v11, %v9688_v41 }
0x1b9c   : > { %12102 = vst [vmem:[%s19122_s5 + $0x90] sm:$0xff] %v12078_v25  ;;  %v12081_v3 = vadd.f32 %v14164_v46, %v19347_v19 }
0x1b9d   : > { %12103 = vst [vmem:[%s19122_s5 + $0x98] sm:$0xff] %v12079_v0  ;;  %v12082_v58 = vadd.f32 %v14165_v47, %v19349_v5 }
0x1b9e   : > { %12105 = vst [vmem:[%s19122_s5 + $0xa8] sm:$0xff] %v12081_v3 }
0x1b9f   : > { %12106 = vst [vmem:[%s19122_s5 + $0xb0] sm:$0xff] %v12082_v58 }
0x1ba0   : > { %16549 = shalt.err (!%p16546_p9)
}
0x1ba1   : > { %s16550_s14 = scalar_lea.hbm %s19176_s27, 3072  ;;  %s16554_s19 = scalar_lea.hbm %s19348_s26, 6144 }
0x1ba2   : > { %p16551_p7 = scmp.ne.s32.totalorder %s19176_s27, %s16550_s14  ;;  %p16555_p13 = scmp.lt.u32.totalorder %s19176_s27, %s19348_s26 }
0x1ba3   : > { %p16556_p1 = scmp.lt.u32.totalorder %s16554_s19, %s16550_s14  ;;  %p16558_p2 = scmp.lt.u32.totalorder %s16550_s14, %s19176_s27 }
0x1ba4   : > { %p16552_p10 = pnand %p16551_p7, %p19350_p8 }
0x1ba5   : > { %p16557_p3 = por %p16556_p1, %p16555_p13 }
0x1ba6   : > { %p16553_p4 = pneg %p16552_p10 }
0x1ba7   : > { %p16559_p6 = por %p16558_p2, %p16557_p3 }
0x1ba9   : > { %p16560_p11 = pnand %p16559_p6, %p16553_p4 }
0x1bab   : > { %16563 = shalt.err (!%p16560_p11)
}
0x1bac   : > { %s16652_s16 = smov 384   ;;  %s16653_s30 = smov 24  }
0x1bad   : > { %14584 = dma.vmem_to_hbm [thread:$0]  (%p19350_p8), %s19180_s29, 3072, %s19176_s27, %s12109_s25, %s16652_s16, %s16652_s16, %s16653_s30  }
0x1bae PF: > { %s12137_s15 = sand.u32 1, %s16614_s21   ;;  %p19351_p12 = scmp.ne.s32.totalorder %s19291_s2, 0 }
0x1baf   : > { %p19352_p0 = scmp.ge.s32.totalorder %s16626_s24, 2  ;;  %s12138_s18 = scalar_lea.sflag [#allocation4], %s12137_s15 }
0x1bb1   : > { %p14625_p5 = pnand %p19352_p0, %p19351_p12 }
0x1bb3   : > { %16609 = dma.done.wait (!%p14625_p5), %s12138_s18, 3072  }
0x1bb4   : > { %16611 = vsyncadd (!%p14625_p5), %s12138_s18, 4294964224  ;;  %p31_p9 = scmp.ge.s32.totalorder %s16993_s13, 4   ;;  %s19353_s21 = smov %s16618_s22 }
0x1bb5   : > { %s19354_s22 = smov %s16622_s23  ;;  %s19355_s23 = smov %s17005_s20 }
0x1bb6   : > { %s19356_s24 = smov %s16993_s13  ;;  %33 = sbr.rel (!%p31_p9) target bundleno = 17 (0x11), region = 157 }
0x1bbd   :  { %12143 = vsyncpa [#allocation3], 1 }
0x1bbe   :  { %12145 = vsyncpa [#allocation3 + $0x1], 1 }
0x1bbf   :  { %12146 = vsyncpa [#allocation6], 1 }
0x1bc0   :  { %12147 = vsyncpa [#allocation9], 1 }
0x1bc1   :  { %12148 = vsyncpa [#allocation12], 1 }
0x1bc2   :  { %12149 = vsyncpa [#allocation15], 1 }
0x1bc3   :  { %12150 = vsyncpa [#allocation18], 1 }
0x1bc4   :  { %12151 = vsyncpa [#allocation21], 1 }
0x1bc5   :  { %12152 = vsyncpa [#allocation4], 1 }
0x1bc6   :  { %12154 = vsyncpa [#allocation4 + $0x1], 1 }

</bundles_post_ra>
